<compile_context>
chip_gen: v7x
topology: tpu7x:2x2x1
jax: 0.10.0
libtpu: 0.0.40
codegen_flags: <defaults>
</compile_context>

<pallas_src>
import functools
import inspect
import math

import jax
import jax.numpy as jnp
from jax.experimental import pallas as pl
from jax.experimental.pallas import tpu as pltpu


# ----------------------------------------------------------------------------
# Kernel
# ----------------------------------------------------------------------------
def _vit_block_kernel(*refs, num_heads, d_k, q_tile, s_chunk, eps, project_out):
    """One (batch, query-tile) grid step; channel-major layout.

    refs (project_out=True):
      x_ref   : [1, D, S]  compute-dtype tokens of this batch element
      wq_ref  : [D, D]     bf16 Wq^T, pre-scaled by 1/sqrt(d_k)
      wkv_ref : [2D, D]    bf16 fused [Wk ; Wv]^T
      wo_ref  : [D, D]     bf16 Wo^T
      pv_ref  : [D, 3]     f32  [gamma | beta | b_out]
      o_ref   : [1, D, tq]
      ln_scr  : [D, S]  bf16   LayerNorm(x)^T      (persists across q tiles)
      kv_scr  : [2D, S] bf16   fused K|V ^T        (persists across q tiles)
      acc_scr : [D, tq] f32    per-tile context accumulator
    (project_out=False drops wo_ref.)
    """
    if project_out:
        (x_ref, wq_ref, wkv_ref, wo_ref, pv_ref,
         o_ref, ln_scr, kv_scr, acc_scr) = refs
    else:
        (x_ref, wq_ref, wkv_ref, pv_ref,
         o_ref, ln_scr, kv_scr, acc_scr) = refs
        wo_ref = None

    dim = num_heads * d_k
    seq = ln_scr.shape[1]
    qi = pl.program_id(1)
    cdt = ln_scr.dtype                                   # MXU compute dtype

    # ---- once per batch element: LayerNorm + fused K|V projection ----------
    # Chunked over S so the transient f32 slabs stay a few MiB regardless of S.
    @pl.when(qi == 0)
    def _():
        g = pv_ref[:, 0:1]                               # [D, 1] f32
        bt = pv_ref[:, 1:2]                              # [D, 1] f32
        wkv = wkv_ref[...]                               # [2D, D] bf16 (hoisted)

        def ln_kv_chunk(c_lo):
            xt = x_ref[0, :, pl.ds(c_lo, s_chunk)].astype(jnp.float32)  # [D, cs]
            # single-pass stats: mean and E[x^2] together (one XLU sweep each)
            mu = jnp.mean(xt, axis=0, keepdims=True)                    # [1, cs]
            ex2 = jnp.mean(xt * xt, axis=0, keepdims=True)
            var = ex2 - mu * mu
            ln = (xt - mu) * jax.lax.rsqrt(var + eps) * g + bt
            ln_c = ln.astype(cdt)
            ln_scr[:, pl.ds(c_lo, s_chunk)] = ln_c
            kv = jnp.dot(wkv, ln_c, preferred_element_type=jnp.float32)  # [2D, cs]
            kv_scr[:, pl.ds(c_lo, s_chunk)] = kv.astype(cdt)

        n_chunks = seq // s_chunk
        if n_chunks == 1:
            ln_kv_chunk(0)
        else:
            @pl.loop(0, n_chunks)
            def _(c):
                ln_kv_chunk(pl.multiple_of(c * s_chunk, 128))

    # ---- per query tile -----------------------------------------------------
    q_lo = qi * q_tile
    if q_tile % 128 == 0:
        q_lo = pl.multiple_of(q_lo, 128)

    ln_q = ln_scr[:, pl.ds(q_lo, q_tile)]                 # [D, tq] bf16
    qt = jnp.dot(wq_ref[...], ln_q,
                 preferred_element_type=jnp.float32).astype(cdt)   # [D, tq]

    for h in range(num_heads):          # static unroll; sublane-aligned head rows
        lo = h * d_k
        qt_h = qt[lo:lo + d_k, :]                         # [dk, tq]
        kt_h = kv_scr[lo:lo + d_k, :]                     # [dk, S]
        vt_h = kv_scr[dim + lo:dim + lo + d_k, :]         # [dk, S]

        # sT[k, q] = sum_d kT[d, k] qT[d, q]   (trans_a on the MXU; tq lane-dense)
        st = jax.lax.dot_general(kt_h, qt_h, (((0,), (0,)), ((), ())),
                                 preferred_element_type=jnp.float32)   # [S, tq]
        st = st - jnp.max(st, axis=0, keepdims=True)
        pt = jnp.exp(st)                                   # [S, tq]
        inv_r = pl.reciprocal(jnp.sum(pt, axis=0, keepdims=True),
                              approx=True)                 # [1, tq] (EUP)
        # TODO(synk): attention dropout (train mode) would go here.

        # ctxT[d, q] = sum_k vT[d, k] pT[k, q]; softmax denom folded in here,
        # so the normalizing multiply touches [dk, tq] instead of [tq, S].
        ctx_h = jax.lax.dot_general(vt_h, pt.astype(cdt), (((1,), (0,)), ((), ())),
                                    preferred_element_type=jnp.float32)  # [dk, tq]
        acc_scr[lo:lo + d_k, :] = ctx_h * inv_r

    res = x_ref[0, :, pl.ds(q_lo, q_tile)].astype(jnp.float32)   # residual
    if project_out:
        ctx = acc_scr[...].astype(cdt)                     # [D, tq]
        out = jnp.dot(wo_ref[...], ctx,
                      preferred_element_type=jnp.float32)  # [D, tq]
        out = out + pv_ref[:, 2:3]                         # output bias
    else:
        out = acc_scr[...]                                 # to_out is Identity
    o_ref[0] = (out + res).astype(o_ref.dtype)


# ----------------------------------------------------------------------------
# Host-side helpers
# ----------------------------------------------------------------------------
def _blockspec_supports_pipeline_mode():
    try:
        return ("pipeline_mode" in inspect.signature(pl.BlockSpec).parameters
                and hasattr(pl, "Buffered"))
    except Exception:
        return False


_HAS_PIPELINE_MODE = _blockspec_supports_pipeline_mode()


def _vmem_capacity_bytes(default=64 << 20):
    try:
        return int(pltpu.get_tpu_info().vmem_capacity_bytes)
    except Exception:
        return default      # conservative (v7x-sized) fallback


def _pick_q_tile(seq_len, target):
    """Largest 128-multiple divisor of seq_len <= target (lane-dense stores,
    MXU-aligned N); falls back to the full sequence for ragged seq_len."""
    if seq_len % 128 == 0:
        best, t = 128, 128
        while t <= min(target, seq_len):
            if seq_len % t == 0:
                best = t
            t += 128
        return best
    return seq_len


def _pick_s_chunk(seq_len, target=512):
    """128-multiple chunk width for the LN/KV prolog (bounds f32 transients)."""
    if seq_len <= target or seq_len % 128 != 0:
        return seq_len
    best, t = None, 128
    while t <= target:
        if seq_len % t == 0:
            best = t
        t += 128
    return best if best is not None else seq_len


def _estimate_vmem_bytes(dim, seq, tq, project_out, cdt_bytes, out_bytes,
                         single_buffer_consts, single_buffer_x):
    nx = 1 if single_buffer_x else 2
    nc = 1 if single_buffer_consts else 2
    n_w = 4 if project_out else 3                  # Wq + Wkv(2) [+ Wo] in D^2 units
    est = 3 * dim * seq * cdt_bytes                # ln_scr + kv_scr (persistent)
    est += dim * tq * 4                            # context accumulator
    est += nx * dim * seq * cdt_bytes              # x stream buffers
    est += nc * n_w * dim * dim * cdt_bytes        # weight buffers
    est += nc * dim * 128 * 4                      # packed gamma|beta|bias (lane pad)
    est += 2 * dim * tq * out_bytes                # output buffers
    est += 3 * seq * tq * 4 + 2 * dim * tq * 4     # per-head score slabs + qt
    return est


def _build_call(B, dim, seq, tq, nq, out_dtype, compute_dtype, kernel,
                project_out, single_buffer_consts, single_buffer_x, vmem_limit):
    const_idx = lambda b, q: (0, 0)

    def spec(shape, index_map, single_buffer):
        if single_buffer:
            # constant-index (or batch-constant) block: one VMEM buffer is enough
            return pl.BlockSpec(shape, index_map, pipeline_mode=pl.Buffered(1))
        return pl.BlockSpec(shape, index_map)

    in_specs = [
        spec((1, dim, seq), lambda b, q: (b, 0, 0), single_buffer_x),   # x (bf16)
        spec((dim, dim), const_idx, single_buffer_consts),              # Wq^T
        spec((2 * dim, dim), const_idx, single_buffer_consts),          # [Wk|Wv]^T
    ]
    if project_out:
        in_specs.append(spec((dim, dim), const_idx, single_buffer_consts))  # Wo^T
    in_specs.append(spec((dim, 3), const_idx, single_buffer_consts))   # gamma|beta|b

    return pl.pallas_call(
        kernel,
        out_shape=jax.ShapeDtypeStruct((B, dim, seq), out_dtype),
        grid_spec=pltpu.PrefetchScalarGridSpec(
            num_scalar_prefetch=0,
            grid=(B, nq),
            in_specs=in_specs,
            out_specs=pl.BlockSpec((1, dim, tq), lambda b, q: (b, 0, q)),
            scratch_shapes=[
                pltpu.VMEM((dim, seq), compute_dtype),        # LayerNorm(x)^T
                pltpu.VMEM((2 * dim, seq), compute_dtype),    # fused K|V ^T
                pltpu.VMEM((dim, tq), jnp.float32),           # context accumulator
            ],
        ),
        compiler_params=pltpu.CompilerParams(
            dimension_semantics=("parallel", "arbitrary"),
            vmem_limit_bytes=vmem_limit,
        ),
    )


def transformer_block_vit(x, params, *, num_heads, eps=1e-5,
                          compute_dtype=jnp.bfloat16):
    """Forward of TransformerBlock_ViT (eval mode).  x: [B, C, H, W] -> [B, C, H, W].

    params = (ln_gamma [D], ln_beta [D], w_qkv [D, 3D], w_out [D, D], b_out [D])
    with weights in "x @ W" layout (i.e. torch weight transposed).
    """
    B, C, H, W = x.shape
    dim, seq = C, H * W
    assert dim % num_heads == 0, "dim must be divisible by num_heads"
    d_k = dim // num_heads
    project_out = num_heads != 1          # PyTorch: heads==1 -> to_out = Identity

    gamma, beta, w_qkv, w_out, b_out = params
    scale = d_k ** -0.5
    wq_t = (w_qkv[:, :dim] * scale).T.astype(compute_dtype)    # [D, D], scale folded
    wkv_t = w_qkv[:, dim:].T.astype(compute_dtype)             # [2D, D] fused K|V
    bias_col = b_out if project_out else jnp.zeros((dim,), jnp.float32)
    pvec = jnp.stack([gamma.astype(jnp.float32),
                      beta.astype(jnp.float32),
                      bias_col.astype(jnp.float32)], axis=1)   # [D, 3] packed

    # Channel-major tokens (free view) pre-cast to the compute dtype: this is
    # the dominant HBM stream, halved vs streaming f32.
    x_cm = x.reshape(B, dim, seq).astype(compute_dtype)

    vmem_cap = _vmem_capacity_bytes()
    tq_target = 512 if vmem_cap >= (100 << 20) else 256        # bigger tiles on v5e/v6e
    tq = _pick_q_tile(seq, tq_target)
    nq = seq // tq
    s_chunk = _pick_s_chunk(seq)

    kernel = functools.partial(
        _vit_block_kernel, num_heads=num_heads, d_k=d_k, q_tile=tq,
        s_chunk=s_chunk, eps=eps, project_out=project_out)

    operands = [x_cm, wq_t, wkv_t]
    if project_out:
        operands.append(w_out.T.astype(compute_dtype))         # Wo^T
    operands.append(pvec)

    cdt_bytes = jnp.dtype(compute_dtype).itemsize
    out_bytes = jnp.dtype(x.dtype).itemsize

    # Try single-buffered constant blocks first (VMEM saving); fall back to
    # default double-buffering if this Pallas build rejects pl.Buffered(1).
    attempts = (True, False) if _HAS_PIPELINE_MODE else (False,)
    out_cm = None
    for use_single_buf in attempts:
        sb_x = False
        est = _estimate_vmem_bytes(dim, seq, tq, project_out, cdt_bytes,
                                   out_bytes, use_single_buf, sb_x)
        if use_single_buf and est > (vmem_cap * 4) // 5:
            # Under pressure, also single-buffer the batch-constant x stream
            # (one exposed DMA per batch element, amortized over nq tiles).
            sb_x = True
            est = _estimate_vmem_bytes(dim, seq, tq, project_out, cdt_bytes,
                                       out_bytes, use_single_buf, sb_x)
        vmem_limit = int(min(max(est * 5 // 4 + (4 << 20), 32 << 20),
                             min(vmem_cap, 128 << 20)))
        call = _build_call(B, dim, seq, tq, nq, x.dtype, compute_dtype, kernel,
                           project_out, use_single_buf, sb_x, vmem_limit)
        try:
            out_cm = call(*operands)
            if hasattr(out_cm, "block_until_ready"):
                out_cm.block_until_ready()
            break
        except Exception:
            if not use_single_buf:
                raise

    return out_cm.reshape(B, C, H, W)


# ----------------------------------------------------------------------------
# Pure-JAX f32 reference of the PyTorch forward (eval mode)
# ----------------------------------------------------------------------------
def _reference(x, params, *, num_heads, eps=1e-5):
    gamma, beta, w_qkv, w_out, b_out = params
    B, C, H, W = x.shape
    dim, seq = C, H * W
    d_k = dim // num_heads

    xs = x.reshape(B, dim, seq).transpose(0, 2, 1)             # [B, S, D]
    mu = xs.mean(-1, keepdims=True)
    var = ((xs - mu) ** 2).mean(-1, keepdims=True)
    ln = (xs - mu) / jnp.sqrt(var + eps) * gamma + beta

    qkv = ln @ w_qkv
    q, k, v = jnp.split(qkv, 3, axis=-1)

    def heads(t):
        return t.reshape(B, seq, num_heads, d_k).transpose(0, 2, 1, 3)

    qh, kh, vh = heads(q), heads(k), heads(v)
    dots = jnp.einsum("bhqd,bhkd->bhqk", qh, kh) * (d_k ** -0.5)
    attn = jax.nn.softmax(dots, axis=-1)
    o = jnp.einsum("bhqk,bhkd->bhqd", attn, vh)
    o = o.transpose(0, 2, 1, 3).reshape(B, seq, dim)
    if num_heads != 1:
        o = o @ w_out + b_out
    y = o + xs
    return y.transpose(0, 2, 1).reshape(B, C, H, W)


if __name__ == "__main__":
    B, C, Hs, Ws, HEADS = 2, 32, 16, 16, 4
    D = C

    rng = jax.random.PRNGKey(0)
    ks = jax.random.split(rng, 6)

    x = jax.random.normal(ks[0], (B, C, Hs, Ws), dtype=jnp.float32)

    lim = 1.0 / math.sqrt(D)
    params = (
        1.0 + 0.1 * jax.random.normal(ks[1], (D,), dtype=jnp.float32),   # LN weight
        0.1 * jax.random.normal(ks[2], (D,), dtype=jnp.float32),         # LN bias
        jax.random.uniform(ks[3], (D, 3 * D), jnp.float32, -lim, lim),   # to_qkv (x @ W)
        jax.random.uniform(ks[4], (D, D), jnp.float32, -lim, lim),       # to_out W
        jax.random.uniform(ks[5], (D,), jnp.float32, -lim, lim),         # to_out bias
    )

    out = transformer_block_vit(x, params, num_heads=HEADS)
    out = jax.block_until_ready(out)

    ref = _reference(x, params, num_heads=HEADS)
    assert out.shape == x.shape
    err = float(jnp.max(jnp.abs(out - ref)))
    assert err < 5e-2, f"mismatch vs JAX reference (max abs err = {err})"

    print("KERNEL_OK")
</pallas_src>

<mosaic_0001>
module attributes {stable_mosaic.version = 11 : i64} {
  func.func @_vit_block_kernel(%arg0: i32, %arg1: i32, %arg2: memref<1x32x256xbf16, #tpu.memory_space<vmem>>, %arg3: memref<32x32xbf16, #tpu.memory_space<vmem>>, %arg4: memref<64x32xbf16, #tpu.memory_space<vmem>>, %arg5: memref<32x32xbf16, #tpu.memory_space<vmem>>, %arg6: memref<32x3xf32, #tpu.memory_space<vmem>>, %arg7: memref<1x32x256xf32, #tpu.memory_space<vmem>>, %arg8: memref<32x256xbf16, #tpu.memory_space<vmem>>, %arg9: memref<64x256xbf16, #tpu.memory_space<vmem>>, %arg10: memref<32x256xf32, #tpu.memory_space<vmem>>) attributes {dimension_semantics = [#tpu.dimension_semantics<parallel>, #tpu.dimension_semantics<arbitrary>], iteration_bounds = array<i64: 2, 1>, scalar_prefetch = 0 : i64, scratch_operands = 3 : i64, tpu.core_type = #tpu.core_type<tc>, window_params = [{transform_indices = @transform_0, window_bounds = array<i64: 1, 32, 256>}, {pipeline_mode = #tpu.pipeline_mode<synchronous>, transform_indices = @transform_1, window_bounds = array<i64: 32, 32>}, {pipeline_mode = #tpu.pipeline_mode<synchronous>, transform_indices = @transform_2, window_bounds = array<i64: 64, 32>}, {pipeline_mode = #tpu.pipeline_mode<synchronous>, transform_indices = @transform_3, window_bounds = array<i64: 32, 32>}, {pipeline_mode = #tpu.pipeline_mode<synchronous>, transform_indices = @transform_4, window_bounds = array<i64: 32, 3>}, {transform_indices = @transform_5, window_bounds = array<i64: 1, 32, 256>}]} {
    %c0_i32 = arith.constant 0 : i32
    %0 = arith.cmpi eq, %arg1, %c0_i32 : i32
    %1 = arith.extui %0 : i1 to i32
    %c0_i32_0 = arith.constant 0 : i32
    %2 = arith.cmpi ne, %1, %c0_i32_0 : i32
    scf.if %2 {
      %c0_47 = arith.constant 0 : index
      %c0_48 = arith.constant 0 : index
      %93 = vector.load %arg6[%c0_47, %c0_48] : memref<32x3xf32, #tpu.memory_space<vmem>>, vector<32x1xf32>
      %c0_49 = arith.constant 0 : index
      %c1 = arith.constant 1 : index
      %94 = vector.load %arg6[%c0_49, %c1] : memref<32x3xf32, #tpu.memory_space<vmem>>, vector<32x1xf32>
      %c0_50 = arith.constant 0 : index
      %c0_51 = arith.constant 0 : index
      %95 = vector.load %arg4[%c0_50, %c0_51] : memref<64x32xbf16, #tpu.memory_space<vmem>>, vector<64x32xbf16>
      %c0_52 = arith.constant 0 : index
      %c0_53 = arith.constant 0 : index
      %c0_54 = arith.constant 0 : index
      %96 = vector.load %arg2[%c0_52, %c0_53, %c0_54] : memref<1x32x256xbf16, #tpu.memory_space<vmem>>, vector<1x32x256xbf16>
      %97 = vector.shape_cast %96 : vector<1x32x256xbf16> to vector<32x256xbf16>
      %98 = arith.extf %97 : vector<32x256xbf16> to vector<32x256xf32>
      %cst_55 = arith.constant dense<0.000000e+00> : vector<256xf32>
      %99 = vector.multi_reduction <add>, %98, %cst_55 [0] : vector<32x256xf32> to vector<256xf32>
      %100 = vector.shape_cast %99 : vector<256xf32> to vector<1x256xf32>
      %cst_56 = arith.constant 3.200000e+01 : f32
      %101 = vector.broadcast %cst_56 : f32 to vector<1x256xf32>
      %102 = arith.divf %100, %101 : vector<1x256xf32>
      %103 = arith.mulf %98, %98 : vector<32x256xf32>
      %cst_57 = arith.constant dense<0.000000e+00> : vector<256xf32>
      %104 = vector.multi_reduction <add>, %103, %cst_57 [0] : vector<32x256xf32> to vector<256xf32>
      %105 = vector.shape_cast %104 : vector<256xf32> to vector<1x256xf32>
      %cst_58 = arith.constant 3.200000e+01 : f32
      %106 = vector.broadcast %cst_58 : f32 to vector<1x256xf32>
      %107 = arith.divf %105, %106 : vector<1x256xf32>
      %108 = arith.mulf %102, %102 : vector<1x256xf32>
      %109 = arith.subf %107, %108 : vector<1x256xf32>
      %110 = vector.broadcast %102 : vector<1x256xf32> to vector<32x256xf32>
      %111 = arith.subf %98, %110 : vector<32x256xf32>
      %cst_59 = arith.constant 9.99999974E-6 : f32
      %112 = vector.broadcast %cst_59 : f32 to vector<1x256xf32>
      %113 = arith.addf %109, %112 : vector<1x256xf32>
      %114 = math.rsqrt %113 : vector<1x256xf32>
      %115 = vector.broadcast %114 : vector<1x256xf32> to vector<32x256xf32>
      %116 = arith.mulf %111, %115 : vector<32x256xf32>
      %117 = vector.broadcast %93 : vector<32x1xf32> to vector<32x256xf32>
      %118 = arith.mulf %116, %117 : vector<32x256xf32>
      %119 = vector.broadcast %94 : vector<32x1xf32> to vector<32x256xf32>
      %120 = arith.addf %118, %119 : vector<32x256xf32>
      %121 = arith.truncf %120 : vector<32x256xf32> to vector<32x256xbf16>
      %c0_60 = arith.constant 0 : index
      %c0_61 = arith.constant 0 : index
      %122 = vector.load %arg8[%c0_60, %c0_61] : memref<32x256xbf16, #tpu.memory_space<vmem>>, vector<32x256xbf16>
      tpu.vector_store %arg8[%c0_60, %c0_61], %121 {strides = array<i32>} : memref<32x256xbf16, #tpu.memory_space<vmem>>, vector<32x256xbf16>,
      %cst_62 = arith.constant dense<0.000000e+00> : vector<64x256xf32>
      %123 = tpu.matmul %95, %121, %cst_62 {dimension_numbers = #tpu.dot_dimension_numbers<[1], [0], [0], [1], [0, 0, 1, 1], [], []>} : vector<64x32xbf16>, vector<32x256xbf16>, vector<64x256xf32> -> vector<64x256xf32>
      %124 = arith.truncf %123 : vector<64x256xf32> to vector<64x256xbf16>
      %c0_63 = arith.constant 0 : index
      %c0_64 = arith.constant 0 : index
      %125 = vector.load %arg9[%c0_63, %c0_64] : memref<64x256xbf16, #tpu.memory_space<vmem>>, vector<64x256xbf16>
      tpu.vector_store %arg9[%c0_63, %c0_64], %124 {strides = array<i32>} : memref<64x256xbf16, #tpu.memory_space<vmem>>, vector<64x256xbf16>,
    } else {
    }
    %c256_i32 = arith.constant 256 : i32
    %3 = arith.muli %arg1, %c256_i32 : i32
    %4 = tpu.assume_multiple %3, 128 : i32
    %c0 = arith.constant 0 : index
    %5 = arith.index_cast %4 : i32 to index
    %6 = vector.load %arg8[%c0, %5] : memref<32x256xbf16, #tpu.memory_space<vmem>>, vector<32x256xbf16>
    %c0_1 = arith.constant 0 : index
    %c0_2 = arith.constant 0 : index
    %7 = vector.load %arg3[%c0_1, %c0_2] : memref<32x32xbf16, #tpu.memory_space<vmem>>, vector<32x32xbf16>
    %cst = arith.constant dense<0.000000e+00> : vector<32x256xf32>
    %8 = tpu.matmul %7, %6, %cst {dimension_numbers = #tpu.dot_dimension_numbers<[1], [0], [0], [1], [0, 0, 1, 1], [], []>} : vector<32x32xbf16>, vector<32x256xbf16>, vector<32x256xf32> -> vector<32x256xf32>
    %9 = arith.truncf %8 : vector<32x256xf32> to vector<32x256xbf16>
    %10 = vector.extract_strided_slice %9 {offsets = [0, 0], sizes = [8, 256], strides = [1, 1]} : vector<32x256xbf16> to vector<8x256xbf16>
    %c0_3 = arith.constant 0 : index
    %c0_4 = arith.constant 0 : index
    %11 = vector.load %arg9[%c0_3, %c0_4] : memref<64x256xbf16, #tpu.memory_space<vmem>>, vector<8x256xbf16>
    %c32 = arith.constant 32 : index
    %c0_5 = arith.constant 0 : index
    %12 = vector.load %arg9[%c32, %c0_5] : memref<64x256xbf16, #tpu.memory_space<vmem>>, vector<8x256xbf16>
    %cst_6 = arith.constant dense<0.000000e+00> : vector<256x256xf32>
    %13 = tpu.matmul %11, %10, %cst_6 {dimension_numbers = #tpu.dot_dimension_numbers<[0], [0], [1], [1], [0, 1, 1, 1], [], []>} : vector<8x256xbf16>, vector<8x256xbf16>, vector<256x256xf32> -> vector<256x256xf32>
    %cst_7 = arith.constant dense<0xFF800000> : vector<256xf32>
    %14 = vector.multi_reduction <maximumf>, %13, %cst_7 [0] : vector<256x256xf32> to vector<256xf32>
    %15 = vector.shape_cast %14 : vector<256xf32> to vector<1x256xf32>
    %16 = vector.broadcast %15 : vector<1x256xf32> to vector<256x256xf32>
    %17 = arith.subf %13, %16 : vector<256x256xf32>
    %18 = math.exp %17 : vector<256x256xf32>
    %cst_8 = arith.constant dense<0.000000e+00> : vector<256xf32>
    %19 = vector.multi_reduction <add>, %18, %cst_8 [0] : vector<256x256xf32> to vector<256xf32>
    %20 = vector.shape_cast %19 : vector<256xf32> to vector<1x256xf32>
    %21 = tpu.reciprocal %20 {approx = true} : vector<1x256xf32> -> vector<1x256xf32>
    %22 = arith.truncf %18 : vector<256x256xf32> to vector<256x256xbf16>
    %cst_9 = arith.constant dense<0.000000e+00> : vector<8x256xf32>
    %23 = tpu.matmul %12, %22, %cst_9 {dimension_numbers = #tpu.dot_dimension_numbers<[1], [0], [0], [1], [0, 0, 1, 1], [], []>} : vector<8x256xbf16>, vector<256x256xbf16>, vector<8x256xf32> -> vector<8x256xf32>
    %24 = vector.broadcast %21 : vector<1x256xf32> to vector<8x256xf32>
    %25 = arith.mulf %23, %24 : vector<8x256xf32>
    %c0_10 = arith.constant 0 : index
    %c0_11 = arith.constant 0 : index
    %26 = vector.load %arg10[%c0_10, %c0_11] : memref<32x256xf32, #tpu.memory_space<vmem>>, vector<8x256xf32>
    tpu.vector_store %arg10[%c0_10, %c0_11], %25 {strides = array<i32>} : memref<32x256xf32, #tpu.memory_space<vmem>>, vector<8x256xf32>,
    %27 = vector.extract_strided_slice %9 {offsets = [8, 0], sizes = [8, 256], strides = [1, 1]} : vector<32x256xbf16> to vector<8x256xbf16>
    %c8 = arith.constant 8 : index
    %c0_12 = arith.constant 0 : index
    %28 = vector.load %arg9[%c8, %c0_12] : memref<64x256xbf16, #tpu.memory_space<vmem>>, vector<8x256xbf16>
    %c40 = arith.constant 40 : index
    %c0_13 = arith.constant 0 : index
    %29 = vector.load %arg9[%c40, %c0_13] : memref<64x256xbf16, #tpu.memory_space<vmem>>, vector<8x256xbf16>
    %cst_14 = arith.constant dense<0.000000e+00> : vector<256x256xf32>
    %30 = tpu.matmul %28, %27, %cst_14 {dimension_numbers = #tpu.dot_dimension_numbers<[0], [0], [1], [1], [0, 1, 1, 1], [], []>} : vector<8x256xbf16>, vector<8x256xbf16>, vector<256x256xf32> -> vector<256x256xf32>
    %cst_15 = arith.constant dense<0xFF800000> : vector<256xf32>
    %31 = vector.multi_reduction <maximumf>, %30, %cst_15 [0] : vector<256x256xf32> to vector<256xf32>
    %32 = vector.shape_cast %31 : vector<256xf32> to vector<1x256xf32>
    %33 = vector.broadcast %32 : vector<1x256xf32> to vector<256x256xf32>
    %34 = arith.subf %30, %33 : vector<256x256xf32>
    %35 = math.exp %34 : vector<256x256xf32>
    %cst_16 = arith.constant dense<0.000000e+00> : vector<256xf32>
    %36 = vector.multi_reduction <add>, %35, %cst_16 [0] : vector<256x256xf32> to vector<256xf32>
    %37 = vector.shape_cast %36 : vector<256xf32> to vector<1x256xf32>
    %38 = tpu.reciprocal %37 {approx = true} : vector<1x256xf32> -> vector<1x256xf32>
    %39 = arith.truncf %35 : vector<256x256xf32> to vector<256x256xbf16>
    %cst_17 = arith.constant dense<0.000000e+00> : vector<8x256xf32>
    %40 = tpu.matmul %29, %39, %cst_17 {dimension_numbers = #tpu.dot_dimension_numbers<[1], [0], [0], [1], [0, 0, 1, 1], [], []>} : vector<8x256xbf16>, vector<256x256xbf16>, vector<8x256xf32> -> vector<8x256xf32>
    %41 = vector.broadcast %38 : vector<1x256xf32> to vector<8x256xf32>
    %42 = arith.mulf %40, %41 : vector<8x256xf32>
    %c8_18 = arith.constant 8 : index
    %c0_19 = arith.constant 0 : index
    %43 = vector.load %arg10[%c8_18, %c0_19] : memref<32x256xf32, #tpu.memory_space<vmem>>, vector<8x256xf32>
    tpu.vector_store %arg10[%c8_18, %c0_19], %42 {strides = array<i32>} : memref<32x256xf32, #tpu.memory_space<vmem>>, vector<8x256xf32>,
    %44 = vector.extract_strided_slice %9 {offsets = [16, 0], sizes = [8, 256], strides = [1, 1]} : vector<32x256xbf16> to vector<8x256xbf16>
    %c16 = arith.constant 16 : index
    %c0_20 = arith.constant 0 : index
    %45 = vector.load %arg9[%c16, %c0_20] : memref<64x256xbf16, #tpu.memory_space<vmem>>, vector<8x256xbf16>
    %c48 = arith.constant 48 : index
    %c0_21 = arith.constant 0 : index
    %46 = vector.load %arg9[%c48, %c0_21] : memref<64x256xbf16, #tpu.memory_space<vmem>>, vector<8x256xbf16>
    %cst_22 = arith.constant dense<0.000000e+00> : vector<256x256xf32>
    %47 = tpu.matmul %45, %44, %cst_22 {dimension_numbers = #tpu.dot_dimension_numbers<[0], [0], [1], [1], [0, 1, 1, 1], [], []>} : vector<8x256xbf16>, vector<8x256xbf16>, vector<256x256xf32> -> vector<256x256xf32>
    %cst_23 = arith.constant dense<0xFF800000> : vector<256xf32>
    %48 = vector.multi_reduction <maximumf>, %47, %cst_23 [0] : vector<256x256xf32> to vector<256xf32>
    %49 = vector.shape_cast %48 : vector<256xf32> to vector<1x256xf32>
    %50 = vector.broadcast %49 : vector<1x256xf32> to vector<256x256xf32>
    %51 = arith.subf %47, %50 : vector<256x256xf32>
    %52 = math.exp %51 : vector<256x256xf32>
    %cst_24 = arith.constant dense<0.000000e+00> : vector<256xf32>
    %53 = vector.multi_reduction <add>, %52, %cst_24 [0] : vector<256x256xf32> to vector<256xf32>
    %54 = vector.shape_cast %53 : vector<256xf32> to vector<1x256xf32>
    %55 = tpu.reciprocal %54 {approx = true} : vector<1x256xf32> -> vector<1x256xf32>
    %56 = arith.truncf %52 : vector<256x256xf32> to vector<256x256xbf16>
    %cst_25 = arith.constant dense<0.000000e+00> : vector<8x256xf32>
    %57 = tpu.matmul %46, %56, %cst_25 {dimension_numbers = #tpu.dot_dimension_numbers<[1], [0], [0], [1], [0, 0, 1, 1], [], []>} : vector<8x256xbf16>, vector<256x256xbf16>, vector<8x256xf32> -> vector<8x256xf32>
    %58 = vector.broadcast %55 : vector<1x256xf32> to vector<8x256xf32>
    %59 = arith.mulf %57, %58 : vector<8x256xf32>
    %c16_26 = arith.constant 16 : index
    %c0_27 = arith.constant 0 : index
    %60 = vector.load %arg10[%c16_26, %c0_27] : memref<32x256xf32, #tpu.memory_space<vmem>>, vector<8x256xf32>
    tpu.vector_store %arg10[%c16_26, %c0_27], %59 {strides = array<i32>} : memref<32x256xf32, #tpu.memory_space<vmem>>, vector<8x256xf32>,
    %61 = vector.extract_strided_slice %9 {offsets = [24, 0], sizes = [8, 256], strides = [1, 1]} : vector<32x256xbf16> to vector<8x256xbf16>
    %c24 = arith.constant 24 : index
    %c0_28 = arith.constant 0 : index
    %62 = vector.load %arg9[%c24, %c0_28] : memref<64x256xbf16, #tpu.memory_space<vmem>>, vector<8x256xbf16>
    %c56 = arith.constant 56 : index
    %c0_29 = arith.constant 0 : index
    %63 = vector.load %arg9[%c56, %c0_29] : memref<64x256xbf16, #tpu.memory_space<vmem>>, vector<8x256xbf16>
    %cst_30 = arith.constant dense<0.000000e+00> : vector<256x256xf32>
    %64 = tpu.matmul %62, %61, %cst_30 {dimension_numbers = #tpu.dot_dimension_numbers<[0], [0], [1], [1], [0, 1, 1, 1], [], []>} : vector<8x256xbf16>, vector<8x256xbf16>, vector<256x256xf32> -> vector<256x256xf32>
    %cst_31 = arith.constant dense<0xFF800000> : vector<256xf32>
    %65 = vector.multi_reduction <maximumf>, %64, %cst_31 [0] : vector<256x256xf32> to vector<256xf32>
    %66 = vector.shape_cast %65 : vector<256xf32> to vector<1x256xf32>
    %67 = vector.broadcast %66 : vector<1x256xf32> to vector<256x256xf32>
    %68 = arith.subf %64, %67 : vector<256x256xf32>
    %69 = math.exp %68 : vector<256x256xf32>
    %cst_32 = arith.constant dense<0.000000e+00> : vector<256xf32>
    %70 = vector.multi_reduction <add>, %69, %cst_32 [0] : vector<256x256xf32> to vector<256xf32>
    %71 = vector.shape_cast %70 : vector<256xf32> to vector<1x256xf32>
    %72 = tpu.reciprocal %71 {approx = true} : vector<1x256xf32> -> vector<1x256xf32>
    %73 = arith.truncf %69 : vector<256x256xf32> to vector<256x256xbf16>
    %cst_33 = arith.constant dense<0.000000e+00> : vector<8x256xf32>
    %74 = tpu.matmul %63, %73, %cst_33 {dimension_numbers = #tpu.dot_dimension_numbers<[1], [0], [0], [1], [0, 0, 1, 1], [], []>} : vector<8x256xbf16>, vector<256x256xbf16>, vector<8x256xf32> -> vector<8x256xf32>
    %75 = vector.broadcast %72 : vector<1x256xf32> to vector<8x256xf32>
    %76 = arith.mulf %74, %75 : vector<8x256xf32>
    %c24_34 = arith.constant 24 : index
    %c0_35 = arith.constant 0 : index
    %77 = vector.load %arg10[%c24_34, %c0_35] : memref<32x256xf32, #tpu.memory_space<vmem>>, vector<8x256xf32>
    tpu.vector_store %arg10[%c24_34, %c0_35], %76 {strides = array<i32>} : memref<32x256xf32, #tpu.memory_space<vmem>>, vector<8x256xf32>,
    %c0_36 = arith.constant 0 : index
    %c0_37 = arith.constant 0 : index
    %78 = arith.index_cast %4 : i32 to index
    %79 = vector.load %arg2[%c0_36, %c0_37, %78] : memref<1x32x256xbf16, #tpu.memory_space<vmem>>, vector<1x32x256xbf16>
    %80 = vector.shape_cast %79 : vector<1x32x256xbf16> to vector<32x256xbf16>
    %81 = arith.extf %80 : vector<32x256xbf16> to vector<32x256xf32>
    %c0_38 = arith.constant 0 : index
    %c0_39 = arith.constant 0 : index
    %82 = vector.load %arg10[%c0_38, %c0_39] : memref<32x256xf32, #tpu.memory_space<vmem>>, vector<32x256xf32>
    %83 = arith.truncf %82 : vector<32x256xf32> to vector<32x256xbf16>
    %c0_40 = arith.constant 0 : index
    %c0_41 = arith.constant 0 : index
    %84 = vector.load %arg5[%c0_40, %c0_41] : memref<32x32xbf16, #tpu.memory_space<vmem>>, vector<32x32xbf16>
    %cst_42 = arith.constant dense<0.000000e+00> : vector<32x256xf32>
    %85 = tpu.matmul %84, %83, %cst_42 {dimension_numbers = #tpu.dot_dimension_numbers<[1], [0], [0], [1], [0, 0, 1, 1], [], []>} : vector<32x32xbf16>, vector<32x256xbf16>, vector<32x256xf32> -> vector<32x256xf32>
    %c0_43 = arith.constant 0 : index
    %c2 = arith.constant 2 : index
    %86 = vector.load %arg6[%c0_43, %c2] : memref<32x3xf32, #tpu.memory_space<vmem>>, vector<32x1xf32>
    %87 = vector.broadcast %86 : vector<32x1xf32> to vector<32x256xf32>
    %88 = arith.addf %85, %87 : vector<32x256xf32>
    %89 = arith.addf %88, %81 : vector<32x256xf32>
    %c0_44 = arith.constant 0 : index
    %c0_45 = arith.constant 0 : index
    %c0_46 = arith.constant 0 : index
    %90 = vector.load %arg7[%c0_44, %c0_45, %c0_46] : memref<1x32x256xf32, #tpu.memory_space<vmem>>, vector<1x32x256xf32>
    %91 = vector.shape_cast %90 : vector<1x32x256xf32> to vector<32x256xf32>
    %92 = vector.shape_cast %89 : vector<32x256xf32> to vector<1x32x256xf32>
    tpu.vector_store %arg7[%c0_44, %c0_45, %c0_46], %92 {strides = array<i32>} : memref<1x32x256xf32, #tpu.memory_space<vmem>>, vector<1x32x256xf32>,
    return
  }
  func.func @transform_0(%arg0: i32, %arg1: i32) -> (i32, i32, i32) {
    %c0_i32 = arith.constant 0 : i32
    %c0_i32_0 = arith.constant 0 : i32
    %c0_i32_1 = arith.constant 0 : i32
    return %arg0, %c0_i32, %c0_i32_0 : i32, i32, i32
  }
  func.func @transform_1(%arg0: i32, %arg1: i32) -> (i32, i32) {
    %c0_i32 = arith.constant 0 : i32
    %c0_i32_0 = arith.constant 0 : i32
    %c0_i32_1 = arith.constant 0 : i32
    return %c0_i32, %c0_i32_0 : i32, i32
  }
  func.func @transform_2(%arg0: i32, %arg1: i32) -> (i32, i32) {
    %c0_i32 = arith.constant 0 : i32
    %c0_i32_0 = arith.constant 0 : i32
    %c0_i32_1 = arith.constant 0 : i32
    return %c0_i32, %c0_i32_0 : i32, i32
  }
  func.func @transform_3(%arg0: i32, %arg1: i32) -> (i32, i32) {
    %c0_i32 = arith.constant 0 : i32
    %c0_i32_0 = arith.constant 0 : i32
    %c0_i32_1 = arith.constant 0 : i32
    return %c0_i32, %c0_i32_0 : i32, i32
  }
  func.func @transform_4(%arg0: i32, %arg1: i32) -> (i32, i32) {
    %c0_i32 = arith.constant 0 : i32
    %c0_i32_0 = arith.constant 0 : i32
    %c0_i32_1 = arith.constant 0 : i32
    return %c0_i32, %c0_i32_0 : i32, i32
  }
  func.func @transform_5(%arg0: i32, %arg1: i32) -> (i32, i32, i32) {
    %c0_i32 = arith.constant 0 : i32
    %c0_i32_0 = arith.constant 0 : i32
    return %arg0, %c0_i32, %arg1 : i32, i32, i32
  }
}

module attributes {stable_mosaic.version = 11 : i64} {
  func.func @_vit_block_kernel(%arg0: i32, %arg1: i32, %arg2: memref<1x32x256xbf16, #tpu.memory_space<vmem>>, %arg3: memref<32x32xbf16, #tpu.memory_space<vmem>>, %arg4: memref<64x32xbf16, #tpu.memory_space<vmem>>, %arg5: memref<32x32xbf16, #tpu.memory_space<vmem>>, %arg6: memref<32x3xf32, #tpu.memory_space<vmem>>, %arg7: memref<1x32x256xf32, #tpu.memory_space<vmem>>, %arg8: memref<32x256xbf16, #tpu.memory_space<vmem>>, %arg9: memref<64x256xbf16, #tpu.memory_space<vmem>>, %arg10: memref<32x256xf32, #tpu.memory_space<vmem>>) attributes {dimension_semantics = [#tpu.dimension_semantics<parallel>, #tpu.dimension_semantics<arbitrary>], iteration_bounds = array<i64: 2, 1>, scalar_prefetch = 0 : i64, scratch_operands = 3 : i64, tpu.core_type = #tpu.core_type<tc>, window_params = [{transform_indices = @transform_0, window_bounds = array<i64: 1, 32, 256>}, {pipeline_mode = #tpu.pipeline_mode<synchronous>, transform_indices = @transform_1, window_bounds = array<i64: 32, 32>}, {pipeline_mode = #tpu.pipeline_mode<synchronous>, transform_indices = @transform_2, window_bounds = array<i64: 64, 32>}, {pipeline_mode = #tpu.pipeline_mode<synchronous>, transform_indices = @transform_3, window_bounds = array<i64: 32, 32>}, {pipeline_mode = #tpu.pipeline_mode<synchronous>, transform_indices = @transform_4, window_bounds = array<i64: 32, 3>}, {transform_indices = @transform_5, window_bounds = array<i64: 1, 32, 256>}]} {
    %c0_i32 = arith.constant 0 : i32
    %0 = arith.cmpi eq, %arg1, %c0_i32 : i32
    %1 = arith.extui %0 : i1 to i32
    %c0_i32_0 = arith.constant 0 : i32
    %2 = arith.cmpi ne, %1, %c0_i32_0 : i32
    scf.if %2 {
      %c0_47 = arith.constant 0 : index
      %c0_48 = arith.constant 0 : index
      %93 = vector.load %arg6[%c0_47, %c0_48] : memref<32x3xf32, #tpu.memory_space<vmem>>, vector<32x1xf32>
      %c0_49 = arith.constant 0 : index
      %c1 = arith.constant 1 : index
      %94 = vector.load %arg6[%c0_49, %c1] : memref<32x3xf32, #tpu.memory_space<vmem>>, vector<32x1xf32>
      %c0_50 = arith.constant 0 : index
      %c0_51 = arith.constant 0 : index
      %95 = vector.load %arg4[%c0_50, %c0_51] : memref<64x32xbf16, #tpu.memory_space<vmem>>, vector<64x32xbf16>
      %c0_52 = arith.constant 0 : index
      %c0_53 = arith.constant 0 : index
      %c0_54 = arith.constant 0 : index
      %96 = vector.load %arg2[%c0_52, %c0_53, %c0_54] : memref<1x32x256xbf16, #tpu.memory_space<vmem>>, vector<1x32x256xbf16>
      %97 = vector.shape_cast %96 : vector<1x32x256xbf16> to vector<32x256xbf16>
      %98 = arith.extf %97 : vector<32x256xbf16> to vector<32x256xf32>
      %cst_55 = arith.constant dense<0.000000e+00> : vector<256xf32>
      %99 = vector.multi_reduction <add>, %98, %cst_55 [0] : vector<32x256xf32> to vector<256xf32>
      %100 = vector.shape_cast %99 : vector<256xf32> to vector<1x256xf32>
      %cst_56 = arith.constant 3.200000e+01 : f32
      %101 = vector.broadcast %cst_56 : f32 to vector<1x256xf32>
      %102 = arith.divf %100, %101 : vector<1x256xf32>
      %103 = arith.mulf %98, %98 : vector<32x256xf32>
      %cst_57 = arith.constant dense<0.000000e+00> : vector<256xf32>
      %104 = vector.multi_reduction <add>, %103, %cst_57 [0] : vector<32x256xf32> to vector<256xf32>
      %105 = vector.shape_cast %104 : vector<256xf32> to vector<1x256xf32>
      %cst_58 = arith.constant 3.200000e+01 : f32
      %106 = vector.broadcast %cst_58 : f32 to vector<1x256xf32>
      %107 = arith.divf %105, %106 : vector<1x256xf32>
      %108 = arith.mulf %102, %102 : vector<1x256xf32>
      %109 = arith.subf %107, %108 : vector<1x256xf32>
      %110 = vector.broadcast %102 : vector<1x256xf32> to vector<32x256xf32>
      %111 = arith.subf %98, %110 : vector<32x256xf32>
      %cst_59 = arith.constant 9.99999974E-6 : f32
      %112 = vector.broadcast %cst_59 : f32 to vector<1x256xf32>
      %113 = arith.addf %109, %112 : vector<1x256xf32>
      %114 = math.rsqrt %113 : vector<1x256xf32>
      %115 = vector.broadcast %114 : vector<1x256xf32> to vector<32x256xf32>
      %116 = arith.mulf %111, %115 : vector<32x256xf32>
      %117 = vector.broadcast %93 : vector<32x1xf32> to vector<32x256xf32>
      %118 = arith.mulf %116, %117 : vector<32x256xf32>
      %119 = vector.broadcast %94 : vector<32x1xf32> to vector<32x256xf32>
      %120 = arith.addf %118, %119 : vector<32x256xf32>
      %121 = arith.truncf %120 : vector<32x256xf32> to vector<32x256xbf16>
      %c0_60 = arith.constant 0 : index
      %c0_61 = arith.constant 0 : index
      %122 = vector.load %arg8[%c0_60, %c0_61] : memref<32x256xbf16, #tpu.memory_space<vmem>>, vector<32x256xbf16>
      tpu.vector_store %arg8[%c0_60, %c0_61], %121 {strides = array<i32>} : memref<32x256xbf16, #tpu.memory_space<vmem>>, vector<32x256xbf16>,
      %cst_62 = arith.constant dense<0.000000e+00> : vector<64x256xf32>
      %123 = tpu.matmul %95, %121, %cst_62 {dimension_numbers = #tpu.dot_dimension_numbers<[1], [0], [0], [1], [0, 0, 1, 1], [], []>} : vector<64x32xbf16>, vector<32x256xbf16>, vector<64x256xf32> -> vector<64x256xf32>
      %124 = arith.truncf %123 : vector<64x256xf32> to vector<64x256xbf16>
      %c0_63 = arith.constant 0 : index
      %c0_64 = arith.constant 0 : index
      %125 = vector.load %arg9[%c0_63, %c0_64] : memref<64x256xbf16, #tpu.memory_space<vmem>>, vector<64x256xbf16>
      tpu.vector_store %arg9[%c0_63, %c0_64], %124 {strides = array<i32>} : memref<64x256xbf16, #tpu.memory_space<vmem>>, vector<64x256xbf16>,
    } else {
    }
    %c256_i32 = arith.constant 256 : i32
    %3 = arith.muli %arg1, %c256_i32 : i32
    %4 = tpu.assume_multiple %3, 128 : i32
    %c0 = arith.constant 0 : index
    %5 = arith.index_cast %4 : i32 to index
    %6 = vector.load %arg8[%c0, %5] : memref<32x256xbf16, #tpu.memory_space<vmem>>, vector<32x256xbf16>
    %c0_1 = arith.constant 0 : index
    %c0_2 = arith.constant 0 : index
    %7 = vector.load %arg3[%c0_1, %c0_2] : memref<32x32xbf16, #tpu.memory_space<vmem>>, vector<32x32xbf16>
    %cst = arith.constant dense<0.000000e+00> : vector<32x256xf32>
    %8 = tpu.matmul %7, %6, %cst {dimension_numbers = #tpu.dot_dimension_numbers<[1], [0], [0], [1], [0, 0, 1, 1], [], []>} : vector<32x32xbf16>, vector<32x256xbf16>, vector<32x256xf32> -> vector<32x256xf32>
    %9 = arith.truncf %8 : vector<32x256xf32> to vector<32x256xbf16>
    %10 = vector.extract_strided_slice %9 {offsets = [0, 0], sizes = [8, 256], strides = [1, 1]} : vector<32x256xbf16> to vector<8x256xbf16>
    %c0_3 = arith.constant 0 : index
    %c0_4 = arith.constant 0 : index
    %11 = vector.load %arg9[%c0_3, %c0_4] : memref<64x256xbf16, #tpu.memory_space<vmem>>, vector<8x256xbf16>
    %c32 = arith.constant 32 : index
    %c0_5 = arith.constant 0 : index
    %12 = vector.load %arg9[%c32, %c0_5] : memref<64x256xbf16, #tpu.memory_space<vmem>>, vector<8x256xbf16>
    %cst_6 = arith.constant dense<0.000000e+00> : vector<256x256xf32>
    %13 = tpu.matmul %11, %10, %cst_6 {dimension_numbers = #tpu.dot_dimension_numbers<[0], [0], [1], [1], [0, 1, 1, 1], [], []>} : vector<8x256xbf16>, vector<8x256xbf16>, vector<256x256xf32> -> vector<256x256xf32>
    %cst_7 = arith.constant dense<0xFF800000> : vector<256xf32>
    %14 = vector.multi_reduction <maximumf>, %13, %cst_7 [0] : vector<256x256xf32> to vector<256xf32>
    %15 = vector.shape_cast %14 : vector<256xf32> to vector<1x256xf32>
    %16 = vector.broadcast %15 : vector<1x256xf32> to vector<256x256xf32>
    %17 = arith.subf %13, %16 : vector<256x256xf32>
    %18 = math.exp %17 : vector<256x256xf32>
    %cst_8 = arith.constant dense<0.000000e+00> : vector<256xf32>
    %19 = vector.multi_reduction <add>, %18, %cst_8 [0] : vector<256x256xf32> to vector<256xf32>
    %20 = vector.shape_cast %19 : vector<256xf32> to vector<1x256xf32>
    %21 = tpu.reciprocal %20 {approx = true} : vector<1x256xf32> -> vector<1x256xf32>
    %22 = arith.truncf %18 : vector<256x256xf32> to vector<256x256xbf16>
    %cst_9 = arith.constant dense<0.000000e+00> : vector<8x256xf32>
    %23 = tpu.matmul %12, %22, %cst_9 {dimension_numbers = #tpu.dot_dimension_numbers<[1], [0], [0], [1], [0, 0, 1, 1], [], []>} : vector<8x256xbf16>, vector<256x256xbf16>, vector<8x256xf32> -> vector<8x256xf32>
    %24 = vector.broadcast %21 : vector<1x256xf32> to vector<8x256xf32>
    %25 = arith.mulf %23, %24 : vector<8x256xf32>
    %c0_10 = arith.constant 0 : index
    %c0_11 = arith.constant 0 : index
    %26 = vector.load %arg10[%c0_10, %c0_11] : memref<32x256xf32, #tpu.memory_space<vmem>>, vector<8x256xf32>
    tpu.vector_store %arg10[%c0_10, %c0_11], %25 {strides = array<i32>} : memref<32x256xf32, #tpu.memory_space<vmem>>, vector<8x256xf32>,
    %27 = vector.extract_strided_slice %9 {offsets = [8, 0], sizes = [8, 256], strides = [1, 1]} : vector<32x256xbf16> to vector<8x256xbf16>
    %c8 = arith.constant 8 : index
    %c0_12 = arith.constant 0 : index
    %28 = vector.load %arg9[%c8, %c0_12] : memref<64x256xbf16, #tpu.memory_space<vmem>>, vector<8x256xbf16>
    %c40 = arith.constant 40 : index
    %c0_13 = arith.constant 0 : index
    %29 = vector.load %arg9[%c40, %c0_13] : memref<64x256xbf16, #tpu.memory_space<vmem>>, vector<8x256xbf16>
    %cst_14 = arith.constant dense<0.000000e+00> : vector<256x256xf32>
    %30 = tpu.matmul %28, %27, %cst_14 {dimension_numbers = #tpu.dot_dimension_numbers<[0], [0], [1], [1], [0, 1, 1, 1], [], []>} : vector<8x256xbf16>, vector<8x256xbf16>, vector<256x256xf32> -> vector<256x256xf32>
    %cst_15 = arith.constant dense<0xFF800000> : vector<256xf32>
    %31 = vector.multi_reduction <maximumf>, %30, %cst_15 [0] : vector<256x256xf32> to vector<256xf32>
    %32 = vector.shape_cast %31 : vector<256xf32> to vector<1x256xf32>
    %33 = vector.broadcast %32 : vector<1x256xf32> to vector<256x256xf32>
    %34 = arith.subf %30, %33 : vector<256x256xf32>
    %35 = math.exp %34 : vector<256x256xf32>
    %cst_16 = arith.constant dense<0.000000e+00> : vector<256xf32>
    %36 = vector.multi_reduction <add>, %35, %cst_16 [0] : vector<256x256xf32> to vector<256xf32>
    %37 = vector.shape_cast %36 : vector<256xf32> to vector<1x256xf32>
    %38 = tpu.reciprocal %37 {approx = true} : vector<1x256xf32> -> vector<1x256xf32>
    %39 = arith.truncf %35 : vector<256x256xf32> to vector<256x256xbf16>
    %cst_17 = arith.constant dense<0.000000e+00> : vector<8x256xf32>
    %40 = tpu.matmul %29, %39, %cst_17 {dimension_numbers = #tpu.dot_dimension_numbers<[1], [0], [0], [1], [0, 0, 1, 1], [], []>} : vector<8x256xbf16>, vector<256x256xbf16>, vector<8x256xf32> -> vector<8x256xf32>
    %41 = vector.broadcast %38 : vector<1x256xf32> to vector<8x256xf32>
    %42 = arith.mulf %40, %41 : vector<8x256xf32>
    %c8_18 = arith.constant 8 : index
    %c0_19 = arith.constant 0 : index
    %43 = vector.load %arg10[%c8_18, %c0_19] : memref<32x256xf32, #tpu.memory_space<vmem>>, vector<8x256xf32>
    tpu.vector_store %arg10[%c8_18, %c0_19], %42 {strides = array<i32>} : memref<32x256xf32, #tpu.memory_space<vmem>>, vector<8x256xf32>,
    %44 = vector.extract_strided_slice %9 {offsets = [16, 0], sizes = [8, 256], strides = [1, 1]} : vector<32x256xbf16> to vector<8x256xbf16>
    %c16 = arith.constant 16 : index
    %c0_20 = arith.constant 0 : index
    %45 = vector.load %arg9[%c16, %c0_20] : memref<64x256xbf16, #tpu.memory_space<vmem>>, vector<8x256xbf16>
    %c48 = arith.constant 48 : index
    %c0_21 = arith.constant 0 : index
    %46 = vector.load %arg9[%c48, %c0_21] : memref<64x256xbf16, #tpu.memory_space<vmem>>, vector<8x256xbf16>
    %cst_22 = arith.constant dense<0.000000e+00> : vector<256x256xf32>
    %47 = tpu.matmul %45, %44, %cst_22 {dimension_numbers = #tpu.dot_dimension_numbers<[0], [0], [1], [1], [0, 1, 1, 1], [], []>} : vector<8x256xbf16>, vector<8x256xbf16>, vector<256x256xf32> -> vector<256x256xf32>
    %cst_23 = arith.constant dense<0xFF800000> : vector<256xf32>
    %48 = vector.multi_reduction <maximumf>, %47, %cst_23 [0] : vector<256x256xf32> to vector<256xf32>
    %49 = vector.shape_cast %48 : vector<256xf32> to vector<1x256xf32>
    %50 = vector.broadcast %49 : vector<1x256xf32> to vector<256x256xf32>
    %51 = arith.subf %47, %50 : vector<256x256xf32>
    %52 = math.exp %51 : vector<256x256xf32>
    %cst_24 = arith.constant dense<0.000000e+00> : vector<256xf32>
    %53 = vector.multi_reduction <add>, %52, %cst_24 [0] : vector<256x256xf32> to vector<256xf32>
    %54 = vector.shape_cast %53 : vector<256xf32> to vector<1x256xf32>
    %55 = tpu.reciprocal %54 {approx = true} : vector<1x256xf32> -> vector<1x256xf32>
    %56 = arith.truncf %52 : vector<256x256xf32> to vector<256x256xbf16>
    %cst_25 = arith.constant dense<0.000000e+00> : vector<8x256xf32>
    %57 = tpu.matmul %46, %56, %cst_25 {dimension_numbers = #tpu.dot_dimension_numbers<[1], [0], [0], [1], [0, 0, 1, 1], [], []>} : vector<8x256xbf16>, vector<256x256xbf16>, vector<8x256xf32> -> vector<8x256xf32>
    %58 = vector.broadcast %55 : vector<1x256xf32> to vector<8x256xf32>
    %59 = arith.mulf %57, %58 : vector<8x256xf32>
    %c16_26 = arith.constant 16 : index
    %c0_27 = arith.constant 0 : index
    %60 = vector.load %arg10[%c16_26, %c0_27] : memref<32x256xf32, #tpu.memory_space<vmem>>, vector<8x256xf32>
    tpu.vector_store %arg10[%c16_26, %c0_27], %59 {strides = array<i32>} : memref<32x256xf32, #tpu.memory_space<vmem>>, vector<8x256xf32>,
    %61 = vector.extract_strided_slice %9 {offsets = [24, 0], sizes = [8, 256], strides = [1, 1]} : vector<32x256xbf16> to vector<8x256xbf16>
    %c24 = arith.constant 24 : index
    %c0_28 = arith.constant 0 : index
    %62 = vector.load %arg9[%c24, %c0_28] : memref<64x256xbf16, #tpu.memory_space<vmem>>, vector<8x256xbf16>
    %c56 = arith.constant 56 : index
    %c0_29 = arith.constant 0 : index
    %63 = vector.load %arg9[%c56, %c0_29] : memref<64x256xbf16, #tpu.memory_space<vmem>>, vector<8x256xbf16>
    %cst_30 = arith.constant dense<0.000000e+00> : vector<256x256xf32>
    %64 = tpu.matmul %62, %61, %cst_30 {dimension_numbers = #tpu.dot_dimension_numbers<[0], [0], [1], [1], [0, 1, 1, 1], [], []>} : vector<8x256xbf16>, vector<8x256xbf16>, vector<256x256xf32> -> vector<256x256xf32>
    %cst_31 = arith.constant dense<0xFF800000> : vector<256xf32>
    %65 = vector.multi_reduction <maximumf>, %64, %cst_31 [0] : vector<256x256xf32> to vector<256xf32>
    %66 = vector.shape_cast %65 : vector<256xf32> to vector<1x256xf32>
    %67 = vector.broadcast %66 : vector<1x256xf32> to vector<256x256xf32>
    %68 = arith.subf %64, %67 : vector<256x256xf32>
    %69 = math.exp %68 : vector<256x256xf32>
    %cst_32 = arith.constant dense<0.000000e+00> : vector<256xf32>
    %70 = vector.multi_reduction <add>, %69, %cst_32 [0] : vector<256x256xf32> to vector<256xf32>
    %71 = vector.shape_cast %70 : vector<256xf32> to vector<1x256xf32>
    %72 = tpu.reciprocal %71 {approx = true} : vector<1x256xf32> -> vector<1x256xf32>
    %73 = arith.truncf %69 : vector<256x256xf32> to vector<256x256xbf16>
    %cst_33 = arith.constant dense<0.000000e+00> : vector<8x256xf32>
    %74 = tpu.matmul %63, %73, %cst_33 {dimension_numbers = #tpu.dot_dimension_numbers<[1], [0], [0], [1], [0, 0, 1, 1], [], []>} : vector<8x256xbf16>, vector<256x256xbf16>, vector<8x256xf32> -> vector<8x256xf32>
    %75 = vector.broadcast %72 : vector<1x256xf32> to vector<8x256xf32>
    %76 = arith.mulf %74, %75 : vector<8x256xf32>
    %c24_34 = arith.constant 24 : index
    %c0_35 = arith.constant 0 : index
    %77 = vector.load %arg10[%c24_34, %c0_35] : memref<32x256xf32, #tpu.memory_space<vmem>>, vector<8x256xf32>
    tpu.vector_store %arg10[%c24_34, %c0_35], %76 {strides = array<i32>} : memref<32x256xf32, #tpu.memory_space<vmem>>, vector<8x256xf32>,
    %c0_36 = arith.constant 0 : index
    %c0_37 = arith.constant 0 : index
    %78 = arith.index_cast %4 : i32 to index
    %79 = vector.load %arg2[%c0_36, %c0_37, %78] : memref<1x32x256xbf16, #tpu.memory_space<vmem>>, vector<1x32x256xbf16>
    %80 = vector.shape_cast %79 : vector<1x32x256xbf16> to vector<32x256xbf16>
    %81 = arith.extf %80 : vector<32x256xbf16> to vector<32x256xf32>
    %c0_38 = arith.constant 0 : index
    %c0_39 = arith.constant 0 : index
    %82 = vector.load %arg10[%c0_38, %c0_39] : memref<32x256xf32, #tpu.memory_space<vmem>>, vector<32x256xf32>
    %83 = arith.truncf %82 : vector<32x256xf32> to vector<32x256xbf16>
    %c0_40 = arith.constant 0 : index
    %c0_41 = arith.constant 0 : index
    %84 = vector.load %arg5[%c0_40, %c0_41] : memref<32x32xbf16, #tpu.memory_space<vmem>>, vector<32x32xbf16>
    %cst_42 = arith.constant dense<0.000000e+00> : vector<32x256xf32>
    %85 = tpu.matmul %84, %83, %cst_42 {dimension_numbers = #tpu.dot_dimension_numbers<[1], [0], [0], [1], [0, 0, 1, 1], [], []>} : vector<32x32xbf16>, vector<32x256xbf16>, vector<32x256xf32> -> vector<32x256xf32>
    %c0_43 = arith.constant 0 : index
    %c2 = arith.constant 2 : index
    %86 = vector.load %arg6[%c0_43, %c2] : memref<32x3xf32, #tpu.memory_space<vmem>>, vector<32x1xf32>
    %87 = vector.broadcast %86 : vector<32x1xf32> to vector<32x256xf32>
    %88 = arith.addf %85, %87 : vector<32x256xf32>
    %89 = arith.addf %88, %81 : vector<32x256xf32>
    %c0_44 = arith.constant 0 : index
    %c0_45 = arith.constant 0 : index
    %c0_46 = arith.constant 0 : index
    %90 = vector.load %arg7[%c0_44, %c0_45, %c0_46] : memref<1x32x256xf32, #tpu.memory_space<vmem>>, vector<1x32x256xf32>
    %91 = vector.shape_cast %90 : vector<1x32x256xf32> to vector<32x256xf32>
    %92 = vector.shape_cast %89 : vector<32x256xf32> to vector<1x32x256xf32>
    tpu.vector_store %arg7[%c0_44, %c0_45, %c0_46], %92 {strides = array<i32>} : memref<1x32x256xf32, #tpu.memory_space<vmem>>, vector<1x32x256xf32>,
    return
  }
  func.func @transform_0(%arg0: i32, %arg1: i32) -> (i32, i32, i32) {
    %c0_i32 = arith.constant 0 : i32
    %c0_i32_0 = arith.constant 0 : i32
    %c0_i32_1 = arith.constant 0 : i32
    return %arg0, %c0_i32, %c0_i32_0 : i32, i32, i32
  }
  func.func @transform_1(%arg0: i32, %arg1: i32) -> (i32, i32) {
    %c0_i32 = arith.constant 0 : i32
    %c0_i32_0 = arith.constant 0 : i32
    %c0_i32_1 = arith.constant 0 : i32
    return %c0_i32, %c0_i32_0 : i32, i32
  }
  func.func @transform_2(%arg0: i32, %arg1: i32) -> (i32, i32) {
    %c0_i32 = arith.constant 0 : i32
    %c0_i32_0 = arith.constant 0 : i32
    %c0_i32_1 = arith.constant 0 : i32
    return %c0_i32, %c0_i32_0 : i32, i32
  }
  func.func @transform_3(%arg0: i32, %arg1: i32) -> (i32, i32) {
    %c0_i32 = arith.constant 0 : i32
    %c0_i32_0 = arith.constant 0 : i32
    %c0_i32_1 = arith.constant 0 : i32
    return %c0_i32, %c0_i32_0 : i32, i32
  }
  func.func @transform_4(%arg0: i32, %arg1: i32) -> (i32, i32) {
    %c0_i32 = arith.constant 0 : i32
    %c0_i32_0 = arith.constant 0 : i32
    %c0_i32_1 = arith.constant 0 : i32
    return %c0_i32, %c0_i32_0 : i32, i32
  }
  func.func @transform_5(%arg0: i32, %arg1: i32) -> (i32, i32, i32) {
    %c0_i32 = arith.constant 0 : i32
    %c0_i32_0 = arith.constant 0 : i32
    return %arg0, %c0_i32, %arg1 : i32, i32, i32
  }
}

</mosaic_0001>

<bundles_post_ra>
// kernel: tpu_custom_call.1
= control target key start
LH: loop header
LB: loop body
LE: loop exit
PB: predicated region body
PF: predicated region fallthrough
CT: control target
= control target key end

     0   :  { %10 = vsyncpa [#allocation6], 0  ;;  %s7609_s0 = inlined_call_operand.vmem [shape: bf16[2,32,256], index: 0, kind: input, shape index: {}]   ;;  %s7610_s1 = inlined_call_operand.vmem [shape: bf16[32,32], index: 1, kind: input, shape index: {}]   ;;  %s7611_s2 = inlined_call_operand.vmem [shape: bf16[64,32], index: 2, kind: input, shape index: {}]   ;;  %s7612_s3 = inlined_call_operand.hbm [shape: bf16[32,32], index: 3, kind: input, shape index: {}]   ;;  %s7613_s4 = inlined_call_operand.vmem [shape: f32[32,3], index: 4, kind: input, shape index: {}]   ;;  %s7614_s5 = inlined_call_operand.hbm [shape: f32[2,32,256], index: 5, kind: output, shape index: {}]  }
   0x1   :  { %11 = vsyncpa [#allocation7], 0 }
   0x2   :  { %13 = vsyncpa [#allocation7 + $0x1], 0  ;;  %s4603_s18 = smov 0   ;;  %s4605_s19 = smov 0  }
   0x3   :  { %s4607_s20 = smov 0   ;;  %s4609_s21 = smov 0  }
   0x4   :  { %s4611_s22 = smov 0   ;;  %s4613_s23 = smov 0  }
   0x5 LB: > { %s3710_s24 = sadd.s32 4294967295, %s4561_s23   ;;  %s3711_s25 = sadd.s32 4294967294, %s4561_s23   ;;  %s4561_s23 = sphi %s4613_s23, %s19_s23   ;;  %s4557_s22 = sphi %s4611_s22, %s8253_s22   ;;  %s4553_s21 = sphi %s4609_s21, %s8252_s21   ;;  %s4549_s20 = sphi %s4607_s20, %s8251_s20   ;;  %s4545_s19 = sphi %s4605_s19, %s8250_s19   ;;  %s4541_s18 = sphi %s4603_s18, %s8249_s18  }
   0x6   : > { %s31_s26 = sadd.s32 1, %s4557_s22  ;;  %s150_s27 = sadd.s32 1, %s4549_s20 }
   0x7   : > { %p33_p0 = scmp.ge.s32.totalorder %s31_s26, 2  ;;  %p160_p1 = scmp.ne.s32.totalorder %s4549_s20, %s4545_s19 }
   0x8   : > { %p161_p2 = scmp.eq.s32.totalorder %s3710_s24, 1  ;;  %p166_p3 = scmp.ne.s32.totalorder %s4545_s19, %s4541_s18 }
   0x9   : > { %s8255_s26 = smov (%p33_p0, %s31_s26), 0  ;;  %p167_p5 = scmp.eq.s32.totalorder %s3711_s25, 1 }
   0xa   : > { %p4643_p4 = por %p161_p2, %p160_p1  ;;  %s145_s29 = ssub.s32 %s4557_s22, %s8255_s26 }
   0xb   : > { %p3712_p6 = scmp.ge.s32.totalorder %s4561_s23, 1  ;;  %p148_p7 = scmp.eq.s32.totalorder %s145_s29, 0 }
   0xc   : > { %s7801_s28 = scalar_select %p4643_p4, 1, 0 }
   0xd   : > { %p4650_p8 = por %p167_p5, %p166_p3  ;;  %p174_p9 = scmp.lt.s32.totalorder %s4561_s23, 3 }
   0xe   : > { %s4656_s6 = scalar_select %p148_p7, %s4549_s20, %s150_s27  }
   0xf   : > { %s7802_s30 = scalar_select %p4650_p8, 1, 0 }
  0x10   : > { %p4658_p10 = pnand %p3712_p6, %p174_p9  ;;  %p4662_p11 = scmp.eq.s32.totalorder %s3710_s24, 0 }
  0x11   : > { %s4563_s9 = smov [#allocation5]   ;;  %s4431_s14 = scalar_lea.hbm %s7612_s3, 256 }
  0x12   : > { %s7803_s7 = scalar_select %p4658_p10, 1, 0 }
  0x13   : > { %s7804_s8 = scalar_select %p4662_p11, 1, 0 }
  0x14   : > { %p3817_p12 = pneg %p4658_p10  ;;  %s192_s10 = sshll.u32 %s4563_s9, 4  ;;  %s193_s10 = int_to_ptr.vmem [resolvable:$true] %s192_s10 }
  0x15   : > { %p4432_p0 = scmp.ne.s32.totalorder %s7612_s3, %s4431_s14  ;;  %p4438_p5 = scmp.lt.u32.totalorder %s4431_s14, %s7612_s3 }
  0x16   : > { %p4670_p13 = pnand %p4662_p11, %p3817_p12 }
  0x18   : > { %p4433_p1 = pneg %p4670_p13 }
  0x1a   : > { %p4434_p2 = pnand %p4433_p1, %p4432_p0 }
  0x1c   : > { %p4435_p3 = pneg %p4434_p2 }
  0x1e   : > { %p4440_p6 = pnand %p4438_p5, %p4435_p3 }
  0x20   : > { %4443 = shalt.err (!%p4440_p6)
}
  0x21   : > { %s4444_s25 = scalar_lea.vmem %s193_s10, 256  ;;  %p4452_p8 = scmp.lt.s32.totalorder %s193_s10, %s193_s10 }
  0x22   : > { %p4445_p7 = scmp.ne.s32.totalorder %s193_s10, %s4444_s25  ;;  %p4453_p4 = scmp.lt.s32.totalorder %s4444_s25, %s4444_s25 }
  0x24   : > { %p4447_p9 = pnand %p4445_p7, %p4433_p1  ;;  %p4454_p11 = por %p4453_p4, %p4452_p8 }
  0x26   : > { %p4448_p12 = pneg %p4447_p9 }
  0x28   : > { %p4455_p10 = pnand %p4454_p11, %p4448_p12 }
  0x2a   : > { %4458 = shalt.err (!%p4455_p10)
}
  0x2b   : > { %s4564_s27 = smov 64   ;;  %s4565_s29 = smov 4  }
  0x2c   : > { %3820 = dma.hbm_to_vmem [thread:$0]  (!%p4670_p13), %s7612_s3, 256, %s193_s10, [#allocation6], %s4564_s27, %s4564_s27, %s4565_s29  }
  0x2d   : > { %p7806_p0 = scmp.ne.s32.totalorder %s7803_s7, 0 }
  0x2f   : > { %219 = sbr.rel (%p7806_p0) target bundleno = 2908 (0xb5c), region = 40 }
  0x36   : > { %p7807_p2 = scmp.ne.s32.totalorder %s7804_s8, 0 }
  0x38   : > { %4512 = dma.done.wait (%p7807_p2), [#allocation6], 256  }
  0x39   : > { %4514 = vsyncadd (%p7807_p2), [#allocation6], 4294967040  ;;  %v4566_v0 = vmov 1   ;;  %v7619_v1 = vmov 0   ;;  %v258_v2 = vld [vmem:[%s7613_s4] sm:$0xff]  ;;  %v259_v3 = vld [vmem:[%s7613_s4 + $0x8] sm:$0xff]  ;;  %v4529_v32 = vlaneseq }
  0x3a   : > { %3885 = vset.pattern.permute.xlu1 %v4566_v0  ;;  %3884 = vset.pattern.permute.xlu0 %v7619_v1  ;;  %v260_v4 = vld [vmem:[%s7613_s4 + $0x10] sm:$0xff]  ;;  %v261_v5 = vld [vmem:[%s7613_s4 + $0x18] sm:$0xff]  ;;  %p247_p4 = scmp.lt.s32.totalorder %s4553_s21, 1  ;;  %v4568_v29 = vmov 1935823168   ;;  %vm435_vm0 = vcmask 261120  }
  0x3b   : > { %480 = vmatprep.mubr.bf16.mxu0 %v7619_v1  ;;  %599 = vmatprep.mubr.bf16.mxu1 %v7619_v1  ;;  %v4527_v30 = vunpack.c.l.s4 %v4568_v29  ;;  %v4530_v33 = vshrl.u32 %v4529_v32, 7  ;;  %vm709_vm1 = vcmask 1043456   ;;  %vm660_vm2 = vcmask 64512   ;;  %s244_s13 = sand.u32 1, %s4545_s19   ;;  %s3810_s16 = sshll.u32 %s4553_s21, 10 }
  0x3c   : > { %384 = vperm.xlu1 %3885, %v258_v2   ;;  %357 = vperm.xlu0 %3884, %v258_v2   ;;  %s248_s17 = scalar_select %p247_p4, %s4553_s21, 1 }
  0x3d   : > { %v4528_v31 = vunpack.c.0.s8 %v4527_v30  ;;  %s3717_s14 = sshll.u32 %s244_s13, 6  ;;  %s7554_s25 = scalar_lea.hbm %s7614_s5, %s3810_s16 }
  0x3e   : > { %s3809_s24 = sshll.u32 %s248_s17, 5  ;;  %s7541_s15 = scalar_lea.vmem [#allocation8], %s3717_s14 }
  0x3f   : > { %s4717_s29 = scalar_lea.vmem %s7609_s0, %s3809_s24  ;;  %v4531_v34 = vsub.s32 %v4528_v31, %v4530_v33  ;;  %s7563_s21 = scalar_lea.sflag [#allocation7], %s244_s13 }
  0x40   : > { %388 = vperm.xlu1 %3885, %v259_v3   ;;  %362 = vperm.xlu0 %3884, %v259_v3   ;;  %v4720_v6 = vld [vmem:[%s4717_s29] sm:$0xff]  ;;  %v4723_v7 = vld [vmem:[%s4717_s29 + $0x8] sm:$0xff]  ;;  %v4728_v10 = vld [vmem:[%s4717_s29 + $0x10] sm:$0xff]  ;;  %p8247_p10 = scmp.ne.s32.totalorder %s7801_s28, 0  ;;  %s4570_s9 = smov [#allocation8]  }
  0x41   : > { %v274_v8 = vunpack.c.l.bf16 %v4720_v6  ;;  %v276_v9 = vunpack.c.l.bf16 %v4723_v7  ;;  %v275_v11 = vunpack.c.h.bf16 %v4720_v6  ;;  %v277_v12 = vunpack.c.h.bf16 %v4723_v7  ;;  %v4738_v15 = vld [vmem:[%s4717_s29 + $0x18] sm:$0xff]  ;;  %s4463_s12 = sshll.u32 %s4570_s9, 4  ;;  %s4464_s12 = int_to_ptr.vmem [resolvable:$false] %s4463_s12 }
  0x42   : > { %v278_v13 = vunpack.c.l.bf16 %v4728_v10  ;;  %v279_v16 = vunpack.c.h.bf16 %v4728_v10  ;;  %v280_v18 = vunpack.c.l.bf16 %v4738_v15  ;;  %4519 = vmul.bf16.f32.vacc0 %v4720_v6, %v4720_v6  ;;  %s4465_s11 = scalar_lea.vmem %s4464_s12, 2048 }
  0x43   : > { %v282_v14 = vadd.f32 %v276_v9, %v274_v8  ;;  %v291_v17 = vadd.f32 %v277_v12, %v275_v11  ;;  %4520 = vmac.bf16.f32.vacc0 %v4723_v7, %v4723_v7  ;;  %v281_v20 = vunpack.c.h.bf16 %v4738_v15 }
  0x44   : > { %3886 = vset.pattern.permute.xlu1 %v7619_v1  ;;  %367 = vperm.xlu0 %3884, %v260_v4   ;;  %4521 = vmac.bf16.f32.vacc0 %v4728_v10, %v4728_v10 }
  0x45   : > { %372 = vperm.xlu1 %3886, %v261_v5   ;;  %v283_v19 = vadd.f32 %v282_v14, %v278_v13  ;;  %v292_v21 = vadd.f32 %v291_v17, %v279_v16  ;;  %4522 = vmac.bf16.f32.vacc0 %v4738_v15, %v4738_v15 }
  0x47   : > { %v284_v22 = vadd.f32 %v283_v19, %v280_v18  ;;  %v293_v23 = vadd.f32 %v292_v21, %v281_v20  ;;  %v4523_v25 = vmovacc.add.low.vacc0 }
  0x48   : > { %3887 = vset.pattern.permute.xlu0 %v4566_v0  ;;  %v4524_v26 = vmovacc.add.high.vacc0 }
  0x49   : > { %3888 = vset.pattern.permute.xlu1 %v4566_v0  ;;  %392 = vperm.xlu0 %3887, %v260_v4   ;;  %v285_v24 = vrot.slane %v284_v22, 4  ;;  %v294_v37 = vrot.slane %v293_v23, 4 }
  0x4a   : > { %396 = vperm.xlu1 %3888, %v261_v5   ;;  %v4525_v27 = vcombine.low %v4523_v25, %v4524_v26  ;;  %v4526_v28 = vcombine.high %v4523_v25, %v4524_v26 }
  0x4b   : > { %v286_v38 = vadd.f32 %v285_v24, %v284_v22  ;;  %v295_v40 = vadd.f32 %v294_v37, %v293_v23 }
  0x4c   : > { %v4532_v35 = vrot.slane %v4525_v27, %v4531_v34  ;;  %v4538_v36 = vrot.slane %v4526_v28, %v4531_v34 }
  0x4d   : > { %v287_v42 = vrot.slane %v286_v38, 2  ;;  %v296_v44 = vrot.slane %v295_v40, 2 }
  0x4e   : > { %v314_v39 = vrot.slane %v4532_v35, 4  ;;  %v323_v41 = vrot.slane %v4538_v36, 4 }
  0x4f   : > { %v288_v46 = vadd.f32 %v287_v42, %v286_v38  ;;  %v297_v48 = vadd.f32 %v296_v44, %v295_v40 }
  0x50   : > { %v315_v43 = vadd.f32 %v4532_v35, %v314_v39  ;;  %v324_v45 = vadd.f32 %v4538_v36, %v323_v41 }
  0x51   : > { %v289_v50 = vrot.slane %v288_v46, 1  ;;  %v298_v52 = vrot.slane %v297_v48, 1 }
  0x52   : > { %v316_v47 = vrot.slane %v315_v43, 2  ;;  %v325_v49 = vrot.slane %v324_v45, 2 }
  0x53   : > { %v290_v54 = vadd.f32 %v289_v50, %v288_v46  ;;  %v299_v56 = vadd.f32 %v298_v52, %v297_v48 }
  0x54   : > { %v317_v51 = vadd.f32 %v316_v47, %v315_v43  ;;  %v326_v53 = vadd.f32 %v325_v49, %v324_v45 }
  0x55   : > { %v301_v58 = vmul.f32 0.03125, %v290_v54  ;;  %v302_v60 = vmul.f32 0.03125, %v299_v56  ;;  %v3892_v54 = vld [vmem:[%s7610_s1] sm:$0xff]  }
  0x56   : > { %v318_v55 = vrot.slane %v317_v51, 1  ;;  %v327_v57 = vrot.slane %v326_v53, 1 }
  0x57   : > { %v331_v63 = vmul.f32 %v301_v58, %v301_v58  ;;  %v332_v2 = vmul.f32 %v302_v60, %v302_v60  ;;  %v335_v19 = vsub.f32 %v274_v8, %v301_v58  ;;  %v336_v21 = vsub.f32 %v275_v11, %v302_v60 }
  0x58   : > { %v319_v59 = vadd.f32 %v318_v55, %v317_v51  ;;  %v328_v61 = vadd.f32 %v327_v57, %v326_v53  ;;  %v337_v23 = vsub.f32 %v276_v9, %v301_v58  ;;  %v338_v24 = vsub.f32 %v277_v12, %v302_v60  ;;  %v3891_v53 = vld [vmem:[%s7611_s2] sm:$0xff]   ;;  %v3893_v55 = vld [vmem:[%s7610_s1 + $0x8] sm:$0xff]  }
  0x59   : > { %v339_v6 = vsub.f32 %v278_v13, %v301_v58  ;;  %v340_v11 = vsub.f32 %v279_v16, %v302_v60  ;;  %v341_v7 = vsub.f32 %v280_v18, %v301_v58  ;;  %v342_v12 = vsub.f32 %v281_v20, %v302_v60 }
  0x5a   : > { %v329_v62 = vmul.f32 0.03125, %v319_v59  ;;  %v330_v0 = vmul.f32 0.03125, %v328_v61 }
  0x5c   : > { %v333_v3 = vsub.f32 %v329_v62, %v331_v63  ;;  %v334_v4 = vsub.f32 %v330_v0, %v332_v2 }
  0x5e   : > { %v343_v5 = vadd.f32 1e-05, %v333_v3  ;;  %v344_v14 = vadd.f32 1e-05, %v334_v4 }
  0x60   : > { %3899 = vrsqrt.f32 %v343_v5 }
  0x61   : > { %3901 = vrsqrt.f32 %v344_v14 }
  0x6a   : > { %v3900_v17 = vpop.eup %3899 }
  0x6b   : > { %v3902_v22 = vpop.eup %3901  ;;  %v347_v25 = vmul.f32 %v3900_v17, %v335_v19  ;;  %v349_v29 = vmul.f32 %v3900_v17, %v337_v23  ;;  %v351_v39 = vmul.f32 %v3900_v17, %v339_v6  ;;  %v353_v42 = vmul.f32 %v3900_v17, %v341_v7 }
  0x6c   : > { %v348_v26 = vmul.f32 %v3902_v22, %v336_v21  ;;  %v350_v30 = vmul.f32 %v3902_v22, %v338_v24  ;;  %v352_v40 = vmul.f32 %v3902_v22, %v340_v11  ;;  %v354_v13 = vmul.f32 %v3902_v22, %v342_v12  ;;  %v3894_v24 = vld [vmem:[%s7611_s2 + $0x8] sm:$0xff]  }
  0xbb   : > { %v385_v27 = vpop.permute.xlu1 %384  ;;  %v358_v28 = vpop.permute.xlu0 %357 }
  0xbc   : > { %v375_v31 = vmul.f32 %v358_v28, %v347_v25  ;;  %v376_v32 = vmul.f32 %v358_v28, %v348_v26  ;;  %v3895_v25 = vld [vmem:[%s7611_s2 + $0x10] sm:$0xff]  }
  0xbe   : > { %v400_v35 = vadd.f32 %v385_v27, %v376_v32  ;;  %v399_v37 = vadd.f32 %v385_v27, %v375_v31 }
  0xbf   : > { %v389_v33 = vpop.permute.xlu1 %388  ;;  %v363_v8 = vpop.permute.xlu0 %362 }
  0xc0   : > { %v377_v9 = vmul.f32 %v363_v8, %v349_v29  ;;  %v378_v34 = vmul.f32 %v363_v8, %v350_v30 }
  0xc2   : > { %v402_v36 = vadd.f32 %v389_v33, %v378_v34  ;;  %v401_v38 = vadd.f32 %v389_v33, %v377_v9 }
  0xc3   : > { %v368_v41 = vpop.permute.xlu0 %367 }
  0xc4   : > { %v373_v43 = vpop.permute.xlu1 %372  ;;  %v408_v10 = vpack.c.bf16 %v402_v36, %v400_v35  ;;  %v407_v16 = vpack.c.bf16 %v401_v38, %v399_v37  ;;  %v379_v44 = vmul.f32 %v368_v41, %v351_v39  ;;  %v380_v45 = vmul.f32 %v368_v41, %v352_v40 }
  0xc5   : > { %v381_v15 = vmul.f32 %v373_v43, %v353_v42  ;;  %v382_v18 = vmul.f32 %v373_v43, %v354_v13 }
  0xc6   : > { %448 = vmatprep.subr.bf16.mxu0 %v408_v10  ;;  %567 = vmatprep.subr.bf16.mxu1 %v408_v10 }
  0xc7   : > { %449 = vmatpush1.bf16.msra.mxu0 %v407_v16  ;;  %568 = vmatpush1.bf16.msra.mxu1 %v407_v16 }
  0xc8   : > { %v393_v20 = vpop.permute.xlu0 %392 }
  0xc9   : > { %v403_v46 = vadd.f32 %v393_v20, %v379_v44  ;;  %v404_v47 = vadd.f32 %v393_v20, %v380_v45  ;;  %v397_v48 = vpop.permute.xlu1 %396 }
  0xca   : > { %v405_v49 = vadd.f32 %v397_v48, %v381_v15  ;;  %v406_v50 = vadd.f32 %v397_v48, %v382_v18 }
  0xcc   : > { %v409_v51 = vpack.c.bf16 %v405_v49, %v403_v46  ;;  %v410_v52 = vpack.c.bf16 %v406_v50, %v404_v47 }
  0xce   : > { %450 = vmatprep.subr.bf16.mxu0 %v410_v52  ;;  %569 = vmatprep.subr.bf16.mxu1 %v410_v52 }
  0xcf   : > { %451 = vmatpush1.bf16.msra.mxu0 %v409_v51  ;;  %570 = vmatpush1.bf16.msra.mxu1 %v409_v51 }
  0xd2   : > { %3724 = vmatmul.mubr.msk.bf16.vlgmr.msra.gmra.mrb[0].mxu0 %vm435_vm0, %v3891_v53  ;;  %3730 = vmatmul.mubr.msk.bf16.vlgmr.msra.gmra.mrb[0].mxu1 %vm435_vm0, %v3892_v54 }
  0xd3   : > { %609 = vmatprep.mubr.bf16.mxu1 %v7619_v1  ;;  %490 = vmatprep.mubr.bf16.mxu0 %v7619_v1 }
  0xda   : > { %3731 = vmatmul.mubr.msk.bf16.gmra.mrb[4].mxu1 %vm435_vm0, %v3893_v55  ;;  %3725 = vmatmul.mubr.msk.bf16.gmra.mrb[4].mxu0 %vm435_vm0, %v3894_v24 }
  0xdb   : > { %748 = vmatprep.mubr.bf16.mxu1 %v7619_v1  ;;  %500 = vmatprep.mubr.bf16.mxu0 %v7619_v1 }
  0xe2   : > { %3726 = vmatmul.mubr.msk.bf16.gmra.mrb[8].mxu0 %vm435_vm0, %v3895_v25 }
  0xe3   : > { %510 = vmatprep.mubr.bf16.mxu0 %v7619_v1 }
 0x1a5   : > { %v482_v56 = vpop.f32.mrb[0].mxu0  ;;  %v601_v57 = vpop.f32.mrb[0].mxu1 }
 0x1a6   : > { %v484_v58 = vpop.f32.mrb[1].mxu0  ;;  %v603_v59 = vpop.f32.mrb[1].mxu1 }
 0x1a7   : > { %v486_v60 = vpop.f32.mrb[2].mxu0  ;;  %v605_v61 = vpop.f32.mrb[2].mxu1 }
 0x1a8   : > { %v521_v62 = vpack.c.bf16 %v486_v60, %v482_v56  ;;  %v488_v63 = vpop.f32.mrb[3].mxu0  ;;  %v4794_v0 = vpack.c.bf16 %v605_v61, %v601_v57  ;;  %v607_v2 = vpop.f32.mrb[3].mxu1 }
 0x1a9   : > { %v522_v3 = vpack.c.bf16 %v488_v63, %v484_v58  ;;  %v4796_v4 = vpack.c.bf16 %v607_v2, %v603_v59 }
 0x1aa   : > { %7808 = vst [vmem:[#allocation11_spill] sm:$0xff] %v4794_v0  ;;  %529 = vst [vmem:[#allocation3] sm:$0xff] %v521_v62  ;;  %v711_v5 = vsel %vm709_vm1, %v4794_v0, 0 }
 0x1ab   : > { %7809 = vst [vmem:[#allocation12_spill] sm:$0xff] %v4796_v4  ;;  %530 = vst [vmem:[#allocation3 + $0x8] sm:$0xff] %v522_v3  ;;  %3732 = vmatprep.subr.msk.bf16.mxu1 %vm709_vm1, %v4796_v4 }
 0x1ac   : > { %717 = vmatpush1.bf16.msra.mxu1 %v711_v5 }
 0x1ad   : > { %v611_v28 = vpop.f32.mrb[4].mxu1 }
 0x1ae   : > { %v613_v30 = vpop.f32.mrb[5].mxu1 }
 0x1af   : > { %v615_v31 = vpop.f32.mrb[6].mxu1 }
 0x1b0   : > { %v4816_v32 = vpack.c.bf16 %v615_v31, %v611_v28  ;;  %v617_v33 = vpop.f32.mrb[7].mxu1 }
 0x1b1   : > { %v624_v14 = vld [vmem:[#allocation3] sm:$0xf]  ;;  %v1328_v21 = vld [vmem:[#allocation3] sm:$0xf0]  ;;  %v4819_v8 = vpack.c.bf16 %v617_v33, %v613_v30 }
 0x1b2   : > { %628 = vxpose.xlu1.c.b16.start.end [1/1] (short) %v624_v14, 128  ;;  %v625_v17 = vld [vmem:[#allocation3 + $0x8] sm:$0xf]  ;;  %v1329_v19 = vld [vmem:[#allocation3 + $0x8] sm:$0xf0]  ;;  %v1334_v23 = vrot.slane %v1328_v21, 4  ;;  %7810 = vst [vmem:[#allocation13_spill] sm:$0xff] %v4816_v32 }
 0x1b3   : > { %644 = vxpose.xlu0.c.b16.start.end [1/1] (short) %v625_v17, 128  ;;  %v1335_v22 = vrot.slane %v1329_v19, 4  ;;  %7811 = vst [vmem:[#allocation14_spill] sm:$0xff] %v4819_v8 }
 0x1cf   : > { %1354 = vxpose.xlu1.c.b16.start.end [1/1] (short) %v1335_v22, 128 }
 0x1d0   : > { %1338 = vxpose.xlu0.c.b16.start.end [1/1] (short) %v1334_v23, 128 }
 0x218   : > { %v636_v26 = vpop.trf.xlu1 }
 0x219   : > { %3733 = vmatmul.mubr.msk.bf16.vlgmr.msra.gmra.mrb[8].mxu1 %vm660_vm2, %v636_v26  ;;  %v652_v12 = vpop.trf.xlu0 }
 0x21a   : > { %758 = vmatprep.mubr.bf16.mxu1 %v7619_v1 }
 0x21c   : > { %v637_v27 = vpop.trf.xlu1 }
 0x21d   : > { %v653_v35 = vpop.trf.xlu0 }
 0x220   : > { %v638_v29 = vpop.trf.xlu1 }
 0x221   : > { %3734 = vmatmul.mubr.msk.bf16.gmra.mrb[12].mxu1 %vm660_vm2, %v637_v27  ;;  %v654_v36 = vpop.trf.xlu0 }
 0x222   : > { %768 = vmatprep.mubr.bf16.mxu1 %v7619_v1 }
 0x224   : > { %v639_v6 = vpop.trf.xlu1 }
 0x225   : > { %v655_v37 = vpop.trf.xlu0 }
 0x228   : > { %v640_v11 = vpop.trf.xlu1 }
 0x229   : > { %3735 = vmatmul.mubr.msk.bf16.gmra.mrb[16].mxu1 %vm660_vm2, %v638_v29  ;;  %v656_v38 = vpop.trf.xlu0 }
 0x22a   : > { %778 = vmatprep.mubr.bf16.mxu1 %v7619_v1 }
 0x22c   : > { %v641_v9 = vpop.trf.xlu1 }
 0x22d   : > { %v657_v39 = vpop.trf.xlu0 }
 0x230   : > { %v642_v34 = vpop.trf.xlu1 }
 0x231   : > { %3736 = vmatmul.mubr.msk.bf16.gmra.mrb[20].mxu1 %vm660_vm2, %v639_v6  ;;  %v658_v40 = vpop.trf.xlu0 }
 0x232   : > { %788 = vmatprep.mubr.bf16.mxu1 %v7619_v1 }
 0x234   : > { %v643_v7 = vpop.trf.xlu1 }
 0x235   : > { %v659_v41 = vpop.trf.xlu0 }
 0x239   : > { %3737 = vmatmul.mubr.msk.bf16.gmra.mrb[24].mxu1 %vm660_vm2, %v640_v11 }
 0x23a   : > { %798 = vmatprep.mubr.bf16.mxu1 %v7619_v1 }
 0x241   : > { %3738 = vmatmul.mubr.msk.bf16.gmra.mrb[28].mxu1 %vm660_vm2, %v641_v9 }
 0x242   : > { %808 = vmatprep.mubr.bf16.mxu1 %v7619_v1 }
 0x249   : > { %3739 = vmatmul.mubr.msk.bf16.gmra.mrb[32].mxu1 %vm660_vm2, %v642_v34 }
 0x24a   : > { %818 = vmatprep.mubr.bf16.mxu1 %v7619_v1 }
 0x251   : > { %3740 = vmatmul.mubr.msk.bf16.gmra.mrb[36].mxu1 %vm660_vm2, %v643_v7 }
 0x252   : > { %828 = vmatprep.mubr.bf16.mxu1 %v7619_v1 }
 0x259   : > { %3741 = vmatmul.mubr.msk.bf16.gmra.mrb[40].mxu1 %vm660_vm2, %v652_v12 }
 0x25a   : > { %838 = vmatprep.mubr.bf16.mxu1 %v7619_v1 }
 0x261   : > { %3742 = vmatmul.mubr.msk.bf16.gmra.mrb[44].mxu1 %vm660_vm2, %v653_v35 }
 0x262   : > { %848 = vmatprep.mubr.bf16.mxu1 %v7619_v1 }
 0x269   : > { %3743 = vmatmul.mubr.msk.bf16.gmra.mrb[48].mxu1 %vm660_vm2, %v654_v36 }
 0x26a   : > { %858 = vmatprep.mubr.bf16.mxu1 %v7619_v1 }
 0x271   : > { %3744 = vmatmul.mubr.msk.bf16.gmra.mrb[52].mxu1 %vm660_vm2, %v655_v37 }
 0x272   : > { %868 = vmatprep.mubr.bf16.mxu1 %v7619_v1 }
 0x279   : > { %3745 = vmatmul.mubr.msk.bf16.gmra.mrb[56].mxu1 %vm660_vm2, %v656_v38 }
 0x27a   : > { %878 = vmatprep.mubr.bf16.mxu1 %v7619_v1 }
 0x281   : > { %3746 = vmatmul.mubr.msk.bf16.gmra.mrb[60].mxu1 %vm660_vm2, %v657_v39 }
 0x282   : > { %888 = vmatprep.mubr.bf16.mxu1 %v7619_v1 }
 0x289   : > { %3747 = vmatmul.mubr.msk.bf16.gmra.mrb[64].mxu1 %vm660_vm2, %v658_v40 }
 0x28a   : > { %898 = vmatprep.mubr.bf16.mxu1 %v7619_v1 }
 0x291   : > { %3748 = vmatmul.mubr.msk.bf16.gmra.mrb[68].mxu1 %vm660_vm2, %v659_v41 }
 0x2ec   : > { %v4847_v42 = vpop.f32.mrb[8].mxu1 }
 0x2ed   : > { %v4849_v13 = vpop.f32.mrb[9].mxu1 }
 0x2ee   : > { %v4851_v43 = vpop.f32.mrb[10].mxu1 }
 0x2ef   : > { %v4853_v10 = vpop.f32.mrb[11].mxu1 }
 0x2f4   : > { %v4855_v16 = vpop.f32.mrb[12].mxu1 }
 0x2f5   : > { %v909_v44 = vmax.f32 %v4847_v42, %v4855_v16  ;;  %v4859_v45 = vpop.f32.mrb[13].mxu1 }
 0x2f6   : > { %v946_v15 = vmax.f32 %v4849_v13, %v4859_v45  ;;  %v4863_v18 = vpop.f32.mrb[14].mxu1 }
 0x2f7   : > { %v910_v20 = vmax.f32 %v4851_v43, %v4863_v18  ;;  %v4867_v46 = vpop.f32.mrb[15].mxu1 }
 0x2f8   : > { %v947_v47 = vmax.f32 %v4853_v10, %v4867_v46 }
 0x2fc   : > { %v4871_v48 = vpop.f32.mrb[16].mxu1 }
 0x2fd   : > { %v911_v49 = vmax.f32 %v909_v44, %v4871_v48  ;;  %v4874_v50 = vpop.f32.mrb[17].mxu1 }
 0x2fe   : > { %v948_v51 = vmax.f32 %v946_v15, %v4874_v50  ;;  %v4877_v52 = vpop.f32.mrb[18].mxu1 }
 0x2ff   : > { %v912_v53 = vmax.f32 %v910_v20, %v4877_v52  ;;  %v4880_v54 = vpop.f32.mrb[19].mxu1 }
 0x300   : > { %v949_v55 = vmax.f32 %v947_v47, %v4880_v54 }
 0x304   : > { %v4883_v56 = vpop.f32.mrb[20].mxu1 }
 0x305   : > { %v913_v57 = vmax.f32 %v911_v49, %v4883_v56  ;;  %v4886_v58 = vpop.f32.mrb[21].mxu1 }
 0x306   : > { %v950_v59 = vmax.f32 %v948_v51, %v4886_v58  ;;  %v4889_v60 = vpop.f32.mrb[22].mxu1 }
 0x307   : > { %v914_v61 = vmax.f32 %v912_v53, %v4889_v60  ;;  %v4892_v62 = vpop.f32.mrb[23].mxu1 }
 0x308   : > { %v951_v63 = vmax.f32 %v949_v55, %v4892_v62 }
 0x30c   : > { %v4895_v2 = vpop.f32.mrb[24].mxu1 }
 0x30d   : > { %v915_v3 = vmax.f32 %v913_v57, %v4895_v2  ;;  %v4898_v5 = vpop.f32.mrb[25].mxu1 }
 0x30e   : > { %v952_v14 = vmax.f32 %v950_v59, %v4898_v5  ;;  %v4901_v17 = vpop.f32.mrb[26].mxu1 }
 0x30f   : > { %v916_v19 = vmax.f32 %v914_v61, %v4901_v17  ;;  %v4904_v21 = vpop.f32.mrb[27].mxu1 }
 0x310   : > { %v953_v22 = vmax.f32 %v951_v63, %v4904_v21 }
 0x314   : > { %v4907_v23 = vpop.f32.mrb[28].mxu1 }
 0x315   : > { %v917_v24 = vmax.f32 %v915_v3, %v4907_v23  ;;  %v4910_v25 = vpop.f32.mrb[29].mxu1 }
 0x316   : > { %v954_v26 = vmax.f32 %v952_v14, %v4910_v25  ;;  %v4913_v27 = vpop.f32.mrb[30].mxu1 }
 0x317   : > { %v918_v28 = vmax.f32 %v916_v19, %v4913_v27  ;;  %v4916_v29 = vpop.f32.mrb[31].mxu1 }
 0x318   : > { %7812 = vst [vmem:[#allocation15_spill] sm:$0xff] %v4916_v29  ;;  %v955_v30 = vmax.f32 %v953_v22, %v4916_v29 }
 0x31c   : > { %v4919_v31 = vpop.f32.mrb[32].mxu1 }
 0x31d   : > { %v919_v33 = vmax.f32 %v917_v24, %v4919_v31  ;;  %v4922_v6 = vpop.f32.mrb[33].mxu1 }
 0x31e   : > { %7813 = vst [vmem:[#allocation16_spill] sm:$0xff] %v4922_v6  ;;  %v956_v11 = vmax.f32 %v954_v26, %v4922_v6  ;;  %v4925_v9 = vpop.f32.mrb[34].mxu1 }
 0x31f   : > { %v920_v34 = vmax.f32 %v918_v28, %v4925_v9  ;;  %v4928_v7 = vpop.f32.mrb[35].mxu1 }
 0x320   : > { %7814 = vst [vmem:[#allocation17_spill] sm:$0xff] %v4928_v7  ;;  %v957_v12 = vmax.f32 %v955_v30, %v4928_v7 }
 0x324   : > { %v4931_v35 = vpop.f32.mrb[36].mxu1 }
 0x325   : > { %v921_v36 = vmax.f32 %v919_v33, %v4931_v35  ;;  %v4934_v37 = vpop.f32.mrb[37].mxu1 }
 0x326   : > { %7815 = vst [vmem:[#allocation18_spill] sm:$0xff] %v4934_v37  ;;  %v958_v38 = vmax.f32 %v956_v11, %v4934_v37  ;;  %v4937_v39 = vpop.f32.mrb[38].mxu1 }
 0x327   : > { %v922_v40 = vmax.f32 %v920_v34, %v4937_v39  ;;  %v4940_v41 = vpop.f32.mrb[39].mxu1 }
 0x328   : > { %7816 = vst [vmem:[#allocation19_spill] sm:$0xff] %v4940_v41  ;;  %v959_v44 = vmax.f32 %v957_v12, %v4940_v41 }
 0x32c   : > { %v4943_v15 = vpop.f32.mrb[40].mxu1 }
 0x32d   : > { %v923_v20 = vmax.f32 %v921_v36, %v4943_v15  ;;  %v4946_v47 = vpop.f32.mrb[41].mxu1 }
 0x32e   : > { %7817 = vst [vmem:[#allocation20_spill] sm:$0xff] %v4946_v47  ;;  %v960_v49 = vmax.f32 %v958_v38, %v4946_v47  ;;  %v4949_v51 = vpop.f32.mrb[42].mxu1 }
 0x32f   : > { %v924_v53 = vmax.f32 %v922_v40, %v4949_v51  ;;  %v4952_v55 = vpop.f32.mrb[43].mxu1 }
 0x330   : > { %7818 = vst [vmem:[#allocation21_spill] sm:$0xff] %v4952_v55  ;;  %v961_v57 = vmax.f32 %v959_v44, %v4952_v55 }
 0x334   : > { %v4955_v59 = vpop.f32.mrb[44].mxu1 }
 0x335   : > { %v925_v61 = vmax.f32 %v923_v20, %v4955_v59  ;;  %v4958_v63 = vpop.f32.mrb[45].mxu1 }
 0x336   : > { %7819 = vst [vmem:[#allocation22_spill] sm:$0xff] %v4958_v63  ;;  %v962_v3 = vmax.f32 %v960_v49, %v4958_v63  ;;  %v4961_v14 = vpop.f32.mrb[46].mxu1 }
 0x337   : > { %v926_v19 = vmax.f32 %v924_v53, %v4961_v14  ;;  %v4964_v22 = vpop.f32.mrb[47].mxu1 }
 0x338   : > { %7820 = vst [vmem:[#allocation23_spill] sm:$0xff] %v4964_v22  ;;  %v963_v24 = vmax.f32 %v961_v57, %v4964_v22 }
 0x33c   : > { %v4967_v26 = vpop.f32.mrb[48].mxu1 }
 0x33d   : > { %v927_v28 = vmax.f32 %v925_v61, %v4967_v26  ;;  %v4970_v30 = vpop.f32.mrb[49].mxu1 }
 0x33e   : > { %7821 = vst [vmem:[#allocation24_spill] sm:$0xff] %v4970_v30  ;;  %v964_v33 = vmax.f32 %v962_v3, %v4970_v30  ;;  %v4973_v11 = vpop.f32.mrb[50].mxu1 }
 0x33f   : > { %v928_v34 = vmax.f32 %v926_v19, %v4973_v11  ;;  %v4976_v12 = vpop.f32.mrb[51].mxu1 }
 0x340   : > { %7822 = vst [vmem:[#allocation25_spill] sm:$0xff] %v4976_v12  ;;  %v965_v36 = vmax.f32 %v963_v24, %v4976_v12 }
 0x344   : > { %v4979_v38 = vpop.f32.mrb[52].mxu1 }
 0x345   : > { %v929_v40 = vmax.f32 %v927_v28, %v4979_v38  ;;  %v4982_v44 = vpop.f32.mrb[53].mxu1 }
 0x346   : > { %7823 = vst [vmem:[#allocation26_spill] sm:$0xff] %v4982_v44  ;;  %v966_v20 = vmax.f32 %v964_v33, %v4982_v44  ;;  %v4985_v49 = vpop.f32.mrb[54].mxu1 }
 0x347   : > { %v930_v53 = vmax.f32 %v928_v34, %v4985_v49  ;;  %v4988_v57 = vpop.f32.mrb[55].mxu1 }
 0x348   : > { %7824 = vst [vmem:[#allocation27_spill] sm:$0xff] %v4988_v57  ;;  %v967_v61 = vmax.f32 %v965_v36, %v4988_v57  ;;  %v492_v57 = vpop.f32.mrb[4].mxu0 }
 0x349   : > { %v494_v44 = vpop.f32.mrb[5].mxu0 }
 0x34a   : > { %v496_v12 = vpop.f32.mrb[6].mxu0 }
 0x34b   : > { %v523_v30 = vpack.c.bf16 %v496_v12, %v492_v57 }
 0x34c   : > { %v4991_v3 = vpop.f32.mrb[56].mxu1 }
 0x34d   : > { %v931_v19 = vmax.f32 %v929_v40, %v4991_v3  ;;  %v4994_v24 = vpop.f32.mrb[57].mxu1  ;;  %531 = vst [vmem:[#allocation3 + $0x10] sm:$0xff] %v523_v30 }
 0x34e   : > { %7825 = vst [vmem:[#allocation28_spill] sm:$0xff] %v4994_v24  ;;  %v968_v28 = vmax.f32 %v966_v20, %v4994_v24  ;;  %v4997_v1 = vpop.f32.mrb[58].mxu1 }
 0x34f   : > { %v932_v33 = vmax.f32 %v930_v53, %v4997_v1  ;;  %v5000_v32 = vpop.f32.mrb[59].mxu1 }
 0x350   : > { %7826 = vst [vmem:[#allocation29_spill] sm:$0xff] %v5000_v32  ;;  %v969_v34 = vmax.f32 %v967_v61, %v5000_v32  ;;  %v498_v61 = vpop.f32.mrb[7].mxu0 }
 0x351   : > { %v502_v41 = vpop.f32.mrb[8].mxu0 }
 0x352   : > { %v504_v37 = vpop.f32.mrb[9].mxu0 }
 0x354   : > { %v5003_v8 = vpop.f32.mrb[60].mxu1  ;;  %v2046_v57 = vld [vmem:[#allocation3 + $0x10] sm:$0xf] }
 0x355   : > { %v933_v36 = vmax.f32 %v931_v19, %v5003_v8  ;;  %v5006_v4 = vpop.f32.mrb[61].mxu1  ;;  %v524_v19 = vpack.c.bf16 %v498_v61, %v494_v44  ;;  %2050 = vxpose.xlu0.c.b16.start.end [1/1] (short) %v2046_v57, 128 }
 0x356   : > { %7827 = vst [vmem:[#allocation30_spill] sm:$0xff] %v5006_v4  ;;  %v970_v40 = vmax.f32 %v968_v28, %v5006_v4  ;;  %v5009_v0 = vpop.f32.mrb[62].mxu1 }
 0x357   : > { %v934_v20 = vmax.f32 %v932_v33, %v5009_v0  ;;  %v5012_v24 = vpop.f32.mrb[63].mxu1  ;;  %532 = vst [vmem:[#allocation3 + $0x18] sm:$0xff] %v524_v19 }
 0x358   : > { %7828 = vst [vmem:[#allocation31_spill] sm:$0xff] %v5012_v24  ;;  %v971_v53 = vmax.f32 %v969_v34, %v5012_v24 }
 0x35c   : > { %v5015_v32 = vpop.f32.mrb[64].mxu1 }
 0x35d   : > { %v935_v22 = vmax.f32 %v933_v36, %v5015_v32  ;;  %v5018_v63 = vpop.f32.mrb[65].mxu1 }
 0x35e   : > { %7829 = vst [vmem:[#allocation32_spill] sm:$0xff] %v5018_v63  ;;  %v972_v28 = vmax.f32 %v970_v40, %v5018_v63  ;;  %v5021_v4 = vpop.f32.mrb[66].mxu1  ;;  %v2047_v36 = vld [vmem:[#allocation3 + $0x18] sm:$0xf] }
 0x35f   : > { %v936_v33 = vmax.f32 %v934_v20, %v5021_v4  ;;  %v5024_v34 = vpop.f32.mrb[67].mxu1  ;;  %2066 = vxpose.xlu1.c.b16.start.end [1/1] (short) %v2047_v36, 128  ;;  %v506_v36 = vpop.f32.mrb[10].mxu0 }
 0x360   : > { %7830 = vst [vmem:[#allocation33_spill] sm:$0xff] %v5024_v34  ;;  %v973_v24 = vmax.f32 %v971_v53, %v5024_v34  ;;  %v525_v7 = vpack.c.bf16 %v506_v36, %v502_v41  ;;  %v508_v6 = vpop.f32.mrb[11].mxu0 }
 0x362   : > { %533 = vst [vmem:[#allocation3 + $0x20] sm:$0xff] %v525_v7 }
 0x364   : > { %v5027_v55 = vpop.f32.mrb[68].mxu1 }
 0x365   : > { %v937_v12 = vmax.f32 %v935_v22, %v5027_v55  ;;  %v5030_v44 = vpop.f32.mrb[69].mxu1 }
 0x366   : > { %7831 = vst [vmem:[#allocation34_spill] sm:$0xff] %v5030_v44  ;;  %v974_v40 = vmax.f32 %v972_v28, %v5030_v44  ;;  %v5033_v61 = vpop.f32.mrb[70].mxu1  ;;  %v3896_v28 = vld [vmem:[%s7611_s2 + $0x18] sm:$0xff]  }
 0x367   : > { %v938_v30 = vmax.f32 %v936_v33, %v5033_v61  ;;  %v5036_v20 = vpop.f32.mrb[71].mxu1  ;;  %3727 = vmatmul.mubr.msk.bf16.gmra.mrb[12].mxu0 %vm435_vm0, %v3896_v28 }
 0x368   : > { %7832 = vst [vmem:[#allocation35_spill] sm:$0xff] %v5036_v20  ;;  %v975_v53 = vmax.f32 %v973_v24, %v5036_v20 }
 0x369   : > { %v939_v19 = vmax.f32 %v937_v12, %v938_v30  ;;  %v526_v12 = vpack.c.bf16 %v508_v6, %v504_v37 }
 0x36a   : > { %v976_v34 = vmax.f32 %v974_v40, %v975_v53  ;;  %v2749_v53 = vld [vmem:[#allocation3 + $0x18] sm:$0xf0] }
 0x36b   : > { %v940_v63 = vrot.slane %v939_v19, 4  ;;  %534 = vst [vmem:[#allocation3 + $0x28] sm:$0xff] %v526_v12  ;;  %v2755_v29 = vrot.slane %v2749_v53, 4 }
 0x36c   : > { %v977_v22 = vrot.slane %v976_v34, 4 }
 0x36d   : > { %v941_v47 = vmax.f32 %v939_v19, %v940_v63  ;;  %v2748_v63 = vld [vmem:[#allocation3 + $0x10] sm:$0xf0] }
 0x36e   : > { %v978_v44 = vmax.f32 %v976_v34, %v977_v22  ;;  %v2754_v22 = vrot.slane %v2748_v63, 4 }
 0x36f   : > { %v942_v57 = vrot.slane %v941_v47, 2 }
 0x370   : > { %v979_v33 = vrot.slane %v978_v44, 2 }
 0x371   : > { %v943_v24 = vmax.f32 %v941_v47, %v942_v57 }
 0x372   : > { %v980_v40 = vmax.f32 %v978_v44, %v979_v33  ;;  %v627_v57 = vld [vmem:[#allocation3 + $0x28] sm:$0xf]  ;;  %2758 = vxpose.xlu0.c.b16.start.end [1/1] (short) %v2754_v22, 128 }
 0x373   : > { %v944_v30 = vrot.slane %v943_v24, 1  ;;  %1315 = vmatprep.mubr.bf16.mxu0 %v627_v57 }
 0x374   : > { %v981_v19 = vrot.slane %v980_v40, 1 }
 0x375   : > { %v5043_v20 = vmax.f32 %v943_v24, %v944_v30 }
 0x376   : > { %v5045_v34 = vmax.f32 %v980_v40, %v981_v19 }
 0x377   : > { %v983_v28 = vsub.f32 %v4847_v42, %v5043_v20  ;;  %v985_v41 = vsub.f32 %v4851_v43, %v5043_v20  ;;  %v987_v6 = vsub.f32 %v4855_v16, %v5043_v20  ;;  %v989_v7 = vsub.f32 %v4863_v18, %v5043_v20 }
 0x378   : > { %v991_v37 = vsub.f32 %v4871_v48, %v5043_v20  ;;  %v993_v47 = vsub.f32 %v4877_v52, %v5043_v20  ;;  %v995_v44 = vsub.f32 %v4883_v56, %v5043_v20  ;;  %v997_v42 = vsub.f32 %v4889_v60, %v5043_v20 }
 0x379   : > { %v999_v43 = vsub.f32 %v4895_v2, %v5043_v20  ;;  %v1001_v16 = vsub.f32 %v4901_v17, %v5043_v20  ;;  %v1003_v18 = vsub.f32 %v4907_v23, %v5043_v20  ;;  %v1005_v48 = vsub.f32 %v4913_v27, %v5043_v20 }
 0x37a   : > { %v1007_v52 = vsub.f32 %v4919_v31, %v5043_v20  ;;  %v1009_v56 = vsub.f32 %v4925_v9, %v5043_v20  ;;  %v1011_v60 = vsub.f32 %v4931_v35, %v5043_v20  ;;  %v1013_v2 = vsub.f32 %v4937_v39, %v5043_v20 }
 0x37b   : > { %v1015_v17 = vsub.f32 %v4943_v15, %v5043_v20  ;;  %v1017_v23 = vsub.f32 %v4949_v51, %v5043_v20  ;;  %v1019_v27 = vsub.f32 %v4955_v59, %v5043_v20  ;;  %v1021_v31 = vsub.f32 %v4961_v14, %v5043_v20  ;;  %v7852_v59 = vld [vmem:[#allocation34_spill] sm:$0xff] }
 0x37c   : > { %v1023_v9 = vsub.f32 %v4967_v26, %v5043_v20  ;;  %v1025_v35 = vsub.f32 %v4973_v11, %v5043_v20  ;;  %v1027_v39 = vsub.f32 %v4979_v38, %v5043_v20  ;;  %v1029_v15 = vsub.f32 %v4985_v49, %v5043_v20  ;;  %2774 = vxpose.xlu1.c.b16.start.end [1/1] (short) %v2755_v29, 128 }
 0x37d   : > { %v1047_v33 = vmul.f32 1.442695, %v983_v28  ;;  %v1051_v24 = vmul.f32 1.442695, %v985_v41  ;;  %v1055_v12 = vmul.f32 1.442695, %v987_v6 }
 0x37e   : > { %v1059_v30 = vmul.f32 1.442695, %v989_v7  ;;  %v1063_v53 = vmul.f32 1.442695, %v991_v37  ;;  %v1067_v19 = vmul.f32 1.442695, %v993_v47 }
 0x37f   : > { %3903 = vpow2.f32 %v1047_v33  ;;  %v1071_v57 = vmul.f32 1.442695, %v995_v44  ;;  %v1075_v36 = vmul.f32 1.442695, %v997_v42  ;;  %v1079_v28 = vmul.f32 1.442695, %v999_v43 }
 0x380   : > { %3905 = vpow2.f32 %v1051_v24  ;;  %v1083_v41 = vmul.f32 1.442695, %v1001_v16  ;;  %v1087_v6 = vmul.f32 1.442695, %v1003_v18  ;;  %v1091_v49 = vmul.f32 1.442695, %v1005_v48 }
 0x381   : > { %3907 = vpow2.f32 %v1055_v12  ;;  %v1095_v40 = vmul.f32 1.442695, %v1007_v52  ;;  %v1099_v7 = vmul.f32 1.442695, %v1009_v56  ;;  %v1103_v38 = vmul.f32 1.442695, %v1011_v60 }
 0x382   : > { %3909 = vpow2.f32 %v1059_v30  ;;  %v1107_v63 = vmul.f32 1.442695, %v1013_v2  ;;  %v1111_v37 = vmul.f32 1.442695, %v1015_v17  ;;  %v1115_v33 = vmul.f32 1.442695, %v1017_v23 }
 0x383   : > { %3911 = vpow2.f32 %v1063_v53  ;;  %v1119_v47 = vmul.f32 1.442695, %v1019_v27  ;;  %v1123_v44 = vmul.f32 1.442695, %v1021_v31  ;;  %v1127_v22 = vmul.f32 1.442695, %v1023_v9 }
 0x384   : > { %3913 = vpow2.f32 %v1067_v19  ;;  %v5115_v29 = vmul.f32 1.442695, %v1025_v35  ;;  %v5117_v42 = vmul.f32 1.442695, %v1027_v39  ;;  %v5119_v43 = vmul.f32 1.442695, %v1029_v15 }
 0x385   : > { %3915 = vpow2.f32 %v1071_v57  ;;  %v7833_v9 = vld [vmem:[#allocation15_spill] sm:$0xff]  ;;  %v7836_v53 = vld [vmem:[#allocation18_spill] sm:$0xff]  ;;  %v7839_v35 = vld [vmem:[#allocation21_spill] sm:$0xff] }
 0x386   : > { %3917 = vpow2.f32 %v1075_v36  ;;  %v7834_v36 = vld [vmem:[#allocation16_spill] sm:$0xff]  ;;  %v7837_v57 = vld [vmem:[#allocation19_spill] sm:$0xff]  ;;  %v7840_v31 = vld [vmem:[#allocation22_spill] sm:$0xff] }
 0x387   : > { %3919 = vpow2.f32 %v1079_v28  ;;  %v7841_v19 = vld [vmem:[#allocation23_spill] sm:$0xff]  ;;  %v7842_v17 = vld [vmem:[#allocation24_spill] sm:$0xff]  ;;  %v7843_v2 = vld [vmem:[#allocation25_spill] sm:$0xff] }
 0x388   : > { %3921 = vpow2.f32 %v1083_v41  ;;  %v7844_v12 = vld [vmem:[#allocation26_spill] sm:$0xff]  ;;  %v7845_v52 = vld [vmem:[#allocation27_spill] sm:$0xff]  ;;  %v7846_v28 = vld [vmem:[#allocation28_spill] sm:$0xff] }
 0x389   : > { %v5129_v56 = vpop.eup %3903  ;;  %3923 = vpow2.f32 %v1087_v6  ;;  %v7847_v18 = vld [vmem:[#allocation29_spill] sm:$0xff] }
 0x38a   : > { %v5137_v23 = vpop.eup %3905  ;;  %3925 = vpow2.f32 %v1091_v49  ;;  %v7835_v49 = vld [vmem:[#allocation17_spill] sm:$0xff] }
 0x38b   : > { %v5145_v39 = vpop.eup %3907  ;;  %3927 = vpow2.f32 %v1095_v40  ;;  %v1175_v15 = vadd.f32 %v5137_v23, %v5129_v56  ;;  %v7838_v40 = vld [vmem:[#allocation20_spill] sm:$0xff]  ;;  %v7851_v41 = vld [vmem:[#allocation33_spill] sm:$0xff] }
 0x38c   : > { %v5153_v30 = vpop.eup %3909  ;;  %3929 = vpow2.f32 %v1099_v7  ;;  %v7849_v7 = vld [vmem:[#allocation31_spill] sm:$0xff] }
 0x38d   : > { %v5161_v6 = vpop.eup %3911  ;;  %3931 = vpow2.f32 %v1103_v38  ;;  %v1176_v24 = vadd.f32 %v5145_v39, %v1175_v15 }
 0x38e   : > { %v5168_v27 = vpop.eup %3913  ;;  %3933 = vpow2.f32 %v1107_v63 }
 0x38f   : > { %v5176_v60 = vpop.eup %3915  ;;  %3935 = vpow2.f32 %v1111_v37  ;;  %v1177_v15 = vadd.f32 %v5153_v30, %v1176_v24 }
 0x390   : > { %v5183_v48 = vpop.eup %3917  ;;  %3937 = vpow2.f32 %v1115_v33 }
 0x391   : > { %v5191_v11 = vpop.eup %3919  ;;  %3939 = vpow2.f32 %v1119_v47  ;;  %v1178_v24 = vadd.f32 %v5161_v6, %v1177_v15  ;;  %v7854_v15 = vsub.f32 %v4991_v3, %v5043_v20 }
 0x392   : > { %v5198_v14 = vpop.eup %3921  ;;  %3941 = vpow2.f32 %v1123_v44  ;;  %v7855_v44 = vsub.f32 %v4997_v1, %v5043_v20 }
 0x393   : > { %v5206_v16 = vpop.eup %3923  ;;  %3943 = vpow2.f32 %v1127_v22  ;;  %v1143_v63 = vmul.f32 1.442695, %v7854_v15  ;;  %v1179_v33 = vadd.f32 %v5168_v27, %v1178_v24  ;;  %v7856_v22 = vsub.f32 %v5003_v8, %v5043_v20 }
 0x394   : > { %v5212_v26 = vpop.eup %3925  ;;  %3945 = vpow2.f32 %v5115_v29  ;;  %v1147_v37 = vmul.f32 1.442695, %v7855_v44  ;;  %v7857_v29 = vsub.f32 %v5009_v0, %v5043_v20  ;;  %v7861_v0 = vsub.f32 %v5027_v55, %v5043_v20 }
 0x395   : > { %v5218_v38 = vpop.eup %3927  ;;  %3947 = vpow2.f32 %v5117_v42  ;;  %v1151_v47 = vmul.f32 1.442695, %v7856_v22  ;;  %v1180_v3 = vadd.f32 %v5176_v60, %v1179_v33  ;;  %v7858_v42 = vsub.f32 %v5015_v32, %v5043_v20 }
 0x396   : > { %v5225_v15 = vpop.eup %3929  ;;  %3949 = vpow2.f32 %v5119_v43  ;;  %v1155_v24 = vmul.f32 1.442695, %v7857_v29  ;;  %v7859_v33 = vsub.f32 %v5021_v4, %v5043_v20 }
 0x397   : > { %v5231_v1 = vpop.eup %3931  ;;  %3951 = vpow2.f32 %v1143_v63  ;;  %v1159_v44 = vmul.f32 1.442695, %v7858_v42  ;;  %v1181_v8 = vadd.f32 %v5183_v48, %v1180_v3  ;;  %v1167_v63 = vmul.f32 1.442695, %v7861_v0 }
 0x398   : > { %v5237_v22 = vpop.eup %3933  ;;  %3953 = vpow2.f32 %v1147_v37  ;;  %v1163_v43 = vmul.f32 1.442695, %v7859_v33  ;;  %v7862_v3 = vsub.f32 %v5033_v61, %v5043_v20  ;;  %v7865_v61 = vsub.f32 %v4859_v45, %v5045_v34 }
 0x399   : > { %v5242_v51 = vpop.eup %3935  ;;  %3955 = vpow2.f32 %v1151_v47  ;;  %v1182_v29 = vadd.f32 %v5191_v11, %v1181_v8  ;;  %v7863_v47 = vsub.f32 %v4849_v13, %v5045_v34  ;;  %v7864_v8 = vsub.f32 %v4853_v10, %v5045_v34 }
 0x39a   : > { %7860 = vst [vmem:[#allocation15_spill] sm:$0xff] %v5242_v51  ;;  %v5248_v32 = vpop.eup %3937  ;;  %3957 = vpow2.f32 %v1155_v24  ;;  %v1171_v37 = vmul.f32 1.442695, %v7862_v3  ;;  %v1057_v20 = vmul.f32 1.442695, %v7865_v61  ;;  %v7868_v10 = vsub.f32 %v4880_v54, %v5045_v34 }
 0x39b   : > { %v5253_v42 = vpop.eup %3939  ;;  %3959 = vpow2.f32 %v1159_v44  ;;  %v1183_v4 = vadd.f32 %v5198_v14, %v1182_v29  ;;  %v1049_v33 = vmul.f32 1.442695, %v7863_v47  ;;  %v1053_v24 = vmul.f32 1.442695, %v7864_v8 }
 0x39c   : > { %v5259_v55 = vpop.eup %3941  ;;  %3961 = vpow2.f32 %v1163_v43  ;;  %v7866_v44 = vsub.f32 %v4867_v46, %v5045_v34  ;;  %v7867_v43 = vsub.f32 %v4874_v50, %v5045_v34  ;;  %v1069_v47 = vmul.f32 1.442695, %v7868_v10 }
 0x39d   : > { %v5270_v29 = vpop.eup %3943  ;;  %3963 = vpow2.f32 %v1167_v63  ;;  %v1184_v13 = vadd.f32 %v5206_v16, %v1183_v4  ;;  %v7869_v45 = vsub.f32 %v4886_v58, %v5045_v34  ;;  %v7870_v63 = vsub.f32 %v4892_v62, %v5045_v34 }
 0x39e   : > { %v1061_v0 = vmul.f32 1.442695, %v7866_v44  ;;  %v1065_v3 = vmul.f32 1.442695, %v7867_v43  ;;  %v5279_v8 = vpop.eup %3945  ;;  %3965 = vpow2.f32 %v1171_v37  ;;  %v7871_v4 = vsub.f32 %v4898_v5, %v5045_v34 }
 0x39f   : > { %v1073_v46 = vmul.f32 1.442695, %v7869_v45  ;;  %v1077_v61 = vmul.f32 1.442695, %v7870_v63  ;;  %v5290_v44 = vpop.eup %3947  ;;  %v1185_v54 = vadd.f32 %v5212_v26, %v1184_v13  ;;  %3967 = vpow2.f32 %v1049_v33 }
 0x3a0   : > { %v1081_v50 = vmul.f32 1.442695, %v7871_v4  ;;  %v7872_v37 = vsub.f32 %v4904_v21, %v5045_v34  ;;  %v7873_v58 = vsub.f32 %v4910_v25, %v5045_v34  ;;  %v5299_v45 = vpop.eup %3949  ;;  %3969 = vpow2.f32 %v1053_v24 }
 0x3a1   : > { %v5307_v13 = vpop.eup %3951  ;;  %v1186_v21 = vadd.f32 %v5218_v38, %v1185_v54  ;;  %3971 = vpow2.f32 %v1057_v20  ;;  %v1331_v54 = vld [vmem:[#allocation3 + $0x28] sm:$0xf0] }
 0x3a2   : > { %v1085_v43 = vmul.f32 1.442695, %v7872_v37  ;;  %v1089_v10 = vmul.f32 1.442695, %v7873_v58  ;;  %v5314_v63 = vpop.eup %3953  ;;  %3973 = vpow2.f32 %v1061_v0  ;;  %v1998_v24 = vrot.slane %v1331_v54, 4 }
 0x3a3   : > { %v5322_v20 = vpop.eup %3955  ;;  %v1187_v25 = vadd.f32 %v5225_v15, %v1186_v21  ;;  %3975 = vpow2.f32 %v1065_v3 }
 0x3a4   : > { %v5329_v33 = vpop.eup %3957  ;;  %3977 = vpow2.f32 %v1069_v47  ;;  %v7874_v47 = vsub.f32 %v7833_v9, %v5045_v34  ;;  %2033 = vmatprep.mubr.bf16.mxu1 %v1998_v24  ;;  %v7876_v9 = vsub.f32 %v7835_v49, %v5045_v34  ;;  %v7879_v49 = vsub.f32 %v7838_v40, %v5045_v34 }
 0x3a5   : > { %v5337_v21 = vpop.eup %3959  ;;  %v1188_v3 = vadd.f32 %v5231_v1, %v1187_v25  ;;  %3979 = vpow2.f32 %v1073_v46  ;;  %v7875_v25 = vsub.f32 %v7834_v36, %v5045_v34 }
 0x3a6   : > { %v5342_v5 = vpop.eup %3961  ;;  %3981 = vpow2.f32 %v1077_v61  ;;  %v1093_v37 = vmul.f32 1.442695, %v7874_v47  ;;  %v1101_v61 = vmul.f32 1.442695, %v7876_v9  ;;  %v1113_v9 = vmul.f32 1.442695, %v7879_v49 }
 0x3a7   : > { %v5347_v58 = vpop.eup %3963  ;;  %v1189_v4 = vadd.f32 %v5237_v22, %v1188_v3  ;;  %3983 = vpow2.f32 %v1081_v50  ;;  %v1097_v46 = vmul.f32 1.442695, %v7875_v25  ;;  %v7877_v50 = vsub.f32 %v7836_v53, %v5045_v34 }
 0x3a8   : > { %v5355_v54 = vpop.eup %3965  ;;  %3985 = vpow2.f32 %v1085_v43  ;;  %v7878_v43 = vsub.f32 %v7837_v57, %v5045_v34  ;;  %v7880_v3 = vsub.f32 %v7839_v35, %v5045_v34  ;;  %v7881_v57 = vsub.f32 %v7840_v31, %v5045_v34 }
 0x3a9   : > { %v3968_v47 = vpop.eup %3967  ;;  %v1190_v62 = vadd.f32 %v5242_v51, %v1189_v4  ;;  %3987 = vpow2.f32 %v1089_v10  ;;  %v1105_v36 = vmul.f32 1.442695, %v7877_v50  ;;  %v7883_v35 = vsub.f32 %v7842_v17, %v5045_v34 }
 0x3aa   : > { %v3970_v25 = vpop.eup %3969  ;;  %3989 = vpow2.f32 %v1093_v37  ;;  %v1109_v24 = vmul.f32 1.442695, %v7878_v43  ;;  %v1117_v37 = vmul.f32 1.442695, %v7880_v3  ;;  %v1121_v43 = vmul.f32 1.442695, %v7881_v57 }
 0x3ab   : > { %v3972_v0 = vpop.eup %3971  ;;  %v1191_v10 = vadd.f32 %v5248_v32, %v1190_v62  ;;  %3991 = vpow2.f32 %v1097_v46  ;;  %v1212_v4 = vadd.f32 %v3970_v25, %v3968_v47  ;;  %v1252_v53 = vpack.c.bf16 %v3970_v25, %v3968_v47 }
 0x3ac   : > { %v3974_v50 = vpop.eup %3973  ;;  %3993 = vpow2.f32 %v1101_v61  ;;  %v7882_v61 = vsub.f32 %v7841_v19, %v5045_v34  ;;  %v1129_v3 = vmul.f32 1.442695, %v7883_v35  ;;  %v7884_v31 = vpack.c.bf16 %v5137_v23, %v5129_v56 }
 0x3ad   : > { %v3976_v51 = vpop.eup %3975  ;;  %v1192_v40 = vadd.f32 %v5253_v42, %v1191_v10  ;;  %3995 = vpow2.f32 %v1105_v36  ;;  %v1213_v49 = vadd.f32 %v3972_v0, %v1212_v4  ;;  %1283 = vmatprep.subr.bf16.mxu0 %v1252_v53  ;;  %v1254_v62 = vpack.c.bf16 %v3974_v50, %v3972_v0 }
 0x3ae   : > { %v3978_v46 = vpop.eup %3977  ;;  %3997 = vpow2.f32 %v1109_v24  ;;  %v1125_v47 = vmul.f32 1.442695, %v7882_v61  ;;  %1284 = vmatpush1.bf16.msra.mxu0 %v7884_v31  ;;  %v7885_v19 = vsub.f32 %v7843_v2, %v5045_v34  ;;  %v7886_v17 = vsub.f32 %v7844_v12, %v5045_v34  ;;  %v7891_v31 = vld [vmem:[#allocation30_spill] sm:$0xff] }
 0x3af   : > { %v3980_v25 = vpop.eup %3979  ;;  %v1193_v36 = vadd.f32 %v5259_v55, %v1192_v40  ;;  %3999 = vpow2.f32 %v1113_v9  ;;  %v1214_v10 = vadd.f32 %v3974_v50, %v1213_v49  ;;  %1285 = vmatprep.subr.bf16.mxu0 %v1254_v62  ;;  %v1256_v0 = vpack.c.bf16 %v3978_v46, %v3976_v51 }
 0x3b0   : > { %v3982_v24 = vpop.eup %3981  ;;  %4001 = vpow2.f32 %v1117_v37  ;;  %v1133_v4 = vmul.f32 1.442695, %v7885_v19  ;;  %v1137_v53 = vmul.f32 1.442695, %v7886_v17  ;;  %v7887_v50 = vsub.f32 %v7845_v52, %v5045_v34 }
 0x3b1   : > { %v3984_v57 = vpop.eup %3983  ;;  %v1194_v56 = vadd.f32 %v5270_v29, %v1193_v36  ;;  %4003 = vpow2.f32 %v1121_v43  ;;  %v1215_v23 = vadd.f32 %v3976_v51, %v1214_v10  ;;  %v1258_v40 = vpack.c.bf16 %v3982_v24, %v3980_v25 }
 0x3b2   : > { %v3986_v9 = vpop.eup %3985  ;;  %4005 = vpow2.f32 %v1125_v47  ;;  %v1141_v37 = vmul.f32 1.442695, %v7887_v50  ;;  %v7888_v2 = vsub.f32 %v7846_v28, %v5045_v34  ;;  %v7889_v12 = vpack.c.bf16 %v5153_v30, %v5145_v39 }
 0x3b3   : > { %v3988_v62 = vpop.eup %3987  ;;  %v1195_v61 = vadd.f32 %v5279_v8, %v1194_v56  ;;  %4007 = vpow2.f32 %v1129_v3  ;;  %v1216_v51 = vadd.f32 %v3978_v46, %v1215_v23  ;;  %v1260_v43 = vpack.c.bf16 %v3986_v9, %v3984_v57 }
 0x3b4   : > { %v1145_v49 = vmul.f32 1.442695, %v7888_v2  ;;  %1286 = vmatpush1.bf16.msra.mxu0 %v7889_v12  ;;  %v3990_v47 = vpop.eup %3989  ;;  %4009 = vpow2.f32 %v1133_v4  ;;  %v7890_v52 = vsub.f32 %v7847_v18, %v5045_v34  ;;  %v7892_v28 = vsub.f32 %v7891_v31, %v5045_v34  ;;  %v7894_v4 = vld [vmem:[#allocation32_spill] sm:$0xff] }
 0x3b5   : > { %1287 = vmatprep.subr.bf16.mxu0 %v1256_v0  ;;  %v3992_v10 = vpop.eup %3991  ;;  %v1196_v39 = vadd.f32 %v5290_v44, %v1195_v61  ;;  %4011 = vpow2.f32 %v1137_v53  ;;  %v1217_v30 = vadd.f32 %v3980_v25, %v1216_v51  ;;  %v1262_v19 = vpack.c.bf16 %v3990_v47, %v3988_v62 }
 0x3b6   : > { %v1149_v35 = vmul.f32 1.442695, %v7890_v52  ;;  %v1153_v36 = vmul.f32 1.442695, %v7892_v28  ;;  %v3994_v3 = vpop.eup %3993  ;;  %4013 = vpow2.f32 %v1141_v37  ;;  %v7893_v46 = vsub.f32 %v7849_v7, %v5045_v34 }
 0x3b7   : > { %v7895_v18 = vsub.f32 %v7894_v4, %v5045_v34  ;;  %v7896_v56 = vpack.c.bf16 %v5168_v27, %v5161_v6  ;;  %v3996_v23 = vpop.eup %3995  ;;  %v1197_v50 = vadd.f32 %v5299_v45, %v1196_v39  ;;  %4015 = vpow2.f32 %v1145_v49 }
 0x3b8   : > { %v1157_v0 = vmul.f32 1.442695, %v7893_v46  ;;  %v1218_v25 = vadd.f32 %v3982_v24, %v1217_v30  ;;  %v1264_v53 = vpack.c.bf16 %v3994_v3, %v3992_v10  ;;  %v3998_v37 = vpop.eup %3997  ;;  %4017 = vpow2.f32 %v1149_v35  ;;  %v7899_v24 = vld [vmem:[#allocation35_spill] sm:$0xff] }
 0x3b9   : > { %v1161_v17 = vmul.f32 1.442695, %v7895_v18  ;;  %1288 = vmatpush1.bf16.msra.mxu0 %v7896_v56  ;;  %v7897_v7 = vsub.f32 %v7851_v41, %v5045_v34  ;;  %v7898_v12 = vsub.f32 %v7852_v59, %v5045_v34  ;;  %v4000_v51 = vpop.eup %3999  ;;  %v1198_v27 = vadd.f32 %v5307_v13, %v1197_v50 }
 0x3ba   : > { %1289 = vmatprep.subr.bf16.mxu0 %v1258_v40  ;;  %4019 = vpow2.f32 %v1153_v36  ;;  %v1219_v6 = vadd.f32 %v3984_v57, %v1218_v25  ;;  %v1266_v52 = vpack.c.bf16 %v3998_v37, %v3996_v23  ;;  %v4002_v49 = vpop.eup %4001  ;;  %v7900_v40 = vsub.f32 %v7899_v24, %v5045_v34 }
 0x3bb   : > { %v1165_v2 = vmul.f32 1.442695, %v7897_v7  ;;  %v1169_v61 = vmul.f32 1.442695, %v7898_v12  ;;  %4021 = vpow2.f32 %v1157_v0  ;;  %v7901_v41 = vpack.c.bf16 %v5183_v48, %v5176_v60  ;;  %v4004_v31 = vpop.eup %4003 }
 0x3bc   : > { %v1173_v35 = vmul.f32 1.442695, %v7900_v40  ;;  %v1199_v59 = vadd.f32 %v5314_v63, %v1198_v27  ;;  %4023 = vpow2.f32 %v1161_v17  ;;  %v1220_v28 = vadd.f32 %v3986_v9, %v1219_v6  ;;  %v4006_v36 = vpop.eup %4005 }
 0x3bd   : > { %1290 = vmatpush1.bf16.msra.mxu0 %v7901_v41  ;;  %v1268_v39 = vpack.c.bf16 %v4002_v49, %v4000_v51  ;;  %4025 = vpow2.f32 %v1165_v2  ;;  %v4008_v57 = vpop.eup %4007  ;;  %v1270_v34 = vpack.c.bf16 %v4006_v36, %v4004_v31  ;;  %v7902_v48 = vpack.c.bf16 %v5198_v14, %v5191_v11 }
 0x3be   : > { %1291 = vmatprep.subr.bf16.mxu0 %v1260_v43  ;;  %v1200_v30 = vadd.f32 %v5322_v20, %v1199_v59  ;;  %4027 = vpow2.f32 %v1169_v61  ;;  %v1221_v46 = vadd.f32 %v3988_v62, %v1220_v28  ;;  %v4010_v0 = vpop.eup %4009  ;;  %v7903_v7 = vpack.c.bf16 %v5212_v26, %v5206_v16 }
 0x3bf   : > { %4029 = vpow2.f32 %v1173_v35  ;;  %v4012_v60 = vpop.eup %4011  ;;  %v1272_v43 = vpack.c.bf16 %v4010_v0, %v4008_v57  ;;  %v7905_v59 = vpack.c.bf16 %v5237_v22, %v5231_v1  ;;  %v7909_v1 = vpack.c.bf16 %v5279_v8, %v5270_v29 }
 0x3c0   : > { %v1201_v4 = vadd.f32 %v5329_v33, %v1200_v30  ;;  %v1222_v9 = vadd.f32 %v3990_v47, %v1221_v46  ;;  %v4014_v18 = vpop.eup %4013  ;;  %v7912_v29 = vpack.c.bf16 %v5329_v33, %v5322_v20  ;;  %v626_v33 = vld [vmem:[#allocation3 + $0x20] sm:$0xf] }
 0x3c1   : > { %1292 = vmatpush1.bf16.msra.mxu0 %v7902_v48  ;;  %v4016_v17 = vpop.eup %4015  ;;  %v1274_v25 = vpack.c.bf16 %v4014_v18, %v4012_v60  ;;  %v7916_v48 = vpack.c.bf16 %v5355_v54, %v5347_v58 }
 0x3c2   : > { %1293 = vmatprep.subr.bf16.mxu0 %v1262_v19  ;;  %v1202_v56 = vadd.f32 %v5337_v21, %v1201_v4  ;;  %v1223_v50 = vadd.f32 %v3992_v10, %v1222_v9  ;;  %v4018_v62 = vpop.eup %4017  ;;  %v7904_v10 = vpack.c.bf16 %v5225_v15, %v5218_v38  ;;  %v7906_v38 = vld [vmem:[#allocation15_spill] sm:$0xff] }
 0x3c3   : > { %v1276_v12 = vpack.c.bf16 %v4018_v62, %v4016_v17  ;;  %v7907_v15 = vpack.c.bf16 %v5248_v32, %v7906_v38  ;;  %v7910_v32 = vpack.c.bf16 %v5299_v45, %v5290_v44  ;;  %v7913_v44 = vpack.c.bf16 %v5342_v5, %v5337_v21  ;;  %v1346_v21 = vpop.trf.xlu0 }
 0x3c4   : > { %v4020_v2 = vpop.eup %4019  ;;  %v1203_v14 = vadd.f32 %v5342_v5, %v1202_v56  ;;  %v1224_v11 = vadd.f32 %v3994_v3, %v1223_v50  ;;  %v7917_v5 = vmov 0  }
 0x3c5   : > { %1294 = vmatpush1.bf16.msra.mxu0 %v7903_v7  ;;  %v4022_v47 = vpop.eup %4021 }
 0x3c6   : > { %1295 = vmatprep.subr.bf16.mxu0 %v1264_v53  ;;  %v4024_v19 = vpop.eup %4023  ;;  %v1204_v61 = vadd.f32 %v5347_v58, %v1203_v14  ;;  %v1225_v27 = vadd.f32 %v3996_v23, %v1224_v11  ;;  %v1278_v6 = vpack.c.bf16 %v4022_v47, %v4020_v2 }
 0x3c7   : > { %v4026_v24 = vpop.eup %4025 }
 0x3c8   : > { %v4028_v40 = vpop.eup %4027  ;;  %v5453_v26 = vadd.f32 %v5355_v54, %v1204_v61  ;;  %v1226_v16 = vadd.f32 %v3998_v37, %v1225_v27  ;;  %v1280_v3 = vpack.c.bf16 %v4026_v24, %v4024_v19  ;;  %v7908_v37 = vpack.c.bf16 %v5259_v55, %v5253_v42 }
 0x3c9   : > { %1296 = vmatpush1.bf16.msra.mxu0 %v7904_v10  ;;  %v4030_v53 = vpop.eup %4029  ;;  %v7911_v42 = vpack.c.bf16 %v5314_v63, %v5307_v13  ;;  %v7915_v63 = vld [vmem:[#allocation12_spill] sm:$0xff] }
 0x3ca   : > { %1297 = vmatprep.subr.bf16.mxu0 %v1266_v52  ;;  %v1227_v35 = vadd.f32 %v4000_v51, %v1226_v16  ;;  %v1282_v41 = vpack.c.bf16 %v4030_v53, %v4028_v40 }
 0x3cc   : > { %v1228_v23 = vadd.f32 %v4002_v49, %v1227_v35 }
 0x3cd   : > { %1298 = vmatpush1.bf16.msra.mxu0 %v7905_v59 }
 0x3ce   : > { %1299 = vmatprep.subr.bf16.mxu0 %v1268_v39  ;;  %v1229_v28 = vadd.f32 %v4004_v31, %v1228_v23 }
 0x3d0   : > { %v1230_v30 = vadd.f32 %v4006_v36, %v1229_v28 }
 0x3d1   : > { %1300 = vmatpush1.bf16.msra.mxu0 %v7907_v15 }
 0x3d2   : > { %1301 = vmatprep.subr.bf16.mxu0 %v1270_v34  ;;  %v1231_v46 = vadd.f32 %v4008_v57, %v1230_v30  ;;  %v7914_v34 = vld [vmem:[#allocation11_spill] sm:$0xff] }
 0x3d3   : > { %v1372_v13 = vrot.slane %v7914_v34, 4 }
 0x3d4   : > { %v1232_v51 = vadd.f32 %v4010_v0, %v1231_v46  ;;  %v1373_v0 = vrot.slane %v7915_v63, 4 }
 0x3d5   : > { %1302 = vmatpush1.bf16.msra.mxu0 %v7908_v37  ;;  %v1423_v20 = vsel %vm709_vm1, %v1372_v13, 0 }
 0x3d6   : > { %1303 = vmatprep.subr.bf16.mxu0 %v1272_v43  ;;  %v1233_v52 = vadd.f32 %v4012_v60, %v1232_v51  ;;  %v1347_v60 = vpop.trf.xlu0 }
 0x3d8   : > { %v1234_v22 = vadd.f32 %v4014_v18, %v1233_v52 }
 0x3d9   : > { %1304 = vmatpush1.bf16.msra.mxu0 %v7909_v1 }
 0x3da   : > { %1305 = vmatprep.subr.bf16.mxu0 %v1274_v25  ;;  %v1235_v49 = vadd.f32 %v4016_v17, %v1234_v22  ;;  %v1348_v58 = vpop.trf.xlu0  ;;  %v1362_v17 = vpop.trf.xlu1 }
 0x3dc   : > { %v1236_v31 = vadd.f32 %v4018_v62, %v1235_v49 }
 0x3dd   : > { %1306 = vmatpush1.bf16.msra.mxu0 %v7910_v32 }
 0x3de   : > { %1307 = vmatprep.subr.bf16.mxu0 %v1276_v12  ;;  %v1237_v39 = vadd.f32 %v4020_v2, %v1236_v31  ;;  %v1349_v54 = vpop.trf.xlu0  ;;  %v1363_v56 = vpop.trf.xlu1 }
 0x3e0   : > { %v1238_v55 = vadd.f32 %v4022_v47, %v1237_v39 }
 0x3e1   : > { %1308 = vmatpush1.bf16.msra.mxu0 %v7911_v42 }
 0x3e2   : > { %1309 = vmatprep.subr.bf16.mxu0 %v1278_v6  ;;  %v1239_v36 = vadd.f32 %v4024_v19, %v1238_v55  ;;  %v1350_v4 = vpop.trf.xlu0  ;;  %v1364_v62 = vpop.trf.xlu1 }
 0x3e4   : > { %v1240_v8 = vadd.f32 %v4026_v24, %v1239_v36  ;;  %v1206_v24 = vrot.slane %v5453_v26, 4 }
 0x3e5   : > { %1310 = vmatpush1.bf16.msra.mxu0 %v7912_v29 }
 0x3e6   : > { %1311 = vmatprep.subr.bf16.mxu0 %v1280_v3  ;;  %v1241_v57 = vadd.f32 %v4028_v40, %v1240_v8  ;;  %v1351_v9 = vpop.trf.xlu0  ;;  %v1365_v12 = vpop.trf.xlu1  ;;  %v1207_v40 = vadd.f32 %v1206_v24, %v5453_v26 }
 0x3e8   : > { %v5479_v45 = vadd.f32 %v4030_v53, %v1241_v57  ;;  %v1208_v3 = vrot.slane %v1207_v40, 2 }
 0x3e9   : > { %1312 = vmatpush1.bf16.msra.mxu0 %v7913_v44 }
 0x3ea   : > { %1313 = vmatprep.subr.bf16.mxu0 %v1282_v41  ;;  %v1352_v43 = vpop.trf.xlu0  ;;  %v1366_v47 = vpop.trf.xlu1  ;;  %v1243_v10 = vrot.slane %v5479_v45, 4  ;;  %v1209_v35 = vadd.f32 %v1208_v3, %v1207_v40 }
 0x3ec   : > { %v1244_v16 = vadd.f32 %v1243_v10, %v5479_v45  ;;  %v1210_v59 = vrot.slane %v1209_v35, 1 }
 0x3ed   : > { %1314 = vmatpush1.bf16.msra.mxu0 %v7916_v48 }
 0x3ee   : > { %3749 = vmatprep.subr.msk.bf16.mxu0 %vm709_vm1, %v1373_v0  ;;  %v1353_v18 = vpop.trf.xlu0  ;;  %v1367_v19 = vpop.trf.xlu1  ;;  %v1245_v53 = vrot.slane %v1244_v16, 2  ;;  %v1211_v28 = vadd.f32 %v1210_v59, %v1209_v35 }
 0x3f0   : > { %1316 = vmatmul.mubr.bf16.vlgmr.msra.gmra.mrb[16].mxu0 %v626_v33  ;;  %v1246_v41 = vadd.f32 %v1245_v53, %v1244_v16  ;;  %4031 = vrcp.f32 %v1211_v28 }
 0x3f1   : > { %1429 = vmatpush1.bf16.msra.mxu0 %v1423_v20  ;;  %1460 = vmatprep.mubr.bf16.mxu0 %v7917_v5 }
 0x3f2   : > { %v1368_v61 = vpop.trf.xlu1  ;;  %v1247_v23 = vrot.slane %v1246_v41, 1 }
 0x3f4   : > { %v1248_v38 = vadd.f32 %v1247_v23, %v1246_v41 }
 0x3f6   : > { %v1369_v27 = vpop.trf.xlu1  ;;  %4033 = vrcp.f32 %v1248_v38 }
 0x3f8   : > { %3750 = vmatmul.mubr.msk.bf16.vlgmr.msra.gmra.mrb[20].mxu0 %vm660_vm2, %v1346_v21 }
 0x3f9   : > { %1470 = vmatprep.mubr.bf16.mxu0 %v7917_v5 }
 0x3fa   : > { %v4032_v15 = vpop.eup %4031 }
 0x400   : > { %3751 = vmatmul.mubr.msk.bf16.gmra.mrb[24].mxu0 %vm660_vm2, %v1347_v60  ;;  %v4034_v46 = vpop.eup %4033 }
 0x401   : > { %1480 = vmatprep.mubr.bf16.mxu0 %v7917_v5 }
 0x408   : > { %3752 = vmatmul.mubr.msk.bf16.gmra.mrb[28].mxu0 %vm660_vm2, %v1348_v58 }
 0x409   : > { %1490 = vmatprep.mubr.bf16.mxu0 %v7917_v5 }
 0x410   : > { %3753 = vmatmul.mubr.msk.bf16.gmra.mrb[32].mxu0 %vm660_vm2, %v1349_v54 }
 0x411   : > { %1500 = vmatprep.mubr.bf16.mxu0 %v7917_v5 }
 0x418   : > { %3754 = vmatmul.mubr.msk.bf16.gmra.mrb[36].mxu0 %vm660_vm2, %v1350_v4 }
 0x419   : > { %1510 = vmatprep.mubr.bf16.mxu0 %v7917_v5 }
 0x420   : > { %3755 = vmatmul.mubr.msk.bf16.gmra.mrb[40].mxu0 %vm660_vm2, %v1351_v9 }
 0x421   : > { %1520 = vmatprep.mubr.bf16.mxu0 %v7917_v5 }
 0x428   : > { %3756 = vmatmul.mubr.msk.bf16.gmra.mrb[44].mxu0 %vm660_vm2, %v1352_v43 }
 0x429   : > { %1530 = vmatprep.mubr.bf16.mxu0 %v7917_v5 }
 0x430   : > { %3757 = vmatmul.mubr.msk.bf16.gmra.mrb[48].mxu0 %vm660_vm2, %v1353_v18 }
 0x431   : > { %1540 = vmatprep.mubr.bf16.mxu0 %v7917_v5 }
 0x438   : > { %3758 = vmatmul.mubr.msk.bf16.gmra.mrb[52].mxu0 %vm660_vm2, %v1362_v17 }
 0x439   : > { %1550 = vmatprep.mubr.bf16.mxu0 %v7917_v5 }
 0x43a   : > { %v512_v50 = vpop.f32.mrb[12].mxu0 }
 0x43b   : > { %v514_v25 = vpop.f32.mrb[13].mxu0 }
 0x43c   : > { %v516_v7 = vpop.f32.mrb[14].mxu0 }
 0x43d   : > { %v527_v2 = vpack.c.bf16 %v516_v7, %v512_v50  ;;  %v518_v14 = vpop.f32.mrb[15].mxu0 }
 0x43e   : > { %v528_v11 = vpack.c.bf16 %v518_v14, %v514_v25 }
 0x43f   : > { %535 = vst [vmem:[#allocation3 + $0x30] sm:$0xff] %v527_v2 }
 0x440   : > { %3759 = vmatmul.mubr.msk.bf16.gmra.mrb[56].mxu0 %vm660_vm2, %v1363_v56  ;;  %536 = vst [vmem:[#allocation3 + $0x38] sm:$0xff] %v528_v11 }
 0x441   : > { %1560 = vmatprep.mubr.bf16.mxu0 %v7917_v5 }
 0x447   : > { %v2049_v6 = vld [vmem:[#allocation3 + $0x38] sm:$0xf] }
 0x448   : > { %3760 = vmatmul.mubr.msk.bf16.gmra.mrb[60].mxu0 %vm660_vm2, %v1364_v62 }
 0x449   : > { %1570 = vmatprep.mubr.bf16.mxu0 %v7917_v5 }
 0x450   : > { %3761 = vmatmul.mubr.msk.bf16.gmra.mrb[64].mxu0 %vm660_vm2, %v1365_v12 }
 0x451   : > { %1580 = vmatprep.mubr.bf16.mxu0 %v7917_v5 }
 0x458   : > { %3762 = vmatmul.mubr.msk.bf16.gmra.mrb[68].mxu0 %vm660_vm2, %v1366_v47 }
 0x459   : > { %1590 = vmatprep.mubr.bf16.mxu0 %v7917_v5 }
 0x460   : > { %3763 = vmatmul.mubr.msk.bf16.gmra.mrb[72].mxu0 %vm660_vm2, %v1367_v19 }
 0x461   : > { %1600 = vmatprep.mubr.bf16.mxu0 %v7917_v5 }
 0x468   : > { %3764 = vmatmul.mubr.msk.bf16.gmra.mrb[76].mxu0 %vm660_vm2, %v1368_v61 }
 0x469   : > { %1610 = vmatprep.mubr.bf16.mxu0 %v7917_v5 }
 0x470   : > { %3765 = vmatmul.mubr.msk.bf16.gmra.mrb[80].mxu0 %vm660_vm2, %v1369_v27 }
 0x471   : > { %2735 = vmatprep.mubr.bf16.mxu0 %v2049_v6 }
 0x4c3   : > { %v1317_v30 = vpop.f32.mrb[16].mxu0 }
 0x4c4   : > { %v5524_v37 = vmul.f32 %v4032_v15, %v1317_v30  ;;  %v1319_v51 = vpop.f32.mrb[17].mxu0 }
 0x4c5   : > { %v5526_v52 = vmul.f32 %v4034_v46, %v1319_v51  ;;  %v1321_v26 = vpop.f32.mrb[18].mxu0 }
 0x4c6   : > { %7918 = vst [vmem:[#allocation16_spill] sm:$0xff] %v5524_v37  ;;  %v1322_v1 = vpop.f32.mrb[19].mxu0 }
 0x4c7   : > { %7919 = vst [vmem:[#allocation17_spill] sm:$0xff] %v5526_v52 }
 0x4cb   : > { %v5528_v22 = vpop.f32.mrb[20].mxu0 }
 0x4cc   : > { %v5530_v49 = vpop.f32.mrb[21].mxu0 }
 0x4cd   : > { %v5532_v32 = vpop.f32.mrb[22].mxu0 }
 0x4ce   : > { %v5534_v31 = vpop.f32.mrb[23].mxu0 }
 0x4d3   : > { %v5536_v39 = vpop.f32.mrb[24].mxu0 }
 0x4d4   : > { %v1621_v42 = vmax.f32 %v5528_v22, %v5536_v39  ;;  %v5540_v55 = vpop.f32.mrb[25].mxu0 }
 0x4d5   : > { %v1658_v36 = vmax.f32 %v5530_v49, %v5540_v55  ;;  %v5544_v29 = vpop.f32.mrb[26].mxu0 }
 0x4d6   : > { %v1622_v8 = vmax.f32 %v5532_v32, %v5544_v29  ;;  %v5548_v57 = vpop.f32.mrb[27].mxu0 }
 0x4d7   : > { %v1659_v44 = vmax.f32 %v5534_v31, %v5548_v57 }
 0x4db   : > { %v5552_v45 = vpop.f32.mrb[28].mxu0 }
 0x4dc   : > { %v1623_v34 = vmax.f32 %v1621_v42, %v5552_v45  ;;  %v5555_v13 = vpop.f32.mrb[29].mxu0 }
 0x4dd   : > { %v1660_v63 = vmax.f32 %v1658_v36, %v5555_v13  ;;  %v5558_v0 = vpop.f32.mrb[30].mxu0 }
 0x4de   : > { %v1624_v48 = vmax.f32 %v1622_v8, %v5558_v0  ;;  %v5561_v33 = vpop.f32.mrb[31].mxu0 }
 0x4df   : > { %v1661_v20 = vmax.f32 %v1659_v44, %v5561_v33 }
 0x4e3   : > { %v5564_v21 = vpop.f32.mrb[32].mxu0 }
 0x4e4   : > { %v1625_v60 = vmax.f32 %v1623_v34, %v5564_v21  ;;  %v5567_v58 = vpop.f32.mrb[33].mxu0 }
 0x4e5   : > { %v1662_v54 = vmax.f32 %v1660_v63, %v5567_v58  ;;  %v5570_v4 = vpop.f32.mrb[34].mxu0 }
 0x4e6   : > { %v1626_v9 = vmax.f32 %v1624_v48, %v5570_v4  ;;  %v5573_v43 = vpop.f32.mrb[35].mxu0 }
 0x4e7   : > { %v1663_v18 = vmax.f32 %v1661_v20, %v5573_v43 }
 0x4eb   : > { %v5576_v17 = vpop.f32.mrb[36].mxu0 }
 0x4ec   : > { %v1627_v56 = vmax.f32 %v1625_v60, %v5576_v17  ;;  %v5579_v50 = vpop.f32.mrb[37].mxu0 }
 0x4ed   : > { %v1664_v25 = vmax.f32 %v1662_v54, %v5579_v50  ;;  %v5582_v62 = vpop.f32.mrb[38].mxu0 }
 0x4ee   : > { %v1628_v7 = vmax.f32 %v1626_v9, %v5582_v62  ;;  %v5585_v2 = vpop.f32.mrb[39].mxu0 }
 0x4ef   : > { %v1665_v14 = vmax.f32 %v1663_v18, %v5585_v2 }
 0x4f3   : > { %v5588_v11 = vpop.f32.mrb[40].mxu0 }
 0x4f4   : > { %v1629_v12 = vmax.f32 %v1627_v56, %v5588_v11  ;;  %v5591_v47 = vpop.f32.mrb[41].mxu0 }
 0x4f5   : > { %v1666_v19 = vmax.f32 %v1664_v25, %v5591_v47  ;;  %v5594_v61 = vpop.f32.mrb[42].mxu0 }
 0x4f6   : > { %v1630_v27 = vmax.f32 %v1628_v7, %v5594_v61  ;;  %v5597_v6 = vpop.f32.mrb[43].mxu0 }
 0x4f7   : > { %7920 = vst [vmem:[#allocation18_spill] sm:$0xff] %v5597_v6  ;;  %v1667_v24 = vmax.f32 %v1665_v14, %v5597_v6 }
 0x4fb   : > { %v5600_v10 = vpop.f32.mrb[44].mxu0 }
 0x4fc   : > { %v1631_v40 = vmax.f32 %v1629_v12, %v5600_v10  ;;  %v5603_v16 = vpop.f32.mrb[45].mxu0 }
 0x4fd   : > { %7921 = vst [vmem:[#allocation19_spill] sm:$0xff] %v5603_v16  ;;  %v1668_v3 = vmax.f32 %v1666_v19, %v5603_v16  ;;  %v5606_v53 = vpop.f32.mrb[46].mxu0 }
 0x4fe   : > { %v1632_v35 = vmax.f32 %v1630_v27, %v5606_v53  ;;  %v5609_v41 = vpop.f32.mrb[47].mxu0 }
 0x4ff   : > { %7922 = vst [vmem:[#allocation20_spill] sm:$0xff] %v5609_v41  ;;  %v1669_v59 = vmax.f32 %v1667_v24, %v5609_v41 }
 0x503   : > { %v5612_v23 = vpop.f32.mrb[48].mxu0 }
 0x504   : > { %v1633_v28 = vmax.f32 %v1631_v40, %v5612_v23  ;;  %v5615_v38 = vpop.f32.mrb[49].mxu0 }
 0x505   : > { %7923 = vst [vmem:[#allocation21_spill] sm:$0xff] %v5615_v38  ;;  %v1670_v15 = vmax.f32 %v1668_v3, %v5615_v38  ;;  %v5618_v30 = vpop.f32.mrb[50].mxu0 }
 0x506   : > { %v1634_v46 = vmax.f32 %v1632_v35, %v5618_v30  ;;  %v5621_v51 = vpop.f32.mrb[51].mxu0 }
 0x507   : > { %7924 = vst [vmem:[#allocation22_spill] sm:$0xff] %v5621_v51  ;;  %v1671_v26 = vmax.f32 %v1669_v59, %v5621_v51 }
 0x50b   : > { %v5624_v1 = vpop.f32.mrb[52].mxu0 }
 0x50c   : > { %v1635_v42 = vmax.f32 %v1633_v28, %v5624_v1  ;;  %v5627_v36 = vpop.f32.mrb[53].mxu0 }
 0x50d   : > { %7925 = vst [vmem:[#allocation23_spill] sm:$0xff] %v5627_v36  ;;  %v1672_v8 = vmax.f32 %v1670_v15, %v5627_v36  ;;  %v5630_v44 = vpop.f32.mrb[54].mxu0 }
 0x50e   : > { %v1636_v34 = vmax.f32 %v1634_v46, %v5630_v44  ;;  %v5633_v63 = vpop.f32.mrb[55].mxu0 }
 0x50f   : > { %7926 = vst [vmem:[#allocation24_spill] sm:$0xff] %v5633_v63  ;;  %v1673_v48 = vmax.f32 %v1671_v26, %v5633_v63 }
 0x513   : > { %v5636_v20 = vpop.f32.mrb[56].mxu0 }
 0x514   : > { %v1637_v60 = vmax.f32 %v1635_v42, %v5636_v20  ;;  %v5639_v54 = vpop.f32.mrb[57].mxu0 }
 0x515   : > { %7927 = vst [vmem:[#allocation25_spill] sm:$0xff] %v5639_v54  ;;  %v1674_v9 = vmax.f32 %v1672_v8, %v5639_v54  ;;  %v5642_v18 = vpop.f32.mrb[58].mxu0 }
 0x516   : > { %v1638_v56 = vmax.f32 %v1636_v34, %v5642_v18  ;;  %v5645_v25 = vpop.f32.mrb[59].mxu0 }
 0x517   : > { %7928 = vst [vmem:[#allocation26_spill] sm:$0xff] %v5645_v25  ;;  %v1675_v7 = vmax.f32 %v1673_v48, %v5645_v25 }
 0x51b   : > { %v5648_v14 = vpop.f32.mrb[60].mxu0 }
 0x51c   : > { %v1639_v12 = vmax.f32 %v1637_v60, %v5648_v14  ;;  %v5651_v19 = vpop.f32.mrb[61].mxu0 }
 0x51d   : > { %7929 = vst [vmem:[#allocation27_spill] sm:$0xff] %v5651_v19  ;;  %v1676_v27 = vmax.f32 %v1674_v9, %v5651_v19  ;;  %v5654_v24 = vpop.f32.mrb[62].mxu0 }
 0x51e   : > { %v1640_v40 = vmax.f32 %v1638_v56, %v5654_v24  ;;  %v5657_v3 = vpop.f32.mrb[63].mxu0 }
 0x51f   : > { %7930 = vst [vmem:[#allocation28_spill] sm:$0xff] %v5657_v3  ;;  %v1677_v35 = vmax.f32 %v1675_v7, %v5657_v3 }
 0x523   : > { %v5660_v59 = vpop.f32.mrb[64].mxu0 }
 0x524   : > { %v1641_v28 = vmax.f32 %v1639_v12, %v5660_v59  ;;  %v5663_v15 = vpop.f32.mrb[65].mxu0 }
 0x525   : > { %7931 = vst [vmem:[#allocation29_spill] sm:$0xff] %v5663_v15  ;;  %v1678_v46 = vmax.f32 %v1676_v27, %v5663_v15  ;;  %v5666_v26 = vpop.f32.mrb[66].mxu0 }
 0x526   : > { %v1642_v42 = vmax.f32 %v1640_v40, %v5666_v26  ;;  %v5669_v8 = vpop.f32.mrb[67].mxu0 }
 0x527   : > { %7932 = vst [vmem:[#allocation31_spill] sm:$0xff] %v5669_v8  ;;  %v1679_v34 = vmax.f32 %v1677_v35, %v5669_v8 }
 0x52b   : > { %v5672_v48 = vpop.f32.mrb[68].mxu0 }
 0x52c   : > { %v1643_v60 = vmax.f32 %v1641_v28, %v5672_v48  ;;  %v5675_v9 = vpop.f32.mrb[69].mxu0 }
 0x52d   : > { %7933 = vst [vmem:[#allocation33_spill] sm:$0xff] %v5675_v9  ;;  %v1680_v56 = vmax.f32 %v1678_v46, %v5675_v9  ;;  %v5678_v7 = vpop.f32.mrb[70].mxu0 }
 0x52e   : > { %v1644_v12 = vmax.f32 %v1642_v42, %v5678_v7  ;;  %v5681_v27 = vpop.f32.mrb[71].mxu0 }
 0x52f   : > { %7934 = vst [vmem:[#allocation34_spill] sm:$0xff] %v5681_v27  ;;  %v1681_v40 = vmax.f32 %v1679_v34, %v5681_v27 }
 0x533   : > { %v5684_v52 = vpop.f32.mrb[72].mxu0 }
 0x534   : > { %v1645_v35 = vmax.f32 %v1643_v60, %v5684_v52  ;;  %v5687_v37 = vpop.f32.mrb[73].mxu0 }
 0x535   : > { %7935 = vst [vmem:[#allocation30_spill] sm:$0xff] %v5687_v37  ;;  %v1682_v28 = vmax.f32 %v1680_v56, %v5687_v37  ;;  %v5690_v5 = vpop.f32.mrb[74].mxu0 }
 0x536   : > { %v1646_v46 = vmax.f32 %v1644_v12, %v5690_v5  ;;  %v5693_v9 = vpop.f32.mrb[75].mxu0 }
 0x537   : > { %7936 = vst [vmem:[#allocation32_spill] sm:$0xff] %v5693_v9  ;;  %v1683_v42 = vmax.f32 %v1681_v40, %v5693_v9 }
 0x53b   : > { %v5696_v8 = vpop.f32.mrb[76].mxu0 }
 0x53c   : > { %v1647_v34 = vmax.f32 %v1645_v35, %v5696_v8  ;;  %v5699_v27 = vpop.f32.mrb[77].mxu0 }
 0x53d   : > { %7937 = vst [vmem:[#allocation35_spill] sm:$0xff] %v5699_v27  ;;  %v1684_v60 = vmax.f32 %v1682_v28, %v5699_v27  ;;  %v5702_v15 = vpop.f32.mrb[78].mxu0 }
 0x53e   : > { %v1648_v56 = vmax.f32 %v1646_v46, %v5702_v15  ;;  %v5705_v37 = vpop.f32.mrb[79].mxu0 }
 0x53f   : > { %7938 = vst [vmem:[#allocation15_spill] sm:$0xff] %v5705_v37  ;;  %v1685_v12 = vmax.f32 %v1683_v42, %v5705_v37 }
 0x543   : > { %v5708_v3 = vpop.f32.mrb[80].mxu0 }
 0x544   : > { %v1649_v40 = vmax.f32 %v1647_v34, %v5708_v3  ;;  %v5711_v9 = vpop.f32.mrb[81].mxu0 }
 0x545   : > { %7939 = vst [vmem:[#allocation11_spill] sm:$0xff] %v5711_v9  ;;  %v1686_v35 = vmax.f32 %v1684_v60, %v5711_v9  ;;  %v5714_v19 = vpop.f32.mrb[82].mxu0 }
 0x546   : > { %v1650_v28 = vmax.f32 %v1648_v56, %v5714_v19  ;;  %v5717_v27 = vpop.f32.mrb[83].mxu0 }
 0x547   : > { %7940 = vst [vmem:[#allocation12_spill] sm:$0xff] %v5717_v27  ;;  %v1687_v46 = vmax.f32 %v1685_v12, %v5717_v27 }
 0x548   : > { %v1651_v25 = vmax.f32 %v1649_v40, %v1650_v28 }
 0x549   : > { %v1688_v54 = vmax.f32 %v1686_v35, %v1687_v46 }
 0x54a   : > { %v1652_v63 = vrot.slane %v1651_v25, 4 }
 0x54b   : > { %v1689_v42 = vrot.slane %v1688_v54, 4 }
 0x54c   : > { %v1653_v37 = vmax.f32 %v1651_v25, %v1652_v63 }
 0x54d   : > { %v1690_v36 = vmax.f32 %v1688_v54, %v1689_v42 }
 0x54e   : > { %v1654_v51 = vrot.slane %v1653_v37, 2 }
 0x54f   : > { %v1691_v34 = vrot.slane %v1690_v36, 2 }
 0x550   : > { %v1655_v38 = vmax.f32 %v1653_v37, %v1654_v51  ;;  %v7960_v51 = vld [vmem:[#allocation11_spill] sm:$0xff] }
 0x551   : > { %v1692_v41 = vmax.f32 %v1690_v36, %v1691_v34 }
 0x552   : > { %v1656_v16 = vrot.slane %v1655_v38, 1 }
 0x553   : > { %v1693_v60 = vrot.slane %v1692_v41, 1 }
 0x554   : > { %v5720_v9 = vmax.f32 %v1655_v38, %v1656_v16 }
 0x555   : > { %v5722_v6 = vmax.f32 %v1692_v41, %v1693_v60 }
 0x556   : > { %v1695_v56 = vsub.f32 %v5528_v22, %v5720_v9  ;;  %v1697_v12 = vsub.f32 %v5532_v32, %v5720_v9  ;;  %v1699_v63 = vsub.f32 %v5536_v39, %v5720_v9  ;;  %v1701_v54 = vsub.f32 %v5544_v29, %v5720_v9 }
 0x557   : > { %v1703_v37 = vsub.f32 %v5552_v45, %v5720_v9  ;;  %v1705_v16 = vsub.f32 %v5558_v0, %v5720_v9  ;;  %v1707_v41 = vsub.f32 %v5564_v21, %v5720_v9  ;;  %v1709_v22 = vsub.f32 %v5570_v4, %v5720_v9 }
 0x558   : > { %v1711_v32 = vsub.f32 %v5576_v17, %v5720_v9  ;;  %v1713_v39 = vsub.f32 %v5582_v62, %v5720_v9  ;;  %v1715_v29 = vsub.f32 %v5588_v11, %v5720_v9  ;;  %v1717_v45 = vsub.f32 %v5594_v61, %v5720_v9 }
 0x559   : > { %v1719_v0 = vsub.f32 %v5600_v10, %v5720_v9  ;;  %v1721_v21 = vsub.f32 %v5606_v53, %v5720_v9  ;;  %v1723_v4 = vsub.f32 %v5612_v23, %v5720_v9  ;;  %v1725_v17 = vsub.f32 %v5618_v30, %v5720_v9 }
 0x55a   : > { %v1727_v62 = vsub.f32 %v5624_v1, %v5720_v9  ;;  %v1729_v11 = vsub.f32 %v5630_v44, %v5720_v9  ;;  %v1731_v61 = vsub.f32 %v5636_v20, %v5720_v9  ;;  %v1733_v10 = vsub.f32 %v5642_v18, %v5720_v9 }
 0x55b   : > { %v1735_v53 = vsub.f32 %v5648_v14, %v5720_v9  ;;  %v1737_v23 = vsub.f32 %v5654_v24, %v5720_v9  ;;  %v1739_v38 = vsub.f32 %v5660_v59, %v5720_v9  ;;  %v1741_v30 = vsub.f32 %v5666_v26, %v5720_v9 }
 0x55c   : > { %v1759_v24 = vmul.f32 1.442695, %v1695_v56  ;;  %v1763_v59 = vmul.f32 1.442695, %v1697_v12  ;;  %v1767_v26 = vmul.f32 1.442695, %v1699_v63 }
 0x55d   : > { %v1771_v35 = vmul.f32 1.442695, %v1701_v54  ;;  %v1775_v46 = vmul.f32 1.442695, %v1703_v37  ;;  %v1779_v42 = vmul.f32 1.442695, %v1705_v16 }
 0x55e   : > { %4035 = vpow2.f32 %v1759_v24  ;;  %v1783_v34 = vmul.f32 1.442695, %v1707_v41  ;;  %v1787_v60 = vmul.f32 1.442695, %v1709_v22  ;;  %v1791_v25 = vmul.f32 1.442695, %v1711_v32 }
 0x55f   : > { %4037 = vpow2.f32 %v1763_v59  ;;  %v1795_v14 = vmul.f32 1.442695, %v1713_v39  ;;  %v1799_v56 = vmul.f32 1.442695, %v1715_v29  ;;  %v1803_v12 = vmul.f32 1.442695, %v1717_v45 }
 0x560   : > { %4039 = vpow2.f32 %v1767_v26  ;;  %v1807_v63 = vmul.f32 1.442695, %v1719_v0  ;;  %v1811_v40 = vmul.f32 1.442695, %v1721_v21  ;;  %v1815_v54 = vmul.f32 1.442695, %v1723_v4 }
 0x561   : > { %4041 = vpow2.f32 %v1771_v35  ;;  %v1819_v18 = vmul.f32 1.442695, %v1725_v17  ;;  %v1823_v28 = vmul.f32 1.442695, %v1727_v62  ;;  %v1827_v24 = vmul.f32 1.442695, %v1729_v11 }
 0x562   : > { %4043 = vpow2.f32 %v1775_v46  ;;  %v1831_v37 = vmul.f32 1.442695, %v1731_v61  ;;  %v1835_v16 = vmul.f32 1.442695, %v1733_v10  ;;  %v1839_v59 = vmul.f32 1.442695, %v1735_v53 }
 0x563   : > { %4045 = vpow2.f32 %v1779_v42  ;;  %v5792_v41 = vmul.f32 1.442695, %v1737_v23  ;;  %v5794_v22 = vmul.f32 1.442695, %v1739_v38  ;;  %v5796_v32 = vmul.f32 1.442695, %v1741_v30 }
 0x564   : > { %4047 = vpow2.f32 %v1783_v34  ;;  %v7941_v53 = vld [vmem:[#allocation18_spill] sm:$0xff]  ;;  %v7943_v26 = vld [vmem:[#allocation20_spill] sm:$0xff]  ;;  %v7944_v42 = vld [vmem:[#allocation21_spill] sm:$0xff] }
 0x565   : > { %4049 = vpow2.f32 %v1787_v60  ;;  %v7945_v60 = vld [vmem:[#allocation22_spill] sm:$0xff]  ;;  %v7947_v10 = vld [vmem:[#allocation24_spill] sm:$0xff]  ;;  %v7948_v61 = vld [vmem:[#allocation25_spill] sm:$0xff] }
 0x566   : > { %4051 = vpow2.f32 %v1791_v25  ;;  %v7942_v25 = vld [vmem:[#allocation19_spill] sm:$0xff]  ;;  %v7949_v34 = vld [vmem:[#allocation26_spill] sm:$0xff]  ;;  %v7951_v4 = vld [vmem:[#allocation28_spill] sm:$0xff] }
 0x567   : > { %4053 = vpow2.f32 %v1795_v14  ;;  %v7950_v17 = vld [vmem:[#allocation27_spill] sm:$0xff]  ;;  %v7952_v35 = vld [vmem:[#allocation29_spill] sm:$0xff]  ;;  %v7955_v39 = vld [vmem:[#allocation34_spill] sm:$0xff] }
 0x568   : > { %v5806_v21 = vpop.eup %4035  ;;  %4055 = vpow2.f32 %v1799_v56  ;;  %v7953_v45 = vld [vmem:[#allocation31_spill] sm:$0xff]  ;;  %v7954_v56 = vld [vmem:[#allocation33_spill] sm:$0xff] }
 0x569   : > { %v5814_v11 = vpop.eup %4037  ;;  %4057 = vpow2.f32 %v1803_v12  ;;  %v7946_v12 = vld [vmem:[#allocation23_spill] sm:$0xff] }
 0x56a   : > { %v5822_v38 = vpop.eup %4039  ;;  %4059 = vpow2.f32 %v1807_v63  ;;  %v1887_v30 = vadd.f32 %v5814_v11, %v5806_v21  ;;  %v7959_v63 = vld [vmem:[#allocation15_spill] sm:$0xff] }
 0x56b   : > { %v5830_v46 = vpop.eup %4041  ;;  %4061 = vpow2.f32 %v1811_v40  ;;  %v7957_v40 = vld [vmem:[#allocation32_spill] sm:$0xff] }
 0x56c   : > { %v5838_v23 = vpop.eup %4043  ;;  %4063 = vpow2.f32 %v1815_v54  ;;  %v1888_v14 = vadd.f32 %v5822_v38, %v1887_v30 }
 0x56d   : > { %v5845_v62 = vpop.eup %4045  ;;  %4065 = vpow2.f32 %v1819_v18 }
 0x56e   : > { %v5853_v0 = vpop.eup %4047  ;;  %4067 = vpow2.f32 %v1823_v28  ;;  %v1889_v30 = vadd.f32 %v5830_v46, %v1888_v14 }
 0x56f   : > { %v5860_v29 = vpop.eup %4049  ;;  %4069 = vpow2.f32 %v1827_v24 }
 0x570   : > { %v5868_v44 = vpop.eup %4051  ;;  %4071 = vpow2.f32 %v1831_v37  ;;  %v1890_v14 = vadd.f32 %v5838_v23, %v1889_v30  ;;  %v7961_v30 = vsub.f32 %v5672_v48, %v5720_v9 }
 0x571   : > { %v5875_v1 = vpop.eup %4053  ;;  %4073 = vpow2.f32 %v1835_v16  ;;  %v7962_v16 = vsub.f32 %v5678_v7, %v5720_v9 }
 0x572   : > { %v5883_v20 = vpop.eup %4055  ;;  %4075 = vpow2.f32 %v1839_v59  ;;  %v1855_v18 = vmul.f32 1.442695, %v7961_v30  ;;  %v1891_v24 = vadd.f32 %v5845_v62, %v1890_v14  ;;  %v7963_v59 = vsub.f32 %v5684_v52, %v5720_v9 }
 0x573   : > { %v5889_v36 = vpop.eup %4057  ;;  %4077 = vpow2.f32 %v5792_v41  ;;  %v1859_v28 = vmul.f32 1.442695, %v7962_v16  ;;  %v7964_v41 = vsub.f32 %v5690_v5, %v5720_v9  ;;  %v7968_v5 = vsub.f32 %v5708_v3, %v5720_v9 }
 0x574   : > { %v5895_v54 = vpop.eup %4059  ;;  %4079 = vpow2.f32 %v5794_v22  ;;  %v1863_v37 = vmul.f32 1.442695, %v7963_v59  ;;  %v1892_v48 = vadd.f32 %v5853_v0, %v1891_v24  ;;  %v7965_v22 = vsub.f32 %v5696_v8, %v5720_v9 }
 0x575   : > { %v5902_v30 = vpop.eup %4061  ;;  %4081 = vpow2.f32 %v5796_v32  ;;  %v1867_v14 = vmul.f32 1.442695, %v7964_v41  ;;  %v7966_v24 = vsub.f32 %v5702_v15, %v5720_v9 }
 0x576   : > { %v5908_v7 = vpop.eup %4063  ;;  %4083 = vpow2.f32 %v1855_v18  ;;  %v1871_v16 = vmul.f32 1.442695, %v7965_v22  ;;  %v1893_v52 = vadd.f32 %v5860_v29, %v1892_v48  ;;  %v1879_v18 = vmul.f32 1.442695, %v7968_v5 }
 0x577   : > { %v5914_v59 = vpop.eup %4065  ;;  %4085 = vpow2.f32 %v1859_v28  ;;  %v1875_v32 = vmul.f32 1.442695, %v7966_v24  ;;  %v7969_v48 = vsub.f32 %v5714_v19, %v5720_v9  ;;  %v7972_v19 = vsub.f32 %v5540_v55, %v5722_v6 }
 0x578   : > { %v5919_v27 = vpop.eup %4067  ;;  %4087 = vpow2.f32 %v1863_v37  ;;  %v1894_v41 = vadd.f32 %v5868_v44, %v1893_v52  ;;  %v7970_v37 = vsub.f32 %v5530_v49, %v5722_v6  ;;  %v7971_v52 = vsub.f32 %v5534_v31, %v5722_v6 }
 0x579   : > { %7967 = vst [vmem:[#allocation18_spill] sm:$0xff] %v5919_v27  ;;  %v5925_v8 = vpop.eup %4069  ;;  %4089 = vpow2.f32 %v1867_v14  ;;  %v1883_v28 = vmul.f32 1.442695, %v7969_v48  ;;  %v1769_v9 = vmul.f32 1.442695, %v7972_v19  ;;  %v7973_v49 = vsub.f32 %v5548_v57, %v5722_v6 }
 0x57a   : > { %v5930_v22 = vpop.eup %4071  ;;  %4091 = vpow2.f32 %v1871_v16  ;;  %v1895_v15 = vadd.f32 %v5875_v1, %v1894_v41  ;;  %v1761_v24 = vmul.f32 1.442695, %v7970_v37  ;;  %v1765_v14 = vmul.f32 1.442695, %v7971_v52 }
 0x57b   : > { %v5936_v3 = vpop.eup %4073  ;;  %4093 = vpow2.f32 %v1875_v32  ;;  %v1773_v41 = vmul.f32 1.442695, %v7973_v49  ;;  %v7974_v32 = vsub.f32 %v5555_v13, %v5722_v6  ;;  %v7975_v31 = vsub.f32 %v5561_v33, %v5722_v6 }
 0x57c   : > { %v5944_v5 = vpop.eup %4075  ;;  %4095 = vpow2.f32 %v1879_v18  ;;  %v1896_v16 = vadd.f32 %v5883_v20, %v1895_v15  ;;  %v7976_v18 = vsub.f32 %v5567_v58, %v5722_v6  ;;  %v7977_v15 = vsub.f32 %v5573_v43, %v5722_v6 }
 0x57d   : > { %v1777_v48 = vmul.f32 1.442695, %v7974_v32  ;;  %v5953_v37 = vpop.eup %4077  ;;  %4097 = vpow2.f32 %v1883_v28  ;;  %v1781_v55 = vmul.f32 1.442695, %v7975_v31  ;;  %v7978_v28 = vsub.f32 %v5579_v50, %v5722_v6 }
 0x57e   : > { %v1785_v52 = vmul.f32 1.442695, %v7976_v18  ;;  %v1789_v57 = vmul.f32 1.442695, %v7977_v15  ;;  %v5964_v19 = vpop.eup %4079  ;;  %v1897_v13 = vadd.f32 %v5889_v36, %v1896_v16  ;;  %4099 = vpow2.f32 %v1761_v24 }
 0x57f   : > { %v1793_v49 = vmul.f32 1.442695, %v7978_v28  ;;  %v7979_v33 = vsub.f32 %v5585_v2, %v5722_v6  ;;  %v5973_v31 = vpop.eup %4081  ;;  %4101 = vpow2.f32 %v1765_v14 }
 0x580   : > { %v5981_v16 = vpop.eup %4083  ;;  %v1898_v50 = vadd.f32 %v5895_v54, %v1897_v13  ;;  %4103 = vpow2.f32 %v1769_v9 }
 0x581   : > { %v1797_v32 = vmul.f32 1.442695, %v7979_v33  ;;  %v5988_v18 = vpop.eup %4085  ;;  %4105 = vpow2.f32 %v1773_v41  ;;  %v7980_v41 = vsub.f32 %v5591_v47, %v5722_v6  ;;  %v7981_v33 = vsub.f32 %v7941_v53, %v5722_v6 }
 0x582   : > { %v5996_v13 = vpop.eup %4087  ;;  %v1899_v9 = vadd.f32 %v5902_v30, %v1898_v50  ;;  %4107 = vpow2.f32 %v1777_v48 }
 0x583   : > { %v6003_v2 = vpop.eup %4089  ;;  %4109 = vpow2.f32 %v1781_v55  ;;  %v1801_v14 = vmul.f32 1.442695, %v7980_v41  ;;  %v1805_v28 = vmul.f32 1.442695, %v7981_v33 }
 0x584   : > { %v6011_v50 = vpop.eup %4091  ;;  %v1900_v48 = vadd.f32 %v5908_v7, %v1899_v9  ;;  %4111 = vpow2.f32 %v1785_v52  ;;  %v7982_v52 = vsub.f32 %v7942_v25, %v5722_v6  ;;  %v7987_v25 = vsub.f32 %v7947_v10, %v5722_v6 }
 0x585   : > { %v6019_v24 = vpop.eup %4093  ;;  %4113 = vpow2.f32 %v1789_v57  ;;  %v7983_v57 = vsub.f32 %v7943_v26, %v5722_v6  ;;  %v7986_v26 = vsub.f32 %v7946_v12, %v5722_v6  ;;  %v7990_v10 = vsub.f32 %v7950_v17, %v5722_v6 }
 0x586   : > { %v6024_v15 = vpop.eup %4095  ;;  %v1901_v43 = vadd.f32 %v5914_v59, %v1900_v48  ;;  %4115 = vpow2.f32 %v1793_v49  ;;  %v1809_v47 = vmul.f32 1.442695, %v7982_v52  ;;  %v7984_v49 = vsub.f32 %v7944_v42, %v5722_v6 }
 0x587   : > { %v6032_v41 = vpop.eup %4097  ;;  %4117 = vpow2.f32 %v1797_v32  ;;  %v1813_v53 = vmul.f32 1.442695, %v7983_v57  ;;  %v7985_v32 = vsub.f32 %v7945_v60, %v5722_v6  ;;  %v1825_v57 = vmul.f32 1.442695, %v7986_v26 }
 0x588   : > { %v4100_v33 = vpop.eup %4099  ;;  %v1902_v55 = vadd.f32 %v5919_v27, %v1901_v43  ;;  %4119 = vpow2.f32 %v1801_v14  ;;  %v1817_v48 = vmul.f32 1.442695, %v7984_v49  ;;  %v7988_v60 = vsub.f32 %v7948_v61, %v5722_v6 }
 0x589   : > { %v4102_v52 = vpop.eup %4101  ;;  %4121 = vpow2.f32 %v1805_v28  ;;  %v1821_v9 = vmul.f32 1.442695, %v7985_v32  ;;  %v1829_v28 = vmul.f32 1.442695, %v7987_v25  ;;  %v1841_v25 = vmul.f32 1.442695, %v7990_v10 }
 0x58a   : > { %v4104_v58 = vpop.eup %4103  ;;  %v1903_v43 = vadd.f32 %v5925_v8, %v1902_v55  ;;  %4123 = vpow2.f32 %v1809_v47  ;;  %v1924_v14 = vadd.f32 %v4102_v52, %v4100_v33  ;;  %v1964_v42 = vpack.c.bf16 %v4102_v52, %v4100_v33 }
 0x58b   : > { %v4106_v49 = vpop.eup %4105  ;;  %4125 = vpow2.f32 %v1813_v53  ;;  %v1833_v32 = vmul.f32 1.442695, %v7988_v60  ;;  %v7989_v53 = vsub.f32 %v7949_v34, %v5722_v6  ;;  %v7991_v61 = vpack.c.bf16 %v5814_v11, %v5806_v21 }
 0x58c   : > { %v4108_v27 = vpop.eup %4107  ;;  %v1904_v12 = vadd.f32 %v5930_v22, %v1903_v43  ;;  %4127 = vpow2.f32 %v1817_v48  ;;  %v1925_v26 = vadd.f32 %v4104_v58, %v1924_v14  ;;  %2001 = vmatprep.subr.bf16.mxu1 %v1964_v42  ;;  %v1966_v55 = vpack.c.bf16 %v4106_v49, %v4104_v58 }
 0x58d   : > { %v4110_v47 = vpop.eup %4109  ;;  %4129 = vpow2.f32 %v1821_v9  ;;  %v1837_v33 = vmul.f32 1.442695, %v7989_v53  ;;  %2002 = vmatpush1.bf16.msra.mxu1 %v7991_v61  ;;  %v7992_v34 = vsub.f32 %v7951_v4, %v5722_v6  ;;  %v7993_v17 = vsub.f32 %v7952_v35, %v5722_v6  ;;  %v7998_v61 = vld [vmem:[#allocation30_spill] sm:$0xff] }
 0x58e   : > { %v4112_v52 = vpop.eup %4111  ;;  %v1905_v48 = vadd.f32 %v5936_v3, %v1904_v12  ;;  %4131 = vpow2.f32 %v1825_v57  ;;  %v1926_v43 = vadd.f32 %v4106_v49, %v1925_v26  ;;  %2003 = vmatprep.subr.bf16.mxu1 %v1966_v55  ;;  %v1968_v58 = vpack.c.bf16 %v4110_v47, %v4108_v27 }
 0x58f   : > { %v4114_v9 = vpop.eup %4113  ;;  %4133 = vpow2.f32 %v1829_v28  ;;  %v1845_v14 = vmul.f32 1.442695, %v7992_v34  ;;  %v1849_v42 = vmul.f32 1.442695, %v7993_v17  ;;  %v7994_v49 = vsub.f32 %v7953_v45, %v5722_v6 }
 0x590   : > { %v4116_v60 = vpop.eup %4115  ;;  %v1906_v21 = vadd.f32 %v5944_v5, %v1905_v48  ;;  %4135 = vpow2.f32 %v1833_v32  ;;  %v1927_v11 = vadd.f32 %v4108_v27, %v1926_v43  ;;  %v1970_v12 = vpack.c.bf16 %v4114_v9, %v4112_v52 }
 0x591   : > { %v4118_v57 = vpop.eup %4117  ;;  %4137 = vpow2.f32 %v1837_v33  ;;  %v1853_v28 = vmul.f32 1.442695, %v7994_v49  ;;  %v7995_v4 = vsub.f32 %v7954_v56, %v5722_v6  ;;  %v7996_v35 = vpack.c.bf16 %v5830_v46, %v5822_v38 }
 0x592   : > { %v4120_v55 = vpop.eup %4119  ;;  %v1907_v53 = vadd.f32 %v5953_v37, %v1906_v21  ;;  %4139 = vpow2.f32 %v1841_v25  ;;  %v1928_v27 = vadd.f32 %v4110_v47, %v1927_v11  ;;  %v1972_v32 = vpack.c.bf16 %v4118_v57, %v4116_v60 }
 0x593   : > { %v1857_v26 = vmul.f32 1.442695, %v7995_v4  ;;  %2004 = vmatpush1.bf16.msra.mxu1 %v7996_v35  ;;  %v4122_v33 = vpop.eup %4121  ;;  %4141 = vpow2.f32 %v1845_v14  ;;  %v7997_v45 = vsub.f32 %v7955_v39, %v5722_v6  ;;  %v7999_v56 = vsub.f32 %v7998_v61, %v5722_v6  ;;  %v8001_v14 = vld [vmem:[#allocation35_spill] sm:$0xff] }
 0x594   : > { %2005 = vmatprep.subr.bf16.mxu1 %v1968_v58  ;;  %v4124_v43 = vpop.eup %4123  ;;  %v1908_v38 = vadd.f32 %v5964_v19, %v1907_v53  ;;  %4143 = vpow2.f32 %v1849_v42  ;;  %v1929_v46 = vadd.f32 %v4112_v52, %v1928_v27  ;;  %v1974_v34 = vpack.c.bf16 %v4122_v33, %v4120_v55 }
 0x595   : > { %v1861_v10 = vmul.f32 1.442695, %v7997_v45  ;;  %v1865_v48 = vmul.f32 1.442695, %v7999_v56  ;;  %v4126_v25 = vpop.eup %4125  ;;  %4145 = vpow2.f32 %v1853_v28  ;;  %v8000_v47 = vsub.f32 %v7957_v40, %v5722_v6 }
 0x596   : > { %v8002_v39 = vsub.f32 %v8001_v14, %v5722_v6  ;;  %v8003_v21 = vpack.c.bf16 %v5845_v62, %v5838_v23  ;;  %v4128_v11 = vpop.eup %4127  ;;  %v1909_v49 = vadd.f32 %v5973_v31, %v1908_v38  ;;  %4147 = vpow2.f32 %v1857_v26 }
 0x597   : > { %v1869_v58 = vmul.f32 1.442695, %v8000_v47  ;;  %v1930_v52 = vadd.f32 %v4114_v9, %v1929_v46  ;;  %v1976_v42 = vpack.c.bf16 %v4126_v25, %v4124_v43  ;;  %v4130_v28 = vpop.eup %4129  ;;  %4149 = vpow2.f32 %v1861_v10  ;;  %v8006_v9 = vld [vmem:[#allocation12_spill] sm:$0xff] }
 0x598   : > { %v1873_v17 = vmul.f32 1.442695, %v8002_v39  ;;  %2006 = vmatpush1.bf16.msra.mxu1 %v8003_v21  ;;  %v8004_v40 = vsub.f32 %v7959_v63, %v5722_v6  ;;  %v8005_v35 = vsub.f32 %v7960_v51, %v5722_v6  ;;  %v4132_v27 = vpop.eup %4131  ;;  %v1910_v62 = vadd.f32 %v5981_v16, %v1909_v49 }
 0x599   : > { %2007 = vmatprep.subr.bf16.mxu1 %v1970_v12  ;;  %4151 = vpow2.f32 %v1865_v48  ;;  %v1931_v23 = vadd.f32 %v4116_v60, %v1930_v52  ;;  %v1978_v45 = vpack.c.bf16 %v4130_v28, %v4128_v11  ;;  %v4134_v26 = vpop.eup %4133  ;;  %v8007_v12 = vsub.f32 %v8006_v9, %v5722_v6 }
 0x59a   : > { %v1877_v4 = vmul.f32 1.442695, %v8004_v40  ;;  %v1881_v53 = vmul.f32 1.442695, %v8005_v35  ;;  %4153 = vpow2.f32 %v1869_v58  ;;  %v8008_v63 = vpack.c.bf16 %v5860_v29, %v5853_v0  ;;  %v4136_v61 = vpop.eup %4135 }
 0x59b   : > { %v1885_v10 = vmul.f32 1.442695, %v8007_v12  ;;  %v1911_v51 = vadd.f32 %v5988_v18, %v1910_v62  ;;  %4155 = vpow2.f32 %v1873_v17  ;;  %v1932_v56 = vadd.f32 %v4118_v57, %v1931_v23  ;;  %v4138_v48 = vpop.eup %4137 }
 0x59c   : > { %2008 = vmatpush1.bf16.msra.mxu1 %v8008_v63  ;;  %v1980_v38 = vpack.c.bf16 %v4134_v26, %v4132_v27  ;;  %4157 = vpow2.f32 %v1877_v4  ;;  %v4140_v60 = vpop.eup %4139  ;;  %v1982_v6 = vpack.c.bf16 %v4138_v48, %v4136_v61  ;;  %v8009_v29 = vpack.c.bf16 %v5875_v1, %v5868_v44 }
 0x59d   : > { %2009 = vmatprep.subr.bf16.mxu1 %v1972_v32  ;;  %v1912_v46 = vadd.f32 %v5996_v13, %v1911_v51  ;;  %4159 = vpow2.f32 %v1881_v53  ;;  %v1933_v47 = vadd.f32 %v4120_v55, %v1932_v56  ;;  %v4142_v58 = vpop.eup %4141  ;;  %v8010_v40 = vpack.c.bf16 %v5889_v36, %v5883_v20 }
 0x59e   : > { %4161 = vpow2.f32 %v1885_v10  ;;  %v4144_v0 = vpop.eup %4143  ;;  %v1984_v32 = vpack.c.bf16 %v4142_v58, %v4140_v60  ;;  %v8012_v51 = vpack.c.bf16 %v5914_v59, %v5908_v7  ;;  %v8016_v7 = vpack.c.bf16 %v5953_v37, %v5944_v5 }
 0x59f   : > { %v1913_v14 = vadd.f32 %v6003_v2, %v1912_v46  ;;  %v1934_v57 = vadd.f32 %v4122_v33, %v1933_v47  ;;  %v4146_v39 = vpop.eup %4145  ;;  %v8019_v5 = vpack.c.bf16 %v6003_v2, %v5996_v13  ;;  %v8023_v13 = vld [vmem:[#allocation13_spill] sm:$0xff] }
 0x5a0   : > { %2010 = vmatpush1.bf16.msra.mxu1 %v8009_v29  ;;  %v4148_v17 = vpop.eup %4147  ;;  %v1986_v52 = vpack.c.bf16 %v4146_v39, %v4144_v0  ;;  %v8024_v29 = vmov 0  }
 0x5a1   : > { %2011 = vmatprep.subr.bf16.mxu1 %v1974_v34  ;;  %v1914_v21 = vadd.f32 %v6011_v50, %v1913_v14  ;;  %v1935_v49 = vadd.f32 %v4124_v43, %v1934_v57  ;;  %v4150_v55 = vpop.eup %4149  ;;  %v8011_v43 = vpack.c.bf16 %v5902_v30, %v5895_v54  ;;  %v8013_v54 = vld [vmem:[#allocation18_spill] sm:$0xff] }
 0x5a2   : > { %v1988_v35 = vpack.c.bf16 %v4150_v55, %v4148_v17  ;;  %v8014_v30 = vpack.c.bf16 %v5925_v8, %v8013_v54  ;;  %v8017_v8 = vpack.c.bf16 %v5973_v31, %v5964_v19  ;;  %v8020_v19 = vpack.c.bf16 %v6019_v24, %v6011_v50 }
 0x5a3   : > { %v4152_v4 = vpop.eup %4151  ;;  %v1915_v1 = vadd.f32 %v6019_v24, %v1914_v21  ;;  %v1936_v44 = vadd.f32 %v4126_v25, %v1935_v49  ;;  %v2058_v24 = vpop.trf.xlu0 }
 0x5a4   : > { %2012 = vmatpush1.bf16.msra.mxu1 %v8010_v40  ;;  %v4154_v33 = vpop.eup %4153 }
 0x5a5   : > { %2013 = vmatprep.subr.bf16.mxu1 %v1976_v42  ;;  %v4156_v34 = vpop.eup %4155  ;;  %v1916_v53 = vadd.f32 %v6024_v15, %v1915_v1  ;;  %v1937_v62 = vadd.f32 %v4128_v11, %v1936_v44  ;;  %v1990_v23 = vpack.c.bf16 %v4154_v33, %v4152_v4 }
 0x5a6   : > { %v4158_v9 = vpop.eup %4157 }
 0x5a7   : > { %v4160_v12 = vpop.eup %4159  ;;  %v6130_v36 = vadd.f32 %v6032_v41, %v1916_v53  ;;  %v1938_v20 = vadd.f32 %v4130_v28, %v1937_v62  ;;  %v1992_v25 = vpack.c.bf16 %v4158_v9, %v4156_v34  ;;  %v8015_v28 = vpack.c.bf16 %v5936_v3, %v5930_v22  ;;  %v2059_v50 = vpop.trf.xlu0 }
 0x5a8   : > { %2014 = vmatpush1.bf16.msra.mxu1 %v8011_v43  ;;  %v4162_v42 = vpop.eup %4161  ;;  %v8018_v22 = vpack.c.bf16 %v5988_v18, %v5981_v16  ;;  %v8021_v16 = vpack.c.bf16 %v6032_v41, %v6024_v15  ;;  %v8022_v18 = vld [vmem:[#allocation14_spill] sm:$0xff] }
 0x5a9   : > { %2015 = vmatprep.subr.bf16.mxu1 %v1978_v45  ;;  %v1939_v10 = vadd.f32 %v4132_v27, %v1938_v20  ;;  %v1994_v63 = vpack.c.bf16 %v4162_v42, %v4160_v12 }
 0x5ab   : > { %v1940_v11 = vadd.f32 %v4134_v26, %v1939_v10  ;;  %v2060_v15 = vpop.trf.xlu0 }
 0x5ac   : > { %2016 = vmatpush1.bf16.msra.mxu1 %v8012_v51 }
 0x5ad   : > { %2017 = vmatprep.subr.bf16.mxu1 %v1980_v38  ;;  %v1941_v56 = vadd.f32 %v4136_v61, %v1940_v11 }
 0x5af   : > { %v1942_v46 = vadd.f32 %v4138_v48, %v1941_v56  ;;  %v2061_v41 = vpop.trf.xlu0 }
 0x5b0   : > { %2018 = vmatpush1.bf16.msra.mxu1 %v8014_v30 }
 0x5b1   : > { %2019 = vmatprep.subr.bf16.mxu1 %v1982_v6  ;;  %v1943_v47 = vadd.f32 %v4140_v60, %v1942_v46  ;;  %v1330_v6 = vld [vmem:[#allocation3 + $0x20] sm:$0xf0] }
 0x5b2   : > { %v1997_v2 = vrot.slane %v1330_v6, 4 }
 0x5b3   : > { %v1944_v27 = vadd.f32 %v4142_v58, %v1943_v47  ;;  %v2131_v58 = vsel %vm709_vm1, %v8023_v13, 0 }
 0x5b4   : > { %2020 = vmatpush1.bf16.msra.mxu1 %v8015_v28 }
 0x5b5   : > { %2021 = vmatprep.subr.bf16.mxu1 %v1984_v32  ;;  %v1945_v45 = vadd.f32 %v4144_v0, %v1944_v27  ;;  %v2062_v0 = vpop.trf.xlu0 }
 0x5b7   : > { %v1946_v59 = vadd.f32 %v4146_v39, %v1945_v45  ;;  %v2074_v39 = vpop.trf.xlu1 }
 0x5b8   : > { %2022 = vmatpush1.bf16.msra.mxu1 %v8016_v7 }
 0x5b9   : > { %2023 = vmatprep.subr.bf16.mxu1 %v1986_v52  ;;  %v1947_v26 = vadd.f32 %v4148_v17, %v1946_v59  ;;  %v2063_v14 = vpop.trf.xlu0 }
 0x5bb   : > { %v1948_v61 = vadd.f32 %v4150_v55, %v1947_v26  ;;  %v2075_v17 = vpop.trf.xlu1 }
 0x5bc   : > { %2024 = vmatpush1.bf16.msra.mxu1 %v8017_v8 }
 0x5bd   : > { %2025 = vmatprep.subr.bf16.mxu1 %v1988_v35  ;;  %v1949_v38 = vadd.f32 %v4152_v4, %v1948_v61  ;;  %v2064_v57 = vpop.trf.xlu0  ;;  %v2751_v4 = vld [vmem:[#allocation3 + $0x38] sm:$0xf0]  ;;  %v1918_v35 = vrot.slane %v6130_v36, 4 }
 0x5be   : > { %v3418_v44 = vrot.slane %v2751_v4, 4 }
 0x5bf   : > { %v1950_v3 = vadd.f32 %v4154_v33, %v1949_v38  ;;  %v2076_v21 = vpop.trf.xlu1 }
 0x5c0   : > { %2026 = vmatpush1.bf16.msra.mxu1 %v8018_v22 }
 0x5c1   : > { %2027 = vmatprep.subr.bf16.mxu1 %v1990_v23  ;;  %v1951_v48 = vadd.f32 %v4156_v34, %v1950_v3  ;;  %v2065_v32 = vpop.trf.xlu0  ;;  %v1919_v34 = vadd.f32 %v1918_v35, %v6130_v36 }
 0x5c3   : > { %v1952_v37 = vadd.f32 %v4158_v9, %v1951_v48  ;;  %v2077_v49 = vpop.trf.xlu1  ;;  %v1920_v62 = vrot.slane %v1919_v34, 2 }
 0x5c4   : > { %2028 = vmatpush1.bf16.msra.mxu1 %v8019_v5 }
 0x5c5   : > { %2029 = vmatprep.subr.bf16.mxu1 %v1992_v25  ;;  %v1953_v60 = vadd.f32 %v4160_v12, %v1952_v37  ;;  %v1921_v9 = vadd.f32 %v1920_v62, %v1919_v34 }
 0x5c7   : > { %v6156_v31 = vadd.f32 %v4162_v42, %v1953_v60  ;;  %v2078_v52 = vpop.trf.xlu1  ;;  %v1922_v12 = vrot.slane %v1921_v9, 1 }
 0x5c8   : > { %2030 = vmatpush1.bf16.msra.mxu1 %v8020_v19 }
 0x5c9   : > { %2031 = vmatprep.subr.bf16.mxu1 %v1994_v63  ;;  %v1955_v33 = vrot.slane %v6156_v31, 4  ;;  %v1923_v25 = vadd.f32 %v1922_v12, %v1921_v9 }
 0x5cb   : > { %v2079_v55 = vpop.trf.xlu1  ;;  %v1956_v53 = vadd.f32 %v1955_v33, %v6156_v31  ;;  %4163 = vrcp.f32 %v1923_v25 }
 0x5cc   : > { %2032 = vmatpush1.bf16.msra.mxu1 %v8021_v16 }
 0x5cd   : > { %3766 = vmatprep.subr.msk.bf16.mxu1 %vm709_vm1, %v8022_v18  ;;  %v1957_v23 = vrot.slane %v1956_v53, 2 }
 0x5cf   : > { %2034 = vmatmul.mubr.bf16.vlgmr.msra.gmra.mrb[72].mxu1 %v1997_v2  ;;  %v2080_v40 = vpop.trf.xlu1  ;;  %v1958_v43 = vadd.f32 %v1957_v23, %v1956_v53 }
 0x5d0   : > { %2137 = vmatpush1.bf16.msra.mxu1 %v2131_v58  ;;  %2168 = vmatprep.mubr.bf16.mxu1 %v8024_v29 }
 0x5d1   : > { %v1959_v20 = vrot.slane %v1958_v43, 1 }
 0x5d3   : > { %v2081_v1 = vpop.trf.xlu1  ;;  %v1960_v42 = vadd.f32 %v1959_v20, %v1958_v43 }
 0x5d5   : > { %4165 = vrcp.f32 %v1960_v42  ;;  %v4164_v10 = vpop.eup %4163 }
 0x5d7   : > { %3767 = vmatmul.mubr.msk.bf16.vlgmr.msra.gmra.mrb[76].mxu1 %vm660_vm2, %v2058_v24 }
 0x5d8   : > { %2178 = vmatprep.mubr.bf16.mxu1 %v8024_v29 }
 0x5df   : > { %3768 = vmatmul.mubr.msk.bf16.gmra.mrb[80].mxu1 %vm660_vm2, %v2059_v50  ;;  %v4166_v51 = vpop.eup %4165 }
 0x5e0   : > { %2188 = vmatprep.mubr.bf16.mxu1 %v8024_v29 }
 0x5e7   : > { %3769 = vmatmul.mubr.msk.bf16.gmra.mrb[84].mxu1 %vm660_vm2, %v2060_v15 }
 0x5e8   : > { %2198 = vmatprep.mubr.bf16.mxu1 %v8024_v29 }
 0x5ef   : > { %3770 = vmatmul.mubr.msk.bf16.gmra.mrb[88].mxu1 %vm660_vm2, %v2061_v41 }
 0x5f0   : > { %2208 = vmatprep.mubr.bf16.mxu1 %v8024_v29 }
 0x5f7   : > { %3771 = vmatmul.mubr.msk.bf16.gmra.mrb[92].mxu1 %vm660_vm2, %v2062_v0 }
 0x5f8   : > { %2218 = vmatprep.mubr.bf16.mxu1 %v8024_v29 }
 0x5ff   : > { %3772 = vmatmul.mubr.msk.bf16.gmra.mrb[96].mxu1 %vm660_vm2, %v2063_v14 }
 0x600   : > { %2228 = vmatprep.mubr.bf16.mxu1 %v8024_v29 }
 0x607   : > { %3773 = vmatmul.mubr.msk.bf16.gmra.mrb[100].mxu1 %vm660_vm2, %v2064_v57 }
 0x608   : > { %2238 = vmatprep.mubr.bf16.mxu1 %v8024_v29 }
 0x60f   : > { %3774 = vmatmul.mubr.msk.bf16.gmra.mrb[104].mxu1 %vm660_vm2, %v2065_v32 }
 0x610   : > { %2248 = vmatprep.mubr.bf16.mxu1 %v8024_v29 }
 0x617   : > { %3775 = vmatmul.mubr.msk.bf16.gmra.mrb[108].mxu1 %vm660_vm2, %v2074_v39 }
 0x618   : > { %2258 = vmatprep.mubr.bf16.mxu1 %v8024_v29 }
 0x61f   : > { %3776 = vmatmul.mubr.msk.bf16.gmra.mrb[112].mxu1 %vm660_vm2, %v2075_v17 }
 0x620   : > { %2268 = vmatprep.mubr.bf16.mxu1 %v8024_v29 }
 0x627   : > { %3777 = vmatmul.mubr.msk.bf16.gmra.mrb[116].mxu1 %vm660_vm2, %v2076_v21 }
 0x628   : > { %2278 = vmatprep.mubr.bf16.mxu1 %v8024_v29 }
 0x62f   : > { %3778 = vmatmul.mubr.msk.bf16.gmra.mrb[120].mxu1 %vm660_vm2, %v2077_v49 }
 0x630   : > { %2288 = vmatprep.mubr.bf16.mxu1 %v8024_v29 }
 0x637   : > { %3779 = vmatmul.mubr.msk.bf16.gmra.mrb[124].mxu1 %vm660_vm2, %v2078_v52 }
 0x638   : > { %2298 = vmatprep.mubr.bf16.mxu1 %v8024_v29 }
 0x63f   : > { %3780 = vmatmul.mubr.msk.bf16.gmra.mrb[128].mxu1 %vm660_vm2, %v2079_v55 }
 0x640   : > { %2308 = vmatprep.mubr.bf16.mxu1 %v8024_v29 }
 0x647   : > { %3781 = vmatmul.mubr.msk.bf16.gmra.mrb[132].mxu1 %vm660_vm2, %v2080_v40 }
 0x648   : > { %2318 = vmatprep.mubr.bf16.mxu1 %v8024_v29 }
 0x64f   : > { %3782 = vmatmul.mubr.msk.bf16.gmra.mrb[136].mxu1 %vm660_vm2, %v2081_v1 }
 0x650   : > { %3453 = vmatprep.mubr.bf16.mxu1 %v3418_v44 }
 0x6a2   : > { %v2035_v63 = vpop.f32.mrb[72].mxu1 }
 0x6a3   : > { %v6201_v11 = vmul.f32 %v4164_v10, %v2035_v63  ;;  %v2037_v56 = vpop.f32.mrb[73].mxu1 }
 0x6a4   : > { %v6203_v54 = vmul.f32 %v4166_v51, %v2037_v56  ;;  %v2039_v36 = vpop.f32.mrb[74].mxu1 }
 0x6a5   : > { %8025 = vst [vmem:[#allocation19_spill] sm:$0xff] %v6201_v11  ;;  %v2040_v47 = vpop.f32.mrb[75].mxu1 }
 0x6a6   : > { %8026 = vst [vmem:[#allocation20_spill] sm:$0xff] %v6203_v54 }
 0x6aa   : > { %v6209_v45 = vpop.f32.mrb[76].mxu1 }
 0x6ab   : > { %v6211_v7 = vpop.f32.mrb[77].mxu1 }
 0x6ac   : > { %v6213_v59 = vpop.f32.mrb[78].mxu1 }
 0x6ad   : > { %v6215_v26 = vpop.f32.mrb[79].mxu1 }
 0x6b2   : > { %v6217_v8 = vpop.f32.mrb[80].mxu1 }
 0x6b3   : > { %v2329_v61 = vmax.f32 %v6209_v45, %v6217_v8  ;;  %v6221_v38 = vpop.f32.mrb[81].mxu1 }
 0x6b4   : > { %v2366_v22 = vmax.f32 %v6211_v7, %v6221_v38  ;;  %v6225_v3 = vpop.f32.mrb[82].mxu1 }
 0x6b5   : > { %v2330_v48 = vmax.f32 %v6213_v59, %v6225_v3  ;;  %v6229_v5 = vpop.f32.mrb[83].mxu1 }
 0x6b6   : > { %v2367_v37 = vmax.f32 %v6215_v26, %v6229_v5 }
 0x6ba   : > { %v6233_v60 = vpop.f32.mrb[84].mxu1 }
 0x6bb   : > { %v2331_v19 = vmax.f32 %v2329_v61, %v6233_v60  ;;  %v6236_v31 = vpop.f32.mrb[85].mxu1 }
 0x6bc   : > { %v2368_v6 = vmax.f32 %v2366_v22, %v6236_v31  ;;  %v6239_v16 = vpop.f32.mrb[86].mxu1 }
 0x6bd   : > { %v2332_v2 = vmax.f32 %v2330_v48, %v6239_v16  ;;  %v6242_v58 = vpop.f32.mrb[87].mxu1 }
 0x6be   : > { %v2369_v24 = vmax.f32 %v2367_v37, %v6242_v58 }
 0x6c2   : > { %v6245_v50 = vpop.f32.mrb[88].mxu1 }
 0x6c3   : > { %v2333_v15 = vmax.f32 %v2331_v19, %v6245_v50  ;;  %v6248_v41 = vpop.f32.mrb[89].mxu1 }
 0x6c4   : > { %v2370_v0 = vmax.f32 %v2368_v6, %v6248_v41  ;;  %v6251_v14 = vpop.f32.mrb[90].mxu1 }
 0x6c5   : > { %v2334_v57 = vmax.f32 %v2332_v2, %v6251_v14  ;;  %v6254_v32 = vpop.f32.mrb[91].mxu1 }
 0x6c6   : > { %v2371_v39 = vmax.f32 %v2369_v24, %v6254_v32 }
 0x6ca   : > { %v6257_v17 = vpop.f32.mrb[92].mxu1 }
 0x6cb   : > { %v2335_v21 = vmax.f32 %v2333_v15, %v6257_v17  ;;  %v6260_v49 = vpop.f32.mrb[93].mxu1 }
 0x6cc   : > { %v2372_v52 = vmax.f32 %v2370_v0, %v6260_v49  ;;  %v6263_v55 = vpop.f32.mrb[94].mxu1 }
 0x6cd   : > { %v2336_v40 = vmax.f32 %v2334_v57, %v6263_v55  ;;  %v6266_v4 = vpop.f32.mrb[95].mxu1 }
 0x6ce   : > { %v2373_v1 = vmax.f32 %v2371_v39, %v6266_v4 }
 0x6d2   : > { %v6269_v44 = vpop.f32.mrb[96].mxu1 }
 0x6d3   : > { %v2337_v35 = vmax.f32 %v2335_v21, %v6269_v44  ;;  %v6272_v33 = vpop.f32.mrb[97].mxu1 }
 0x6d4   : > { %v2374_v34 = vmax.f32 %v2372_v52, %v6272_v33  ;;  %v6275_v53 = vpop.f32.mrb[98].mxu1 }
 0x6d5   : > { %v2338_v62 = vmax.f32 %v2336_v40, %v6275_v53  ;;  %v6278_v23 = vpop.f32.mrb[99].mxu1 }
 0x6d6   : > { %8029 = vst [vmem:[#allocation21_spill] sm:$0xff] %v6278_v23  ;;  %v2375_v9 = vmax.f32 %v2373_v1, %v6278_v23 }
 0x6da   : > { %v6281_v43 = vpop.f32.mrb[100].mxu1 }
 0x6db   : > { %v2339_v12 = vmax.f32 %v2337_v35, %v6281_v43  ;;  %v6284_v20 = vpop.f32.mrb[101].mxu1 }
 0x6dc   : > { %8030 = vst [vmem:[#allocation22_spill] sm:$0xff] %v6284_v20  ;;  %v2376_v25 = vmax.f32 %v2374_v34, %v6284_v20  ;;  %v6287_v42 = vpop.f32.mrb[102].mxu1 }
 0x6dd   : > { %v2340_v10 = vmax.f32 %v2338_v62, %v6287_v42  ;;  %v6290_v63 = vpop.f32.mrb[103].mxu1 }
 0x6de   : > { %8031 = vst [vmem:[#allocation23_spill] sm:$0xff] %v6290_v63  ;;  %v2377_v51 = vmax.f32 %v2375_v9, %v6290_v63 }
 0x6e2   : > { %v6293_v56 = vpop.f32.mrb[104].mxu1 }
 0x6e3   : > { %v2341_v36 = vmax.f32 %v2339_v12, %v6293_v56  ;;  %v6296_v47 = vpop.f32.mrb[105].mxu1 }
 0x6e4   : > { %8032 = vst [vmem:[#allocation24_spill] sm:$0xff] %v6296_v47  ;;  %v2378_v61 = vmax.f32 %v2376_v25, %v6296_v47  ;;  %v6299_v22 = vpop.f32.mrb[106].mxu1 }
 0x6e5   : > { %v2342_v48 = vmax.f32 %v2340_v10, %v6299_v22  ;;  %v6302_v37 = vpop.f32.mrb[107].mxu1 }
 0x6e6   : > { %8033 = vst [vmem:[#allocation25_spill] sm:$0xff] %v6302_v37  ;;  %v2379_v19 = vmax.f32 %v2377_v51, %v6302_v37 }
 0x6ea   : > { %v6305_v6 = vpop.f32.mrb[108].mxu1 }
 0x6eb   : > { %v2343_v2 = vmax.f32 %v2341_v36, %v6305_v6  ;;  %v6308_v24 = vpop.f32.mrb[109].mxu1 }
 0x6ec   : > { %8034 = vst [vmem:[#allocation26_spill] sm:$0xff] %v6308_v24  ;;  %v2380_v15 = vmax.f32 %v2378_v61, %v6308_v24  ;;  %v6311_v0 = vpop.f32.mrb[110].mxu1 }
 0x6ed   : > { %v2344_v57 = vmax.f32 %v2342_v48, %v6311_v0  ;;  %v6314_v39 = vpop.f32.mrb[111].mxu1 }
 0x6ee   : > { %8035 = vst [vmem:[#allocation27_spill] sm:$0xff] %v6314_v39  ;;  %v2381_v21 = vmax.f32 %v2379_v19, %v6314_v39 }
 0x6f2   : > { %v6317_v52 = vpop.f32.mrb[112].mxu1 }
 0x6f3   : > { %v2345_v40 = vmax.f32 %v2343_v2, %v6317_v52  ;;  %v6320_v1 = vpop.f32.mrb[113].mxu1 }
 0x6f4   : > { %8036 = vst [vmem:[#allocation28_spill] sm:$0xff] %v6320_v1  ;;  %v2382_v35 = vmax.f32 %v2380_v15, %v6320_v1  ;;  %v6323_v34 = vpop.f32.mrb[114].mxu1 }
 0x6f5   : > { %v2346_v62 = vmax.f32 %v2344_v57, %v6323_v34  ;;  %v6326_v9 = vpop.f32.mrb[115].mxu1 }
 0x6f6   : > { %8037 = vst [vmem:[#allocation29_spill] sm:$0xff] %v6326_v9  ;;  %v2383_v12 = vmax.f32 %v2381_v21, %v6326_v9 }
 0x6fa   : > { %v6329_v25 = vpop.f32.mrb[116].mxu1 }
 0x6fb   : > { %v2347_v10 = vmax.f32 %v2345_v40, %v6329_v25  ;;  %v6332_v51 = vpop.f32.mrb[117].mxu1 }
 0x6fc   : > { %8038 = vst [vmem:[#allocation31_spill] sm:$0xff] %v6332_v51  ;;  %v2384_v36 = vmax.f32 %v2382_v35, %v6332_v51  ;;  %v6335_v61 = vpop.f32.mrb[118].mxu1 }
 0x6fd   : > { %v2348_v48 = vmax.f32 %v2346_v62, %v6335_v61  ;;  %v6338_v19 = vpop.f32.mrb[119].mxu1 }
 0x6fe   : > { %8039 = vst [vmem:[#allocation33_spill] sm:$0xff] %v6338_v19  ;;  %v2385_v2 = vmax.f32 %v2383_v12, %v6338_v19 }
 0x702   : > { %v6341_v15 = vpop.f32.mrb[120].mxu1 }
 0x703   : > { %v2349_v57 = vmax.f32 %v2347_v10, %v6341_v15  ;;  %v6344_v21 = vpop.f32.mrb[121].mxu1 }
 0x704   : > { %8040 = vst [vmem:[#allocation34_spill] sm:$0xff] %v6344_v21  ;;  %v2386_v40 = vmax.f32 %v2384_v36, %v6344_v21  ;;  %v6347_v46 = vpop.f32.mrb[122].mxu1 }
 0x705   : > { %v2350_v35 = vmax.f32 %v2348_v48, %v6347_v46  ;;  %v6350_v27 = vpop.f32.mrb[123].mxu1 }
 0x706   : > { %8041 = vst [vmem:[#allocation32_spill] sm:$0xff] %v6350_v27  ;;  %v2387_v62 = vmax.f32 %v2385_v2, %v6350_v27 }
 0x70a   : > { %v6353_v30 = vpop.f32.mrb[124].mxu1 }
 0x70b   : > { %v2351_v12 = vmax.f32 %v2349_v57, %v6353_v30  ;;  %v6356_v11 = vpop.f32.mrb[125].mxu1 }
 0x70c   : > { %8042 = vst [vmem:[#allocation15_spill] sm:$0xff] %v6356_v11  ;;  %v2388_v10 = vmax.f32 %v2386_v40, %v6356_v11  ;;  %v6359_v28 = vpop.f32.mrb[126].mxu1 }
 0x70d   : > { %v2352_v36 = vmax.f32 %v2350_v35, %v6359_v28  ;;  %v6362_v54 = vpop.f32.mrb[127].mxu1 }
 0x70e   : > { %8043 = vst [vmem:[#allocation11_spill] sm:$0xff] %v6362_v54  ;;  %v2389_v48 = vmax.f32 %v2387_v62, %v6362_v54 }
 0x712   : > { %v6365_v29 = vpop.f32.mrb[128].mxu1 }
 0x713   : > { %v2353_v2 = vmax.f32 %v2351_v12, %v6365_v29  ;;  %v6368_v18 = vpop.f32.mrb[129].mxu1 }
 0x714   : > { %8044 = vst [vmem:[#allocation30_spill] sm:$0xff] %v6368_v18  ;;  %v2390_v57 = vmax.f32 %v2388_v10, %v6368_v18  ;;  %v6371_v13 = vpop.f32.mrb[130].mxu1 }
 0x715   : > { %v2354_v40 = vmax.f32 %v2352_v36, %v6371_v13  ;;  %v6374_v11 = vpop.f32.mrb[131].mxu1 }
 0x716   : > { %8045 = vst [vmem:[#allocation35_spill] sm:$0xff] %v6374_v11  ;;  %v2391_v35 = vmax.f32 %v2389_v48, %v6374_v11 }
 0x71a   : > { %v6377_v27 = vpop.f32.mrb[132].mxu1 }
 0x71b   : > { %v2355_v62 = vmax.f32 %v2353_v2, %v6377_v27  ;;  %v6380_v54 = vpop.f32.mrb[133].mxu1 }
 0x71c   : > { %8046 = vst [vmem:[#allocation12_spill] sm:$0xff] %v6380_v54  ;;  %v2392_v12 = vmax.f32 %v2390_v57, %v6380_v54  ;;  %v6383_v21 = vpop.f32.mrb[134].mxu1 }
 0x71d   : > { %v2356_v10 = vmax.f32 %v2354_v40, %v6383_v21  ;;  %v6386_v18 = vpop.f32.mrb[135].mxu1 }
 0x71e   : > { %8047 = vst [vmem:[#allocation18_spill] sm:$0xff] %v6386_v18  ;;  %v2393_v36 = vmax.f32 %v2391_v35, %v6386_v18 }
 0x722   : > { %v6389_v19 = vpop.f32.mrb[136].mxu1 }
 0x723   : > { %v2357_v48 = vmax.f32 %v2355_v62, %v6389_v19  ;;  %v6392_v11 = vpop.f32.mrb[137].mxu1 }
 0x724   : > { %8048 = vst [vmem:[#allocation36_spill] sm:$0xff] %v6392_v11  ;;  %v2394_v2 = vmax.f32 %v2392_v12, %v6392_v11  ;;  %v6395_v51 = vpop.f32.mrb[138].mxu1 }
 0x725   : > { %v2358_v57 = vmax.f32 %v2356_v10, %v6395_v51  ;;  %v6398_v54 = vpop.f32.mrb[139].mxu1 }
 0x726   : > { %8049 = vst [vmem:[#allocation37_spill] sm:$0xff] %v6398_v54  ;;  %v2395_v40 = vmax.f32 %v2393_v36, %v6398_v54 }
 0x727   : > { %v2359_v9 = vmax.f32 %v2357_v48, %v2358_v57 }
 0x728   : > { %v2396_v1 = vmax.f32 %v2394_v2, %v2395_v40 }
 0x729   : > { %v2360_v39 = vrot.slane %v2359_v9, 4 }
 0x72a   : > { %v2397_v35 = vrot.slane %v2396_v1, 4 }
 0x72b   : > { %v2361_v18 = vmax.f32 %v2359_v9, %v2360_v39 }
 0x72c   : > { %v2398_v24 = vmax.f32 %v2396_v1, %v2397_v35 }
 0x72d   : > { %v2362_v37 = vrot.slane %v2361_v18, 2 }
 0x72e   : > { %v2399_v62 = vrot.slane %v2398_v24, 2 }
 0x72f   : > { %v2363_v47 = vmax.f32 %v2361_v18, %v2362_v37  ;;  %v8069_v37 = vld [vmem:[#allocation36_spill] sm:$0xff] }
 0x730   : > { %v2400_v63 = vmax.f32 %v2398_v24, %v2399_v62 }
 0x731   : > { %v2364_v20 = vrot.slane %v2363_v47, 1 }
 0x732   : > { %v2401_v12 = vrot.slane %v2400_v63, 1 }
 0x733   : > { %v6401_v11 = vmax.f32 %v2363_v47, %v2364_v20 }
 0x734   : > { %v6403_v23 = vmax.f32 %v2400_v63, %v2401_v12 }
 0x735   : > { %v2403_v10 = vsub.f32 %v6209_v45, %v6401_v11  ;;  %v2405_v36 = vsub.f32 %v6213_v59, %v6401_v11  ;;  %v2407_v39 = vsub.f32 %v6217_v8, %v6401_v11  ;;  %v2409_v1 = vsub.f32 %v6225_v3, %v6401_v11 }
 0x736   : > { %v2411_v18 = vsub.f32 %v6233_v60, %v6401_v11  ;;  %v2413_v20 = vsub.f32 %v6239_v16, %v6401_v11  ;;  %v2415_v63 = vsub.f32 %v6245_v50, %v6401_v11  ;;  %v2417_v45 = vsub.f32 %v6251_v14, %v6401_v11 }
 0x737   : > { %v2419_v59 = vsub.f32 %v6257_v17, %v6401_v11  ;;  %v2421_v8 = vsub.f32 %v6263_v55, %v6401_v11  ;;  %v2423_v3 = vsub.f32 %v6269_v44, %v6401_v11  ;;  %v2425_v60 = vsub.f32 %v6275_v53, %v6401_v11 }
 0x738   : > { %v2427_v16 = vsub.f32 %v6281_v43, %v6401_v11  ;;  %v2429_v50 = vsub.f32 %v6287_v42, %v6401_v11  ;;  %v2431_v14 = vsub.f32 %v6293_v56, %v6401_v11  ;;  %v2433_v17 = vsub.f32 %v6299_v22, %v6401_v11 }
 0x739   : > { %v2435_v55 = vsub.f32 %v6305_v6, %v6401_v11  ;;  %v2437_v44 = vsub.f32 %v6311_v0, %v6401_v11  ;;  %v2439_v53 = vsub.f32 %v6317_v52, %v6401_v11  ;;  %v2441_v43 = vsub.f32 %v6323_v34, %v6401_v11 }
 0x73a   : > { %v2443_v42 = vsub.f32 %v6329_v25, %v6401_v11  ;;  %v2445_v56 = vsub.f32 %v6335_v61, %v6401_v11  ;;  %v2447_v47 = vsub.f32 %v6341_v15, %v6401_v11  ;;  %v2449_v22 = vsub.f32 %v6347_v46, %v6401_v11 }
 0x73b   : > { %v2467_v25 = vmul.f32 1.442695, %v2403_v10  ;;  %v2471_v61 = vmul.f32 1.442695, %v2405_v36  ;;  %v2475_v15 = vmul.f32 1.442695, %v2407_v39 }
 0x73c   : > { %v2479_v2 = vmul.f32 1.442695, %v2409_v1  ;;  %v2483_v40 = vmul.f32 1.442695, %v2411_v18  ;;  %v2487_v35 = vmul.f32 1.442695, %v2413_v20 }
 0x73d   : > { %4167 = vpow2.f32 %v2467_v25  ;;  %v2491_v62 = vmul.f32 1.442695, %v2415_v63  ;;  %v2495_v12 = vmul.f32 1.442695, %v2417_v45  ;;  %v2499_v46 = vmul.f32 1.442695, %v2419_v59 }
 0x73e   : > { %4169 = vpow2.f32 %v2471_v61  ;;  %v2503_v9 = vmul.f32 1.442695, %v2421_v8  ;;  %v2507_v10 = vmul.f32 1.442695, %v2423_v3  ;;  %v2511_v36 = vmul.f32 1.442695, %v2425_v60 }
 0x73f   : > { %4171 = vpow2.f32 %v2475_v15  ;;  %v2515_v39 = vmul.f32 1.442695, %v2427_v16  ;;  %v2519_v48 = vmul.f32 1.442695, %v2429_v50  ;;  %v2523_v1 = vmul.f32 1.442695, %v2431_v14 }
 0x740   : > { %4173 = vpow2.f32 %v2479_v2  ;;  %v2527_v34 = vmul.f32 1.442695, %v2433_v17  ;;  %v2531_v57 = vmul.f32 1.442695, %v2435_v55  ;;  %v2535_v25 = vmul.f32 1.442695, %v2437_v44 }
 0x741   : > { %4175 = vpow2.f32 %v2483_v40  ;;  %v2539_v18 = vmul.f32 1.442695, %v2439_v53  ;;  %v2543_v20 = vmul.f32 1.442695, %v2441_v43  ;;  %v2547_v61 = vmul.f32 1.442695, %v2443_v42 }
 0x742   : > { %4177 = vpow2.f32 %v2487_v35  ;;  %v6473_v63 = vmul.f32 1.442695, %v2445_v56  ;;  %v6475_v45 = vmul.f32 1.442695, %v2447_v47  ;;  %v6477_v59 = vmul.f32 1.442695, %v2449_v22 }
 0x743   : > { %4179 = vpow2.f32 %v2491_v62  ;;  %v8050_v42 = vld [vmem:[#allocation21_spill] sm:$0xff]  ;;  %v8052_v15 = vld [vmem:[#allocation23_spill] sm:$0xff]  ;;  %v8053_v35 = vld [vmem:[#allocation24_spill] sm:$0xff] }
 0x744   : > { %4181 = vpow2.f32 %v2495_v12  ;;  %v8054_v12 = vld [vmem:[#allocation25_spill] sm:$0xff]  ;;  %v8056_v43 = vld [vmem:[#allocation27_spill] sm:$0xff]  ;;  %v8057_v53 = vld [vmem:[#allocation28_spill] sm:$0xff] }
 0x745   : > { %4183 = vpow2.f32 %v2499_v46  ;;  %v8051_v46 = vld [vmem:[#allocation22_spill] sm:$0xff]  ;;  %v8058_v62 = vld [vmem:[#allocation29_spill] sm:$0xff]  ;;  %v8059_v17 = vld [vmem:[#allocation31_spill] sm:$0xff] }
 0x746   : > { %4185 = vpow2.f32 %v2503_v9  ;;  %v8060_v14 = vld [vmem:[#allocation33_spill] sm:$0xff]  ;;  %v8061_v2 = vld [vmem:[#allocation34_spill] sm:$0xff]  ;;  %v8062_v60 = vld [vmem:[#allocation32_spill] sm:$0xff] }
 0x747   : > { %v6487_v50 = vpop.eup %4167  ;;  %4187 = vpow2.f32 %v2507_v10  ;;  %v8063_v10 = vld [vmem:[#allocation15_spill] sm:$0xff] }
 0x748   : > { %v6495_v44 = vpop.eup %4169  ;;  %4189 = vpow2.f32 %v2511_v36  ;;  %v8055_v36 = vld [vmem:[#allocation26_spill] sm:$0xff]  ;;  %v8064_v8 = vld [vmem:[#allocation11_spill] sm:$0xff] }
 0x749   : > { %v6503_v47 = vpop.eup %4171  ;;  %4191 = vpow2.f32 %v2515_v39  ;;  %v2595_v22 = vadd.f32 %v6495_v44, %v6487_v50  ;;  %v8068_v39 = vld [vmem:[#allocation18_spill] sm:$0xff] }
 0x74a   : > { %v6511_v40 = vpop.eup %4173  ;;  %4193 = vpow2.f32 %v2519_v48  ;;  %v8066_v48 = vld [vmem:[#allocation35_spill] sm:$0xff] }
 0x74b   : > { %v6519_v56 = vpop.eup %4175  ;;  %4195 = vpow2.f32 %v2523_v1  ;;  %v2596_v9 = vadd.f32 %v6503_v47, %v2595_v22 }
 0x74c   : > { %v6526_v55 = vpop.eup %4177  ;;  %4197 = vpow2.f32 %v2527_v34 }
 0x74d   : > { %v6534_v16 = vpop.eup %4179  ;;  %4199 = vpow2.f32 %v2531_v57  ;;  %v2597_v22 = vadd.f32 %v6511_v40, %v2596_v9 }
 0x74e   : > { %v6541_v3 = vpop.eup %4181  ;;  %4201 = vpow2.f32 %v2535_v25 }
 0x74f   : > { %v6549_v0 = vpop.eup %4183  ;;  %4203 = vpow2.f32 %v2539_v18  ;;  %v2598_v9 = vadd.f32 %v6519_v56, %v2597_v22  ;;  %v8070_v22 = vsub.f32 %v6353_v30, %v6401_v11 }
 0x750   : > { %v6556_v6 = vpop.eup %4185  ;;  %4205 = vpow2.f32 %v2543_v20  ;;  %v8071_v20 = vsub.f32 %v6359_v28, %v6401_v11 }
 0x751   : > { %v6564_v52 = vpop.eup %4187  ;;  %4207 = vpow2.f32 %v2547_v61  ;;  %v2563_v34 = vmul.f32 1.442695, %v8070_v22  ;;  %v2599_v25 = vadd.f32 %v6526_v55, %v2598_v9  ;;  %v8072_v61 = vsub.f32 %v6365_v29, %v6401_v11 }
 0x752   : > { %v6570_v24 = vpop.eup %4189  ;;  %4209 = vpow2.f32 %v6473_v63  ;;  %v2567_v57 = vmul.f32 1.442695, %v8071_v20  ;;  %v8073_v63 = vsub.f32 %v6371_v13, %v6401_v11  ;;  %v8077_v13 = vsub.f32 %v6389_v19, %v6401_v11 }
 0x753   : > { %v6576_v1 = vpop.eup %4191  ;;  %4211 = vpow2.f32 %v6475_v45  ;;  %v2571_v18 = vmul.f32 1.442695, %v8072_v61  ;;  %v2600_v30 = vadd.f32 %v6534_v16, %v2599_v25  ;;  %v8074_v45 = vsub.f32 %v6377_v27, %v6401_v11 }
 0x754   : > { %v6583_v22 = vpop.eup %4193  ;;  %4213 = vpow2.f32 %v6477_v59  ;;  %v2575_v9 = vmul.f32 1.442695, %v8073_v63  ;;  %v8075_v25 = vsub.f32 %v6383_v21, %v6401_v11 }
 0x755   : > { %v6589_v28 = vpop.eup %4195  ;;  %4215 = vpow2.f32 %v2563_v34  ;;  %v2579_v20 = vmul.f32 1.442695, %v8074_v45  ;;  %v2601_v29 = vadd.f32 %v6541_v3, %v2600_v30  ;;  %v2587_v34 = vmul.f32 1.442695, %v8077_v13 }
 0x756   : > { %v6595_v61 = vpop.eup %4197  ;;  %4217 = vpow2.f32 %v2567_v57  ;;  %v2583_v59 = vmul.f32 1.442695, %v8075_v25  ;;  %v8078_v30 = vsub.f32 %v6395_v51, %v6401_v11  ;;  %v8081_v11 = vsub.f32 %v6221_v38, %v6403_v23 }
 0x757   : > { %v6600_v54 = vpop.eup %4199  ;;  %4219 = vpow2.f32 %v2571_v18  ;;  %v2602_v63 = vadd.f32 %v6549_v0, %v2601_v29  ;;  %v8079_v18 = vsub.f32 %v6211_v7, %v6403_v23  ;;  %v8080_v29 = vsub.f32 %v6215_v26, %v6403_v23 }
 0x758   : > { %8076 = vst [vmem:[#allocation21_spill] sm:$0xff] %v6600_v54  ;;  %v6606_v27 = vpop.eup %4201  ;;  %4221 = vpow2.f32 %v2575_v9  ;;  %v2591_v57 = vmul.f32 1.442695, %v8078_v30  ;;  %v2477_v51 = vmul.f32 1.442695, %v8081_v11  ;;  %v8082_v7 = vsub.f32 %v6229_v5, %v6403_v23 }
 0x759   : > { %v6611_v45 = vpop.eup %4203  ;;  %4223 = vpow2.f32 %v2579_v20  ;;  %v2603_v21 = vadd.f32 %v6556_v6, %v2602_v63  ;;  %v2469_v25 = vmul.f32 1.442695, %v8079_v18  ;;  %v2473_v9 = vmul.f32 1.442695, %v8080_v29 }
 0x75a   : > { %v6617_v19 = vpop.eup %4205  ;;  %4225 = vpow2.f32 %v2583_v59  ;;  %v2481_v63 = vmul.f32 1.442695, %v8082_v7  ;;  %v8083_v59 = vsub.f32 %v6236_v31, %v6403_v23  ;;  %v8084_v26 = vsub.f32 %v6242_v58, %v6403_v23 }
 0x75b   : > { %v6625_v13 = vpop.eup %4207  ;;  %4227 = vpow2.f32 %v2587_v34  ;;  %v2604_v20 = vadd.f32 %v6564_v52, %v2603_v21  ;;  %v8085_v34 = vsub.f32 %v6248_v41, %v6403_v23  ;;  %v8086_v21 = vsub.f32 %v6254_v32, %v6403_v23 }
 0x75c   : > { %v2485_v30 = vmul.f32 1.442695, %v8083_v59  ;;  %v6634_v18 = vpop.eup %4209  ;;  %4229 = vpow2.f32 %v2591_v57  ;;  %v2489_v38 = vmul.f32 1.442695, %v8084_v26  ;;  %v8087_v57 = vsub.f32 %v6260_v49, %v6403_v23 }
 0x75d   : > { %v2493_v29 = vmul.f32 1.442695, %v8085_v34  ;;  %v2497_v5 = vmul.f32 1.442695, %v8086_v21  ;;  %v6645_v11 = vpop.eup %4211  ;;  %v2605_v31 = vadd.f32 %v6570_v24, %v2604_v20  ;;  %4231 = vpow2.f32 %v2469_v25 }
 0x75e   : > { %v2501_v7 = vmul.f32 1.442695, %v8087_v57  ;;  %v8088_v58 = vsub.f32 %v6266_v4, %v6403_v23  ;;  %v6654_v26 = vpop.eup %4213  ;;  %4233 = vpow2.f32 %v2473_v9 }
 0x75f   : > { %v6662_v20 = vpop.eup %4215  ;;  %v2606_v49 = vadd.f32 %v6576_v1, %v2605_v31  ;;  %4235 = vpow2.f32 %v2477_v51 }
 0x760   : > { %v2505_v59 = vmul.f32 1.442695, %v8088_v58  ;;  %v6669_v34 = vpop.eup %4217  ;;  %4237 = vpow2.f32 %v2481_v63  ;;  %v8089_v63 = vsub.f32 %v6272_v33, %v6403_v23  ;;  %v8090_v58 = vsub.f32 %v8050_v42, %v6403_v23 }
 0x761   : > { %v6677_v31 = vpop.eup %4219  ;;  %v2607_v51 = vadd.f32 %v6583_v22, %v2606_v49  ;;  %4239 = vpow2.f32 %v2485_v30 }
 0x762   : > { %v6684_v4 = vpop.eup %4221  ;;  %4241 = vpow2.f32 %v2489_v38  ;;  %v2509_v9 = vmul.f32 1.442695, %v8089_v63  ;;  %v2513_v57 = vmul.f32 1.442695, %v8090_v58 }
 0x763   : > { %v6692_v49 = vpop.eup %4223  ;;  %v2608_v30 = vadd.f32 %v6589_v28, %v2607_v51  ;;  %4243 = vpow2.f32 %v2493_v29  ;;  %v8091_v29 = vsub.f32 %v8051_v46, %v6403_v23  ;;  %v8096_v46 = vsub.f32 %v8056_v43, %v6403_v23 }
 0x764   : > { %v6700_v25 = vpop.eup %4225  ;;  %4245 = vpow2.f32 %v2497_v5  ;;  %v8092_v5 = vsub.f32 %v8052_v15, %v6403_v23  ;;  %v8095_v15 = vsub.f32 %v8055_v36, %v6403_v23  ;;  %v8099_v43 = vsub.f32 %v8059_v17, %v6403_v23 }
 0x765   : > { %v6705_v21 = vpop.eup %4227  ;;  %v2609_v32 = vadd.f32 %v6595_v61, %v2608_v30  ;;  %4247 = vpow2.f32 %v2501_v7  ;;  %v2517_v33 = vmul.f32 1.442695, %v8091_v29  ;;  %v8093_v7 = vsub.f32 %v8053_v35, %v6403_v23 }
 0x766   : > { %v6713_v63 = vpop.eup %4229  ;;  %4249 = vpow2.f32 %v2505_v59  ;;  %v2521_v42 = vmul.f32 1.442695, %v8092_v5  ;;  %v8094_v59 = vsub.f32 %v8054_v12, %v6403_v23  ;;  %v2533_v5 = vmul.f32 1.442695, %v8095_v15 }
 0x767   : > { %v4232_v58 = vpop.eup %4231  ;;  %v2610_v38 = vadd.f32 %v6600_v54, %v2609_v32  ;;  %4251 = vpow2.f32 %v2509_v9  ;;  %v2525_v30 = vmul.f32 1.442695, %v8093_v7  ;;  %v8097_v12 = vsub.f32 %v8057_v53, %v6403_v23 }
 0x768   : > { %v4234_v29 = vpop.eup %4233  ;;  %4253 = vpow2.f32 %v2513_v57  ;;  %v2529_v51 = vmul.f32 1.442695, %v8094_v59  ;;  %v2537_v57 = vmul.f32 1.442695, %v8096_v46  ;;  %v2549_v46 = vmul.f32 1.442695, %v8099_v43 }
 0x769   : > { %v4236_v41 = vpop.eup %4235  ;;  %v2611_v32 = vadd.f32 %v6606_v27, %v2610_v38  ;;  %4255 = vpow2.f32 %v2517_v33  ;;  %v2632_v9 = vadd.f32 %v4234_v29, %v4232_v58  ;;  %v2672_v35 = vpack.c.bf16 %v4234_v29, %v4232_v58 }
 0x76a   : > { %v4238_v7 = vpop.eup %4237  ;;  %4257 = vpow2.f32 %v2521_v42  ;;  %v2541_v59 = vmul.f32 1.442695, %v8097_v12  ;;  %v8098_v42 = vsub.f32 %v8058_v62, %v6403_v23  ;;  %v8100_v53 = vpack.c.bf16 %v6495_v44, %v6487_v50 }
 0x76b   : > { %v4240_v54 = vpop.eup %4239  ;;  %v2612_v36 = vadd.f32 %v6611_v45, %v2611_v32  ;;  %4259 = vpow2.f32 %v2525_v30  ;;  %v2633_v15 = vadd.f32 %v4236_v41, %v2632_v9  ;;  %2703 = vmatprep.subr.bf16.mxu0 %v2672_v35  ;;  %v2674_v38 = vpack.c.bf16 %v4238_v7, %v4236_v41 }
 0x76c   : > { %v4242_v33 = vpop.eup %4241  ;;  %4261 = vpow2.f32 %v2529_v51  ;;  %v2545_v58 = vmul.f32 1.442695, %v8098_v42  ;;  %2704 = vmatpush1.bf16.msra.mxu0 %v8100_v53  ;;  %v8101_v62 = vsub.f32 %v8060_v14, %v6403_v23  ;;  %v8102_v17 = vsub.f32 %v8061_v2, %v6403_v23  ;;  %v8107_v53 = vld [vmem:[#allocation30_spill] sm:$0xff] }
 0x76d   : > { %v4244_v29 = vpop.eup %4243  ;;  %v2613_v30 = vadd.f32 %v6617_v19, %v2612_v36  ;;  %4263 = vpow2.f32 %v2533_v5  ;;  %v2634_v32 = vadd.f32 %v4238_v7, %v2633_v15  ;;  %2705 = vmatprep.subr.bf16.mxu0 %v2674_v38  ;;  %v2676_v41 = vpack.c.bf16 %v4242_v33, %v4240_v54 }
 0x76e   : > { %v4246_v51 = vpop.eup %4245  ;;  %4265 = vpow2.f32 %v2537_v57  ;;  %v2553_v9 = vmul.f32 1.442695, %v8101_v62  ;;  %v2557_v35 = vmul.f32 1.442695, %v8102_v17  ;;  %v8103_v7 = vsub.f32 %v8062_v60, %v6403_v23 }
 0x76f   : > { %v4248_v12 = vpop.eup %4247  ;;  %v2614_v50 = vadd.f32 %v6625_v13, %v2613_v30  ;;  %4267 = vpow2.f32 %v2541_v59  ;;  %v2635_v44 = vadd.f32 %v4240_v54, %v2634_v32  ;;  %v2678_v36 = vpack.c.bf16 %v4246_v51, %v4244_v29 }
 0x770   : > { %v4250_v5 = vpop.eup %4249  ;;  %4269 = vpow2.f32 %v2545_v58  ;;  %v2561_v57 = vmul.f32 1.442695, %v8103_v7  ;;  %v8104_v14 = vsub.f32 %v8063_v10, %v6403_v23  ;;  %v8105_v2 = vpack.c.bf16 %v6511_v40, %v6503_v47 }
 0x771   : > { %v4252_v38 = vpop.eup %4251  ;;  %v2615_v42 = vadd.f32 %v6634_v18, %v2614_v50  ;;  %4271 = vpow2.f32 %v2549_v46  ;;  %v2636_v54 = vadd.f32 %v4242_v33, %v2635_v44  ;;  %v2680_v59 = vpack.c.bf16 %v4250_v5, %v4248_v12 }
 0x772   : > { %v2565_v15 = vmul.f32 1.442695, %v8104_v14  ;;  %2706 = vmatpush1.bf16.msra.mxu0 %v8105_v2  ;;  %v4254_v58 = vpop.eup %4253  ;;  %4273 = vpow2.f32 %v2553_v9  ;;  %v8106_v60 = vsub.f32 %v8064_v8, %v6403_v23  ;;  %v8108_v10 = vsub.f32 %v8107_v53, %v6403_v23  ;;  %v8110_v9 = vld [vmem:[#allocation12_spill] sm:$0xff] }
 0x773   : > { %2707 = vmatprep.subr.bf16.mxu0 %v2676_v41  ;;  %v4256_v32 = vpop.eup %4255  ;;  %v2616_v47 = vadd.f32 %v6645_v11, %v2615_v42  ;;  %4275 = vpow2.f32 %v2557_v35  ;;  %v2637_v40 = vadd.f32 %v4244_v29, %v2636_v54  ;;  %v2682_v62 = vpack.c.bf16 %v4254_v58, %v4252_v38 }
 0x774   : > { %v2569_v43 = vmul.f32 1.442695, %v8106_v60  ;;  %v2573_v30 = vmul.f32 1.442695, %v8108_v10  ;;  %v4258_v46 = vpop.eup %4257  ;;  %4277 = vpow2.f32 %v2561_v57  ;;  %v8109_v33 = vsub.f32 %v8066_v48, %v6403_v23 }
 0x775   : > { %v8111_v8 = vsub.f32 %v8110_v9, %v6403_v23  ;;  %v8112_v50 = vpack.c.bf16 %v6526_v55, %v6519_v56  ;;  %v4260_v44 = vpop.eup %4259  ;;  %v2617_v7 = vadd.f32 %v6654_v26, %v2616_v47  ;;  %4279 = vpow2.f32 %v2565_v15 }
 0x776   : > { %v2577_v41 = vmul.f32 1.442695, %v8109_v33  ;;  %v2638_v29 = vadd.f32 %v4246_v51, %v2637_v40  ;;  %v2684_v35 = vpack.c.bf16 %v4258_v46, %v4256_v32  ;;  %v4262_v57 = vpop.eup %4261  ;;  %4281 = vpow2.f32 %v2569_v43  ;;  %v8115_v51 = vld [vmem:[#allocation37_spill] sm:$0xff] }
 0x777   : > { %v2581_v17 = vmul.f32 1.442695, %v8111_v8  ;;  %2708 = vmatpush1.bf16.msra.mxu0 %v8112_v50  ;;  %v8113_v48 = vsub.f32 %v8068_v39, %v6403_v23  ;;  %v8114_v2 = vsub.f32 %v8069_v37, %v6403_v23  ;;  %v4264_v54 = vpop.eup %4263  ;;  %v2618_v55 = vadd.f32 %v6662_v20, %v2617_v7 }
 0x778   : > { %2709 = vmatprep.subr.bf16.mxu0 %v2678_v36  ;;  %4283 = vpow2.f32 %v2573_v30  ;;  %v2639_v56 = vadd.f32 %v4248_v12, %v2638_v29  ;;  %v2686_v60 = vpack.c.bf16 %v4262_v57, %v4260_v44  ;;  %v4266_v15 = vpop.eup %4265  ;;  %v8116_v36 = vsub.f32 %v8115_v51, %v6403_v23 }
 0x779   : > { %v2585_v14 = vmul.f32 1.442695, %v8113_v48  ;;  %v2589_v42 = vmul.f32 1.442695, %v8114_v2  ;;  %4285 = vpow2.f32 %v2577_v41  ;;  %v8117_v39 = vpack.c.bf16 %v6541_v3, %v6534_v16  ;;  %v4268_v53 = vpop.eup %4267 }
 0x77a   : > { %v2593_v43 = vmul.f32 1.442695, %v8116_v36  ;;  %v2619_v37 = vadd.f32 %v6669_v34, %v2618_v55  ;;  %4287 = vpow2.f32 %v2581_v17  ;;  %v2640_v10 = vadd.f32 %v4250_v5, %v2639_v56  ;;  %v4270_v30 = vpop.eup %4269 }
 0x77b   : > { %2710 = vmatpush1.bf16.msra.mxu0 %v8117_v39  ;;  %v2688_v47 = vpack.c.bf16 %v4266_v15, %v4264_v54  ;;  %4289 = vpow2.f32 %v2585_v14  ;;  %v4272_v12 = vpop.eup %4271  ;;  %v2690_v23 = vpack.c.bf16 %v4270_v30, %v4268_v53  ;;  %v8118_v3 = vpack.c.bf16 %v6556_v6, %v6549_v0 }
 0x77c   : > { %2711 = vmatprep.subr.bf16.mxu0 %v2680_v59  ;;  %v2620_v40 = vadd.f32 %v6677_v31, %v2619_v37  ;;  %4291 = vpow2.f32 %v2589_v42  ;;  %v2641_v33 = vadd.f32 %v4252_v38, %v2640_v10  ;;  %v4274_v41 = vpop.eup %4273  ;;  %v8119_v48 = vpack.c.bf16 %v6570_v24, %v6564_v52 }
 0x77d   : > { %4293 = vpow2.f32 %v2593_v43  ;;  %v4276_v16 = vpop.eup %4275  ;;  %v2692_v59 = vpack.c.bf16 %v4274_v41, %v4272_v12  ;;  %v8121_v37 = vpack.c.bf16 %v6595_v61, %v6589_v28  ;;  %v8125_v28 = vpack.c.bf16 %v6634_v18, %v6625_v13 }
 0x77e   : > { %v2621_v9 = vadd.f32 %v6684_v4, %v2620_v40  ;;  %v2642_v5 = vadd.f32 %v4254_v58, %v2641_v33  ;;  %v4278_v8 = vpop.eup %4277  ;;  %v8128_v13 = vpack.c.bf16 %v6684_v4, %v6677_v31  ;;  %v2048_v4 = vld [vmem:[#allocation3 + $0x30] sm:$0xf] }
 0x77f   : > { %2712 = vmatpush1.bf16.msra.mxu0 %v8118_v3  ;;  %v4280_v17 = vpop.eup %4279  ;;  %v2694_v29 = vpack.c.bf16 %v4278_v8, %v4276_v16  ;;  %v8132_v3 = vpack.c.bf16 %v6713_v63, %v6705_v21 }
 0x780   : > { %2713 = vmatprep.subr.bf16.mxu0 %v2682_v62  ;;  %v2622_v50 = vadd.f32 %v6692_v49, %v2621_v9  ;;  %v2643_v7 = vadd.f32 %v4256_v32, %v2642_v5  ;;  %v4282_v38 = vpop.eup %4281  ;;  %v8120_v32 = vpack.c.bf16 %v6583_v22, %v6576_v1  ;;  %v8122_v1 = vld [vmem:[#allocation21_spill] sm:$0xff] }
 0x781   : > { %v2696_v2 = vpack.c.bf16 %v4282_v38, %v4280_v17  ;;  %v8123_v22 = vpack.c.bf16 %v6606_v27, %v8122_v1  ;;  %v8126_v27 = vpack.c.bf16 %v6654_v26, %v6645_v11  ;;  %v8129_v11 = vpack.c.bf16 %v6700_v25, %v6692_v49 }
 0x782   : > { %v4284_v14 = vpop.eup %4283  ;;  %v2623_v6 = vadd.f32 %v6700_v25, %v2622_v50  ;;  %v2644_v0 = vadd.f32 %v4258_v46, %v2643_v7  ;;  %v2766_v25 = vpop.trf.xlu0 }
 0x783   : > { %2714 = vmatpush1.bf16.msra.mxu0 %v8119_v48  ;;  %v4286_v58 = vpop.eup %4285 }
 0x784   : > { %2715 = vmatprep.subr.bf16.mxu0 %v2684_v35  ;;  %v4288_v62 = vpop.eup %4287  ;;  %v2624_v42 = vadd.f32 %v6705_v21, %v2623_v6  ;;  %v2645_v55 = vadd.f32 %v4260_v44, %v2644_v0  ;;  %v2698_v56 = vpack.c.bf16 %v4286_v58, %v4284_v14 }
 0x785   : > { %v4290_v51 = vpop.eup %4289 }
 0x786   : > { %v4292_v36 = vpop.eup %4291  ;;  %v6811_v24 = vadd.f32 %v6713_v63, %v2624_v42  ;;  %v2646_v52 = vadd.f32 %v4262_v57, %v2645_v55  ;;  %v2700_v46 = vpack.c.bf16 %v4290_v51, %v4288_v62  ;;  %v8124_v57 = vpack.c.bf16 %v6617_v19, %v6611_v45  ;;  %v2767_v49 = vpop.trf.xlu0 }
 0x787   : > { %2716 = vmatpush1.bf16.msra.mxu0 %v8120_v32  ;;  %v4294_v35 = vpop.eup %4293  ;;  %v8127_v45 = vpack.c.bf16 %v6669_v34, %v6662_v20  ;;  %v8131_v20 = vld [vmem:[#allocation14_spill] sm:$0xff] }
 0x788   : > { %2717 = vmatprep.subr.bf16.mxu0 %v2686_v60  ;;  %v2647_v43 = vadd.f32 %v4264_v54, %v2646_v52  ;;  %v2702_v39 = vpack.c.bf16 %v4294_v35, %v4292_v36  ;;  %v2793_v34 = vrot.slane %v8131_v20, 4  ;;  %v2626_v0 = vrot.slane %v6811_v24, 4 }
 0x78a   : > { %v2648_v44 = vadd.f32 %v4266_v15, %v2647_v43  ;;  %v2768_v21 = vpop.trf.xlu0 }
 0x78b   : > { %2718 = vmatpush1.bf16.msra.mxu0 %v8121_v37 }
 0x78c   : > { %2719 = vmatprep.subr.bf16.mxu0 %v2688_v47  ;;  %v2649_v10 = vadd.f32 %v4268_v53, %v2648_v44 }
 0x78e   : > { %v2650_v40 = vadd.f32 %v4270_v30, %v2649_v10  ;;  %v2769_v63 = vpop.trf.xlu0 }
 0x78f   : > { %2720 = vmatpush1.bf16.msra.mxu0 %v8123_v22 }
 0x790   : > { %2721 = vmatprep.subr.bf16.mxu0 %v2690_v23  ;;  %v2651_v33 = vadd.f32 %v4272_v12, %v2650_v40  ;;  %v8130_v23 = vld [vmem:[#allocation13_spill] sm:$0xff] }
 0x792   : > { %v2652_v54 = vadd.f32 %v4274_v41, %v2651_v33  ;;  %v2792_v41 = vrot.slane %v8130_v23, 4  ;;  %v2770_v9 = vpop.trf.xlu0 }
 0x793   : > { %2722 = vmatpush1.bf16.msra.mxu0 %v8124_v57 }
 0x794   : > { %2723 = vmatprep.subr.bf16.mxu0 %v2692_v59  ;;  %v2653_v60 = vadd.f32 %v4276_v16, %v2652_v54  ;;  %v2843_v31 = vsel %vm709_vm1, %v2792_v41, 0  ;;  %v8133_v16 = vmov 0  }
 0x796   : > { %v2654_v61 = vadd.f32 %v4278_v8, %v2653_v60  ;;  %v2771_v5 = vpop.trf.xlu0 }
 0x797   : > { %2724 = vmatpush1.bf16.msra.mxu0 %v8125_v28 }
 0x798   : > { %2725 = vmatprep.subr.bf16.mxu0 %v2694_v29  ;;  %v2655_v15 = vadd.f32 %v4280_v17, %v2654_v61  ;;  %v2782_v17 = vpop.trf.xlu1 }
 0x79a   : > { %v2656_v53 = vadd.f32 %v4282_v38, %v2655_v15  ;;  %v2772_v59 = vpop.trf.xlu0 }
 0x79b   : > { %2726 = vmatpush1.bf16.msra.mxu0 %v8126_v27 }
 0x79c   : > { %2727 = vmatprep.subr.bf16.mxu0 %v2696_v2  ;;  %v2657_v47 = vadd.f32 %v4284_v14, %v2656_v53  ;;  %v2783_v50 = vpop.trf.xlu1 }
 0x79e   : > { %v2658_v19 = vadd.f32 %v4286_v58, %v2657_v47  ;;  %v2773_v8 = vpop.trf.xlu0  ;;  %v2627_v58 = vadd.f32 %v2626_v0, %v6811_v24 }
 0x79f   : > { %2728 = vmatpush1.bf16.msra.mxu0 %v8127_v45 }
 0x7a0   : > { %2729 = vmatprep.subr.bf16.mxu0 %v2698_v56  ;;  %v2659_v30 = vadd.f32 %v4288_v62, %v2658_v19  ;;  %v2784_v7 = vpop.trf.xlu1  ;;  %v2628_v42 = vrot.slane %v2627_v58, 2 }
 0x7a2   : > { %v2660_v18 = vadd.f32 %v4290_v51, %v2659_v30  ;;  %v2629_v56 = vadd.f32 %v2628_v42, %v2627_v58 }
 0x7a3   : > { %2730 = vmatpush1.bf16.msra.mxu0 %v8128_v13 }
 0x7a4   : > { %2731 = vmatprep.subr.bf16.mxu0 %v2700_v46  ;;  %v2661_v12 = vadd.f32 %v4292_v36, %v2660_v18  ;;  %v2785_v29 = vpop.trf.xlu1  ;;  %v2630_v32 = vrot.slane %v2629_v56, 1 }
 0x7a6   : > { %v2662_v26 = vadd.f32 %v4294_v35, %v2661_v12  ;;  %v2631_v52 = vadd.f32 %v2630_v32, %v2629_v56 }
 0x7a7   : > { %2732 = vmatpush1.bf16.msra.mxu0 %v8129_v11 }
 0x7a8   : > { %2733 = vmatprep.subr.bf16.mxu0 %v2702_v39  ;;  %v2786_v38 = vpop.trf.xlu1  ;;  %v2663_v2 = vrot.slane %v2662_v26, 4  ;;  %4295 = vrcp.f32 %v2631_v52 }
 0x7aa   : > { %v2664_v62 = vadd.f32 %v2663_v2, %v2662_v26 }
 0x7ab   : > { %2734 = vmatpush1.bf16.msra.mxu0 %v8132_v3 }
 0x7ac   : > { %3783 = vmatprep.subr.msk.bf16.mxu0 %vm709_vm1, %v2793_v34  ;;  %v2787_v48 = vpop.trf.xlu1  ;;  %v2665_v55 = vrot.slane %v2664_v62, 2 }
 0x7ae   : > { %2736 = vmatmul.mubr.bf16.vlgmr.msra.gmra.mrb[84].mxu0 %v2048_v4  ;;  %v2666_v51 = vadd.f32 %v2665_v55, %v2664_v62 }
 0x7af   : > { %2849 = vmatpush1.bf16.msra.mxu0 %v2843_v31  ;;  %2880 = vmatprep.mubr.bf16.mxu0 %v8133_v16 }
 0x7b0   : > { %v2788_v14 = vpop.trf.xlu1  ;;  %v2667_v36 = vrot.slane %v2666_v51, 1 }
 0x7b2   : > { %v2668_v46 = vadd.f32 %v2667_v36, %v2666_v51  ;;  %v4296_v35 = vpop.eup %4295 }
 0x7b4   : > { %v2789_v6 = vpop.trf.xlu1  ;;  %4297 = vrcp.f32 %v2668_v46 }
 0x7b6   : > { %3784 = vmatmul.mubr.msk.bf16.vlgmr.msra.gmra.mrb[88].mxu0 %vm660_vm2, %v2766_v25 }
 0x7b7   : > { %2890 = vmatprep.mubr.bf16.mxu0 %v8133_v16 }
 0x7be   : > { %3785 = vmatmul.mubr.msk.bf16.gmra.mrb[92].mxu0 %vm660_vm2, %v2767_v49  ;;  %v4298_v39 = vpop.eup %4297 }
 0x7bf   : > { %2900 = vmatprep.mubr.bf16.mxu0 %v8133_v16 }
 0x7c6   : > { %3786 = vmatmul.mubr.msk.bf16.gmra.mrb[96].mxu0 %vm660_vm2, %v2768_v21 }
 0x7c7   : > { %2910 = vmatprep.mubr.bf16.mxu0 %v8133_v16 }
 0x7ce   : > { %3787 = vmatmul.mubr.msk.bf16.gmra.mrb[100].mxu0 %vm660_vm2, %v2769_v63 }
 0x7cf   : > { %2920 = vmatprep.mubr.bf16.mxu0 %v8133_v16 }
 0x7d6   : > { %3788 = vmatmul.mubr.msk.bf16.gmra.mrb[104].mxu0 %vm660_vm2, %v2770_v9 }
 0x7d7   : > { %2930 = vmatprep.mubr.bf16.mxu0 %v8133_v16 }
 0x7de   : > { %3789 = vmatmul.mubr.msk.bf16.gmra.mrb[108].mxu0 %vm660_vm2, %v2771_v5 }
 0x7df   : > { %2940 = vmatprep.mubr.bf16.mxu0 %v8133_v16 }
 0x7e6   : > { %3790 = vmatmul.mubr.msk.bf16.gmra.mrb[112].mxu0 %vm660_vm2, %v2772_v59 }
 0x7e7   : > { %2950 = vmatprep.mubr.bf16.mxu0 %v8133_v16 }
 0x7ee   : > { %3791 = vmatmul.mubr.msk.bf16.gmra.mrb[116].mxu0 %vm660_vm2, %v2773_v8 }
 0x7ef   : > { %2960 = vmatprep.mubr.bf16.mxu0 %v8133_v16 }
 0x7f6   : > { %3792 = vmatmul.mubr.msk.bf16.gmra.mrb[120].mxu0 %vm660_vm2, %v2782_v17 }
 0x7f7   : > { %2970 = vmatprep.mubr.bf16.mxu0 %v8133_v16 }
 0x7fe   : > { %3793 = vmatmul.mubr.msk.bf16.gmra.mrb[124].mxu0 %vm660_vm2, %v2783_v50 }
 0x7ff   : > { %2980 = vmatprep.mubr.bf16.mxu0 %v8133_v16 }
 0x806   : > { %3794 = vmatmul.mubr.msk.bf16.gmra.mrb[128].mxu0 %vm660_vm2, %v2784_v7 }
 0x807   : > { %2990 = vmatprep.mubr.bf16.mxu0 %v8133_v16 }
 0x80e   : > { %3795 = vmatmul.mubr.msk.bf16.gmra.mrb[132].mxu0 %vm660_vm2, %v2785_v29 }
 0x80f   : > { %3000 = vmatprep.mubr.bf16.mxu0 %v8133_v16 }
 0x816   : > { %3796 = vmatmul.mubr.msk.bf16.gmra.mrb[136].mxu0 %vm660_vm2, %v2786_v38 }
 0x817   : > { %3010 = vmatprep.mubr.bf16.mxu0 %v8133_v16 }
 0x81e   : > { %3797 = vmatmul.mubr.msk.bf16.gmra.mrb[140].mxu0 %vm660_vm2, %v2787_v48 }
 0x81f   : > { %3020 = vmatprep.mubr.bf16.mxu0 %v8133_v16 }
 0x826   : > { %3798 = vmatmul.mubr.msk.bf16.gmra.mrb[144].mxu0 %vm660_vm2, %v2788_v14 }
 0x827   : > { %3030 = vmatprep.mubr.bf16.mxu0 %v8133_v16 }
 0x82e   : > { %3799 = vmatmul.mubr.msk.bf16.gmra.mrb[148].mxu0 %vm660_vm2, %v2789_v6 }
 0x881   : > { %v2737_v43 = vpop.f32.mrb[84].mxu0 }
 0x882   : > { %v6878_v37 = vmul.f32 %v4296_v35, %v2737_v43  ;;  %v2739_v44 = vpop.f32.mrb[85].mxu0 }
 0x883   : > { %v6880_v10 = vmul.f32 %v4298_v39, %v2739_v44  ;;  %v2741_v24 = vpop.f32.mrb[86].mxu0 }
 0x884   : > { %8134 = vst [vmem:[#allocation22_spill] sm:$0xff] %v6878_v37  ;;  %v2742_v1 = vpop.f32.mrb[87].mxu0 }
 0x885   : > { %8135 = vst [vmem:[#allocation23_spill] sm:$0xff] %v6880_v10 }
 0x889   : > { %v6882_v22 = vpop.f32.mrb[88].mxu0 }
 0x88a   : > { %v6884_v40 = vpop.f32.mrb[89].mxu0 }
 0x88b   : > { %v6886_v33 = vpop.f32.mrb[90].mxu0 }
 0x88c   : > { %v6888_v57 = vpop.f32.mrb[91].mxu0 }
 0x891   : > { %v6890_v54 = vpop.f32.mrb[92].mxu0 }
 0x892   : > { %v3041_v60 = vmax.f32 %v6882_v22, %v6890_v54  ;;  %v6894_v28 = vpop.f32.mrb[93].mxu0 }
 0x893   : > { %v3078_v61 = vmax.f32 %v6884_v40, %v6894_v28  ;;  %v6898_v15 = vpop.f32.mrb[94].mxu0 }
 0x894   : > { %v3042_v27 = vmax.f32 %v6886_v33, %v6898_v15  ;;  %v6902_v53 = vpop.f32.mrb[95].mxu0 }
 0x895   : > { %v3079_v47 = vmax.f32 %v6888_v57, %v6902_v53 }
 0x899   : > { %v6906_v45 = vpop.f32.mrb[96].mxu0 }
 0x89a   : > { %v3043_v19 = vmax.f32 %v3041_v60, %v6906_v45  ;;  %v6909_v30 = vpop.f32.mrb[97].mxu0 }
 0x89b   : > { %v3080_v13 = vmax.f32 %v3078_v61, %v6909_v30  ;;  %v6912_v18 = vpop.f32.mrb[98].mxu0 }
 0x89c   : > { %v3044_v12 = vmax.f32 %v3042_v27, %v6912_v18  ;;  %v6915_v11 = vpop.f32.mrb[99].mxu0 }
 0x89d   : > { %v3081_v26 = vmax.f32 %v3079_v47, %v6915_v11 }
 0x8a1   : > { %v6918_v23 = vpop.f32.mrb[100].mxu0 }
 0x8a2   : > { %v3045_v41 = vmax.f32 %v3043_v19, %v6918_v23  ;;  %v6921_v20 = vpop.f32.mrb[101].mxu0 }
 0x8a3   : > { %v3082_v34 = vmax.f32 %v3080_v13, %v6921_v20  ;;  %v6924_v3 = vpop.f32.mrb[102].mxu0 }
 0x8a4   : > { %v3046_v4 = vmax.f32 %v3044_v12, %v6924_v3  ;;  %v6927_v31 = vpop.f32.mrb[103].mxu0 }
 0x8a5   : > { %v3083_v25 = vmax.f32 %v3081_v26, %v6927_v31 }
 0x8a9   : > { %v6930_v49 = vpop.f32.mrb[104].mxu0 }
 0x8aa   : > { %v3047_v21 = vmax.f32 %v3045_v41, %v6930_v49  ;;  %v6933_v63 = vpop.f32.mrb[105].mxu0 }
 0x8ab   : > { %v3084_v9 = vmax.f32 %v3082_v34, %v6933_v63  ;;  %v6936_v5 = vpop.f32.mrb[106].mxu0 }
 0x8ac   : > { %v3048_v59 = vmax.f32 %v3046_v4, %v6936_v5  ;;  %v6939_v8 = vpop.f32.mrb[107].mxu0 }
 0x8ad   : > { %v3085_v17 = vmax.f32 %v3083_v25, %v6939_v8 }
 0x8b1   : > { %v6942_v50 = vpop.f32.mrb[108].mxu0 }
 0x8b2   : > { %v3049_v7 = vmax.f32 %v3047_v21, %v6942_v50  ;;  %v6945_v29 = vpop.f32.mrb[109].mxu0 }
 0x8b3   : > { %v3086_v38 = vmax.f32 %v3084_v9, %v6945_v29  ;;  %v6948_v48 = vpop.f32.mrb[110].mxu0 }
 0x8b4   : > { %v3050_v14 = vmax.f32 %v3048_v59, %v6948_v48  ;;  %v6951_v6 = vpop.f32.mrb[111].mxu0 }
 0x8b5   : > { %8136 = vst [vmem:[#allocation24_spill] sm:$0xff] %v6951_v6  ;;  %v3087_v0 = vmax.f32 %v3085_v17, %v6951_v6 }
 0x8b9   : > { %v6954_v2 = vpop.f32.mrb[112].mxu0 }
 0x8ba   : > { %v3051_v58 = vmax.f32 %v3049_v7, %v6954_v2  ;;  %v6957_v62 = vpop.f32.mrb[113].mxu0 }
 0x8bb   : > { %8137 = vst [vmem:[#allocation25_spill] sm:$0xff] %v6957_v62  ;;  %v3088_v42 = vmax.f32 %v3086_v38, %v6957_v62  ;;  %v6960_v55 = vpop.f32.mrb[114].mxu0 }
 0x8bc   : > { %v3052_v56 = vmax.f32 %v3050_v14, %v6960_v55  ;;  %v6963_v51 = vpop.f32.mrb[115].mxu0 }
 0x8bd   : > { %8138 = vst [vmem:[#allocation26_spill] sm:$0xff] %v6963_v51  ;;  %v3089_v32 = vmax.f32 %v3087_v0, %v6963_v51 }
 0x8c1   : > { %v6966_v36 = vpop.f32.mrb[116].mxu0 }
 0x8c2   : > { %v3053_v52 = vmax.f32 %v3051_v58, %v6966_v36  ;;  %v6969_v46 = vpop.f32.mrb[117].mxu0 }
 0x8c3   : > { %8139 = vst [vmem:[#allocation27_spill] sm:$0xff] %v6969_v46  ;;  %v3090_v35 = vmax.f32 %v3088_v42, %v6969_v46  ;;  %v6972_v43 = vpop.f32.mrb[118].mxu0 }
 0x8c4   : > { %v3054_v39 = vmax.f32 %v3052_v56, %v6972_v43  ;;  %v6975_v44 = vpop.f32.mrb[119].mxu0 }
 0x8c5   : > { %8140 = vst [vmem:[#allocation28_spill] sm:$0xff] %v6975_v44  ;;  %v3091_v24 = vmax.f32 %v3089_v32, %v6975_v44 }
 0x8c9   : > { %v6978_v1 = vpop.f32.mrb[120].mxu0 }
 0x8ca   : > { %v3055_v60 = vmax.f32 %v3053_v52, %v6978_v1  ;;  %v6981_v61 = vpop.f32.mrb[121].mxu0 }
 0x8cb   : > { %8141 = vst [vmem:[#allocation29_spill] sm:$0xff] %v6981_v61  ;;  %v3092_v27 = vmax.f32 %v3090_v35, %v6981_v61  ;;  %v6984_v47 = vpop.f32.mrb[122].mxu0 }
 0x8cc   : > { %v3056_v19 = vmax.f32 %v3054_v39, %v6984_v47  ;;  %v6987_v13 = vpop.f32.mrb[123].mxu0 }
 0x8cd   : > { %8142 = vst [vmem:[#allocation31_spill] sm:$0xff] %v6987_v13  ;;  %v3093_v12 = vmax.f32 %v3091_v24, %v6987_v13 }
 0x8d1   : > { %v6990_v26 = vpop.f32.mrb[124].mxu0 }
 0x8d2   : > { %v3057_v41 = vmax.f32 %v3055_v60, %v6990_v26  ;;  %v6993_v34 = vpop.f32.mrb[125].mxu0 }
 0x8d3   : > { %8143 = vst [vmem:[#allocation33_spill] sm:$0xff] %v6993_v34  ;;  %v3094_v4 = vmax.f32 %v3092_v27, %v6993_v34  ;;  %v6996_v25 = vpop.f32.mrb[126].mxu0 }
 0x8d4   : > { %v3058_v21 = vmax.f32 %v3056_v19, %v6996_v25  ;;  %v6999_v9 = vpop.f32.mrb[127].mxu0 }
 0x8d5   : > { %8144 = vst [vmem:[#allocation34_spill] sm:$0xff] %v6999_v9  ;;  %v3095_v59 = vmax.f32 %v3093_v12, %v6999_v9 }
 0x8d9   : > { %v7002_v17 = vpop.f32.mrb[128].mxu0 }
 0x8da   : > { %v3059_v7 = vmax.f32 %v3057_v41, %v7002_v17  ;;  %v7005_v38 = vpop.f32.mrb[129].mxu0 }
 0x8db   : > { %8145 = vst [vmem:[#allocation32_spill] sm:$0xff] %v7005_v38  ;;  %v3096_v14 = vmax.f32 %v3094_v4, %v7005_v38  ;;  %v7008_v0 = vpop.f32.mrb[130].mxu0 }
 0x8dc   : > { %v3060_v58 = vmax.f32 %v3058_v21, %v7008_v0  ;;  %v7011_v42 = vpop.f32.mrb[131].mxu0 }
 0x8dd   : > { %8146 = vst [vmem:[#allocation15_spill] sm:$0xff] %v7011_v42  ;;  %v3097_v56 = vmax.f32 %v3095_v59, %v7011_v42 }
 0x8e1   : > { %v7014_v32 = vpop.f32.mrb[132].mxu0 }
 0x8e2   : > { %v3061_v52 = vmax.f32 %v3059_v7, %v7014_v32  ;;  %v7017_v35 = vpop.f32.mrb[133].mxu0 }
 0x8e3   : > { %8147 = vst [vmem:[#allocation11_spill] sm:$0xff] %v7017_v35  ;;  %v3098_v39 = vmax.f32 %v3096_v14, %v7017_v35  ;;  %v7020_v24 = vpop.f32.mrb[134].mxu0 }
 0x8e4   : > { %v3062_v60 = vmax.f32 %v3060_v58, %v7020_v24  ;;  %v7023_v27 = vpop.f32.mrb[135].mxu0 }
 0x8e5   : > { %8148 = vst [vmem:[#allocation35_spill] sm:$0xff] %v7023_v27  ;;  %v3099_v19 = vmax.f32 %v3097_v56, %v7023_v27 }
 0x8e9   : > { %v7026_v12 = vpop.f32.mrb[136].mxu0 }
 0x8ea   : > { %v3063_v41 = vmax.f32 %v3061_v52, %v7026_v12  ;;  %v7029_v4 = vpop.f32.mrb[137].mxu0 }
 0x8eb   : > { %8149 = vst [vmem:[#allocation18_spill] sm:$0xff] %v7029_v4  ;;  %v3100_v21 = vmax.f32 %v3098_v39, %v7029_v4  ;;  %v7032_v59 = vpop.f32.mrb[138].mxu0 }
 0x8ec   : > { %v3064_v7 = vmax.f32 %v3062_v60, %v7032_v59  ;;  %v7035_v14 = vpop.f32.mrb[139].mxu0 }
 0x8ed   : > { %8150 = vst [vmem:[#allocation36_spill] sm:$0xff] %v7035_v14  ;;  %v3101_v58 = vmax.f32 %v3099_v19, %v7035_v14 }
 0x8f1   : > { %v7038_v10 = vpop.f32.mrb[140].mxu0 }
 0x8f2   : > { %v3065_v56 = vmax.f32 %v3063_v41, %v7038_v10  ;;  %v7041_v37 = vpop.f32.mrb[141].mxu0 }
 0x8f3   : > { %8151 = vst [vmem:[#allocation30_spill] sm:$0xff] %v7041_v37  ;;  %v3102_v52 = vmax.f32 %v3100_v21, %v7041_v37  ;;  %v7044_v16 = vpop.f32.mrb[142].mxu0 }
 0x8f4   : > { %v3066_v39 = vmax.f32 %v3064_v7, %v7044_v16  ;;  %v7047_v4 = vpop.f32.mrb[143].mxu0 }
 0x8f5   : > { %8152 = vst [vmem:[#allocation12_spill] sm:$0xff] %v7047_v4  ;;  %v3103_v60 = vmax.f32 %v3101_v58, %v7047_v4 }
 0x8f9   : > { %v7050_v27 = vpop.f32.mrb[144].mxu0 }
 0x8fa   : > { %v3067_v19 = vmax.f32 %v3065_v56, %v7050_v27  ;;  %v7053_v14 = vpop.f32.mrb[145].mxu0 }
 0x8fb   : > { %8153 = vst [vmem:[#allocation37_spill] sm:$0xff] %v7053_v14  ;;  %v3104_v41 = vmax.f32 %v3102_v52, %v7053_v14  ;;  %v7056_v35 = vpop.f32.mrb[146].mxu0 }
 0x8fc   : > { %v3068_v21 = vmax.f32 %v3066_v39, %v7056_v35  ;;  %v7059_v37 = vpop.f32.mrb[147].mxu0 }
 0x8fd   : > { %8154 = vst [vmem:[#allocation21_spill] sm:$0xff] %v7059_v37  ;;  %v3105_v7 = vmax.f32 %v3103_v60, %v7059_v37 }
 0x901   : > { %v7062_v42 = vpop.f32.mrb[148].mxu0 }
 0x902   : > { %v3069_v58 = vmax.f32 %v3067_v19, %v7062_v42  ;;  %v7065_v4 = vpop.f32.mrb[149].mxu0 }
 0x903   : > { %8155 = vst [vmem:[#allocation13_spill] sm:$0xff] %v7065_v4  ;;  %v3106_v56 = vmax.f32 %v3104_v41, %v7065_v4  ;;  %v7068_v38 = vpop.f32.mrb[150].mxu0 }
 0x904   : > { %v3070_v52 = vmax.f32 %v3068_v21, %v7068_v38  ;;  %v7071_v14 = vpop.f32.mrb[151].mxu0 }
 0x905   : > { %8156 = vst [vmem:[#allocation14_spill] sm:$0xff] %v7071_v14  ;;  %v3107_v39 = vmax.f32 %v3105_v7, %v7071_v14 }
 0x906   : > { %v3071_v9 = vmax.f32 %v3069_v58, %v3070_v52 }
 0x907   : > { %v3108_v34 = vmax.f32 %v3106_v56, %v3107_v39 }
 0x908   : > { %v3072_v13 = vrot.slane %v3071_v9, 4 }
 0x909   : > { %v3109_v60 = vrot.slane %v3108_v34, 4 }
 0x90a   : > { %v3073_v37 = vmax.f32 %v3071_v9, %v3072_v13 }
 0x90b   : > { %v3110_v61 = vmax.f32 %v3108_v34, %v3109_v60 }
 0x90c   : > { %v3074_v44 = vrot.slane %v3073_v37, 2 }
 0x90d   : > { %v3111_v19 = vrot.slane %v3110_v61, 2 }
 0x90e   : > { %v3075_v46 = vmax.f32 %v3073_v37, %v3074_v44  ;;  %v8176_v44 = vld [vmem:[#allocation13_spill] sm:$0xff] }
 0x90f   : > { %v3112_v51 = vmax.f32 %v3110_v61, %v3111_v19 }
 0x910   : > { %v3076_v62 = vrot.slane %v3075_v46, 1 }
 0x911   : > { %v3113_v41 = vrot.slane %v3112_v51, 1 }
 0x912   : > { %v7074_v4 = vmax.f32 %v3075_v46, %v3076_v62 }
 0x913   : > { %v7076_v6 = vmax.f32 %v3112_v51, %v3113_v41 }
 0x914   : > { %v3115_v21 = vsub.f32 %v6882_v22, %v7074_v4  ;;  %v3117_v7 = vsub.f32 %v6886_v33, %v7074_v4  ;;  %v3119_v13 = vsub.f32 %v6890_v54, %v7074_v4  ;;  %v3121_v34 = vsub.f32 %v6898_v15, %v7074_v4 }
 0x915   : > { %v3123_v37 = vsub.f32 %v6906_v45, %v7074_v4  ;;  %v3125_v62 = vsub.f32 %v6912_v18, %v7074_v4  ;;  %v3127_v51 = vsub.f32 %v6918_v23, %v7074_v4  ;;  %v3129_v22 = vsub.f32 %v6924_v3, %v7074_v4 }
 0x916   : > { %v3131_v33 = vsub.f32 %v6930_v49, %v7074_v4  ;;  %v3133_v54 = vsub.f32 %v6936_v5, %v7074_v4  ;;  %v3135_v15 = vsub.f32 %v6942_v50, %v7074_v4  ;;  %v3137_v45 = vsub.f32 %v6948_v48, %v7074_v4 }
 0x917   : > { %v3139_v18 = vsub.f32 %v6954_v2, %v7074_v4  ;;  %v3141_v23 = vsub.f32 %v6960_v55, %v7074_v4  ;;  %v3143_v3 = vsub.f32 %v6966_v36, %v7074_v4  ;;  %v3145_v49 = vsub.f32 %v6972_v43, %v7074_v4 }
 0x918   : > { %v3147_v5 = vsub.f32 %v6978_v1, %v7074_v4  ;;  %v3149_v50 = vsub.f32 %v6984_v47, %v7074_v4  ;;  %v3151_v48 = vsub.f32 %v6990_v26, %v7074_v4  ;;  %v3153_v2 = vsub.f32 %v6996_v25, %v7074_v4 }
 0x919   : > { %v3155_v55 = vsub.f32 %v7002_v17, %v7074_v4  ;;  %v3157_v36 = vsub.f32 %v7008_v0, %v7074_v4  ;;  %v3159_v46 = vsub.f32 %v7014_v32, %v7074_v4  ;;  %v3161_v43 = vsub.f32 %v7020_v24, %v7074_v4 }
 0x91a   : > { %v3179_v0 = vmul.f32 1.442695, %v3115_v21  ;;  %v3183_v32 = vmul.f32 1.442695, %v3117_v7  ;;  %v3187_v24 = vmul.f32 1.442695, %v3119_v13 }
 0x91b   : > { %v3191_v56 = vmul.f32 1.442695, %v3121_v34  ;;  %v3195_v39 = vmul.f32 1.442695, %v3123_v37  ;;  %v3199_v60 = vmul.f32 1.442695, %v3125_v62 }
 0x91c   : > { %4299 = vpow2.f32 %v3179_v0  ;;  %v3203_v19 = vmul.f32 1.442695, %v3127_v51  ;;  %v3207_v41 = vmul.f32 1.442695, %v3129_v22  ;;  %v3211_v9 = vmul.f32 1.442695, %v3131_v33 }
 0x91d   : > { %4301 = vpow2.f32 %v3183_v32  ;;  %v3215_v17 = vmul.f32 1.442695, %v3133_v54  ;;  %v3219_v21 = vmul.f32 1.442695, %v3135_v15  ;;  %v3223_v7 = vmul.f32 1.442695, %v3137_v45 }
 0x91e   : > { %4303 = vpow2.f32 %v3187_v24  ;;  %v3227_v13 = vmul.f32 1.442695, %v3139_v18  ;;  %v3231_v58 = vmul.f32 1.442695, %v3141_v23  ;;  %v3235_v34 = vmul.f32 1.442695, %v3143_v3 }
 0x91f   : > { %4305 = vpow2.f32 %v3191_v56  ;;  %v3239_v25 = vmul.f32 1.442695, %v3145_v49  ;;  %v3243_v52 = vmul.f32 1.442695, %v3147_v5  ;;  %v3247_v0 = vmul.f32 1.442695, %v3149_v50 }
 0x920   : > { %4307 = vpow2.f32 %v3195_v39  ;;  %v3251_v37 = vmul.f32 1.442695, %v3151_v48  ;;  %v3255_v62 = vmul.f32 1.442695, %v3153_v2  ;;  %v3259_v32 = vmul.f32 1.442695, %v3155_v55 }
 0x921   : > { %4309 = vpow2.f32 %v3199_v60  ;;  %v7146_v51 = vmul.f32 1.442695, %v3157_v36  ;;  %v7148_v22 = vmul.f32 1.442695, %v3159_v46  ;;  %v7150_v33 = vmul.f32 1.442695, %v3161_v43 }
 0x922   : > { %4311 = vpow2.f32 %v3203_v19  ;;  %v8157_v55 = vld [vmem:[#allocation24_spill] sm:$0xff]  ;;  %v8159_v24 = vld [vmem:[#allocation26_spill] sm:$0xff]  ;;  %v8160_v60 = vld [vmem:[#allocation27_spill] sm:$0xff] }
 0x923   : > { %4313 = vpow2.f32 %v3207_v41  ;;  %v8161_v41 = vld [vmem:[#allocation28_spill] sm:$0xff]  ;;  %v8163_v2 = vld [vmem:[#allocation31_spill] sm:$0xff]  ;;  %v8164_v48 = vld [vmem:[#allocation33_spill] sm:$0xff] }
 0x924   : > { %4315 = vpow2.f32 %v3211_v9  ;;  %v8158_v9 = vld [vmem:[#allocation25_spill] sm:$0xff]  ;;  %v8165_v19 = vld [vmem:[#allocation34_spill] sm:$0xff]  ;;  %v8166_v49 = vld [vmem:[#allocation32_spill] sm:$0xff] }
 0x925   : > { %4317 = vpow2.f32 %v3215_v17  ;;  %v8167_v3 = vld [vmem:[#allocation15_spill] sm:$0xff]  ;;  %v8171_v54 = vld [vmem:[#allocation36_spill] sm:$0xff] }
 0x926   : > { %v7160_v23 = vpop.eup %4299  ;;  %4319 = vpow2.f32 %v3219_v21  ;;  %v8168_v56 = vld [vmem:[#allocation11_spill] sm:$0xff]  ;;  %v8170_v21 = vld [vmem:[#allocation18_spill] sm:$0xff] }
 0x927   : > { %v7168_v50 = vpop.eup %4301  ;;  %4321 = vpow2.f32 %v3223_v7  ;;  %v8162_v7 = vld [vmem:[#allocation29_spill] sm:$0xff]  ;;  %v8169_v45 = vld [vmem:[#allocation35_spill] sm:$0xff] }
 0x928   : > { %v7176_v46 = vpop.eup %4303  ;;  %4323 = vpow2.f32 %v3227_v13  ;;  %v3307_v43 = vadd.f32 %v7168_v50, %v7160_v23  ;;  %v8175_v13 = vld [vmem:[#allocation21_spill] sm:$0xff] }
 0x929   : > { %v7184_v39 = vpop.eup %4305  ;;  %4325 = vpow2.f32 %v3231_v58  ;;  %v8173_v58 = vld [vmem:[#allocation12_spill] sm:$0xff] }
 0x92a   : > { %v7192_v36 = vpop.eup %4307  ;;  %4327 = vpow2.f32 %v3235_v34  ;;  %v3308_v17 = vadd.f32 %v7176_v46, %v3307_v43 }
 0x92b   : > { %v7199_v5 = vpop.eup %4309  ;;  %4329 = vpow2.f32 %v3239_v25 }
 0x92c   : > { %v7207_v18 = vpop.eup %4311  ;;  %4331 = vpow2.f32 %v3243_v52  ;;  %v3309_v43 = vadd.f32 %v7184_v39, %v3308_v17 }
 0x92d   : > { %v7214_v15 = vpop.eup %4313  ;;  %4333 = vpow2.f32 %v3247_v0 }
 0x92e   : > { %v7222_v47 = vpop.eup %4315  ;;  %4335 = vpow2.f32 %v3251_v37  ;;  %v3310_v17 = vadd.f32 %v7192_v36, %v3309_v43  ;;  %v8177_v43 = vsub.f32 %v7026_v12, %v7074_v4 }
 0x92f   : > { %v7229_v1 = vpop.eup %4317  ;;  %4337 = vpow2.f32 %v3255_v62  ;;  %v8178_v62 = vsub.f32 %v7032_v59, %v7074_v4 }
 0x930   : > { %v7237_v26 = vpop.eup %4319  ;;  %4339 = vpow2.f32 %v3259_v32  ;;  %v3275_v25 = vmul.f32 1.442695, %v8177_v43  ;;  %v3311_v0 = vadd.f32 %v7199_v5, %v3310_v17  ;;  %v8179_v32 = vsub.f32 %v7038_v10, %v7074_v4 }
 0x931   : > { %v7243_v61 = vpop.eup %4321  ;;  %4341 = vpow2.f32 %v7146_v51  ;;  %v3279_v52 = vmul.f32 1.442695, %v8178_v62  ;;  %v8180_v51 = vsub.f32 %v7044_v16, %v7074_v4  ;;  %v8184_v16 = vsub.f32 %v7062_v42, %v7074_v4 }
 0x932   : > { %v7249_v34 = vpop.eup %4323  ;;  %4343 = vpow2.f32 %v7148_v22  ;;  %v3283_v37 = vmul.f32 1.442695, %v8179_v32  ;;  %v3312_v12 = vadd.f32 %v7207_v18, %v3311_v0  ;;  %v8181_v22 = vsub.f32 %v7050_v27, %v7074_v4 }
 0x933   : > { %v7256_v43 = vpop.eup %4325  ;;  %4345 = vpow2.f32 %v7150_v33  ;;  %v3287_v17 = vmul.f32 1.442695, %v8180_v51  ;;  %v8182_v0 = vsub.f32 %v7056_v35, %v7074_v4 }
 0x934   : > { %v7262_v59 = vpop.eup %4327  ;;  %4347 = vpow2.f32 %v3275_v25  ;;  %v3291_v62 = vmul.f32 1.442695, %v8181_v22  ;;  %v3313_v10 = vadd.f32 %v7214_v15, %v3312_v12  ;;  %v3299_v25 = vmul.f32 1.442695, %v8184_v16 }
 0x935   : > { %v7268_v32 = vpop.eup %4329  ;;  %4349 = vpow2.f32 %v3279_v52  ;;  %v3295_v33 = vmul.f32 1.442695, %v8182_v0  ;;  %v8185_v12 = vsub.f32 %v7068_v38, %v7074_v4  ;;  %v8188_v38 = vsub.f32 %v6894_v28, %v7076_v6 }
 0x936   : > { %v7273_v14 = vpop.eup %4331  ;;  %4351 = vpow2.f32 %v3283_v37  ;;  %v3314_v51 = vadd.f32 %v7222_v47, %v3313_v10  ;;  %v8186_v37 = vsub.f32 %v6884_v40, %v7076_v6  ;;  %v8187_v10 = vsub.f32 %v6888_v57, %v7076_v6 }
 0x937   : > { %8183 = vst [vmem:[#allocation24_spill] sm:$0xff] %v7273_v14  ;;  %v7279_v27 = vpop.eup %4333  ;;  %4353 = vpow2.f32 %v3287_v17  ;;  %v3303_v52 = vmul.f32 1.442695, %v8185_v12  ;;  %v3189_v4 = vmul.f32 1.442695, %v8188_v38  ;;  %v8189_v40 = vsub.f32 %v6902_v53, %v7076_v6 }
 0x938   : > { %v7284_v22 = vpop.eup %4335  ;;  %4355 = vpow2.f32 %v3291_v62  ;;  %v3315_v35 = vadd.f32 %v7229_v1, %v3314_v51  ;;  %v3181_v0 = vmul.f32 1.442695, %v8186_v37  ;;  %v3185_v17 = vmul.f32 1.442695, %v8187_v10 }
 0x939   : > { %v7290_v42 = vpop.eup %4337  ;;  %4357 = vpow2.f32 %v3295_v33  ;;  %v3193_v51 = vmul.f32 1.442695, %v8189_v40  ;;  %v8190_v33 = vsub.f32 %v6909_v30, %v7076_v6  ;;  %v8191_v57 = vsub.f32 %v6915_v11, %v7076_v6 }
 0x93a   : > { %v7298_v16 = vpop.eup %4339  ;;  %4359 = vpow2.f32 %v3299_v25  ;;  %v3316_v62 = vadd.f32 %v7237_v26, %v3315_v35  ;;  %v8192_v25 = vsub.f32 %v6921_v20, %v7076_v6  ;;  %v8193_v35 = vsub.f32 %v6927_v31, %v7076_v6 }
 0x93b   : > { %v3197_v12 = vmul.f32 1.442695, %v8190_v33  ;;  %v7307_v37 = vpop.eup %4341  ;;  %4361 = vpow2.f32 %v3303_v52  ;;  %v3201_v28 = vmul.f32 1.442695, %v8191_v57  ;;  %v8194_v52 = vsub.f32 %v6933_v63, %v7076_v6 }
 0x93c   : > { %v3205_v10 = vmul.f32 1.442695, %v8192_v25  ;;  %v3209_v53 = vmul.f32 1.442695, %v8193_v35  ;;  %v7318_v38 = vpop.eup %4343  ;;  %v3317_v30 = vadd.f32 %v7243_v61, %v3316_v62  ;;  %4363 = vpow2.f32 %v3181_v0 }
 0x93d   : > { %v3213_v40 = vmul.f32 1.442695, %v8194_v52  ;;  %v8195_v11 = vsub.f32 %v6939_v8, %v7076_v6  ;;  %v7327_v57 = vpop.eup %4345  ;;  %4365 = vpow2.f32 %v3185_v17 }
 0x93e   : > { %v7335_v62 = vpop.eup %4347  ;;  %v3318_v63 = vadd.f32 %v7249_v34, %v3317_v30  ;;  %4367 = vpow2.f32 %v3189_v4 }
 0x93f   : > { %v3217_v33 = vmul.f32 1.442695, %v8195_v11  ;;  %v7342_v25 = vpop.eup %4349  ;;  %4369 = vpow2.f32 %v3193_v51  ;;  %v8196_v51 = vsub.f32 %v6945_v29, %v7076_v6  ;;  %v8197_v11 = vsub.f32 %v8157_v55, %v7076_v6 }
 0x940   : > { %v7350_v30 = vpop.eup %4351  ;;  %v3319_v4 = vadd.f32 %v7256_v43, %v3318_v63  ;;  %4371 = vpow2.f32 %v3197_v12 }
 0x941   : > { %v7357_v8 = vpop.eup %4353  ;;  %4373 = vpow2.f32 %v3201_v28  ;;  %v3221_v17 = vmul.f32 1.442695, %v8196_v51  ;;  %v3225_v52 = vmul.f32 1.442695, %v8197_v11 }
 0x942   : > { %v7365_v63 = vpop.eup %4355  ;;  %v3320_v12 = vadd.f32 %v7262_v59, %v3319_v4  ;;  %4375 = vpow2.f32 %v3205_v10  ;;  %v8198_v10 = vsub.f32 %v8158_v9, %v7076_v6  ;;  %v8203_v9 = vsub.f32 %v8163_v2, %v7076_v6 }
 0x943   : > { %v7373_v0 = vpop.eup %4357  ;;  %4377 = vpow2.f32 %v3209_v53  ;;  %v8199_v53 = vsub.f32 %v8159_v24, %v7076_v6  ;;  %v8202_v24 = vsub.f32 %v8162_v7, %v7076_v6  ;;  %v8206_v2 = vsub.f32 %v8166_v49, %v7076_v6 }
 0x944   : > { %v7378_v35 = vpop.eup %4359  ;;  %v3321_v31 = vadd.f32 %v7268_v32, %v3320_v12  ;;  %4379 = vpow2.f32 %v3213_v40  ;;  %v3229_v29 = vmul.f32 1.442695, %v8198_v10  ;;  %v8200_v40 = vsub.f32 %v8160_v60, %v7076_v6 }
 0x945   : > { %v7386_v51 = vpop.eup %4361  ;;  %4381 = vpow2.f32 %v3217_v33  ;;  %v3233_v55 = vmul.f32 1.442695, %v8199_v53  ;;  %v8201_v33 = vsub.f32 %v8161_v41, %v7076_v6  ;;  %v3245_v53 = vmul.f32 1.442695, %v8202_v24 }
 0x946   : > { %v4364_v11 = vpop.eup %4363  ;;  %v3322_v28 = vadd.f32 %v7273_v14, %v3321_v31  ;;  %4383 = vpow2.f32 %v3221_v17  ;;  %v3237_v12 = vmul.f32 1.442695, %v8200_v40  ;;  %v8204_v41 = vsub.f32 %v8164_v48, %v7076_v6 }
 0x947   : > { %v4366_v10 = vpop.eup %4365  ;;  %4385 = vpow2.f32 %v3225_v52  ;;  %v3241_v4 = vmul.f32 1.442695, %v8201_v33  ;;  %v3249_v52 = vmul.f32 1.442695, %v8203_v9  ;;  %v3261_v9 = vmul.f32 1.442695, %v8206_v2 }
 0x948   : > { %v4368_v20 = vpop.eup %4367  ;;  %v3323_v31 = vadd.f32 %v7279_v27, %v3322_v28  ;;  %4387 = vpow2.f32 %v3229_v29  ;;  %v3344_v17 = vadd.f32 %v4366_v10, %v4364_v11  ;;  %v3384_v60 = vpack.c.bf16 %v4366_v10, %v4364_v11 }
 0x949   : > { %v4370_v40 = vpop.eup %4369  ;;  %4389 = vpow2.f32 %v3233_v55  ;;  %v3253_v33 = vmul.f32 1.442695, %v8204_v41  ;;  %v8205_v55 = vsub.f32 %v8165_v19, %v7076_v6  ;;  %v8207_v48 = vpack.c.bf16 %v7168_v50, %v7160_v23 }
 0x94a   : > { %v4372_v14 = vpop.eup %4371  ;;  %v3324_v7 = vadd.f32 %v7284_v22, %v3323_v31  ;;  %4391 = vpow2.f32 %v3237_v12  ;;  %v3345_v24 = vadd.f32 %v4368_v20, %v3344_v17  ;;  %3421 = vmatprep.subr.bf16.mxu1 %v3384_v60  ;;  %v3386_v28 = vpack.c.bf16 %v4370_v40, %v4368_v20 }
 0x94b   : > { %v4374_v29 = vpop.eup %4373  ;;  %4393 = vpow2.f32 %v3241_v4  ;;  %v3257_v11 = vmul.f32 1.442695, %v8205_v55  ;;  %3422 = vmatpush1.bf16.msra.mxu1 %v8207_v48  ;;  %v8208_v19 = vsub.f32 %v8167_v3, %v7076_v6  ;;  %v8209_v49 = vsub.f32 %v8168_v56, %v7076_v6  ;;  %v8214_v48 = vld [vmem:[#allocation30_spill] sm:$0xff] }
 0x94c   : > { %v4376_v10 = vpop.eup %4375  ;;  %v3325_v12 = vadd.f32 %v7290_v42, %v3324_v7  ;;  %4395 = vpow2.f32 %v3245_v53  ;;  %v3346_v31 = vadd.f32 %v4370_v40, %v3345_v24  ;;  %3423 = vmatprep.subr.bf16.mxu1 %v3386_v28  ;;  %v3388_v20 = vpack.c.bf16 %v4374_v29, %v4372_v14 }
 0x94d   : > { %v4378_v4 = vpop.eup %4377  ;;  %4397 = vpow2.f32 %v3249_v52  ;;  %v3265_v17 = vmul.f32 1.442695, %v8208_v19  ;;  %v3269_v60 = vmul.f32 1.442695, %v8209_v49  ;;  %v8210_v40 = vsub.f32 %v8169_v45, %v7076_v6 }
 0x94e   : > { %v4380_v41 = vpop.eup %4379  ;;  %v3326_v23 = vadd.f32 %v7298_v16, %v3325_v12  ;;  %4399 = vpow2.f32 %v3253_v33  ;;  %v3347_v50 = vadd.f32 %v4372_v14, %v3346_v31  ;;  %v3390_v7 = vpack.c.bf16 %v4378_v4, %v4376_v10 }
 0x94f   : > { %v4382_v53 = vpop.eup %4381  ;;  %4401 = vpow2.f32 %v3257_v11  ;;  %v3273_v52 = vmul.f32 1.442695, %v8210_v40  ;;  %v8211_v3 = vsub.f32 %v8170_v21, %v7076_v6  ;;  %v8212_v56 = vpack.c.bf16 %v7184_v39, %v7176_v46 }
 0x950   : > { %v4384_v28 = vpop.eup %4383  ;;  %v3327_v55 = vadd.f32 %v7307_v37, %v3326_v23  ;;  %4403 = vpow2.f32 %v3261_v9  ;;  %v3348_v14 = vadd.f32 %v4374_v29, %v3347_v50  ;;  %v3392_v33 = vpack.c.bf16 %v4382_v53, %v4380_v41 }
 0x951   : > { %v3277_v24 = vmul.f32 1.442695, %v8211_v3  ;;  %3424 = vmatpush1.bf16.msra.mxu1 %v8212_v56  ;;  %v4386_v11 = vpop.eup %4385  ;;  %4405 = vpow2.f32 %v3265_v17  ;;  %v8213_v45 = vsub.f32 %v8171_v54, %v7076_v6  ;;  %v8215_v21 = vsub.f32 %v8214_v48, %v7076_v6  ;;  %v8217_v17 = vld [vmem:[#allocation37_spill] sm:$0xff] }
 0x952   : > { %3425 = vmatprep.subr.bf16.mxu1 %v3388_v20  ;;  %v4388_v31 = vpop.eup %4387  ;;  %v3328_v46 = vadd.f32 %v7318_v38, %v3327_v55  ;;  %4407 = vpow2.f32 %v3269_v60  ;;  %v3349_v39 = vadd.f32 %v4376_v10, %v3348_v14  ;;  %v3394_v19 = vpack.c.bf16 %v4386_v11, %v4384_v28 }
 0x953   : > { %v3281_v2 = vmul.f32 1.442695, %v8213_v45  ;;  %v3285_v12 = vmul.f32 1.442695, %v8215_v21  ;;  %v4390_v9 = vpop.eup %4389  ;;  %4409 = vpow2.f32 %v3273_v52  ;;  %v8216_v29 = vsub.f32 %v8173_v58, %v7076_v6 }
 0x954   : > { %v8218_v54 = vsub.f32 %v8217_v17, %v7076_v6  ;;  %v8219_v23 = vpack.c.bf16 %v7199_v5, %v7192_v36  ;;  %v4392_v50 = vpop.eup %4391  ;;  %v3329_v40 = vadd.f32 %v7327_v57, %v3328_v46  ;;  %4411 = vpow2.f32 %v3277_v24 }
 0x955   : > { %v3289_v20 = vmul.f32 1.442695, %v8216_v29  ;;  %v3350_v10 = vadd.f32 %v4378_v4, %v3349_v39  ;;  %v3396_v60 = vpack.c.bf16 %v4390_v9, %v4388_v31  ;;  %v4394_v52 = vpop.eup %4393  ;;  %4413 = vpow2.f32 %v3281_v2  ;;  %v8222_v4 = vld [vmem:[#allocation14_spill] sm:$0xff] }
 0x956   : > { %v3293_v49 = vmul.f32 1.442695, %v8218_v54  ;;  %3426 = vmatpush1.bf16.msra.mxu1 %v8219_v23  ;;  %v8220_v58 = vsub.f32 %v8175_v13, %v7076_v6  ;;  %v8221_v56 = vsub.f32 %v8176_v44, %v7076_v6  ;;  %v4396_v14 = vpop.eup %4395  ;;  %v3330_v5 = vadd.f32 %v7335_v62, %v3329_v40 }
 0x957   : > { %3427 = vmatprep.subr.bf16.mxu1 %v3390_v7  ;;  %4415 = vpow2.f32 %v3285_v12  ;;  %v3351_v36 = vadd.f32 %v4380_v41, %v3350_v10  ;;  %v3398_v45 = vpack.c.bf16 %v4394_v52, %v4392_v50  ;;  %v4398_v24 = vpop.eup %4397  ;;  %v8223_v7 = vsub.f32 %v8222_v4, %v7076_v6 }
 0x958   : > { %v3297_v3 = vmul.f32 1.442695, %v8220_v58  ;;  %v3301_v55 = vmul.f32 1.442695, %v8221_v56  ;;  %4417 = vpow2.f32 %v3289_v20  ;;  %v8224_v13 = vpack.c.bf16 %v7214_v15, %v7207_v18  ;;  %v4400_v48 = vpop.eup %4399 }
 0x959   : > { %v3305_v2 = vmul.f32 1.442695, %v8223_v7  ;;  %v3331_v44 = vadd.f32 %v7342_v25, %v3330_v5  ;;  %4419 = vpow2.f32 %v3293_v49  ;;  %v3352_v21 = vadd.f32 %v4382_v53, %v3351_v36  ;;  %v4402_v12 = vpop.eup %4401 }
 0x95a   : > { %3428 = vmatpush1.bf16.msra.mxu1 %v8224_v13  ;;  %v3400_v46 = vpack.c.bf16 %v4398_v24, %v4396_v14  ;;  %4421 = vpow2.f32 %v3297_v3  ;;  %v4404_v41 = vpop.eup %4403  ;;  %v3402_v6 = vpack.c.bf16 %v4402_v12, %v4400_v48  ;;  %v8225_v15 = vpack.c.bf16 %v7229_v1, %v7222_v47 }
 0x95b   : > { %3429 = vmatprep.subr.bf16.mxu1 %v3392_v33  ;;  %v3332_v39 = vadd.f32 %v7350_v30, %v3331_v44  ;;  %4423 = vpow2.f32 %v3301_v55  ;;  %v3353_v29 = vadd.f32 %v4384_v28, %v3352_v21  ;;  %v4406_v20 = vpop.eup %4405  ;;  %v8226_v58 = vpack.c.bf16 %v7243_v61, %v7237_v26 }
 0x95c   : > { %4425 = vpow2.f32 %v3305_v2  ;;  %v4408_v18 = vpop.eup %4407  ;;  %v3404_v33 = vpack.c.bf16 %v4406_v20, %v4404_v41  ;;  %v8228_v44 = vpack.c.bf16 %v7268_v32, %v7262_v59  ;;  %v8232_v59 = vpack.c.bf16 %v7307_v37, %v7298_v16 }
 0x95d   : > { %v3333_v17 = vadd.f32 %v7357_v8, %v3332_v39  ;;  %v3354_v53 = vadd.f32 %v4386_v11, %v3353_v29  ;;  %v4410_v54 = vpop.eup %4409  ;;  %v8229_v39 = vld [vmem:[#allocation24_spill] sm:$0xff]  ;;  %v8235_v16 = vpack.c.bf16 %v7357_v8, %v7350_v30  ;;  %v8241_v30 = vld [vmem:[#allocation19_spill] sm:$0xff] }
 0x95e   : > { %3430 = vmatpush1.bf16.msra.mxu1 %v8225_v15  ;;  %v4412_v49 = vpop.eup %4411  ;;  %v3406_v10 = vpack.c.bf16 %v4410_v54, %v4408_v18 }
 0x95f   : > { %3431 = vmatprep.subr.bf16.mxu1 %v3394_v19  ;;  %v3334_v23 = vadd.f32 %v7365_v63, %v3333_v17  ;;  %v3355_v40 = vadd.f32 %v4388_v31, %v3354_v53  ;;  %v4414_v28 = vpop.eup %4413  ;;  %v8227_v31 = vpack.c.bf16 %v7256_v43, %v7249_v34  ;;  %v8230_v34 = vpack.c.bf16 %v7279_v27, %v8229_v39  ;;  %v3469_v39 = vld [vmem:[%s4717_s29 + $0x8] sm:$0xff] }
 0x960   : > { %v3408_v56 = vpack.c.bf16 %v4414_v28, %v4412_v49  ;;  %v8233_v27 = vpack.c.bf16 %v7327_v57, %v7318_v38  ;;  %v8236_v38 = vpack.c.bf16 %v7373_v0, %v7365_v63  ;;  %v8244_v53 = vmov 0  }
 0x961   : > { %v4416_v3 = vpop.eup %4415  ;;  %v3335_v1 = vadd.f32 %v7373_v0, %v3334_v23  ;;  %v3356_v47 = vadd.f32 %v4390_v9, %v3355_v40  ;;  %v3496_v0 = vld [vmem:[%s7613_s4] sm:$0xff]  ;;  %v4569_v63 = vmov 2  }
 0x962   : > { %3432 = vmatpush1.bf16.msra.mxu1 %v8226_v58  ;;  %v4418_v11 = vpop.eup %4417  ;;  %3889 = vset.pattern.permute.xlu0 %v4569_v63 }
 0x963   : > { %3433 = vmatprep.subr.bf16.mxu1 %v3396_v60  ;;  %v4420_v19 = vpop.eup %4419  ;;  %v3336_v55 = vadd.f32 %v7378_v35, %v3335_v1  ;;  %v3357_v5 = vadd.f32 %v4392_v50, %v3356_v47  ;;  %v3410_v36 = vpack.c.bf16 %v4418_v11, %v4416_v3  ;;  %3890 = vset.pattern.permute.xlu1 %v4569_v63 }
 0x964   : > { %v4422_v4 = vpop.eup %4421  ;;  %3502 = vperm.xlu0 %3889, %v3496_v0  }
 0x965   : > { %v4424_v7 = vpop.eup %4423  ;;  %v3337_v61 = vadd.f32 %v7386_v51, %v3336_v55  ;;  %v3358_v26 = vadd.f32 %v4394_v52, %v3357_v5  ;;  %v3412_v2 = vpack.c.bf16 %v4422_v4, %v4420_v19  ;;  %v8231_v52 = vpack.c.bf16 %v7290_v42, %v7284_v22 }
 0x966   : > { %3434 = vmatpush1.bf16.msra.mxu1 %v8227_v31  ;;  %v4426_v9 = vpop.eup %4425  ;;  %v8234_v22 = vpack.c.bf16 %v7342_v25, %v7335_v62  ;;  %v8237_v62 = vpack.c.bf16 %v7386_v51, %v7378_v35  ;;  %v8238_v25 = vld [vmem:[#allocation20_spill] sm:$0xff]  ;;  %v3497_v35 = vld [vmem:[%s7613_s4 + $0x8] sm:$0xff] }
 0x967   : > { %3435 = vmatprep.subr.bf16.mxu1 %v3398_v45  ;;  %v3359_v60 = vadd.f32 %v4396_v14, %v3358_v26  ;;  %v3414_v13 = vpack.c.bf16 %v4426_v9, %v4424_v7  ;;  %3507 = vperm.xlu1 %3890, %v3497_v35   ;;  %v3499_v51 = vld [vmem:[%s7613_s4 + $0x18] sm:$0xff] }
 0x968   : > { %3517 = vperm.xlu0 %3889, %v3499_v51  }
 0x969   : > { %v3360_v50 = vadd.f32 %v4398_v24, %v3359_v60 }
 0x96a   : > { %3436 = vmatpush1.bf16.msra.mxu1 %v8228_v44  ;;  %v3898_v44 = vld [vmem:[#allocation5 + $0x8] sm:$0xff]  }
 0x96b   : > { %3437 = vmatprep.subr.bf16.mxu1 %v3400_v46  ;;  %v3361_v21 = vadd.f32 %v4400_v48, %v3360_v50  ;;  %v3468_v50 = vld [vmem:[%s4717_s29] sm:$0xff] }
 0x96d   : > { %v3362_v43 = vadd.f32 %v4402_v12, %v3361_v21 }
 0x96e   : > { %3438 = vmatpush1.bf16.msra.mxu1 %v8230_v34  ;;  %v3472_v34 = vunpack.c.l.bf16 %v3468_v50 }
 0x96f   : > { %3439 = vmatprep.subr.bf16.mxu1 %v3402_v6  ;;  %v3363_v29 = vadd.f32 %v4404_v41, %v3362_v43  ;;  %v2750_v6 = vld [vmem:[#allocation3 + $0x30] sm:$0xf0] }
 0x970   : > { %v3417_v8 = vrot.slane %v2750_v6, 4 }
 0x971   : > { %v3364_v14 = vadd.f32 %v4406_v20, %v3363_v29  ;;  %v8239_v20 = vld [vmem:[#allocation17_spill] sm:$0xff]  ;;  %v3473_v29 = vunpack.c.h.bf16 %v3468_v50 }
 0x972   : > { %3440 = vmatpush1.bf16.msra.mxu1 %v8231_v52  ;;  %v8240_v15 = vpack.c.bf16 %v8238_v25, %v8239_v20 }
 0x973   : > { %3441 = vmatprep.subr.bf16.mxu1 %v3404_v33  ;;  %v3365_v45 = vadd.f32 %v4408_v18, %v3364_v14  ;;  %v8242_v18 = vld [vmem:[#allocation16_spill] sm:$0xff]  ;;  %v3498_v33 = vld [vmem:[%s7613_s4 + $0x10] sm:$0xff] }
 0x974   : > { %v8243_v17 = vpack.c.bf16 %v8241_v30, %v8242_v18  ;;  %3512 = vperm.xlu1 %3890, %v3498_v33  }
 0x975   : > { %v3366_v32 = vadd.f32 %v4410_v54, %v3365_v45  ;;  %v3338_v54 = vrot.slane %v3337_v61, 4 }
 0x976   : > { %3442 = vmatpush1.bf16.msra.mxu1 %v8232_v59  ;;  %v3474_v59 = vunpack.c.l.bf16 %v3469_v39 }
 0x977   : > { %3443 = vmatprep.subr.bf16.mxu1 %v3406_v10  ;;  %v3367_v24 = vadd.f32 %v4412_v49, %v3366_v32  ;;  %v3339_v23 = vadd.f32 %v3338_v54, %v3337_v61  ;;  %v8245_v61 = vld [vmem:[#allocation22_spill] sm:$0xff] }
 0x979   : > { %v3368_v48 = vadd.f32 %v4414_v28, %v3367_v24  ;;  %v3340_v10 = vrot.slane %v3339_v23, 2 }
 0x97a   : > { %3444 = vmatpush1.bf16.msra.mxu1 %v8233_v27  ;;  %v3475_v27 = vunpack.c.h.bf16 %v3469_v39 }
 0x97b   : > { %3445 = vmatprep.subr.bf16.mxu1 %v3408_v56  ;;  %v3369_v46 = vadd.f32 %v4416_v3, %v3368_v48  ;;  %v3341_v58 = vadd.f32 %v3340_v10, %v3339_v23 }
 0x97d   : > { %v3370_v42 = vadd.f32 %v4418_v11, %v3369_v46  ;;  %v3342_v1 = vrot.slane %v3341_v58, 1 }
 0x97e   : > { %3446 = vmatpush1.bf16.msra.mxu1 %v8234_v22 }
 0x97f   : > { %3447 = vmatprep.subr.bf16.mxu1 %v3410_v36  ;;  %v3371_v12 = vadd.f32 %v4420_v19, %v3370_v42  ;;  %v3343_v56 = vadd.f32 %v3342_v1, %v3341_v58 }
 0x981   : > { %v3372_v37 = vadd.f32 %v4422_v4, %v3371_v12  ;;  %4427 = vrcp.f32 %v3343_v56 }
 0x982   : > { %3448 = vmatpush1.bf16.msra.mxu1 %v8235_v16  ;;  %v3470_v16 = vld [vmem:[%s4717_s29 + $0x10] sm:$0xff] }
 0x983   : > { %3449 = vmatprep.subr.bf16.mxu1 %v3412_v2  ;;  %v3373_v41 = vadd.f32 %v4424_v7, %v3372_v37  ;;  %v3476_v6 = vunpack.c.l.bf16 %v3470_v16  ;;  %v3477_v25 = vunpack.c.h.bf16 %v3470_v16 }
 0x985   : > { %v3374_v57 = vadd.f32 %v4426_v9, %v3373_v41  ;;  %v8246_v9 = vld [vmem:[#allocation23_spill] sm:$0xff] }
 0x986   : > { %3450 = vmatpush1.bf16.msra.mxu1 %v8236_v38  ;;  %v3471_v38 = vld [vmem:[%s4717_s29 + $0x18] sm:$0xff]  ;;  %s3621_s29 = sshll.u32 %s7541_s15, 4  ;;  %s7556_s29 = int_to_ptr.vmem [resolvable:$true] %s3621_s29 }
 0x987   : > { %3451 = vmatprep.subr.bf16.mxu1 %v3414_v13  ;;  %v3375_v49 = vrot.slane %v3374_v57, 4  ;;  %v3897_v13 = vld [vmem:[#allocation5] sm:$0xff]   ;;  %s4459_s27 = scalar_lea.vmem %s7556_s29, 1024  ;;  %p4466_p1 = scmp.lt.s32.totalorder %s7556_s29, %s4464_s12 }
 0x988   : > { %p4460_p8 = scmp.ne.s32.totalorder %s7556_s29, %s4459_s27  ;;  %p4467_p3 = scmp.lt.s32.totalorder %s4465_s11, %s4459_s27 }
 0x989   : > { %v3376_v40 = vadd.f32 %v3375_v49, %v3374_v57 }
 0x98a   : > { %3452 = vmatpush1.bf16.msra.mxu1 %v8237_v62  ;;  %p4461_p11 = pnand %p4460_p8, %p8247_p10  ;;  %p4468_p5 = por %p4467_p3, %p4466_p1 }
 0x98b   : > { %3536 = vmatprep.subr.bf16.mxu1 %v8240_v15  ;;  %v3377_v28 = vrot.slane %v3376_v40, 2  ;;  %v4428_v19 = vpop.eup %4427  ;;  %v3478_v15 = vunpack.c.l.bf16 %v3471_v38 }
 0x98c   : > { %p4462_p13 = pneg %p4461_p11 }
 0x98d   : > { %3454 = vmatmul.mubr.bf16.vlgmr.msra.gmra.mrb[140].mxu1 %v3417_v8  ;;  %v3378_v3 = vadd.f32 %v3377_v28, %v3376_v40 }
 0x98e   : > { %3537 = vmatpush1.bf16.msra.mxu1 %v8243_v17  ;;  %3568 = vmatprep.mubr.bf16.mxu1 %v8244_v53  ;;  %p4469_p6 = pnand %p4468_p5, %p4462_p13 }
 0x98f   : > { %v3379_v47 = vrot.slane %v3378_v3, 1 }
 0x991   : > { %v3380_v11 = vadd.f32 %v3379_v47, %v3378_v3 }
 0x993   : > { %4429 = vrcp.f32 %v3380_v11 }
 0x99d   : > { %v4430_v5 = vpop.eup %4429 }
 0x9e3   : > { %v3503_v21 = vpop.permute.xlu0 %3502 }
 0x9e6   : > { %v3508_v52 = vpop.permute.xlu1 %3507 }
 0x9e7   : > { %v3518_v18 = vpop.permute.xlu0 %3517 }
 0x9f3   : > { %v3513_v57 = vpop.permute.xlu1 %3512 }
 0xa60   : > { %v3455_v55 = vpop.f32.mrb[140].mxu1 }
 0xa61   : > { %v3462_v36 = vmul.f32 %v4428_v19, %v3455_v55  ;;  %v3457_v4 = vpop.f32.mrb[141].mxu1 }
 0xa62   : > { %v3463_v31 = vmul.f32 %v4430_v5, %v3457_v4  ;;  %v3459_v7 = vpop.f32.mrb[142].mxu1 }
 0xa63   : > { %v3490_v26 = vpack.c.bf16 %v3462_v36, %v8245_v61  ;;  %v3460_v2 = vpop.f32.mrb[143].mxu1 }
 0xa64   : > { %v3491_v60 = vpack.c.bf16 %v3463_v31, %v8246_v9 }
 0xa66   : > { %3538 = vmatprep.subr.bf16.mxu1 %v3491_v60 }
 0xa67   : > { %3539 = vmatpush1.bf16.msra.mxu1 %v3490_v26 }
 0xa6a   : > { %3802 = vmatmul.mubr.msk.bf16.vlgmr.msra.gmra.mrb[144].mxu1 %vm435_vm0, %v3897_v13 }
 0xa6b   : > { %3578 = vmatprep.mubr.bf16.mxu1 %v8244_v53  ;;  %v3479_v53 = vunpack.c.h.bf16 %v3471_v38 }
 0xa72   : > { %3803 = vmatmul.mubr.msk.bf16.gmra.mrb[148].mxu1 %vm435_vm0, %v3898_v44 }
 0xb3d   : > { %v3570_v43 = vpop.f32.mrb[144].mxu1 }
 0xb3e   : > { %v3572_v14 = vpop.f32.mrb[145].mxu1  ;;  %v3571_v45 = vadd.f32 %v3570_v43, %v3503_v21 }
 0xb3f   : > { %v3574_v32 = vpop.f32.mrb[146].mxu1  ;;  %v3573_v24 = vadd.f32 %v3572_v14, %v3503_v21 }
 0xb40   : > { %v3589_v48 = vadd.f32 %v3571_v45, %v3472_v34  ;;  %v3575_v46 = vadd.f32 %v3574_v32, %v3508_v52  ;;  %v3576_v22 = vpop.f32.mrb[147].mxu1 }
 0xb41   : > { %v3590_v42 = vadd.f32 %v3573_v24, %v3473_v29  ;;  %v3577_v12 = vadd.f32 %v3576_v22, %v3508_v52 }
 0xb42   : > { %3597 = vst [vmem:[%s7541_s15] sm:$0xff] %v3589_v48  ;;  %v3591_v37 = vadd.f32 %v3575_v46, %v3474_v59 }
 0xb43   : > { %3598 = vst [vmem:[%s7541_s15 + $0x8] sm:$0xff] %v3590_v42  ;;  %v3592_v41 = vadd.f32 %v3577_v12, %v3475_v27 }
 0xb44   : > { %3599 = vst [vmem:[%s7541_s15 + $0x10] sm:$0xff] %v3591_v37 }
 0xb45   : > { %3600 = vst [vmem:[%s7541_s15 + $0x18] sm:$0xff] %v3592_v41  ;;  %v3580_v62 = vpop.f32.mrb[148].mxu1 }
 0xb46   : > { %v3582_v20 = vpop.f32.mrb[149].mxu1  ;;  %v3581_v8 = vadd.f32 %v3580_v62, %v3513_v57 }
 0xb47   : > { %v3584_v30 = vpop.f32.mrb[150].mxu1  ;;  %v3583_v17 = vadd.f32 %v3582_v20, %v3513_v57 }
 0xb48   : > { %v3585_v0 = vadd.f32 %v3584_v30, %v3518_v18  ;;  %v3593_v35 = vadd.f32 %v3581_v8, %v3476_v6  ;;  %v3586_v63 = vpop.f32.mrb[151].mxu1 }
 0xb49   : > { %v3594_v51 = vadd.f32 %v3583_v17, %v3477_v25  ;;  %v3587_v33 = vadd.f32 %v3586_v63, %v3518_v18 }
 0xb4a   : > { %v3595_v54 = vadd.f32 %v3585_v0, %v3478_v15  ;;  %3601 = vst [vmem:[%s7541_s15 + $0x20] sm:$0xff] %v3593_v35 }
 0xb4b   : > { %3602 = vst [vmem:[%s7541_s15 + $0x28] sm:$0xff] %v3594_v51  ;;  %v3596_v49 = vadd.f32 %v3587_v33, %v3479_v53 }
 0xb4c   : > { %3603 = vst [vmem:[%s7541_s15 + $0x30] sm:$0xff] %v3595_v54 }
 0xb4d   : > { %3604 = vst [vmem:[%s7541_s15 + $0x38] sm:$0xff] %v3596_v49 }
 0xb4e   : > { %4472 = shalt.err (!%p4469_p6)
}
 0xb4f   : > { %s4473_s10 = scalar_lea.hbm %s7554_s25, 1024  ;;  %s4477_s13 = scalar_lea.hbm %s7614_s5, 2048 }
 0xb50   : > { %p4474_p7 = scmp.ne.s32.totalorder %s7554_s25, %s4473_s10  ;;  %p4478_p0 = scmp.lt.u32.totalorder %s7554_s25, %s7614_s5 }
 0xb51   : > { %p4479_p2 = scmp.lt.u32.totalorder %s4477_s13, %s4473_s10  ;;  %p4481_p8 = scmp.lt.u32.totalorder %s4473_s10, %s7554_s25 }
 0xb52   : > { %p4475_p9 = pnand %p4474_p7, %p8247_p10 }
 0xb53   : > { %p4480_p4 = por %p4479_p2, %p4478_p0 }
 0xb54   : > { %p4476_p12 = pneg %p4475_p9 }
 0xb55   : > { %p4482_p11 = por %p4481_p8, %p4480_p4 }
 0xb57   : > { %p4483_p13 = pnand %p4482_p11, %p4476_p12 }
 0xb59   : > { %4486 = shalt.err (!%p4483_p13)
}
 0xb5a   : > { %s4571_s16 = smov 256   ;;  %s4572_s17 = smov 16  }
 0xb5b   : > { %3815 = dma.vmem_to_hbm [thread:$0]  (%p8247_p10), %s7556_s29, 1024, %s7554_s25, %s7563_s21, %s4571_s16, %s4571_s16, %s4572_s17  }
 0xb5c PF: > { %p3827_p1 = scmp.ge.s32.totalorder %s4561_s23, 2  ;;  %s3636_s24 = sand.u32 1, %s4541_s18  }
 0xb5d   : > { %p8248_p3 = scmp.ne.s32.totalorder %s7802_s30, 0  ;;  %s3637_s27 = scalar_lea.sflag [#allocation7], %s3636_s24 }
 0xb5f   : > { %p3822_p5 = pnand %p3827_p1, %p8248_p3 }
 0xb61   : > { %4516 = dma.done.wait (!%p3822_p5), %s3637_s27, 1024  }
 0xb62   : > { %4518 = vsyncadd (!%p3822_p5), %s3637_s27, 4294966272  ;;  %s19_s23 = sadd.s32 1, %s4561_s23   ;;  %s8249_s18 = smov %s4545_s19 }
 0xb63   : > { %p16_p6 = scmp.ge.s32.totalorder %s19_s23, 4   ;;  %s8250_s19 = smov %s4549_s20 }
 0xb64   : > { %s8251_s20 = smov %s4656_s6  ;;  %s8252_s21 = smov %s4557_s22 }
 0xb65   : > { %s8253_s22 = smov %s8255_s26  ;;  %18 = sbr.rel (!%p16_p6) target bundleno = 5 (0x5), region = 86 }
 0xb6c   :  { %3642 = vsyncpa [#allocation6], 1 }
 0xb6d   :  { %3644 = vsyncpa [#allocation6 + $0x1], 1 }
 0xb6e   :  { %3645 = vsyncpa [#allocation7], 1 }
 0xb6f   :  { %3647 = vsyncpa [#allocation7 + $0x1], 1 }

// kernel: tpu_custom_call.1
= control target key start
LH: loop header
LB: loop body
LE: loop exit
PB: predicated region body
PF: predicated region fallthrough
CT: control target
= control target key end

     0   :  { %10 = vsyncpa [#allocation6], 0  ;;  %s7609_s0 = inlined_call_operand.vmem [shape: bf16[2,32,256], index: 0, kind: input, shape index: {}]   ;;  %s7610_s1 = inlined_call_operand.vmem [shape: bf16[32,32], index: 1, kind: input, shape index: {}]   ;;  %s7611_s2 = inlined_call_operand.vmem [shape: bf16[64,32], index: 2, kind: input, shape index: {}]   ;;  %s7612_s3 = inlined_call_operand.hbm [shape: bf16[32,32], index: 3, kind: input, shape index: {}]   ;;  %s7613_s4 = inlined_call_operand.vmem [shape: f32[32,3], index: 4, kind: input, shape index: {}]   ;;  %s7614_s5 = inlined_call_operand.hbm [shape: f32[2,32,256], index: 5, kind: output, shape index: {}]  }
   0x1   :  { %11 = vsyncpa [#allocation7], 0 }
   0x2   :  { %13 = vsyncpa [#allocation7 + $0x1], 0  ;;  %s4603_s18 = smov 0   ;;  %s4605_s19 = smov 0  }
   0x3   :  { %s4607_s20 = smov 0   ;;  %s4609_s21 = smov 0  }
   0x4   :  { %s4611_s22 = smov 0   ;;  %s4613_s23 = smov 0  }
   0x5 LB: > { %s3710_s24 = sadd.s32 4294967295, %s4561_s23   ;;  %s3711_s25 = sadd.s32 4294967294, %s4561_s23   ;;  %s4561_s23 = sphi %s4613_s23, %s19_s23   ;;  %s4557_s22 = sphi %s4611_s22, %s8253_s22   ;;  %s4553_s21 = sphi %s4609_s21, %s8252_s21   ;;  %s4549_s20 = sphi %s4607_s20, %s8251_s20   ;;  %s4545_s19 = sphi %s4605_s19, %s8250_s19   ;;  %s4541_s18 = sphi %s4603_s18, %s8249_s18  }
   0x6   : > { %s31_s26 = sadd.s32 1, %s4557_s22  ;;  %s150_s27 = sadd.s32 1, %s4549_s20 }
   0x7   : > { %p33_p0 = scmp.ge.s32.totalorder %s31_s26, 2  ;;  %p160_p1 = scmp.ne.s32.totalorder %s4549_s20, %s4545_s19 }
   0x8   : > { %p161_p2 = scmp.eq.s32.totalorder %s3710_s24, 1  ;;  %p166_p3 = scmp.ne.s32.totalorder %s4545_s19, %s4541_s18 }
   0x9   : > { %s8255_s26 = smov (%p33_p0, %s31_s26), 0  ;;  %p167_p5 = scmp.eq.s32.totalorder %s3711_s25, 1 }
   0xa   : > { %p4643_p4 = por %p161_p2, %p160_p1  ;;  %s145_s29 = ssub.s32 %s4557_s22, %s8255_s26 }
   0xb   : > { %p3712_p6 = scmp.ge.s32.totalorder %s4561_s23, 1  ;;  %p148_p7 = scmp.eq.s32.totalorder %s145_s29, 0 }
   0xc   : > { %s7801_s28 = scalar_select %p4643_p4, 1, 0 }
   0xd   : > { %p4650_p8 = por %p167_p5, %p166_p3  ;;  %p174_p9 = scmp.lt.s32.totalorder %s4561_s23, 3 }
   0xe   : > { %s4656_s6 = scalar_select %p148_p7, %s4549_s20, %s150_s27  }
   0xf   : > { %s7802_s30 = scalar_select %p4650_p8, 1, 0 }
  0x10   : > { %p4658_p10 = pnand %p3712_p6, %p174_p9  ;;  %p4662_p11 = scmp.eq.s32.totalorder %s3710_s24, 0 }
  0x11   : > { %s4563_s9 = smov [#allocation5]   ;;  %s4431_s14 = scalar_lea.hbm %s7612_s3, 256 }
  0x12   : > { %s7803_s7 = scalar_select %p4658_p10, 1, 0 }
  0x13   : > { %s7804_s8 = scalar_select %p4662_p11, 1, 0 }
  0x14   : > { %p3817_p12 = pneg %p4658_p10  ;;  %s192_s10 = sshll.u32 %s4563_s9, 4  ;;  %s193_s10 = int_to_ptr.vmem [resolvable:$true] %s192_s10 }
  0x15   : > { %p4432_p0 = scmp.ne.s32.totalorder %s7612_s3, %s4431_s14  ;;  %p4438_p5 = scmp.lt.u32.totalorder %s4431_s14, %s7612_s3 }
  0x16   : > { %p4670_p13 = pnand %p4662_p11, %p3817_p12 }
  0x18   : > { %p4433_p1 = pneg %p4670_p13 }
  0x1a   : > { %p4434_p2 = pnand %p4433_p1, %p4432_p0 }
  0x1c   : > { %p4435_p3 = pneg %p4434_p2 }
  0x1e   : > { %p4440_p6 = pnand %p4438_p5, %p4435_p3 }
  0x20   : > { %4443 = shalt.err (!%p4440_p6)
}
  0x21   : > { %s4444_s25 = scalar_lea.vmem %s193_s10, 256  ;;  %p4452_p8 = scmp.lt.s32.totalorder %s193_s10, %s193_s10 }
  0x22   : > { %p4445_p7 = scmp.ne.s32.totalorder %s193_s10, %s4444_s25  ;;  %p4453_p4 = scmp.lt.s32.totalorder %s4444_s25, %s4444_s25 }
  0x24   : > { %p4447_p9 = pnand %p4445_p7, %p4433_p1  ;;  %p4454_p11 = por %p4453_p4, %p4452_p8 }
  0x26   : > { %p4448_p12 = pneg %p4447_p9 }
  0x28   : > { %p4455_p10 = pnand %p4454_p11, %p4448_p12 }
  0x2a   : > { %4458 = shalt.err (!%p4455_p10)
}
  0x2b   : > { %s4564_s27 = smov 64   ;;  %s4565_s29 = smov 4  }
  0x2c   : > { %3820 = dma.hbm_to_vmem [thread:$0]  (!%p4670_p13), %s7612_s3, 256, %s193_s10, [#allocation6], %s4564_s27, %s4564_s27, %s4565_s29  }
  0x2d   : > { %p7806_p0 = scmp.ne.s32.totalorder %s7803_s7, 0 }
  0x2f   : > { %219 = sbr.rel (%p7806_p0) target bundleno = 2908 (0xb5c), region = 40 }
  0x36   : > { %p7807_p2 = scmp.ne.s32.totalorder %s7804_s8, 0 }
  0x38   : > { %4512 = dma.done.wait (%p7807_p2), [#allocation6], 256  }
  0x39   : > { %4514 = vsyncadd (%p7807_p2), [#allocation6], 4294967040  ;;  %v4566_v0 = vmov 1   ;;  %v7619_v1 = vmov 0   ;;  %v258_v2 = vld [vmem:[%s7613_s4] sm:$0xff]  ;;  %v259_v3 = vld [vmem:[%s7613_s4 + $0x8] sm:$0xff]  ;;  %v4529_v32 = vlaneseq }
  0x3a   : > { %3885 = vset.pattern.permute.xlu1 %v4566_v0  ;;  %3884 = vset.pattern.permute.xlu0 %v7619_v1  ;;  %v260_v4 = vld [vmem:[%s7613_s4 + $0x10] sm:$0xff]  ;;  %v261_v5 = vld [vmem:[%s7613_s4 + $0x18] sm:$0xff]  ;;  %p247_p4 = scmp.lt.s32.totalorder %s4553_s21, 1  ;;  %v4568_v29 = vmov 1935823168   ;;  %vm435_vm0 = vcmask 261120  }
  0x3b   : > { %480 = vmatprep.mubr.bf16.mxu0 %v7619_v1  ;;  %599 = vmatprep.mubr.bf16.mxu1 %v7619_v1  ;;  %v4527_v30 = vunpack.c.l.s4 %v4568_v29  ;;  %v4530_v33 = vshrl.u32 %v4529_v32, 7  ;;  %vm709_vm1 = vcmask 1043456   ;;  %vm660_vm2 = vcmask 64512   ;;  %s244_s13 = sand.u32 1, %s4545_s19   ;;  %s3810_s16 = sshll.u32 %s4553_s21, 10 }
  0x3c   : > { %384 = vperm.xlu1 %3885, %v258_v2   ;;  %357 = vperm.xlu0 %3884, %v258_v2   ;;  %s248_s17 = scalar_select %p247_p4, %s4553_s21, 1 }
  0x3d   : > { %v4528_v31 = vunpack.c.0.s8 %v4527_v30  ;;  %s3717_s14 = sshll.u32 %s244_s13, 6  ;;  %s7554_s25 = scalar_lea.hbm %s7614_s5, %s3810_s16 }
  0x3e   : > { %s3809_s24 = sshll.u32 %s248_s17, 5  ;;  %s7541_s15 = scalar_lea.vmem [#allocation8], %s3717_s14 }
  0x3f   : > { %s4717_s29 = scalar_lea.vmem %s7609_s0, %s3809_s24  ;;  %v4531_v34 = vsub.s32 %v4528_v31, %v4530_v33  ;;  %s7563_s21 = scalar_lea.sflag [#allocation7], %s244_s13 }
  0x40   : > { %388 = vperm.xlu1 %3885, %v259_v3   ;;  %362 = vperm.xlu0 %3884, %v259_v3   ;;  %v4720_v6 = vld [vmem:[%s4717_s29] sm:$0xff]  ;;  %v4723_v7 = vld [vmem:[%s4717_s29 + $0x8] sm:$0xff]  ;;  %v4728_v10 = vld [vmem:[%s4717_s29 + $0x10] sm:$0xff]  ;;  %p8247_p10 = scmp.ne.s32.totalorder %s7801_s28, 0  ;;  %s4570_s9 = smov [#allocation8]  }
  0x41   : > { %v274_v8 = vunpack.c.l.bf16 %v4720_v6  ;;  %v276_v9 = vunpack.c.l.bf16 %v4723_v7  ;;  %v275_v11 = vunpack.c.h.bf16 %v4720_v6  ;;  %v277_v12 = vunpack.c.h.bf16 %v4723_v7  ;;  %v4738_v15 = vld [vmem:[%s4717_s29 + $0x18] sm:$0xff]  ;;  %s4463_s12 = sshll.u32 %s4570_s9, 4  ;;  %s4464_s12 = int_to_ptr.vmem [resolvable:$false] %s4463_s12 }
  0x42   : > { %v278_v13 = vunpack.c.l.bf16 %v4728_v10  ;;  %v279_v16 = vunpack.c.h.bf16 %v4728_v10  ;;  %v280_v18 = vunpack.c.l.bf16 %v4738_v15  ;;  %4519 = vmul.bf16.f32.vacc0 %v4720_v6, %v4720_v6  ;;  %s4465_s11 = scalar_lea.vmem %s4464_s12, 2048 }
  0x43   : > { %v282_v14 = vadd.f32 %v276_v9, %v274_v8  ;;  %v291_v17 = vadd.f32 %v277_v12, %v275_v11  ;;  %4520 = vmac.bf16.f32.vacc0 %v4723_v7, %v4723_v7  ;;  %v281_v20 = vunpack.c.h.bf16 %v4738_v15 }
  0x44   : > { %3886 = vset.pattern.permute.xlu1 %v7619_v1  ;;  %367 = vperm.xlu0 %3884, %v260_v4   ;;  %4521 = vmac.bf16.f32.vacc0 %v4728_v10, %v4728_v10 }
  0x45   : > { %372 = vperm.xlu1 %3886, %v261_v5   ;;  %v283_v19 = vadd.f32 %v282_v14, %v278_v13  ;;  %v292_v21 = vadd.f32 %v291_v17, %v279_v16  ;;  %4522 = vmac.bf16.f32.vacc0 %v4738_v15, %v4738_v15 }
  0x47   : > { %v284_v22 = vadd.f32 %v283_v19, %v280_v18  ;;  %v293_v23 = vadd.f32 %v292_v21, %v281_v20  ;;  %v4523_v25 = vmovacc.add.low.vacc0 }
  0x48   : > { %3887 = vset.pattern.permute.xlu0 %v4566_v0  ;;  %v4524_v26 = vmovacc.add.high.vacc0 }
  0x49   : > { %3888 = vset.pattern.permute.xlu1 %v4566_v0  ;;  %392 = vperm.xlu0 %3887, %v260_v4   ;;  %v285_v24 = vrot.slane %v284_v22, 4  ;;  %v294_v37 = vrot.slane %v293_v23, 4 }
  0x4a   : > { %396 = vperm.xlu1 %3888, %v261_v5   ;;  %v4525_v27 = vcombine.low %v4523_v25, %v4524_v26  ;;  %v4526_v28 = vcombine.high %v4523_v25, %v4524_v26 }
  0x4b   : > { %v286_v38 = vadd.f32 %v285_v24, %v284_v22  ;;  %v295_v40 = vadd.f32 %v294_v37, %v293_v23 }
  0x4c   : > { %v4532_v35 = vrot.slane %v4525_v27, %v4531_v34  ;;  %v4538_v36 = vrot.slane %v4526_v28, %v4531_v34 }
  0x4d   : > { %v287_v42 = vrot.slane %v286_v38, 2  ;;  %v296_v44 = vrot.slane %v295_v40, 2 }
  0x4e   : > { %v314_v39 = vrot.slane %v4532_v35, 4  ;;  %v323_v41 = vrot.slane %v4538_v36, 4 }
  0x4f   : > { %v288_v46 = vadd.f32 %v287_v42, %v286_v38  ;;  %v297_v48 = vadd.f32 %v296_v44, %v295_v40 }
  0x50   : > { %v315_v43 = vadd.f32 %v4532_v35, %v314_v39  ;;  %v324_v45 = vadd.f32 %v4538_v36, %v323_v41 }
  0x51   : > { %v289_v50 = vrot.slane %v288_v46, 1  ;;  %v298_v52 = vrot.slane %v297_v48, 1 }
  0x52   : > { %v316_v47 = vrot.slane %v315_v43, 2  ;;  %v325_v49 = vrot.slane %v324_v45, 2 }
  0x53   : > { %v290_v54 = vadd.f32 %v289_v50, %v288_v46  ;;  %v299_v56 = vadd.f32 %v298_v52, %v297_v48 }
  0x54   : > { %v317_v51 = vadd.f32 %v316_v47, %v315_v43  ;;  %v326_v53 = vadd.f32 %v325_v49, %v324_v45 }
  0x55   : > { %v301_v58 = vmul.f32 0.03125, %v290_v54  ;;  %v302_v60 = vmul.f32 0.03125, %v299_v56  ;;  %v3892_v54 = vld [vmem:[%s7610_s1] sm:$0xff]  }
  0x56   : > { %v318_v55 = vrot.slane %v317_v51, 1  ;;  %v327_v57 = vrot.slane %v326_v53, 1 }
  0x57   : > { %v331_v63 = vmul.f32 %v301_v58, %v301_v58  ;;  %v332_v2 = vmul.f32 %v302_v60, %v302_v60  ;;  %v335_v19 = vsub.f32 %v274_v8, %v301_v58  ;;  %v336_v21 = vsub.f32 %v275_v11, %v302_v60 }
  0x58   : > { %v319_v59 = vadd.f32 %v318_v55, %v317_v51  ;;  %v328_v61 = vadd.f32 %v327_v57, %v326_v53  ;;  %v337_v23 = vsub.f32 %v276_v9, %v301_v58  ;;  %v338_v24 = vsub.f32 %v277_v12, %v302_v60  ;;  %v3891_v53 = vld [vmem:[%s7611_s2] sm:$0xff]   ;;  %v3893_v55 = vld [vmem:[%s7610_s1 + $0x8] sm:$0xff]  }
  0x59   : > { %v339_v6 = vsub.f32 %v278_v13, %v301_v58  ;;  %v340_v11 = vsub.f32 %v279_v16, %v302_v60  ;;  %v341_v7 = vsub.f32 %v280_v18, %v301_v58  ;;  %v342_v12 = vsub.f32 %v281_v20, %v302_v60 }
  0x5a   : > { %v329_v62 = vmul.f32 0.03125, %v319_v59  ;;  %v330_v0 = vmul.f32 0.03125, %v328_v61 }
  0x5c   : > { %v333_v3 = vsub.f32 %v329_v62, %v331_v63  ;;  %v334_v4 = vsub.f32 %v330_v0, %v332_v2 }
  0x5e   : > { %v343_v5 = vadd.f32 1e-05, %v333_v3  ;;  %v344_v14 = vadd.f32 1e-05, %v334_v4 }
  0x60   : > { %3899 = vrsqrt.f32 %v343_v5 }
  0x61   : > { %3901 = vrsqrt.f32 %v344_v14 }
  0x6a   : > { %v3900_v17 = vpop.eup %3899 }
  0x6b   : > { %v3902_v22 = vpop.eup %3901  ;;  %v347_v25 = vmul.f32 %v3900_v17, %v335_v19  ;;  %v349_v29 = vmul.f32 %v3900_v17, %v337_v23  ;;  %v351_v39 = vmul.f32 %v3900_v17, %v339_v6  ;;  %v353_v42 = vmul.f32 %v3900_v17, %v341_v7 }
  0x6c   : > { %v348_v26 = vmul.f32 %v3902_v22, %v336_v21  ;;  %v350_v30 = vmul.f32 %v3902_v22, %v338_v24  ;;  %v352_v40 = vmul.f32 %v3902_v22, %v340_v11  ;;  %v354_v13 = vmul.f32 %v3902_v22, %v342_v12  ;;  %v3894_v24 = vld [vmem:[%s7611_s2 + $0x8] sm:$0xff]  }
  0xbb   : > { %v385_v27 = vpop.permute.xlu1 %384  ;;  %v358_v28 = vpop.permute.xlu0 %357 }
  0xbc   : > { %v375_v31 = vmul.f32 %v358_v28, %v347_v25  ;;  %v376_v32 = vmul.f32 %v358_v28, %v348_v26  ;;  %v3895_v25 = vld [vmem:[%s7611_s2 + $0x10] sm:$0xff]  }
  0xbe   : > { %v400_v35 = vadd.f32 %v385_v27, %v376_v32  ;;  %v399_v37 = vadd.f32 %v385_v27, %v375_v31 }
  0xbf   : > { %v389_v33 = vpop.permute.xlu1 %388  ;;  %v363_v8 = vpop.permute.xlu0 %362 }
  0xc0   : > { %v377_v9 = vmul.f32 %v363_v8, %v349_v29  ;;  %v378_v34 = vmul.f32 %v363_v8, %v350_v30 }
  0xc2   : > { %v402_v36 = vadd.f32 %v389_v33, %v378_v34  ;;  %v401_v38 = vadd.f32 %v389_v33, %v377_v9 }
  0xc3   : > { %v368_v41 = vpop.permute.xlu0 %367 }
  0xc4   : > { %v373_v43 = vpop.permute.xlu1 %372  ;;  %v408_v10 = vpack.c.bf16 %v402_v36, %v400_v35  ;;  %v407_v16 = vpack.c.bf16 %v401_v38, %v399_v37  ;;  %v379_v44 = vmul.f32 %v368_v41, %v351_v39  ;;  %v380_v45 = vmul.f32 %v368_v41, %v352_v40 }
  0xc5   : > { %v381_v15 = vmul.f32 %v373_v43, %v353_v42  ;;  %v382_v18 = vmul.f32 %v373_v43, %v354_v13 }
  0xc6   : > { %448 = vmatprep.subr.bf16.mxu0 %v408_v10  ;;  %567 = vmatprep.subr.bf16.mxu1 %v408_v10 }
  0xc7   : > { %449 = vmatpush1.bf16.msra.mxu0 %v407_v16  ;;  %568 = vmatpush1.bf16.msra.mxu1 %v407_v16 }
  0xc8   : > { %v393_v20 = vpop.permute.xlu0 %392 }
  0xc9   : > { %v403_v46 = vadd.f32 %v393_v20, %v379_v44  ;;  %v404_v47 = vadd.f32 %v393_v20, %v380_v45  ;;  %v397_v48 = vpop.permute.xlu1 %396 }
  0xca   : > { %v405_v49 = vadd.f32 %v397_v48, %v381_v15  ;;  %v406_v50 = vadd.f32 %v397_v48, %v382_v18 }
  0xcc   : > { %v409_v51 = vpack.c.bf16 %v405_v49, %v403_v46  ;;  %v410_v52 = vpack.c.bf16 %v406_v50, %v404_v47 }
  0xce   : > { %450 = vmatprep.subr.bf16.mxu0 %v410_v52  ;;  %569 = vmatprep.subr.bf16.mxu1 %v410_v52 }
  0xcf   : > { %451 = vmatpush1.bf16.msra.mxu0 %v409_v51  ;;  %570 = vmatpush1.bf16.msra.mxu1 %v409_v51 }
  0xd2   : > { %3724 = vmatmul.mubr.msk.bf16.vlgmr.msra.gmra.mrb[0].mxu0 %vm435_vm0, %v3891_v53  ;;  %3730 = vmatmul.mubr.msk.bf16.vlgmr.msra.gmra.mrb[0].mxu1 %vm435_vm0, %v3892_v54 }
  0xd3   : > { %609 = vmatprep.mubr.bf16.mxu1 %v7619_v1  ;;  %490 = vmatprep.mubr.bf16.mxu0 %v7619_v1 }
  0xda   : > { %3731 = vmatmul.mubr.msk.bf16.gmra.mrb[4].mxu1 %vm435_vm0, %v3893_v55  ;;  %3725 = vmatmul.mubr.msk.bf16.gmra.mrb[4].mxu0 %vm435_vm0, %v3894_v24 }
  0xdb   : > { %748 = vmatprep.mubr.bf16.mxu1 %v7619_v1  ;;  %500 = vmatprep.mubr.bf16.mxu0 %v7619_v1 }
  0xe2   : > { %3726 = vmatmul.mubr.msk.bf16.gmra.mrb[8].mxu0 %vm435_vm0, %v3895_v25 }
  0xe3   : > { %510 = vmatprep.mubr.bf16.mxu0 %v7619_v1 }
 0x1a5   : > { %v482_v56 = vpop.f32.mrb[0].mxu0  ;;  %v601_v57 = vpop.f32.mrb[0].mxu1 }
 0x1a6   : > { %v484_v58 = vpop.f32.mrb[1].mxu0  ;;  %v603_v59 = vpop.f32.mrb[1].mxu1 }
 0x1a7   : > { %v486_v60 = vpop.f32.mrb[2].mxu0  ;;  %v605_v61 = vpop.f32.mrb[2].mxu1 }
 0x1a8   : > { %v521_v62 = vpack.c.bf16 %v486_v60, %v482_v56  ;;  %v488_v63 = vpop.f32.mrb[3].mxu0  ;;  %v4794_v0 = vpack.c.bf16 %v605_v61, %v601_v57  ;;  %v607_v2 = vpop.f32.mrb[3].mxu1 }
 0x1a9   : > { %v522_v3 = vpack.c.bf16 %v488_v63, %v484_v58  ;;  %v4796_v4 = vpack.c.bf16 %v607_v2, %v603_v59 }
 0x1aa   : > { %7808 = vst [vmem:[#allocation11_spill] sm:$0xff] %v4794_v0  ;;  %529 = vst [vmem:[#allocation3] sm:$0xff] %v521_v62  ;;  %v711_v5 = vsel %vm709_vm1, %v4794_v0, 0 }
 0x1ab   : > { %7809 = vst [vmem:[#allocation12_spill] sm:$0xff] %v4796_v4  ;;  %530 = vst [vmem:[#allocation3 + $0x8] sm:$0xff] %v522_v3  ;;  %3732 = vmatprep.subr.msk.bf16.mxu1 %vm709_vm1, %v4796_v4 }
 0x1ac   : > { %717 = vmatpush1.bf16.msra.mxu1 %v711_v5 }
 0x1ad   : > { %v611_v28 = vpop.f32.mrb[4].mxu1 }
 0x1ae   : > { %v613_v30 = vpop.f32.mrb[5].mxu1 }
 0x1af   : > { %v615_v31 = vpop.f32.mrb[6].mxu1 }
 0x1b0   : > { %v4816_v32 = vpack.c.bf16 %v615_v31, %v611_v28  ;;  %v617_v33 = vpop.f32.mrb[7].mxu1 }
 0x1b1   : > { %v624_v14 = vld [vmem:[#allocation3] sm:$0xf]  ;;  %v1328_v21 = vld [vmem:[#allocation3] sm:$0xf0]  ;;  %v4819_v8 = vpack.c.bf16 %v617_v33, %v613_v30 }
 0x1b2   : > { %628 = vxpose.xlu1.c.b16.start.end [1/1] (short) %v624_v14, 128  ;;  %v625_v17 = vld [vmem:[#allocation3 + $0x8] sm:$0xf]  ;;  %v1329_v19 = vld [vmem:[#allocation3 + $0x8] sm:$0xf0]  ;;  %v1334_v23 = vrot.slane %v1328_v21, 4  ;;  %7810 = vst [vmem:[#allocation13_spill] sm:$0xff] %v4816_v32 }
 0x1b3   : > { %644 = vxpose.xlu0.c.b16.start.end [1/1] (short) %v625_v17, 128  ;;  %v1335_v22 = vrot.slane %v1329_v19, 4  ;;  %7811 = vst [vmem:[#allocation14_spill] sm:$0xff] %v4819_v8 }
 0x1cf   : > { %1354 = vxpose.xlu1.c.b16.start.end [1/1] (short) %v1335_v22, 128 }
 0x1d0   : > { %1338 = vxpose.xlu0.c.b16.start.end [1/1] (short) %v1334_v23, 128 }
 0x218   : > { %v636_v26 = vpop.trf.xlu1 }
 0x219   : > { %3733 = vmatmul.mubr.msk.bf16.vlgmr.msra.gmra.mrb[8].mxu1 %vm660_vm2, %v636_v26  ;;  %v652_v12 = vpop.trf.xlu0 }
 0x21a   : > { %758 = vmatprep.mubr.bf16.mxu1 %v7619_v1 }
 0x21c   : > { %v637_v27 = vpop.trf.xlu1 }
 0x21d   : > { %v653_v35 = vpop.trf.xlu0 }
 0x220   : > { %v638_v29 = vpop.trf.xlu1 }
 0x221   : > { %3734 = vmatmul.mubr.msk.bf16.gmra.mrb[12].mxu1 %vm660_vm2, %v637_v27  ;;  %v654_v36 = vpop.trf.xlu0 }
 0x222   : > { %768 = vmatprep.mubr.bf16.mxu1 %v7619_v1 }
 0x224   : > { %v639_v6 = vpop.trf.xlu1 }
 0x225   : > { %v655_v37 = vpop.trf.xlu0 }
 0x228   : > { %v640_v11 = vpop.trf.xlu1 }
 0x229   : > { %3735 = vmatmul.mubr.msk.bf16.gmra.mrb[16].mxu1 %vm660_vm2, %v638_v29  ;;  %v656_v38 = vpop.trf.xlu0 }
 0x22a   : > { %778 = vmatprep.mubr.bf16.mxu1 %v7619_v1 }
 0x22c   : > { %v641_v9 = vpop.trf.xlu1 }
 0x22d   : > { %v657_v39 = vpop.trf.xlu0 }
 0x230   : > { %v642_v34 = vpop.trf.xlu1 }
 0x231   : > { %3736 = vmatmul.mubr.msk.bf16.gmra.mrb[20].mxu1 %vm660_vm2, %v639_v6  ;;  %v658_v40 = vpop.trf.xlu0 }
 0x232   : > { %788 = vmatprep.mubr.bf16.mxu1 %v7619_v1 }
 0x234   : > { %v643_v7 = vpop.trf.xlu1 }
 0x235   : > { %v659_v41 = vpop.trf.xlu0 }
 0x239   : > { %3737 = vmatmul.mubr.msk.bf16.gmra.mrb[24].mxu1 %vm660_vm2, %v640_v11 }
 0x23a   : > { %798 = vmatprep.mubr.bf16.mxu1 %v7619_v1 }
 0x241   : > { %3738 = vmatmul.mubr.msk.bf16.gmra.mrb[28].mxu1 %vm660_vm2, %v641_v9 }
 0x242   : > { %808 = vmatprep.mubr.bf16.mxu1 %v7619_v1 }
 0x249   : > { %3739 = vmatmul.mubr.msk.bf16.gmra.mrb[32].mxu1 %vm660_vm2, %v642_v34 }
 0x24a   : > { %818 = vmatprep.mubr.bf16.mxu1 %v7619_v1 }
 0x251   : > { %3740 = vmatmul.mubr.msk.bf16.gmra.mrb[36].mxu1 %vm660_vm2, %v643_v7 }
 0x252   : > { %828 = vmatprep.mubr.bf16.mxu1 %v7619_v1 }
 0x259   : > { %3741 = vmatmul.mubr.msk.bf16.gmra.mrb[40].mxu1 %vm660_vm2, %v652_v12 }
 0x25a   : > { %838 = vmatprep.mubr.bf16.mxu1 %v7619_v1 }
 0x261   : > { %3742 = vmatmul.mubr.msk.bf16.gmra.mrb[44].mxu1 %vm660_vm2, %v653_v35 }
 0x262   : > { %848 = vmatprep.mubr.bf16.mxu1 %v7619_v1 }
 0x269   : > { %3743 = vmatmul.mubr.msk.bf16.gmra.mrb[48].mxu1 %vm660_vm2, %v654_v36 }
 0x26a   : > { %858 = vmatprep.mubr.bf16.mxu1 %v7619_v1 }
 0x271   : > { %3744 = vmatmul.mubr.msk.bf16.gmra.mrb[52].mxu1 %vm660_vm2, %v655_v37 }
 0x272   : > { %868 = vmatprep.mubr.bf16.mxu1 %v7619_v1 }
 0x279   : > { %3745 = vmatmul.mubr.msk.bf16.gmra.mrb[56].mxu1 %vm660_vm2, %v656_v38 }
 0x27a   : > { %878 = vmatprep.mubr.bf16.mxu1 %v7619_v1 }
 0x281   : > { %3746 = vmatmul.mubr.msk.bf16.gmra.mrb[60].mxu1 %vm660_vm2, %v657_v39 }
 0x282   : > { %888 = vmatprep.mubr.bf16.mxu1 %v7619_v1 }
 0x289   : > { %3747 = vmatmul.mubr.msk.bf16.gmra.mrb[64].mxu1 %vm660_vm2, %v658_v40 }
 0x28a   : > { %898 = vmatprep.mubr.bf16.mxu1 %v7619_v1 }
 0x291   : > { %3748 = vmatmul.mubr.msk.bf16.gmra.mrb[68].mxu1 %vm660_vm2, %v659_v41 }
 0x2ec   : > { %v4847_v42 = vpop.f32.mrb[8].mxu1 }
 0x2ed   : > { %v4849_v13 = vpop.f32.mrb[9].mxu1 }
 0x2ee   : > { %v4851_v43 = vpop.f32.mrb[10].mxu1 }
 0x2ef   : > { %v4853_v10 = vpop.f32.mrb[11].mxu1 }
 0x2f4   : > { %v4855_v16 = vpop.f32.mrb[12].mxu1 }
 0x2f5   : > { %v909_v44 = vmax.f32 %v4847_v42, %v4855_v16  ;;  %v4859_v45 = vpop.f32.mrb[13].mxu1 }
 0x2f6   : > { %v946_v15 = vmax.f32 %v4849_v13, %v4859_v45  ;;  %v4863_v18 = vpop.f32.mrb[14].mxu1 }
 0x2f7   : > { %v910_v20 = vmax.f32 %v4851_v43, %v4863_v18  ;;  %v4867_v46 = vpop.f32.mrb[15].mxu1 }
 0x2f8   : > { %v947_v47 = vmax.f32 %v4853_v10, %v4867_v46 }
 0x2fc   : > { %v4871_v48 = vpop.f32.mrb[16].mxu1 }
 0x2fd   : > { %v911_v49 = vmax.f32 %v909_v44, %v4871_v48  ;;  %v4874_v50 = vpop.f32.mrb[17].mxu1 }
 0x2fe   : > { %v948_v51 = vmax.f32 %v946_v15, %v4874_v50  ;;  %v4877_v52 = vpop.f32.mrb[18].mxu1 }
 0x2ff   : > { %v912_v53 = vmax.f32 %v910_v20, %v4877_v52  ;;  %v4880_v54 = vpop.f32.mrb[19].mxu1 }
 0x300   : > { %v949_v55 = vmax.f32 %v947_v47, %v4880_v54 }
 0x304   : > { %v4883_v56 = vpop.f32.mrb[20].mxu1 }
 0x305   : > { %v913_v57 = vmax.f32 %v911_v49, %v4883_v56  ;;  %v4886_v58 = vpop.f32.mrb[21].mxu1 }
 0x306   : > { %v950_v59 = vmax.f32 %v948_v51, %v4886_v58  ;;  %v4889_v60 = vpop.f32.mrb[22].mxu1 }
 0x307   : > { %v914_v61 = vmax.f32 %v912_v53, %v4889_v60  ;;  %v4892_v62 = vpop.f32.mrb[23].mxu1 }
 0x308   : > { %v951_v63 = vmax.f32 %v949_v55, %v4892_v62 }
 0x30c   : > { %v4895_v2 = vpop.f32.mrb[24].mxu1 }
 0x30d   : > { %v915_v3 = vmax.f32 %v913_v57, %v4895_v2  ;;  %v4898_v5 = vpop.f32.mrb[25].mxu1 }
 0x30e   : > { %v952_v14 = vmax.f32 %v950_v59, %v4898_v5  ;;  %v4901_v17 = vpop.f32.mrb[26].mxu1 }
 0x30f   : > { %v916_v19 = vmax.f32 %v914_v61, %v4901_v17  ;;  %v4904_v21 = vpop.f32.mrb[27].mxu1 }
 0x310   : > { %v953_v22 = vmax.f32 %v951_v63, %v4904_v21 }
 0x314   : > { %v4907_v23 = vpop.f32.mrb[28].mxu1 }
 0x315   : > { %v917_v24 = vmax.f32 %v915_v3, %v4907_v23  ;;  %v4910_v25 = vpop.f32.mrb[29].mxu1 }
 0x316   : > { %v954_v26 = vmax.f32 %v952_v14, %v4910_v25  ;;  %v4913_v27 = vpop.f32.mrb[30].mxu1 }
 0x317   : > { %v918_v28 = vmax.f32 %v916_v19, %v4913_v27  ;;  %v4916_v29 = vpop.f32.mrb[31].mxu1 }
 0x318   : > { %7812 = vst [vmem:[#allocation15_spill] sm:$0xff] %v4916_v29  ;;  %v955_v30 = vmax.f32 %v953_v22, %v4916_v29 }
 0x31c   : > { %v4919_v31 = vpop.f32.mrb[32].mxu1 }
 0x31d   : > { %v919_v33 = vmax.f32 %v917_v24, %v4919_v31  ;;  %v4922_v6 = vpop.f32.mrb[33].mxu1 }
 0x31e   : > { %7813 = vst [vmem:[#allocation16_spill] sm:$0xff] %v4922_v6  ;;  %v956_v11 = vmax.f32 %v954_v26, %v4922_v6  ;;  %v4925_v9 = vpop.f32.mrb[34].mxu1 }
 0x31f   : > { %v920_v34 = vmax.f32 %v918_v28, %v4925_v9  ;;  %v4928_v7 = vpop.f32.mrb[35].mxu1 }
 0x320   : > { %7814 = vst [vmem:[#allocation17_spill] sm:$0xff] %v4928_v7  ;;  %v957_v12 = vmax.f32 %v955_v30, %v4928_v7 }
 0x324   : > { %v4931_v35 = vpop.f32.mrb[36].mxu1 }
 0x325   : > { %v921_v36 = vmax.f32 %v919_v33, %v4931_v35  ;;  %v4934_v37 = vpop.f32.mrb[37].mxu1 }
 0x326   : > { %7815 = vst [vmem:[#allocation18_spill] sm:$0xff] %v4934_v37  ;;  %v958_v38 = vmax.f32 %v956_v11, %v4934_v37  ;;  %v4937_v39 = vpop.f32.mrb[38].mxu1 }
 0x327   : > { %v922_v40 = vmax.f32 %v920_v34, %v4937_v39  ;;  %v4940_v41 = vpop.f32.mrb[39].mxu1 }
 0x328   : > { %7816 = vst [vmem:[#allocation19_spill] sm:$0xff] %v4940_v41  ;;  %v959_v44 = vmax.f32 %v957_v12, %v4940_v41 }
 0x32c   : > { %v4943_v15 = vpop.f32.mrb[40].mxu1 }
 0x32d   : > { %v923_v20 = vmax.f32 %v921_v36, %v4943_v15  ;;  %v4946_v47 = vpop.f32.mrb[41].mxu1 }
 0x32e   : > { %7817 = vst [vmem:[#allocation20_spill] sm:$0xff] %v4946_v47  ;;  %v960_v49 = vmax.f32 %v958_v38, %v4946_v47  ;;  %v4949_v51 = vpop.f32.mrb[42].mxu1 }
 0x32f   : > { %v924_v53 = vmax.f32 %v922_v40, %v4949_v51  ;;  %v4952_v55 = vpop.f32.mrb[43].mxu1 }
 0x330   : > { %7818 = vst [vmem:[#allocation21_spill] sm:$0xff] %v4952_v55  ;;  %v961_v57 = vmax.f32 %v959_v44, %v4952_v55 }
 0x334   : > { %v4955_v59 = vpop.f32.mrb[44].mxu1 }
 0x335   : > { %v925_v61 = vmax.f32 %v923_v20, %v4955_v59  ;;  %v4958_v63 = vpop.f32.mrb[45].mxu1 }
 0x336   : > { %7819 = vst [vmem:[#allocation22_spill] sm:$0xff] %v4958_v63  ;;  %v962_v3 = vmax.f32 %v960_v49, %v4958_v63  ;;  %v4961_v14 = vpop.f32.mrb[46].mxu1 }
 0x337   : > { %v926_v19 = vmax.f32 %v924_v53, %v4961_v14  ;;  %v4964_v22 = vpop.f32.mrb[47].mxu1 }
 0x338   : > { %7820 = vst [vmem:[#allocation23_spill] sm:$0xff] %v4964_v22  ;;  %v963_v24 = vmax.f32 %v961_v57, %v4964_v22 }
 0x33c   : > { %v4967_v26 = vpop.f32.mrb[48].mxu1 }
 0x33d   : > { %v927_v28 = vmax.f32 %v925_v61, %v4967_v26  ;;  %v4970_v30 = vpop.f32.mrb[49].mxu1 }
 0x33e   : > { %7821 = vst [vmem:[#allocation24_spill] sm:$0xff] %v4970_v30  ;;  %v964_v33 = vmax.f32 %v962_v3, %v4970_v30  ;;  %v4973_v11 = vpop.f32.mrb[50].mxu1 }
 0x33f   : > { %v928_v34 = vmax.f32 %v926_v19, %v4973_v11  ;;  %v4976_v12 = vpop.f32.mrb[51].mxu1 }
 0x340   : > { %7822 = vst [vmem:[#allocation25_spill] sm:$0xff] %v4976_v12  ;;  %v965_v36 = vmax.f32 %v963_v24, %v4976_v12 }
 0x344   : > { %v4979_v38 = vpop.f32.mrb[52].mxu1 }
 0x345   : > { %v929_v40 = vmax.f32 %v927_v28, %v4979_v38  ;;  %v4982_v44 = vpop.f32.mrb[53].mxu1 }
 0x346   : > { %7823 = vst [vmem:[#allocation26_spill] sm:$0xff] %v4982_v44  ;;  %v966_v20 = vmax.f32 %v964_v33, %v4982_v44  ;;  %v4985_v49 = vpop.f32.mrb[54].mxu1 }
 0x347   : > { %v930_v53 = vmax.f32 %v928_v34, %v4985_v49  ;;  %v4988_v57 = vpop.f32.mrb[55].mxu1 }
 0x348   : > { %7824 = vst [vmem:[#allocation27_spill] sm:$0xff] %v4988_v57  ;;  %v967_v61 = vmax.f32 %v965_v36, %v4988_v57  ;;  %v492_v57 = vpop.f32.mrb[4].mxu0 }
 0x349   : > { %v494_v44 = vpop.f32.mrb[5].mxu0 }
 0x34a   : > { %v496_v12 = vpop.f32.mrb[6].mxu0 }
 0x34b   : > { %v523_v30 = vpack.c.bf16 %v496_v12, %v492_v57 }
 0x34c   : > { %v4991_v3 = vpop.f32.mrb[56].mxu1 }
 0x34d   : > { %v931_v19 = vmax.f32 %v929_v40, %v4991_v3  ;;  %v4994_v24 = vpop.f32.mrb[57].mxu1  ;;  %531 = vst [vmem:[#allocation3 + $0x10] sm:$0xff] %v523_v30 }
 0x34e   : > { %7825 = vst [vmem:[#allocation28_spill] sm:$0xff] %v4994_v24  ;;  %v968_v28 = vmax.f32 %v966_v20, %v4994_v24  ;;  %v4997_v1 = vpop.f32.mrb[58].mxu1 }
 0x34f   : > { %v932_v33 = vmax.f32 %v930_v53, %v4997_v1  ;;  %v5000_v32 = vpop.f32.mrb[59].mxu1 }
 0x350   : > { %7826 = vst [vmem:[#allocation29_spill] sm:$0xff] %v5000_v32  ;;  %v969_v34 = vmax.f32 %v967_v61, %v5000_v32  ;;  %v498_v61 = vpop.f32.mrb[7].mxu0 }
 0x351   : > { %v502_v41 = vpop.f32.mrb[8].mxu0 }
 0x352   : > { %v504_v37 = vpop.f32.mrb[9].mxu0 }
 0x354   : > { %v5003_v8 = vpop.f32.mrb[60].mxu1  ;;  %v2046_v57 = vld [vmem:[#allocation3 + $0x10] sm:$0xf] }
 0x355   : > { %v933_v36 = vmax.f32 %v931_v19, %v5003_v8  ;;  %v5006_v4 = vpop.f32.mrb[61].mxu1  ;;  %v524_v19 = vpack.c.bf16 %v498_v61, %v494_v44  ;;  %2050 = vxpose.xlu0.c.b16.start.end [1/1] (short) %v2046_v57, 128 }
 0x356   : > { %7827 = vst [vmem:[#allocation30_spill] sm:$0xff] %v5006_v4  ;;  %v970_v40 = vmax.f32 %v968_v28, %v5006_v4  ;;  %v5009_v0 = vpop.f32.mrb[62].mxu1 }
 0x357   : > { %v934_v20 = vmax.f32 %v932_v33, %v5009_v0  ;;  %v5012_v24 = vpop.f32.mrb[63].mxu1  ;;  %532 = vst [vmem:[#allocation3 + $0x18] sm:$0xff] %v524_v19 }
 0x358   : > { %7828 = vst [vmem:[#allocation31_spill] sm:$0xff] %v5012_v24  ;;  %v971_v53 = vmax.f32 %v969_v34, %v5012_v24 }
 0x35c   : > { %v5015_v32 = vpop.f32.mrb[64].mxu1 }
 0x35d   : > { %v935_v22 = vmax.f32 %v933_v36, %v5015_v32  ;;  %v5018_v63 = vpop.f32.mrb[65].mxu1 }
 0x35e   : > { %7829 = vst [vmem:[#allocation32_spill] sm:$0xff] %v5018_v63  ;;  %v972_v28 = vmax.f32 %v970_v40, %v5018_v63  ;;  %v5021_v4 = vpop.f32.mrb[66].mxu1  ;;  %v2047_v36 = vld [vmem:[#allocation3 + $0x18] sm:$0xf] }
 0x35f   : > { %v936_v33 = vmax.f32 %v934_v20, %v5021_v4  ;;  %v5024_v34 = vpop.f32.mrb[67].mxu1  ;;  %2066 = vxpose.xlu1.c.b16.start.end [1/1] (short) %v2047_v36, 128  ;;  %v506_v36 = vpop.f32.mrb[10].mxu0 }
 0x360   : > { %7830 = vst [vmem:[#allocation33_spill] sm:$0xff] %v5024_v34  ;;  %v973_v24 = vmax.f32 %v971_v53, %v5024_v34  ;;  %v525_v7 = vpack.c.bf16 %v506_v36, %v502_v41  ;;  %v508_v6 = vpop.f32.mrb[11].mxu0 }
 0x362   : > { %533 = vst [vmem:[#allocation3 + $0x20] sm:$0xff] %v525_v7 }
 0x364   : > { %v5027_v55 = vpop.f32.mrb[68].mxu1 }
 0x365   : > { %v937_v12 = vmax.f32 %v935_v22, %v5027_v55  ;;  %v5030_v44 = vpop.f32.mrb[69].mxu1 }
 0x366   : > { %7831 = vst [vmem:[#allocation34_spill] sm:$0xff] %v5030_v44  ;;  %v974_v40 = vmax.f32 %v972_v28, %v5030_v44  ;;  %v5033_v61 = vpop.f32.mrb[70].mxu1  ;;  %v3896_v28 = vld [vmem:[%s7611_s2 + $0x18] sm:$0xff]  }
 0x367   : > { %v938_v30 = vmax.f32 %v936_v33, %v5033_v61  ;;  %v5036_v20 = vpop.f32.mrb[71].mxu1  ;;  %3727 = vmatmul.mubr.msk.bf16.gmra.mrb[12].mxu0 %vm435_vm0, %v3896_v28 }
 0x368   : > { %7832 = vst [vmem:[#allocation35_spill] sm:$0xff] %v5036_v20  ;;  %v975_v53 = vmax.f32 %v973_v24, %v5036_v20 }
 0x369   : > { %v939_v19 = vmax.f32 %v937_v12, %v938_v30  ;;  %v526_v12 = vpack.c.bf16 %v508_v6, %v504_v37 }
 0x36a   : > { %v976_v34 = vmax.f32 %v974_v40, %v975_v53  ;;  %v2749_v53 = vld [vmem:[#allocation3 + $0x18] sm:$0xf0] }
 0x36b   : > { %v940_v63 = vrot.slane %v939_v19, 4  ;;  %534 = vst [vmem:[#allocation3 + $0x28] sm:$0xff] %v526_v12  ;;  %v2755_v29 = vrot.slane %v2749_v53, 4 }
 0x36c   : > { %v977_v22 = vrot.slane %v976_v34, 4 }
 0x36d   : > { %v941_v47 = vmax.f32 %v939_v19, %v940_v63  ;;  %v2748_v63 = vld [vmem:[#allocation3 + $0x10] sm:$0xf0] }
 0x36e   : > { %v978_v44 = vmax.f32 %v976_v34, %v977_v22  ;;  %v2754_v22 = vrot.slane %v2748_v63, 4 }
 0x36f   : > { %v942_v57 = vrot.slane %v941_v47, 2 }
 0x370   : > { %v979_v33 = vrot.slane %v978_v44, 2 }
 0x371   : > { %v943_v24 = vmax.f32 %v941_v47, %v942_v57 }
 0x372   : > { %v980_v40 = vmax.f32 %v978_v44, %v979_v33  ;;  %v627_v57 = vld [vmem:[#allocation3 + $0x28] sm:$0xf]  ;;  %2758 = vxpose.xlu0.c.b16.start.end [1/1] (short) %v2754_v22, 128 }
 0x373   : > { %v944_v30 = vrot.slane %v943_v24, 1  ;;  %1315 = vmatprep.mubr.bf16.mxu0 %v627_v57 }
 0x374   : > { %v981_v19 = vrot.slane %v980_v40, 1 }
 0x375   : > { %v5043_v20 = vmax.f32 %v943_v24, %v944_v30 }
 0x376   : > { %v5045_v34 = vmax.f32 %v980_v40, %v981_v19 }
 0x377   : > { %v983_v28 = vsub.f32 %v4847_v42, %v5043_v20  ;;  %v985_v41 = vsub.f32 %v4851_v43, %v5043_v20  ;;  %v987_v6 = vsub.f32 %v4855_v16, %v5043_v20  ;;  %v989_v7 = vsub.f32 %v4863_v18, %v5043_v20 }
 0x378   : > { %v991_v37 = vsub.f32 %v4871_v48, %v5043_v20  ;;  %v993_v47 = vsub.f32 %v4877_v52, %v5043_v20  ;;  %v995_v44 = vsub.f32 %v4883_v56, %v5043_v20  ;;  %v997_v42 = vsub.f32 %v4889_v60, %v5043_v20 }
 0x379   : > { %v999_v43 = vsub.f32 %v4895_v2, %v5043_v20  ;;  %v1001_v16 = vsub.f32 %v4901_v17, %v5043_v20  ;;  %v1003_v18 = vsub.f32 %v4907_v23, %v5043_v20  ;;  %v1005_v48 = vsub.f32 %v4913_v27, %v5043_v20 }
 0x37a   : > { %v1007_v52 = vsub.f32 %v4919_v31, %v5043_v20  ;;  %v1009_v56 = vsub.f32 %v4925_v9, %v5043_v20  ;;  %v1011_v60 = vsub.f32 %v4931_v35, %v5043_v20  ;;  %v1013_v2 = vsub.f32 %v4937_v39, %v5043_v20 }
 0x37b   : > { %v1015_v17 = vsub.f32 %v4943_v15, %v5043_v20  ;;  %v1017_v23 = vsub.f32 %v4949_v51, %v5043_v20  ;;  %v1019_v27 = vsub.f32 %v4955_v59, %v5043_v20  ;;  %v1021_v31 = vsub.f32 %v4961_v14, %v5043_v20  ;;  %v7852_v59 = vld [vmem:[#allocation34_spill] sm:$0xff] }
 0x37c   : > { %v1023_v9 = vsub.f32 %v4967_v26, %v5043_v20  ;;  %v1025_v35 = vsub.f32 %v4973_v11, %v5043_v20  ;;  %v1027_v39 = vsub.f32 %v4979_v38, %v5043_v20  ;;  %v1029_v15 = vsub.f32 %v4985_v49, %v5043_v20  ;;  %2774 = vxpose.xlu1.c.b16.start.end [1/1] (short) %v2755_v29, 128 }
 0x37d   : > { %v1047_v33 = vmul.f32 1.442695, %v983_v28  ;;  %v1051_v24 = vmul.f32 1.442695, %v985_v41  ;;  %v1055_v12 = vmul.f32 1.442695, %v987_v6 }
 0x37e   : > { %v1059_v30 = vmul.f32 1.442695, %v989_v7  ;;  %v1063_v53 = vmul.f32 1.442695, %v991_v37  ;;  %v1067_v19 = vmul.f32 1.442695, %v993_v47 }
 0x37f   : > { %3903 = vpow2.f32 %v1047_v33  ;;  %v1071_v57 = vmul.f32 1.442695, %v995_v44  ;;  %v1075_v36 = vmul.f32 1.442695, %v997_v42  ;;  %v1079_v28 = vmul.f32 1.442695, %v999_v43 }
 0x380   : > { %3905 = vpow2.f32 %v1051_v24  ;;  %v1083_v41 = vmul.f32 1.442695, %v1001_v16  ;;  %v1087_v6 = vmul.f32 1.442695, %v1003_v18  ;;  %v1091_v49 = vmul.f32 1.442695, %v1005_v48 }
 0x381   : > { %3907 = vpow2.f32 %v1055_v12  ;;  %v1095_v40 = vmul.f32 1.442695, %v1007_v52  ;;  %v1099_v7 = vmul.f32 1.442695, %v1009_v56  ;;  %v1103_v38 = vmul.f32 1.442695, %v1011_v60 }
 0x382   : > { %3909 = vpow2.f32 %v1059_v30  ;;  %v1107_v63 = vmul.f32 1.442695, %v1013_v2  ;;  %v1111_v37 = vmul.f32 1.442695, %v1015_v17  ;;  %v1115_v33 = vmul.f32 1.442695, %v1017_v23 }
 0x383   : > { %3911 = vpow2.f32 %v1063_v53  ;;  %v1119_v47 = vmul.f32 1.442695, %v1019_v27  ;;  %v1123_v44 = vmul.f32 1.442695, %v1021_v31  ;;  %v1127_v22 = vmul.f32 1.442695, %v1023_v9 }
 0x384   : > { %3913 = vpow2.f32 %v1067_v19  ;;  %v5115_v29 = vmul.f32 1.442695, %v1025_v35  ;;  %v5117_v42 = vmul.f32 1.442695, %v1027_v39  ;;  %v5119_v43 = vmul.f32 1.442695, %v1029_v15 }
 0x385   : > { %3915 = vpow2.f32 %v1071_v57  ;;  %v7833_v9 = vld [vmem:[#allocation15_spill] sm:$0xff]  ;;  %v7836_v53 = vld [vmem:[#allocation18_spill] sm:$0xff]  ;;  %v7839_v35 = vld [vmem:[#allocation21_spill] sm:$0xff] }
 0x386   : > { %3917 = vpow2.f32 %v1075_v36  ;;  %v7834_v36 = vld [vmem:[#allocation16_spill] sm:$0xff]  ;;  %v7837_v57 = vld [vmem:[#allocation19_spill] sm:$0xff]  ;;  %v7840_v31 = vld [vmem:[#allocation22_spill] sm:$0xff] }
 0x387   : > { %3919 = vpow2.f32 %v1079_v28  ;;  %v7841_v19 = vld [vmem:[#allocation23_spill] sm:$0xff]  ;;  %v7842_v17 = vld [vmem:[#allocation24_spill] sm:$0xff]  ;;  %v7843_v2 = vld [vmem:[#allocation25_spill] sm:$0xff] }
 0x388   : > { %3921 = vpow2.f32 %v1083_v41  ;;  %v7844_v12 = vld [vmem:[#allocation26_spill] sm:$0xff]  ;;  %v7845_v52 = vld [vmem:[#allocation27_spill] sm:$0xff]  ;;  %v7846_v28 = vld [vmem:[#allocation28_spill] sm:$0xff] }
 0x389   : > { %v5129_v56 = vpop.eup %3903  ;;  %3923 = vpow2.f32 %v1087_v6  ;;  %v7847_v18 = vld [vmem:[#allocation29_spill] sm:$0xff] }
 0x38a   : > { %v5137_v23 = vpop.eup %3905  ;;  %3925 = vpow2.f32 %v1091_v49  ;;  %v7835_v49 = vld [vmem:[#allocation17_spill] sm:$0xff] }
 0x38b   : > { %v5145_v39 = vpop.eup %3907  ;;  %3927 = vpow2.f32 %v1095_v40  ;;  %v1175_v15 = vadd.f32 %v5137_v23, %v5129_v56  ;;  %v7838_v40 = vld [vmem:[#allocation20_spill] sm:$0xff]  ;;  %v7851_v41 = vld [vmem:[#allocation33_spill] sm:$0xff] }
 0x38c   : > { %v5153_v30 = vpop.eup %3909  ;;  %3929 = vpow2.f32 %v1099_v7  ;;  %v7849_v7 = vld [vmem:[#allocation31_spill] sm:$0xff] }
 0x38d   : > { %v5161_v6 = vpop.eup %3911  ;;  %3931 = vpow2.f32 %v1103_v38  ;;  %v1176_v24 = vadd.f32 %v5145_v39, %v1175_v15 }
 0x38e   : > { %v5168_v27 = vpop.eup %3913  ;;  %3933 = vpow2.f32 %v1107_v63 }
 0x38f   : > { %v5176_v60 = vpop.eup %3915  ;;  %3935 = vpow2.f32 %v1111_v37  ;;  %v1177_v15 = vadd.f32 %v5153_v30, %v1176_v24 }
 0x390   : > { %v5183_v48 = vpop.eup %3917  ;;  %3937 = vpow2.f32 %v1115_v33 }
 0x391   : > { %v5191_v11 = vpop.eup %3919  ;;  %3939 = vpow2.f32 %v1119_v47  ;;  %v1178_v24 = vadd.f32 %v5161_v6, %v1177_v15  ;;  %v7854_v15 = vsub.f32 %v4991_v3, %v5043_v20 }
 0x392   : > { %v5198_v14 = vpop.eup %3921  ;;  %3941 = vpow2.f32 %v1123_v44  ;;  %v7855_v44 = vsub.f32 %v4997_v1, %v5043_v20 }
 0x393   : > { %v5206_v16 = vpop.eup %3923  ;;  %3943 = vpow2.f32 %v1127_v22  ;;  %v1143_v63 = vmul.f32 1.442695, %v7854_v15  ;;  %v1179_v33 = vadd.f32 %v5168_v27, %v1178_v24  ;;  %v7856_v22 = vsub.f32 %v5003_v8, %v5043_v20 }
 0x394   : > { %v5212_v26 = vpop.eup %3925  ;;  %3945 = vpow2.f32 %v5115_v29  ;;  %v1147_v37 = vmul.f32 1.442695, %v7855_v44  ;;  %v7857_v29 = vsub.f32 %v5009_v0, %v5043_v20  ;;  %v7861_v0 = vsub.f32 %v5027_v55, %v5043_v20 }
 0x395   : > { %v5218_v38 = vpop.eup %3927  ;;  %3947 = vpow2.f32 %v5117_v42  ;;  %v1151_v47 = vmul.f32 1.442695, %v7856_v22  ;;  %v1180_v3 = vadd.f32 %v5176_v60, %v1179_v33  ;;  %v7858_v42 = vsub.f32 %v5015_v32, %v5043_v20 }
 0x396   : > { %v5225_v15 = vpop.eup %3929  ;;  %3949 = vpow2.f32 %v5119_v43  ;;  %v1155_v24 = vmul.f32 1.442695, %v7857_v29  ;;  %v7859_v33 = vsub.f32 %v5021_v4, %v5043_v20 }
 0x397   : > { %v5231_v1 = vpop.eup %3931  ;;  %3951 = vpow2.f32 %v1143_v63  ;;  %v1159_v44 = vmul.f32 1.442695, %v7858_v42  ;;  %v1181_v8 = vadd.f32 %v5183_v48, %v1180_v3  ;;  %v1167_v63 = vmul.f32 1.442695, %v7861_v0 }
 0x398   : > { %v5237_v22 = vpop.eup %3933  ;;  %3953 = vpow2.f32 %v1147_v37  ;;  %v1163_v43 = vmul.f32 1.442695, %v7859_v33  ;;  %v7862_v3 = vsub.f32 %v5033_v61, %v5043_v20  ;;  %v7865_v61 = vsub.f32 %v4859_v45, %v5045_v34 }
 0x399   : > { %v5242_v51 = vpop.eup %3935  ;;  %3955 = vpow2.f32 %v1151_v47  ;;  %v1182_v29 = vadd.f32 %v5191_v11, %v1181_v8  ;;  %v7863_v47 = vsub.f32 %v4849_v13, %v5045_v34  ;;  %v7864_v8 = vsub.f32 %v4853_v10, %v5045_v34 }
 0x39a   : > { %7860 = vst [vmem:[#allocation15_spill] sm:$0xff] %v5242_v51  ;;  %v5248_v32 = vpop.eup %3937  ;;  %3957 = vpow2.f32 %v1155_v24  ;;  %v1171_v37 = vmul.f32 1.442695, %v7862_v3  ;;  %v1057_v20 = vmul.f32 1.442695, %v7865_v61  ;;  %v7868_v10 = vsub.f32 %v4880_v54, %v5045_v34 }
 0x39b   : > { %v5253_v42 = vpop.eup %3939  ;;  %3959 = vpow2.f32 %v1159_v44  ;;  %v1183_v4 = vadd.f32 %v5198_v14, %v1182_v29  ;;  %v1049_v33 = vmul.f32 1.442695, %v7863_v47  ;;  %v1053_v24 = vmul.f32 1.442695, %v7864_v8 }
 0x39c   : > { %v5259_v55 = vpop.eup %3941  ;;  %3961 = vpow2.f32 %v1163_v43  ;;  %v7866_v44 = vsub.f32 %v4867_v46, %v5045_v34  ;;  %v7867_v43 = vsub.f32 %v4874_v50, %v5045_v34  ;;  %v1069_v47 = vmul.f32 1.442695, %v7868_v10 }
 0x39d   : > { %v5270_v29 = vpop.eup %3943  ;;  %3963 = vpow2.f32 %v1167_v63  ;;  %v1184_v13 = vadd.f32 %v5206_v16, %v1183_v4  ;;  %v7869_v45 = vsub.f32 %v4886_v58, %v5045_v34  ;;  %v7870_v63 = vsub.f32 %v4892_v62, %v5045_v34 }
 0x39e   : > { %v1061_v0 = vmul.f32 1.442695, %v7866_v44  ;;  %v1065_v3 = vmul.f32 1.442695, %v7867_v43  ;;  %v5279_v8 = vpop.eup %3945  ;;  %3965 = vpow2.f32 %v1171_v37  ;;  %v7871_v4 = vsub.f32 %v4898_v5, %v5045_v34 }
 0x39f   : > { %v1073_v46 = vmul.f32 1.442695, %v7869_v45  ;;  %v1077_v61 = vmul.f32 1.442695, %v7870_v63  ;;  %v5290_v44 = vpop.eup %3947  ;;  %v1185_v54 = vadd.f32 %v5212_v26, %v1184_v13  ;;  %3967 = vpow2.f32 %v1049_v33 }
 0x3a0   : > { %v1081_v50 = vmul.f32 1.442695, %v7871_v4  ;;  %v7872_v37 = vsub.f32 %v4904_v21, %v5045_v34  ;;  %v7873_v58 = vsub.f32 %v4910_v25, %v5045_v34  ;;  %v5299_v45 = vpop.eup %3949  ;;  %3969 = vpow2.f32 %v1053_v24 }
 0x3a1   : > { %v5307_v13 = vpop.eup %3951  ;;  %v1186_v21 = vadd.f32 %v5218_v38, %v1185_v54  ;;  %3971 = vpow2.f32 %v1057_v20  ;;  %v1331_v54 = vld [vmem:[#allocation3 + $0x28] sm:$0xf0] }
 0x3a2   : > { %v1085_v43 = vmul.f32 1.442695, %v7872_v37  ;;  %v1089_v10 = vmul.f32 1.442695, %v7873_v58  ;;  %v5314_v63 = vpop.eup %3953  ;;  %3973 = vpow2.f32 %v1061_v0  ;;  %v1998_v24 = vrot.slane %v1331_v54, 4 }
 0x3a3   : > { %v5322_v20 = vpop.eup %3955  ;;  %v1187_v25 = vadd.f32 %v5225_v15, %v1186_v21  ;;  %3975 = vpow2.f32 %v1065_v3 }
 0x3a4   : > { %v5329_v33 = vpop.eup %3957  ;;  %3977 = vpow2.f32 %v1069_v47  ;;  %v7874_v47 = vsub.f32 %v7833_v9, %v5045_v34  ;;  %2033 = vmatprep.mubr.bf16.mxu1 %v1998_v24  ;;  %v7876_v9 = vsub.f32 %v7835_v49, %v5045_v34  ;;  %v7879_v49 = vsub.f32 %v7838_v40, %v5045_v34 }
 0x3a5   : > { %v5337_v21 = vpop.eup %3959  ;;  %v1188_v3 = vadd.f32 %v5231_v1, %v1187_v25  ;;  %3979 = vpow2.f32 %v1073_v46  ;;  %v7875_v25 = vsub.f32 %v7834_v36, %v5045_v34 }
 0x3a6   : > { %v5342_v5 = vpop.eup %3961  ;;  %3981 = vpow2.f32 %v1077_v61  ;;  %v1093_v37 = vmul.f32 1.442695, %v7874_v47  ;;  %v1101_v61 = vmul.f32 1.442695, %v7876_v9  ;;  %v1113_v9 = vmul.f32 1.442695, %v7879_v49 }
 0x3a7   : > { %v5347_v58 = vpop.eup %3963  ;;  %v1189_v4 = vadd.f32 %v5237_v22, %v1188_v3  ;;  %3983 = vpow2.f32 %v1081_v50  ;;  %v1097_v46 = vmul.f32 1.442695, %v7875_v25  ;;  %v7877_v50 = vsub.f32 %v7836_v53, %v5045_v34 }
 0x3a8   : > { %v5355_v54 = vpop.eup %3965  ;;  %3985 = vpow2.f32 %v1085_v43  ;;  %v7878_v43 = vsub.f32 %v7837_v57, %v5045_v34  ;;  %v7880_v3 = vsub.f32 %v7839_v35, %v5045_v34  ;;  %v7881_v57 = vsub.f32 %v7840_v31, %v5045_v34 }
 0x3a9   : > { %v3968_v47 = vpop.eup %3967  ;;  %v1190_v62 = vadd.f32 %v5242_v51, %v1189_v4  ;;  %3987 = vpow2.f32 %v1089_v10  ;;  %v1105_v36 = vmul.f32 1.442695, %v7877_v50  ;;  %v7883_v35 = vsub.f32 %v7842_v17, %v5045_v34 }
 0x3aa   : > { %v3970_v25 = vpop.eup %3969  ;;  %3989 = vpow2.f32 %v1093_v37  ;;  %v1109_v24 = vmul.f32 1.442695, %v7878_v43  ;;  %v1117_v37 = vmul.f32 1.442695, %v7880_v3  ;;  %v1121_v43 = vmul.f32 1.442695, %v7881_v57 }
 0x3ab   : > { %v3972_v0 = vpop.eup %3971  ;;  %v1191_v10 = vadd.f32 %v5248_v32, %v1190_v62  ;;  %3991 = vpow2.f32 %v1097_v46  ;;  %v1212_v4 = vadd.f32 %v3970_v25, %v3968_v47  ;;  %v1252_v53 = vpack.c.bf16 %v3970_v25, %v3968_v47 }
 0x3ac   : > { %v3974_v50 = vpop.eup %3973  ;;  %3993 = vpow2.f32 %v1101_v61  ;;  %v7882_v61 = vsub.f32 %v7841_v19, %v5045_v34  ;;  %v1129_v3 = vmul.f32 1.442695, %v7883_v35  ;;  %v7884_v31 = vpack.c.bf16 %v5137_v23, %v5129_v56 }
 0x3ad   : > { %v3976_v51 = vpop.eup %3975  ;;  %v1192_v40 = vadd.f32 %v5253_v42, %v1191_v10  ;;  %3995 = vpow2.f32 %v1105_v36  ;;  %v1213_v49 = vadd.f32 %v3972_v0, %v1212_v4  ;;  %1283 = vmatprep.subr.bf16.mxu0 %v1252_v53  ;;  %v1254_v62 = vpack.c.bf16 %v3974_v50, %v3972_v0 }
 0x3ae   : > { %v3978_v46 = vpop.eup %3977  ;;  %3997 = vpow2.f32 %v1109_v24  ;;  %v1125_v47 = vmul.f32 1.442695, %v7882_v61  ;;  %1284 = vmatpush1.bf16.msra.mxu0 %v7884_v31  ;;  %v7885_v19 = vsub.f32 %v7843_v2, %v5045_v34  ;;  %v7886_v17 = vsub.f32 %v7844_v12, %v5045_v34  ;;  %v7891_v31 = vld [vmem:[#allocation30_spill] sm:$0xff] }
 0x3af   : > { %v3980_v25 = vpop.eup %3979  ;;  %v1193_v36 = vadd.f32 %v5259_v55, %v1192_v40  ;;  %3999 = vpow2.f32 %v1113_v9  ;;  %v1214_v10 = vadd.f32 %v3974_v50, %v1213_v49  ;;  %1285 = vmatprep.subr.bf16.mxu0 %v1254_v62  ;;  %v1256_v0 = vpack.c.bf16 %v3978_v46, %v3976_v51 }
 0x3b0   : > { %v3982_v24 = vpop.eup %3981  ;;  %4001 = vpow2.f32 %v1117_v37  ;;  %v1133_v4 = vmul.f32 1.442695, %v7885_v19  ;;  %v1137_v53 = vmul.f32 1.442695, %v7886_v17  ;;  %v7887_v50 = vsub.f32 %v7845_v52, %v5045_v34 }
 0x3b1   : > { %v3984_v57 = vpop.eup %3983  ;;  %v1194_v56 = vadd.f32 %v5270_v29, %v1193_v36  ;;  %4003 = vpow2.f32 %v1121_v43  ;;  %v1215_v23 = vadd.f32 %v3976_v51, %v1214_v10  ;;  %v1258_v40 = vpack.c.bf16 %v3982_v24, %v3980_v25 }
 0x3b2   : > { %v3986_v9 = vpop.eup %3985  ;;  %4005 = vpow2.f32 %v1125_v47  ;;  %v1141_v37 = vmul.f32 1.442695, %v7887_v50  ;;  %v7888_v2 = vsub.f32 %v7846_v28, %v5045_v34  ;;  %v7889_v12 = vpack.c.bf16 %v5153_v30, %v5145_v39 }
 0x3b3   : > { %v3988_v62 = vpop.eup %3987  ;;  %v1195_v61 = vadd.f32 %v5279_v8, %v1194_v56  ;;  %4007 = vpow2.f32 %v1129_v3  ;;  %v1216_v51 = vadd.f32 %v3978_v46, %v1215_v23  ;;  %v1260_v43 = vpack.c.bf16 %v3986_v9, %v3984_v57 }
 0x3b4   : > { %v1145_v49 = vmul.f32 1.442695, %v7888_v2  ;;  %1286 = vmatpush1.bf16.msra.mxu0 %v7889_v12  ;;  %v3990_v47 = vpop.eup %3989  ;;  %4009 = vpow2.f32 %v1133_v4  ;;  %v7890_v52 = vsub.f32 %v7847_v18, %v5045_v34  ;;  %v7892_v28 = vsub.f32 %v7891_v31, %v5045_v34  ;;  %v7894_v4 = vld [vmem:[#allocation32_spill] sm:$0xff] }
 0x3b5   : > { %1287 = vmatprep.subr.bf16.mxu0 %v1256_v0  ;;  %v3992_v10 = vpop.eup %3991  ;;  %v1196_v39 = vadd.f32 %v5290_v44, %v1195_v61  ;;  %4011 = vpow2.f32 %v1137_v53  ;;  %v1217_v30 = vadd.f32 %v3980_v25, %v1216_v51  ;;  %v1262_v19 = vpack.c.bf16 %v3990_v47, %v3988_v62 }
 0x3b6   : > { %v1149_v35 = vmul.f32 1.442695, %v7890_v52  ;;  %v1153_v36 = vmul.f32 1.442695, %v7892_v28  ;;  %v3994_v3 = vpop.eup %3993  ;;  %4013 = vpow2.f32 %v1141_v37  ;;  %v7893_v46 = vsub.f32 %v7849_v7, %v5045_v34 }
 0x3b7   : > { %v7895_v18 = vsub.f32 %v7894_v4, %v5045_v34  ;;  %v7896_v56 = vpack.c.bf16 %v5168_v27, %v5161_v6  ;;  %v3996_v23 = vpop.eup %3995  ;;  %v1197_v50 = vadd.f32 %v5299_v45, %v1196_v39  ;;  %4015 = vpow2.f32 %v1145_v49 }
 0x3b8   : > { %v1157_v0 = vmul.f32 1.442695, %v7893_v46  ;;  %v1218_v25 = vadd.f32 %v3982_v24, %v1217_v30  ;;  %v1264_v53 = vpack.c.bf16 %v3994_v3, %v3992_v10  ;;  %v3998_v37 = vpop.eup %3997  ;;  %4017 = vpow2.f32 %v1149_v35  ;;  %v7899_v24 = vld [vmem:[#allocation35_spill] sm:$0xff] }
 0x3b9   : > { %v1161_v17 = vmul.f32 1.442695, %v7895_v18  ;;  %1288 = vmatpush1.bf16.msra.mxu0 %v7896_v56  ;;  %v7897_v7 = vsub.f32 %v7851_v41, %v5045_v34  ;;  %v7898_v12 = vsub.f32 %v7852_v59, %v5045_v34  ;;  %v4000_v51 = vpop.eup %3999  ;;  %v1198_v27 = vadd.f32 %v5307_v13, %v1197_v50 }
 0x3ba   : > { %1289 = vmatprep.subr.bf16.mxu0 %v1258_v40  ;;  %4019 = vpow2.f32 %v1153_v36  ;;  %v1219_v6 = vadd.f32 %v3984_v57, %v1218_v25  ;;  %v1266_v52 = vpack.c.bf16 %v3998_v37, %v3996_v23  ;;  %v4002_v49 = vpop.eup %4001  ;;  %v7900_v40 = vsub.f32 %v7899_v24, %v5045_v34 }
 0x3bb   : > { %v1165_v2 = vmul.f32 1.442695, %v7897_v7  ;;  %v1169_v61 = vmul.f32 1.442695, %v7898_v12  ;;  %4021 = vpow2.f32 %v1157_v0  ;;  %v7901_v41 = vpack.c.bf16 %v5183_v48, %v5176_v60  ;;  %v4004_v31 = vpop.eup %4003 }
 0x3bc   : > { %v1173_v35 = vmul.f32 1.442695, %v7900_v40  ;;  %v1199_v59 = vadd.f32 %v5314_v63, %v1198_v27  ;;  %4023 = vpow2.f32 %v1161_v17  ;;  %v1220_v28 = vadd.f32 %v3986_v9, %v1219_v6  ;;  %v4006_v36 = vpop.eup %4005 }
 0x3bd   : > { %1290 = vmatpush1.bf16.msra.mxu0 %v7901_v41  ;;  %v1268_v39 = vpack.c.bf16 %v4002_v49, %v4000_v51  ;;  %4025 = vpow2.f32 %v1165_v2  ;;  %v4008_v57 = vpop.eup %4007  ;;  %v1270_v34 = vpack.c.bf16 %v4006_v36, %v4004_v31  ;;  %v7902_v48 = vpack.c.bf16 %v5198_v14, %v5191_v11 }
 0x3be   : > { %1291 = vmatprep.subr.bf16.mxu0 %v1260_v43  ;;  %v1200_v30 = vadd.f32 %v5322_v20, %v1199_v59  ;;  %4027 = vpow2.f32 %v1169_v61  ;;  %v1221_v46 = vadd.f32 %v3988_v62, %v1220_v28  ;;  %v4010_v0 = vpop.eup %4009  ;;  %v7903_v7 = vpack.c.bf16 %v5212_v26, %v5206_v16 }
 0x3bf   : > { %4029 = vpow2.f32 %v1173_v35  ;;  %v4012_v60 = vpop.eup %4011  ;;  %v1272_v43 = vpack.c.bf16 %v4010_v0, %v4008_v57  ;;  %v7905_v59 = vpack.c.bf16 %v5237_v22, %v5231_v1  ;;  %v7909_v1 = vpack.c.bf16 %v5279_v8, %v5270_v29 }
 0x3c0   : > { %v1201_v4 = vadd.f32 %v5329_v33, %v1200_v30  ;;  %v1222_v9 = vadd.f32 %v3990_v47, %v1221_v46  ;;  %v4014_v18 = vpop.eup %4013  ;;  %v7912_v29 = vpack.c.bf16 %v5329_v33, %v5322_v20  ;;  %v626_v33 = vld [vmem:[#allocation3 + $0x20] sm:$0xf] }
 0x3c1   : > { %1292 = vmatpush1.bf16.msra.mxu0 %v7902_v48  ;;  %v4016_v17 = vpop.eup %4015  ;;  %v1274_v25 = vpack.c.bf16 %v4014_v18, %v4012_v60  ;;  %v7916_v48 = vpack.c.bf16 %v5355_v54, %v5347_v58 }
 0x3c2   : > { %1293 = vmatprep.subr.bf16.mxu0 %v1262_v19  ;;  %v1202_v56 = vadd.f32 %v5337_v21, %v1201_v4  ;;  %v1223_v50 = vadd.f32 %v3992_v10, %v1222_v9  ;;  %v4018_v62 = vpop.eup %4017  ;;  %v7904_v10 = vpack.c.bf16 %v5225_v15, %v5218_v38  ;;  %v7906_v38 = vld [vmem:[#allocation15_spill] sm:$0xff] }
 0x3c3   : > { %v1276_v12 = vpack.c.bf16 %v4018_v62, %v4016_v17  ;;  %v7907_v15 = vpack.c.bf16 %v5248_v32, %v7906_v38  ;;  %v7910_v32 = vpack.c.bf16 %v5299_v45, %v5290_v44  ;;  %v7913_v44 = vpack.c.bf16 %v5342_v5, %v5337_v21  ;;  %v1346_v21 = vpop.trf.xlu0 }
 0x3c4   : > { %v4020_v2 = vpop.eup %4019  ;;  %v1203_v14 = vadd.f32 %v5342_v5, %v1202_v56  ;;  %v1224_v11 = vadd.f32 %v3994_v3, %v1223_v50  ;;  %v7917_v5 = vmov 0  }
 0x3c5   : > { %1294 = vmatpush1.bf16.msra.mxu0 %v7903_v7  ;;  %v4022_v47 = vpop.eup %4021 }
 0x3c6   : > { %1295 = vmatprep.subr.bf16.mxu0 %v1264_v53  ;;  %v4024_v19 = vpop.eup %4023  ;;  %v1204_v61 = vadd.f32 %v5347_v58, %v1203_v14  ;;  %v1225_v27 = vadd.f32 %v3996_v23, %v1224_v11  ;;  %v1278_v6 = vpack.c.bf16 %v4022_v47, %v4020_v2 }
 0x3c7   : > { %v4026_v24 = vpop.eup %4025 }
 0x3c8   : > { %v4028_v40 = vpop.eup %4027  ;;  %v5453_v26 = vadd.f32 %v5355_v54, %v1204_v61  ;;  %v1226_v16 = vadd.f32 %v3998_v37, %v1225_v27  ;;  %v1280_v3 = vpack.c.bf16 %v4026_v24, %v4024_v19  ;;  %v7908_v37 = vpack.c.bf16 %v5259_v55, %v5253_v42 }
 0x3c9   : > { %1296 = vmatpush1.bf16.msra.mxu0 %v7904_v10  ;;  %v4030_v53 = vpop.eup %4029  ;;  %v7911_v42 = vpack.c.bf16 %v5314_v63, %v5307_v13  ;;  %v7915_v63 = vld [vmem:[#allocation12_spill] sm:$0xff] }
 0x3ca   : > { %1297 = vmatprep.subr.bf16.mxu0 %v1266_v52  ;;  %v1227_v35 = vadd.f32 %v4000_v51, %v1226_v16  ;;  %v1282_v41 = vpack.c.bf16 %v4030_v53, %v4028_v40 }
 0x3cc   : > { %v1228_v23 = vadd.f32 %v4002_v49, %v1227_v35 }
 0x3cd   : > { %1298 = vmatpush1.bf16.msra.mxu0 %v7905_v59 }
 0x3ce   : > { %1299 = vmatprep.subr.bf16.mxu0 %v1268_v39  ;;  %v1229_v28 = vadd.f32 %v4004_v31, %v1228_v23 }
 0x3d0   : > { %v1230_v30 = vadd.f32 %v4006_v36, %v1229_v28 }
 0x3d1   : > { %1300 = vmatpush1.bf16.msra.mxu0 %v7907_v15 }
 0x3d2   : > { %1301 = vmatprep.subr.bf16.mxu0 %v1270_v34  ;;  %v1231_v46 = vadd.f32 %v4008_v57, %v1230_v30  ;;  %v7914_v34 = vld [vmem:[#allocation11_spill] sm:$0xff] }
 0x3d3   : > { %v1372_v13 = vrot.slane %v7914_v34, 4 }
 0x3d4   : > { %v1232_v51 = vadd.f32 %v4010_v0, %v1231_v46  ;;  %v1373_v0 = vrot.slane %v7915_v63, 4 }
 0x3d5   : > { %1302 = vmatpush1.bf16.msra.mxu0 %v7908_v37  ;;  %v1423_v20 = vsel %vm709_vm1, %v1372_v13, 0 }
 0x3d6   : > { %1303 = vmatprep.subr.bf16.mxu0 %v1272_v43  ;;  %v1233_v52 = vadd.f32 %v4012_v60, %v1232_v51  ;;  %v1347_v60 = vpop.trf.xlu0 }
 0x3d8   : > { %v1234_v22 = vadd.f32 %v4014_v18, %v1233_v52 }
 0x3d9   : > { %1304 = vmatpush1.bf16.msra.mxu0 %v7909_v1 }
 0x3da   : > { %1305 = vmatprep.subr.bf16.mxu0 %v1274_v25  ;;  %v1235_v49 = vadd.f32 %v4016_v17, %v1234_v22  ;;  %v1348_v58 = vpop.trf.xlu0  ;;  %v1362_v17 = vpop.trf.xlu1 }
 0x3dc   : > { %v1236_v31 = vadd.f32 %v4018_v62, %v1235_v49 }
 0x3dd   : > { %1306 = vmatpush1.bf16.msra.mxu0 %v7910_v32 }
 0x3de   : > { %1307 = vmatprep.subr.bf16.mxu0 %v1276_v12  ;;  %v1237_v39 = vadd.f32 %v4020_v2, %v1236_v31  ;;  %v1349_v54 = vpop.trf.xlu0  ;;  %v1363_v56 = vpop.trf.xlu1 }
 0x3e0   : > { %v1238_v55 = vadd.f32 %v4022_v47, %v1237_v39 }
 0x3e1   : > { %1308 = vmatpush1.bf16.msra.mxu0 %v7911_v42 }
 0x3e2   : > { %1309 = vmatprep.subr.bf16.mxu0 %v1278_v6  ;;  %v1239_v36 = vadd.f32 %v4024_v19, %v1238_v55  ;;  %v1350_v4 = vpop.trf.xlu0  ;;  %v1364_v62 = vpop.trf.xlu1 }
 0x3e4   : > { %v1240_v8 = vadd.f32 %v4026_v24, %v1239_v36  ;;  %v1206_v24 = vrot.slane %v5453_v26, 4 }
 0x3e5   : > { %1310 = vmatpush1.bf16.msra.mxu0 %v7912_v29 }
 0x3e6   : > { %1311 = vmatprep.subr.bf16.mxu0 %v1280_v3  ;;  %v1241_v57 = vadd.f32 %v4028_v40, %v1240_v8  ;;  %v1351_v9 = vpop.trf.xlu0  ;;  %v1365_v12 = vpop.trf.xlu1  ;;  %v1207_v40 = vadd.f32 %v1206_v24, %v5453_v26 }
 0x3e8   : > { %v5479_v45 = vadd.f32 %v4030_v53, %v1241_v57  ;;  %v1208_v3 = vrot.slane %v1207_v40, 2 }
 0x3e9   : > { %1312 = vmatpush1.bf16.msra.mxu0 %v7913_v44 }
 0x3ea   : > { %1313 = vmatprep.subr.bf16.mxu0 %v1282_v41  ;;  %v1352_v43 = vpop.trf.xlu0  ;;  %v1366_v47 = vpop.trf.xlu1  ;;  %v1243_v10 = vrot.slane %v5479_v45, 4  ;;  %v1209_v35 = vadd.f32 %v1208_v3, %v1207_v40 }
 0x3ec   : > { %v1244_v16 = vadd.f32 %v1243_v10, %v5479_v45  ;;  %v1210_v59 = vrot.slane %v1209_v35, 1 }
 0x3ed   : > { %1314 = vmatpush1.bf16.msra.mxu0 %v7916_v48 }
 0x3ee   : > { %3749 = vmatprep.subr.msk.bf16.mxu0 %vm709_vm1, %v1373_v0  ;;  %v1353_v18 = vpop.trf.xlu0  ;;  %v1367_v19 = vpop.trf.xlu1  ;;  %v1245_v53 = vrot.slane %v1244_v16, 2  ;;  %v1211_v28 = vadd.f32 %v1210_v59, %v1209_v35 }
 0x3f0   : > { %1316 = vmatmul.mubr.bf16.vlgmr.msra.gmra.mrb[16].mxu0 %v626_v33  ;;  %v1246_v41 = vadd.f32 %v1245_v53, %v1244_v16  ;;  %4031 = vrcp.f32 %v1211_v28 }
 0x3f1   : > { %1429 = vmatpush1.bf16.msra.mxu0 %v1423_v20  ;;  %1460 = vmatprep.mubr.bf16.mxu0 %v7917_v5 }
 0x3f2   : > { %v1368_v61 = vpop.trf.xlu1  ;;  %v1247_v23 = vrot.slane %v1246_v41, 1 }
 0x3f4   : > { %v1248_v38 = vadd.f32 %v1247_v23, %v1246_v41 }
 0x3f6   : > { %v1369_v27 = vpop.trf.xlu1  ;;  %4033 = vrcp.f32 %v1248_v38 }
 0x3f8   : > { %3750 = vmatmul.mubr.msk.bf16.vlgmr.msra.gmra.mrb[20].mxu0 %vm660_vm2, %v1346_v21 }
 0x3f9   : > { %1470 = vmatprep.mubr.bf16.mxu0 %v7917_v5 }
 0x3fa   : > { %v4032_v15 = vpop.eup %4031 }
 0x400   : > { %3751 = vmatmul.mubr.msk.bf16.gmra.mrb[24].mxu0 %vm660_vm2, %v1347_v60  ;;  %v4034_v46 = vpop.eup %4033 }
 0x401   : > { %1480 = vmatprep.mubr.bf16.mxu0 %v7917_v5 }
 0x408   : > { %3752 = vmatmul.mubr.msk.bf16.gmra.mrb[28].mxu0 %vm660_vm2, %v1348_v58 }
 0x409   : > { %1490 = vmatprep.mubr.bf16.mxu0 %v7917_v5 }
 0x410   : > { %3753 = vmatmul.mubr.msk.bf16.gmra.mrb[32].mxu0 %vm660_vm2, %v1349_v54 }
 0x411   : > { %1500 = vmatprep.mubr.bf16.mxu0 %v7917_v5 }
 0x418   : > { %3754 = vmatmul.mubr.msk.bf16.gmra.mrb[36].mxu0 %vm660_vm2, %v1350_v4 }
 0x419   : > { %1510 = vmatprep.mubr.bf16.mxu0 %v7917_v5 }
 0x420   : > { %3755 = vmatmul.mubr.msk.bf16.gmra.mrb[40].mxu0 %vm660_vm2, %v1351_v9 }
 0x421   : > { %1520 = vmatprep.mubr.bf16.mxu0 %v7917_v5 }
 0x428   : > { %3756 = vmatmul.mubr.msk.bf16.gmra.mrb[44].mxu0 %vm660_vm2, %v1352_v43 }
 0x429   : > { %1530 = vmatprep.mubr.bf16.mxu0 %v7917_v5 }
 0x430   : > { %3757 = vmatmul.mubr.msk.bf16.gmra.mrb[48].mxu0 %vm660_vm2, %v1353_v18 }
 0x431   : > { %1540 = vmatprep.mubr.bf16.mxu0 %v7917_v5 }
 0x438   : > { %3758 = vmatmul.mubr.msk.bf16.gmra.mrb[52].mxu0 %vm660_vm2, %v1362_v17 }
 0x439   : > { %1550 = vmatprep.mubr.bf16.mxu0 %v7917_v5 }
 0x43a   : > { %v512_v50 = vpop.f32.mrb[12].mxu0 }
 0x43b   : > { %v514_v25 = vpop.f32.mrb[13].mxu0 }
 0x43c   : > { %v516_v7 = vpop.f32.mrb[14].mxu0 }
 0x43d   : > { %v527_v2 = vpack.c.bf16 %v516_v7, %v512_v50  ;;  %v518_v14 = vpop.f32.mrb[15].mxu0 }
 0x43e   : > { %v528_v11 = vpack.c.bf16 %v518_v14, %v514_v25 }
 0x43f   : > { %535 = vst [vmem:[#allocation3 + $0x30] sm:$0xff] %v527_v2 }
 0x440   : > { %3759 = vmatmul.mubr.msk.bf16.gmra.mrb[56].mxu0 %vm660_vm2, %v1363_v56  ;;  %536 = vst [vmem:[#allocation3 + $0x38] sm:$0xff] %v528_v11 }
 0x441   : > { %1560 = vmatprep.mubr.bf16.mxu0 %v7917_v5 }
 0x447   : > { %v2049_v6 = vld [vmem:[#allocation3 + $0x38] sm:$0xf] }
 0x448   : > { %3760 = vmatmul.mubr.msk.bf16.gmra.mrb[60].mxu0 %vm660_vm2, %v1364_v62 }
 0x449   : > { %1570 = vmatprep.mubr.bf16.mxu0 %v7917_v5 }
 0x450   : > { %3761 = vmatmul.mubr.msk.bf16.gmra.mrb[64].mxu0 %vm660_vm2, %v1365_v12 }
 0x451   : > { %1580 = vmatprep.mubr.bf16.mxu0 %v7917_v5 }
 0x458   : > { %3762 = vmatmul.mubr.msk.bf16.gmra.mrb[68].mxu0 %vm660_vm2, %v1366_v47 }
 0x459   : > { %1590 = vmatprep.mubr.bf16.mxu0 %v7917_v5 }
 0x460   : > { %3763 = vmatmul.mubr.msk.bf16.gmra.mrb[72].mxu0 %vm660_vm2, %v1367_v19 }
 0x461   : > { %1600 = vmatprep.mubr.bf16.mxu0 %v7917_v5 }
 0x468   : > { %3764 = vmatmul.mubr.msk.bf16.gmra.mrb[76].mxu0 %vm660_vm2, %v1368_v61 }
 0x469   : > { %1610 = vmatprep.mubr.bf16.mxu0 %v7917_v5 }
 0x470   : > { %3765 = vmatmul.mubr.msk.bf16.gmra.mrb[80].mxu0 %vm660_vm2, %v1369_v27 }
 0x471   : > { %2735 = vmatprep.mubr.bf16.mxu0 %v2049_v6 }
 0x4c3   : > { %v1317_v30 = vpop.f32.mrb[16].mxu0 }
 0x4c4   : > { %v5524_v37 = vmul.f32 %v4032_v15, %v1317_v30  ;;  %v1319_v51 = vpop.f32.mrb[17].mxu0 }
 0x4c5   : > { %v5526_v52 = vmul.f32 %v4034_v46, %v1319_v51  ;;  %v1321_v26 = vpop.f32.mrb[18].mxu0 }
 0x4c6   : > { %7918 = vst [vmem:[#allocation16_spill] sm:$0xff] %v5524_v37  ;;  %v1322_v1 = vpop.f32.mrb[19].mxu0 }
 0x4c7   : > { %7919 = vst [vmem:[#allocation17_spill] sm:$0xff] %v5526_v52 }
 0x4cb   : > { %v5528_v22 = vpop.f32.mrb[20].mxu0 }
 0x4cc   : > { %v5530_v49 = vpop.f32.mrb[21].mxu0 }
 0x4cd   : > { %v5532_v32 = vpop.f32.mrb[22].mxu0 }
 0x4ce   : > { %v5534_v31 = vpop.f32.mrb[23].mxu0 }
 0x4d3   : > { %v5536_v39 = vpop.f32.mrb[24].mxu0 }
 0x4d4   : > { %v1621_v42 = vmax.f32 %v5528_v22, %v5536_v39  ;;  %v5540_v55 = vpop.f32.mrb[25].mxu0 }
 0x4d5   : > { %v1658_v36 = vmax.f32 %v5530_v49, %v5540_v55  ;;  %v5544_v29 = vpop.f32.mrb[26].mxu0 }
 0x4d6   : > { %v1622_v8 = vmax.f32 %v5532_v32, %v5544_v29  ;;  %v5548_v57 = vpop.f32.mrb[27].mxu0 }
 0x4d7   : > { %v1659_v44 = vmax.f32 %v5534_v31, %v5548_v57 }
 0x4db   : > { %v5552_v45 = vpop.f32.mrb[28].mxu0 }
 0x4dc   : > { %v1623_v34 = vmax.f32 %v1621_v42, %v5552_v45  ;;  %v5555_v13 = vpop.f32.mrb[29].mxu0 }
 0x4dd   : > { %v1660_v63 = vmax.f32 %v1658_v36, %v5555_v13  ;;  %v5558_v0 = vpop.f32.mrb[30].mxu0 }
 0x4de   : > { %v1624_v48 = vmax.f32 %v1622_v8, %v5558_v0  ;;  %v5561_v33 = vpop.f32.mrb[31].mxu0 }
 0x4df   : > { %v1661_v20 = vmax.f32 %v1659_v44, %v5561_v33 }
 0x4e3   : > { %v5564_v21 = vpop.f32.mrb[32].mxu0 }
 0x4e4   : > { %v1625_v60 = vmax.f32 %v1623_v34, %v5564_v21  ;;  %v5567_v58 = vpop.f32.mrb[33].mxu0 }
 0x4e5   : > { %v1662_v54 = vmax.f32 %v1660_v63, %v5567_v58  ;;  %v5570_v4 = vpop.f32.mrb[34].mxu0 }
 0x4e6   : > { %v1626_v9 = vmax.f32 %v1624_v48, %v5570_v4  ;;  %v5573_v43 = vpop.f32.mrb[35].mxu0 }
 0x4e7   : > { %v1663_v18 = vmax.f32 %v1661_v20, %v5573_v43 }
 0x4eb   : > { %v5576_v17 = vpop.f32.mrb[36].mxu0 }
 0x4ec   : > { %v1627_v56 = vmax.f32 %v1625_v60, %v5576_v17  ;;  %v5579_v50 = vpop.f32.mrb[37].mxu0 }
 0x4ed   : > { %v1664_v25 = vmax.f32 %v1662_v54, %v5579_v50  ;;  %v5582_v62 = vpop.f32.mrb[38].mxu0 }
 0x4ee   : > { %v1628_v7 = vmax.f32 %v1626_v9, %v5582_v62  ;;  %v5585_v2 = vpop.f32.mrb[39].mxu0 }
 0x4ef   : > { %v1665_v14 = vmax.f32 %v1663_v18, %v5585_v2 }
 0x4f3   : > { %v5588_v11 = vpop.f32.mrb[40].mxu0 }
 0x4f4   : > { %v1629_v12 = vmax.f32 %v1627_v56, %v5588_v11  ;;  %v5591_v47 = vpop.f32.mrb[41].mxu0 }
 0x4f5   : > { %v1666_v19 = vmax.f32 %v1664_v25, %v5591_v47  ;;  %v5594_v61 = vpop.f32.mrb[42].mxu0 }
 0x4f6   : > { %v1630_v27 = vmax.f32 %v1628_v7, %v5594_v61  ;;  %v5597_v6 = vpop.f32.mrb[43].mxu0 }
 0x4f7   : > { %7920 = vst [vmem:[#allocation18_spill] sm:$0xff] %v5597_v6  ;;  %v1667_v24 = vmax.f32 %v1665_v14, %v5597_v6 }
 0x4fb   : > { %v5600_v10 = vpop.f32.mrb[44].mxu0 }
 0x4fc   : > { %v1631_v40 = vmax.f32 %v1629_v12, %v5600_v10  ;;  %v5603_v16 = vpop.f32.mrb[45].mxu0 }
 0x4fd   : > { %7921 = vst [vmem:[#allocation19_spill] sm:$0xff] %v5603_v16  ;;  %v1668_v3 = vmax.f32 %v1666_v19, %v5603_v16  ;;  %v5606_v53 = vpop.f32.mrb[46].mxu0 }
 0x4fe   : > { %v1632_v35 = vmax.f32 %v1630_v27, %v5606_v53  ;;  %v5609_v41 = vpop.f32.mrb[47].mxu0 }
 0x4ff   : > { %7922 = vst [vmem:[#allocation20_spill] sm:$0xff] %v5609_v41  ;;  %v1669_v59 = vmax.f32 %v1667_v24, %v5609_v41 }
 0x503   : > { %v5612_v23 = vpop.f32.mrb[48].mxu0 }
 0x504   : > { %v1633_v28 = vmax.f32 %v1631_v40, %v5612_v23  ;;  %v5615_v38 = vpop.f32.mrb[49].mxu0 }
 0x505   : > { %7923 = vst [vmem:[#allocation21_spill] sm:$0xff] %v5615_v38  ;;  %v1670_v15 = vmax.f32 %v1668_v3, %v5615_v38  ;;  %v5618_v30 = vpop.f32.mrb[50].mxu0 }
 0x506   : > { %v1634_v46 = vmax.f32 %v1632_v35, %v5618_v30  ;;  %v5621_v51 = vpop.f32.mrb[51].mxu0 }
 0x507   : > { %7924 = vst [vmem:[#allocation22_spill] sm:$0xff] %v5621_v51  ;;  %v1671_v26 = vmax.f32 %v1669_v59, %v5621_v51 }
 0x50b   : > { %v5624_v1 = vpop.f32.mrb[52].mxu0 }
 0x50c   : > { %v1635_v42 = vmax.f32 %v1633_v28, %v5624_v1  ;;  %v5627_v36 = vpop.f32.mrb[53].mxu0 }
 0x50d   : > { %7925 = vst [vmem:[#allocation23_spill] sm:$0xff] %v5627_v36  ;;  %v1672_v8 = vmax.f32 %v1670_v15, %v5627_v36  ;;  %v5630_v44 = vpop.f32.mrb[54].mxu0 }
 0x50e   : > { %v1636_v34 = vmax.f32 %v1634_v46, %v5630_v44  ;;  %v5633_v63 = vpop.f32.mrb[55].mxu0 }
 0x50f   : > { %7926 = vst [vmem:[#allocation24_spill] sm:$0xff] %v5633_v63  ;;  %v1673_v48 = vmax.f32 %v1671_v26, %v5633_v63 }
 0x513   : > { %v5636_v20 = vpop.f32.mrb[56].mxu0 }
 0x514   : > { %v1637_v60 = vmax.f32 %v1635_v42, %v5636_v20  ;;  %v5639_v54 = vpop.f32.mrb[57].mxu0 }
 0x515   : > { %7927 = vst [vmem:[#allocation25_spill] sm:$0xff] %v5639_v54  ;;  %v1674_v9 = vmax.f32 %v1672_v8, %v5639_v54  ;;  %v5642_v18 = vpop.f32.mrb[58].mxu0 }
 0x516   : > { %v1638_v56 = vmax.f32 %v1636_v34, %v5642_v18  ;;  %v5645_v25 = vpop.f32.mrb[59].mxu0 }
 0x517   : > { %7928 = vst [vmem:[#allocation26_spill] sm:$0xff] %v5645_v25  ;;  %v1675_v7 = vmax.f32 %v1673_v48, %v5645_v25 }
 0x51b   : > { %v5648_v14 = vpop.f32.mrb[60].mxu0 }
 0x51c   : > { %v1639_v12 = vmax.f32 %v1637_v60, %v5648_v14  ;;  %v5651_v19 = vpop.f32.mrb[61].mxu0 }
 0x51d   : > { %7929 = vst [vmem:[#allocation27_spill] sm:$0xff] %v5651_v19  ;;  %v1676_v27 = vmax.f32 %v1674_v9, %v5651_v19  ;;  %v5654_v24 = vpop.f32.mrb[62].mxu0 }
 0x51e   : > { %v1640_v40 = vmax.f32 %v1638_v56, %v5654_v24  ;;  %v5657_v3 = vpop.f32.mrb[63].mxu0 }
 0x51f   : > { %7930 = vst [vmem:[#allocation28_spill] sm:$0xff] %v5657_v3  ;;  %v1677_v35 = vmax.f32 %v1675_v7, %v5657_v3 }
 0x523   : > { %v5660_v59 = vpop.f32.mrb[64].mxu0 }
 0x524   : > { %v1641_v28 = vmax.f32 %v1639_v12, %v5660_v59  ;;  %v5663_v15 = vpop.f32.mrb[65].mxu0 }
 0x525   : > { %7931 = vst [vmem:[#allocation29_spill] sm:$0xff] %v5663_v15  ;;  %v1678_v46 = vmax.f32 %v1676_v27, %v5663_v15  ;;  %v5666_v26 = vpop.f32.mrb[66].mxu0 }
 0x526   : > { %v1642_v42 = vmax.f32 %v1640_v40, %v5666_v26  ;;  %v5669_v8 = vpop.f32.mrb[67].mxu0 }
 0x527   : > { %7932 = vst [vmem:[#allocation31_spill] sm:$0xff] %v5669_v8  ;;  %v1679_v34 = vmax.f32 %v1677_v35, %v5669_v8 }
 0x52b   : > { %v5672_v48 = vpop.f32.mrb[68].mxu0 }
 0x52c   : > { %v1643_v60 = vmax.f32 %v1641_v28, %v5672_v48  ;;  %v5675_v9 = vpop.f32.mrb[69].mxu0 }
 0x52d   : > { %7933 = vst [vmem:[#allocation33_spill] sm:$0xff] %v5675_v9  ;;  %v1680_v56 = vmax.f32 %v1678_v46, %v5675_v9  ;;  %v5678_v7 = vpop.f32.mrb[70].mxu0 }
 0x52e   : > { %v1644_v12 = vmax.f32 %v1642_v42, %v5678_v7  ;;  %v5681_v27 = vpop.f32.mrb[71].mxu0 }
 0x52f   : > { %7934 = vst [vmem:[#allocation34_spill] sm:$0xff] %v5681_v27  ;;  %v1681_v40 = vmax.f32 %v1679_v34, %v5681_v27 }
 0x533   : > { %v5684_v52 = vpop.f32.mrb[72].mxu0 }
 0x534   : > { %v1645_v35 = vmax.f32 %v1643_v60, %v5684_v52  ;;  %v5687_v37 = vpop.f32.mrb[73].mxu0 }
 0x535   : > { %7935 = vst [vmem:[#allocation30_spill] sm:$0xff] %v5687_v37  ;;  %v1682_v28 = vmax.f32 %v1680_v56, %v5687_v37  ;;  %v5690_v5 = vpop.f32.mrb[74].mxu0 }
 0x536   : > { %v1646_v46 = vmax.f32 %v1644_v12, %v5690_v5  ;;  %v5693_v9 = vpop.f32.mrb[75].mxu0 }
 0x537   : > { %7936 = vst [vmem:[#allocation32_spill] sm:$0xff] %v5693_v9  ;;  %v1683_v42 = vmax.f32 %v1681_v40, %v5693_v9 }
 0x53b   : > { %v5696_v8 = vpop.f32.mrb[76].mxu0 }
 0x53c   : > { %v1647_v34 = vmax.f32 %v1645_v35, %v5696_v8  ;;  %v5699_v27 = vpop.f32.mrb[77].mxu0 }
 0x53d   : > { %7937 = vst [vmem:[#allocation35_spill] sm:$0xff] %v5699_v27  ;;  %v1684_v60 = vmax.f32 %v1682_v28, %v5699_v27  ;;  %v5702_v15 = vpop.f32.mrb[78].mxu0 }
 0x53e   : > { %v1648_v56 = vmax.f32 %v1646_v46, %v5702_v15  ;;  %v5705_v37 = vpop.f32.mrb[79].mxu0 }
 0x53f   : > { %7938 = vst [vmem:[#allocation15_spill] sm:$0xff] %v5705_v37  ;;  %v1685_v12 = vmax.f32 %v1683_v42, %v5705_v37 }
 0x543   : > { %v5708_v3 = vpop.f32.mrb[80].mxu0 }
 0x544   : > { %v1649_v40 = vmax.f32 %v1647_v34, %v5708_v3  ;;  %v5711_v9 = vpop.f32.mrb[81].mxu0 }
 0x545   : > { %7939 = vst [vmem:[#allocation11_spill] sm:$0xff] %v5711_v9  ;;  %v1686_v35 = vmax.f32 %v1684_v60, %v5711_v9  ;;  %v5714_v19 = vpop.f32.mrb[82].mxu0 }
 0x546   : > { %v1650_v28 = vmax.f32 %v1648_v56, %v5714_v19  ;;  %v5717_v27 = vpop.f32.mrb[83].mxu0 }
 0x547   : > { %7940 = vst [vmem:[#allocation12_spill] sm:$0xff] %v5717_v27  ;;  %v1687_v46 = vmax.f32 %v1685_v12, %v5717_v27 }
 0x548   : > { %v1651_v25 = vmax.f32 %v1649_v40, %v1650_v28 }
 0x549   : > { %v1688_v54 = vmax.f32 %v1686_v35, %v1687_v46 }
 0x54a   : > { %v1652_v63 = vrot.slane %v1651_v25, 4 }
 0x54b   : > { %v1689_v42 = vrot.slane %v1688_v54, 4 }
 0x54c   : > { %v1653_v37 = vmax.f32 %v1651_v25, %v1652_v63 }
 0x54d   : > { %v1690_v36 = vmax.f32 %v1688_v54, %v1689_v42 }
 0x54e   : > { %v1654_v51 = vrot.slane %v1653_v37, 2 }
 0x54f   : > { %v1691_v34 = vrot.slane %v1690_v36, 2 }
 0x550   : > { %v1655_v38 = vmax.f32 %v1653_v37, %v1654_v51  ;;  %v7960_v51 = vld [vmem:[#allocation11_spill] sm:$0xff] }
 0x551   : > { %v1692_v41 = vmax.f32 %v1690_v36, %v1691_v34 }
 0x552   : > { %v1656_v16 = vrot.slane %v1655_v38, 1 }
 0x553   : > { %v1693_v60 = vrot.slane %v1692_v41, 1 }
 0x554   : > { %v5720_v9 = vmax.f32 %v1655_v38, %v1656_v16 }
 0x555   : > { %v5722_v6 = vmax.f32 %v1692_v41, %v1693_v60 }
 0x556   : > { %v1695_v56 = vsub.f32 %v5528_v22, %v5720_v9  ;;  %v1697_v12 = vsub.f32 %v5532_v32, %v5720_v9  ;;  %v1699_v63 = vsub.f32 %v5536_v39, %v5720_v9  ;;  %v1701_v54 = vsub.f32 %v5544_v29, %v5720_v9 }
 0x557   : > { %v1703_v37 = vsub.f32 %v5552_v45, %v5720_v9  ;;  %v1705_v16 = vsub.f32 %v5558_v0, %v5720_v9  ;;  %v1707_v41 = vsub.f32 %v5564_v21, %v5720_v9  ;;  %v1709_v22 = vsub.f32 %v5570_v4, %v5720_v9 }
 0x558   : > { %v1711_v32 = vsub.f32 %v5576_v17, %v5720_v9  ;;  %v1713_v39 = vsub.f32 %v5582_v62, %v5720_v9  ;;  %v1715_v29 = vsub.f32 %v5588_v11, %v5720_v9  ;;  %v1717_v45 = vsub.f32 %v5594_v61, %v5720_v9 }
 0x559   : > { %v1719_v0 = vsub.f32 %v5600_v10, %v5720_v9  ;;  %v1721_v21 = vsub.f32 %v5606_v53, %v5720_v9  ;;  %v1723_v4 = vsub.f32 %v5612_v23, %v5720_v9  ;;  %v1725_v17 = vsub.f32 %v5618_v30, %v5720_v9 }
 0x55a   : > { %v1727_v62 = vsub.f32 %v5624_v1, %v5720_v9  ;;  %v1729_v11 = vsub.f32 %v5630_v44, %v5720_v9  ;;  %v1731_v61 = vsub.f32 %v5636_v20, %v5720_v9  ;;  %v1733_v10 = vsub.f32 %v5642_v18, %v5720_v9 }
 0x55b   : > { %v1735_v53 = vsub.f32 %v5648_v14, %v5720_v9  ;;  %v1737_v23 = vsub.f32 %v5654_v24, %v5720_v9  ;;  %v1739_v38 = vsub.f32 %v5660_v59, %v5720_v9  ;;  %v1741_v30 = vsub.f32 %v5666_v26, %v5720_v9 }
 0x55c   : > { %v1759_v24 = vmul.f32 1.442695, %v1695_v56  ;;  %v1763_v59 = vmul.f32 1.442695, %v1697_v12  ;;  %v1767_v26 = vmul.f32 1.442695, %v1699_v63 }
 0x55d   : > { %v1771_v35 = vmul.f32 1.442695, %v1701_v54  ;;  %v1775_v46 = vmul.f32 1.442695, %v1703_v37  ;;  %v1779_v42 = vmul.f32 1.442695, %v1705_v16 }
 0x55e   : > { %4035 = vpow2.f32 %v1759_v24  ;;  %v1783_v34 = vmul.f32 1.442695, %v1707_v41  ;;  %v1787_v60 = vmul.f32 1.442695, %v1709_v22  ;;  %v1791_v25 = vmul.f32 1.442695, %v1711_v32 }
 0x55f   : > { %4037 = vpow2.f32 %v1763_v59  ;;  %v1795_v14 = vmul.f32 1.442695, %v1713_v39  ;;  %v1799_v56 = vmul.f32 1.442695, %v1715_v29  ;;  %v1803_v12 = vmul.f32 1.442695, %v1717_v45 }
 0x560   : > { %4039 = vpow2.f32 %v1767_v26  ;;  %v1807_v63 = vmul.f32 1.442695, %v1719_v0  ;;  %v1811_v40 = vmul.f32 1.442695, %v1721_v21  ;;  %v1815_v54 = vmul.f32 1.442695, %v1723_v4 }
 0x561   : > { %4041 = vpow2.f32 %v1771_v35  ;;  %v1819_v18 = vmul.f32 1.442695, %v1725_v17  ;;  %v1823_v28 = vmul.f32 1.442695, %v1727_v62  ;;  %v1827_v24 = vmul.f32 1.442695, %v1729_v11 }
 0x562   : > { %4043 = vpow2.f32 %v1775_v46  ;;  %v1831_v37 = vmul.f32 1.442695, %v1731_v61  ;;  %v1835_v16 = vmul.f32 1.442695, %v1733_v10  ;;  %v1839_v59 = vmul.f32 1.442695, %v1735_v53 }
 0x563   : > { %4045 = vpow2.f32 %v1779_v42  ;;  %v5792_v41 = vmul.f32 1.442695, %v1737_v23  ;;  %v5794_v22 = vmul.f32 1.442695, %v1739_v38  ;;  %v5796_v32 = vmul.f32 1.442695, %v1741_v30 }
 0x564   : > { %4047 = vpow2.f32 %v1783_v34  ;;  %v7941_v53 = vld [vmem:[#allocation18_spill] sm:$0xff]  ;;  %v7943_v26 = vld [vmem:[#allocation20_spill] sm:$0xff]  ;;  %v7944_v42 = vld [vmem:[#allocation21_spill] sm:$0xff] }
 0x565   : > { %4049 = vpow2.f32 %v1787_v60  ;;  %v7945_v60 = vld [vmem:[#allocation22_spill] sm:$0xff]  ;;  %v7947_v10 = vld [vmem:[#allocation24_spill] sm:$0xff]  ;;  %v7948_v61 = vld [vmem:[#allocation25_spill] sm:$0xff] }
 0x566   : > { %4051 = vpow2.f32 %v1791_v25  ;;  %v7942_v25 = vld [vmem:[#allocation19_spill] sm:$0xff]  ;;  %v7949_v34 = vld [vmem:[#allocation26_spill] sm:$0xff]  ;;  %v7951_v4 = vld [vmem:[#allocation28_spill] sm:$0xff] }
 0x567   : > { %4053 = vpow2.f32 %v1795_v14  ;;  %v7950_v17 = vld [vmem:[#allocation27_spill] sm:$0xff]  ;;  %v7952_v35 = vld [vmem:[#allocation29_spill] sm:$0xff]  ;;  %v7955_v39 = vld [vmem:[#allocation34_spill] sm:$0xff] }
 0x568   : > { %v5806_v21 = vpop.eup %4035  ;;  %4055 = vpow2.f32 %v1799_v56  ;;  %v7953_v45 = vld [vmem:[#allocation31_spill] sm:$0xff]  ;;  %v7954_v56 = vld [vmem:[#allocation33_spill] sm:$0xff] }
 0x569   : > { %v5814_v11 = vpop.eup %4037  ;;  %4057 = vpow2.f32 %v1803_v12  ;;  %v7946_v12 = vld [vmem:[#allocation23_spill] sm:$0xff] }
 0x56a   : > { %v5822_v38 = vpop.eup %4039  ;;  %4059 = vpow2.f32 %v1807_v63  ;;  %v1887_v30 = vadd.f32 %v5814_v11, %v5806_v21  ;;  %v7959_v63 = vld [vmem:[#allocation15_spill] sm:$0xff] }
 0x56b   : > { %v5830_v46 = vpop.eup %4041  ;;  %4061 = vpow2.f32 %v1811_v40  ;;  %v7957_v40 = vld [vmem:[#allocation32_spill] sm:$0xff] }
 0x56c   : > { %v5838_v23 = vpop.eup %4043  ;;  %4063 = vpow2.f32 %v1815_v54  ;;  %v1888_v14 = vadd.f32 %v5822_v38, %v1887_v30 }
 0x56d   : > { %v5845_v62 = vpop.eup %4045  ;;  %4065 = vpow2.f32 %v1819_v18 }
 0x56e   : > { %v5853_v0 = vpop.eup %4047  ;;  %4067 = vpow2.f32 %v1823_v28  ;;  %v1889_v30 = vadd.f32 %v5830_v46, %v1888_v14 }
 0x56f   : > { %v5860_v29 = vpop.eup %4049  ;;  %4069 = vpow2.f32 %v1827_v24 }
 0x570   : > { %v5868_v44 = vpop.eup %4051  ;;  %4071 = vpow2.f32 %v1831_v37  ;;  %v1890_v14 = vadd.f32 %v5838_v23, %v1889_v30  ;;  %v7961_v30 = vsub.f32 %v5672_v48, %v5720_v9 }
 0x571   : > { %v5875_v1 = vpop.eup %4053  ;;  %4073 = vpow2.f32 %v1835_v16  ;;  %v7962_v16 = vsub.f32 %v5678_v7, %v5720_v9 }
 0x572   : > { %v5883_v20 = vpop.eup %4055  ;;  %4075 = vpow2.f32 %v1839_v59  ;;  %v1855_v18 = vmul.f32 1.442695, %v7961_v30  ;;  %v1891_v24 = vadd.f32 %v5845_v62, %v1890_v14  ;;  %v7963_v59 = vsub.f32 %v5684_v52, %v5720_v9 }
 0x573   : > { %v5889_v36 = vpop.eup %4057  ;;  %4077 = vpow2.f32 %v5792_v41  ;;  %v1859_v28 = vmul.f32 1.442695, %v7962_v16  ;;  %v7964_v41 = vsub.f32 %v5690_v5, %v5720_v9  ;;  %v7968_v5 = vsub.f32 %v5708_v3, %v5720_v9 }
 0x574   : > { %v5895_v54 = vpop.eup %4059  ;;  %4079 = vpow2.f32 %v5794_v22  ;;  %v1863_v37 = vmul.f32 1.442695, %v7963_v59  ;;  %v1892_v48 = vadd.f32 %v5853_v0, %v1891_v24  ;;  %v7965_v22 = vsub.f32 %v5696_v8, %v5720_v9 }
 0x575   : > { %v5902_v30 = vpop.eup %4061  ;;  %4081 = vpow2.f32 %v5796_v32  ;;  %v1867_v14 = vmul.f32 1.442695, %v7964_v41  ;;  %v7966_v24 = vsub.f32 %v5702_v15, %v5720_v9 }
 0x576   : > { %v5908_v7 = vpop.eup %4063  ;;  %4083 = vpow2.f32 %v1855_v18  ;;  %v1871_v16 = vmul.f32 1.442695, %v7965_v22  ;;  %v1893_v52 = vadd.f32 %v5860_v29, %v1892_v48  ;;  %v1879_v18 = vmul.f32 1.442695, %v7968_v5 }
 0x577   : > { %v5914_v59 = vpop.eup %4065  ;;  %4085 = vpow2.f32 %v1859_v28  ;;  %v1875_v32 = vmul.f32 1.442695, %v7966_v24  ;;  %v7969_v48 = vsub.f32 %v5714_v19, %v5720_v9  ;;  %v7972_v19 = vsub.f32 %v5540_v55, %v5722_v6 }
 0x578   : > { %v5919_v27 = vpop.eup %4067  ;;  %4087 = vpow2.f32 %v1863_v37  ;;  %v1894_v41 = vadd.f32 %v5868_v44, %v1893_v52  ;;  %v7970_v37 = vsub.f32 %v5530_v49, %v5722_v6  ;;  %v7971_v52 = vsub.f32 %v5534_v31, %v5722_v6 }
 0x579   : > { %7967 = vst [vmem:[#allocation18_spill] sm:$0xff] %v5919_v27  ;;  %v5925_v8 = vpop.eup %4069  ;;  %4089 = vpow2.f32 %v1867_v14  ;;  %v1883_v28 = vmul.f32 1.442695, %v7969_v48  ;;  %v1769_v9 = vmul.f32 1.442695, %v7972_v19  ;;  %v7973_v49 = vsub.f32 %v5548_v57, %v5722_v6 }
 0x57a   : > { %v5930_v22 = vpop.eup %4071  ;;  %4091 = vpow2.f32 %v1871_v16  ;;  %v1895_v15 = vadd.f32 %v5875_v1, %v1894_v41  ;;  %v1761_v24 = vmul.f32 1.442695, %v7970_v37  ;;  %v1765_v14 = vmul.f32 1.442695, %v7971_v52 }
 0x57b   : > { %v5936_v3 = vpop.eup %4073  ;;  %4093 = vpow2.f32 %v1875_v32  ;;  %v1773_v41 = vmul.f32 1.442695, %v7973_v49  ;;  %v7974_v32 = vsub.f32 %v5555_v13, %v5722_v6  ;;  %v7975_v31 = vsub.f32 %v5561_v33, %v5722_v6 }
 0x57c   : > { %v5944_v5 = vpop.eup %4075  ;;  %4095 = vpow2.f32 %v1879_v18  ;;  %v1896_v16 = vadd.f32 %v5883_v20, %v1895_v15  ;;  %v7976_v18 = vsub.f32 %v5567_v58, %v5722_v6  ;;  %v7977_v15 = vsub.f32 %v5573_v43, %v5722_v6 }
 0x57d   : > { %v1777_v48 = vmul.f32 1.442695, %v7974_v32  ;;  %v5953_v37 = vpop.eup %4077  ;;  %4097 = vpow2.f32 %v1883_v28  ;;  %v1781_v55 = vmul.f32 1.442695, %v7975_v31  ;;  %v7978_v28 = vsub.f32 %v5579_v50, %v5722_v6 }
 0x57e   : > { %v1785_v52 = vmul.f32 1.442695, %v7976_v18  ;;  %v1789_v57 = vmul.f32 1.442695, %v7977_v15  ;;  %v5964_v19 = vpop.eup %4079  ;;  %v1897_v13 = vadd.f32 %v5889_v36, %v1896_v16  ;;  %4099 = vpow2.f32 %v1761_v24 }
 0x57f   : > { %v1793_v49 = vmul.f32 1.442695, %v7978_v28  ;;  %v7979_v33 = vsub.f32 %v5585_v2, %v5722_v6  ;;  %v5973_v31 = vpop.eup %4081  ;;  %4101 = vpow2.f32 %v1765_v14 }
 0x580   : > { %v5981_v16 = vpop.eup %4083  ;;  %v1898_v50 = vadd.f32 %v5895_v54, %v1897_v13  ;;  %4103 = vpow2.f32 %v1769_v9 }
 0x581   : > { %v1797_v32 = vmul.f32 1.442695, %v7979_v33  ;;  %v5988_v18 = vpop.eup %4085  ;;  %4105 = vpow2.f32 %v1773_v41  ;;  %v7980_v41 = vsub.f32 %v5591_v47, %v5722_v6  ;;  %v7981_v33 = vsub.f32 %v7941_v53, %v5722_v6 }
 0x582   : > { %v5996_v13 = vpop.eup %4087  ;;  %v1899_v9 = vadd.f32 %v5902_v30, %v1898_v50  ;;  %4107 = vpow2.f32 %v1777_v48 }
 0x583   : > { %v6003_v2 = vpop.eup %4089  ;;  %4109 = vpow2.f32 %v1781_v55  ;;  %v1801_v14 = vmul.f32 1.442695, %v7980_v41  ;;  %v1805_v28 = vmul.f32 1.442695, %v7981_v33 }
 0x584   : > { %v6011_v50 = vpop.eup %4091  ;;  %v1900_v48 = vadd.f32 %v5908_v7, %v1899_v9  ;;  %4111 = vpow2.f32 %v1785_v52  ;;  %v7982_v52 = vsub.f32 %v7942_v25, %v5722_v6  ;;  %v7987_v25 = vsub.f32 %v7947_v10, %v5722_v6 }
 0x585   : > { %v6019_v24 = vpop.eup %4093  ;;  %4113 = vpow2.f32 %v1789_v57  ;;  %v7983_v57 = vsub.f32 %v7943_v26, %v5722_v6  ;;  %v7986_v26 = vsub.f32 %v7946_v12, %v5722_v6  ;;  %v7990_v10 = vsub.f32 %v7950_v17, %v5722_v6 }
 0x586   : > { %v6024_v15 = vpop.eup %4095  ;;  %v1901_v43 = vadd.f32 %v5914_v59, %v1900_v48  ;;  %4115 = vpow2.f32 %v1793_v49  ;;  %v1809_v47 = vmul.f32 1.442695, %v7982_v52  ;;  %v7984_v49 = vsub.f32 %v7944_v42, %v5722_v6 }
 0x587   : > { %v6032_v41 = vpop.eup %4097  ;;  %4117 = vpow2.f32 %v1797_v32  ;;  %v1813_v53 = vmul.f32 1.442695, %v7983_v57  ;;  %v7985_v32 = vsub.f32 %v7945_v60, %v5722_v6  ;;  %v1825_v57 = vmul.f32 1.442695, %v7986_v26 }
 0x588   : > { %v4100_v33 = vpop.eup %4099  ;;  %v1902_v55 = vadd.f32 %v5919_v27, %v1901_v43  ;;  %4119 = vpow2.f32 %v1801_v14  ;;  %v1817_v48 = vmul.f32 1.442695, %v7984_v49  ;;  %v7988_v60 = vsub.f32 %v7948_v61, %v5722_v6 }
 0x589   : > { %v4102_v52 = vpop.eup %4101  ;;  %4121 = vpow2.f32 %v1805_v28  ;;  %v1821_v9 = vmul.f32 1.442695, %v7985_v32  ;;  %v1829_v28 = vmul.f32 1.442695, %v7987_v25  ;;  %v1841_v25 = vmul.f32 1.442695, %v7990_v10 }
 0x58a   : > { %v4104_v58 = vpop.eup %4103  ;;  %v1903_v43 = vadd.f32 %v5925_v8, %v1902_v55  ;;  %4123 = vpow2.f32 %v1809_v47  ;;  %v1924_v14 = vadd.f32 %v4102_v52, %v4100_v33  ;;  %v1964_v42 = vpack.c.bf16 %v4102_v52, %v4100_v33 }
 0x58b   : > { %v4106_v49 = vpop.eup %4105  ;;  %4125 = vpow2.f32 %v1813_v53  ;;  %v1833_v32 = vmul.f32 1.442695, %v7988_v60  ;;  %v7989_v53 = vsub.f32 %v7949_v34, %v5722_v6  ;;  %v7991_v61 = vpack.c.bf16 %v5814_v11, %v5806_v21 }
 0x58c   : > { %v4108_v27 = vpop.eup %4107  ;;  %v1904_v12 = vadd.f32 %v5930_v22, %v1903_v43  ;;  %4127 = vpow2.f32 %v1817_v48  ;;  %v1925_v26 = vadd.f32 %v4104_v58, %v1924_v14  ;;  %2001 = vmatprep.subr.bf16.mxu1 %v1964_v42  ;;  %v1966_v55 = vpack.c.bf16 %v4106_v49, %v4104_v58 }
 0x58d   : > { %v4110_v47 = vpop.eup %4109  ;;  %4129 = vpow2.f32 %v1821_v9  ;;  %v1837_v33 = vmul.f32 1.442695, %v7989_v53  ;;  %2002 = vmatpush1.bf16.msra.mxu1 %v7991_v61  ;;  %v7992_v34 = vsub.f32 %v7951_v4, %v5722_v6  ;;  %v7993_v17 = vsub.f32 %v7952_v35, %v5722_v6  ;;  %v7998_v61 = vld [vmem:[#allocation30_spill] sm:$0xff] }
 0x58e   : > { %v4112_v52 = vpop.eup %4111  ;;  %v1905_v48 = vadd.f32 %v5936_v3, %v1904_v12  ;;  %4131 = vpow2.f32 %v1825_v57  ;;  %v1926_v43 = vadd.f32 %v4106_v49, %v1925_v26  ;;  %2003 = vmatprep.subr.bf16.mxu1 %v1966_v55  ;;  %v1968_v58 = vpack.c.bf16 %v4110_v47, %v4108_v27 }
 0x58f   : > { %v4114_v9 = vpop.eup %4113  ;;  %4133 = vpow2.f32 %v1829_v28  ;;  %v1845_v14 = vmul.f32 1.442695, %v7992_v34  ;;  %v1849_v42 = vmul.f32 1.442695, %v7993_v17  ;;  %v7994_v49 = vsub.f32 %v7953_v45, %v5722_v6 }
 0x590   : > { %v4116_v60 = vpop.eup %4115  ;;  %v1906_v21 = vadd.f32 %v5944_v5, %v1905_v48  ;;  %4135 = vpow2.f32 %v1833_v32  ;;  %v1927_v11 = vadd.f32 %v4108_v27, %v1926_v43  ;;  %v1970_v12 = vpack.c.bf16 %v4114_v9, %v4112_v52 }
 0x591   : > { %v4118_v57 = vpop.eup %4117  ;;  %4137 = vpow2.f32 %v1837_v33  ;;  %v1853_v28 = vmul.f32 1.442695, %v7994_v49  ;;  %v7995_v4 = vsub.f32 %v7954_v56, %v5722_v6  ;;  %v7996_v35 = vpack.c.bf16 %v5830_v46, %v5822_v38 }
 0x592   : > { %v4120_v55 = vpop.eup %4119  ;;  %v1907_v53 = vadd.f32 %v5953_v37, %v1906_v21  ;;  %4139 = vpow2.f32 %v1841_v25  ;;  %v1928_v27 = vadd.f32 %v4110_v47, %v1927_v11  ;;  %v1972_v32 = vpack.c.bf16 %v4118_v57, %v4116_v60 }
 0x593   : > { %v1857_v26 = vmul.f32 1.442695, %v7995_v4  ;;  %2004 = vmatpush1.bf16.msra.mxu1 %v7996_v35  ;;  %v4122_v33 = vpop.eup %4121  ;;  %4141 = vpow2.f32 %v1845_v14  ;;  %v7997_v45 = vsub.f32 %v7955_v39, %v5722_v6  ;;  %v7999_v56 = vsub.f32 %v7998_v61, %v5722_v6  ;;  %v8001_v14 = vld [vmem:[#allocation35_spill] sm:$0xff] }
 0x594   : > { %2005 = vmatprep.subr.bf16.mxu1 %v1968_v58  ;;  %v4124_v43 = vpop.eup %4123  ;;  %v1908_v38 = vadd.f32 %v5964_v19, %v1907_v53  ;;  %4143 = vpow2.f32 %v1849_v42  ;;  %v1929_v46 = vadd.f32 %v4112_v52, %v1928_v27  ;;  %v1974_v34 = vpack.c.bf16 %v4122_v33, %v4120_v55 }
 0x595   : > { %v1861_v10 = vmul.f32 1.442695, %v7997_v45  ;;  %v1865_v48 = vmul.f32 1.442695, %v7999_v56  ;;  %v4126_v25 = vpop.eup %4125  ;;  %4145 = vpow2.f32 %v1853_v28  ;;  %v8000_v47 = vsub.f32 %v7957_v40, %v5722_v6 }
 0x596   : > { %v8002_v39 = vsub.f32 %v8001_v14, %v5722_v6  ;;  %v8003_v21 = vpack.c.bf16 %v5845_v62, %v5838_v23  ;;  %v4128_v11 = vpop.eup %4127  ;;  %v1909_v49 = vadd.f32 %v5973_v31, %v1908_v38  ;;  %4147 = vpow2.f32 %v1857_v26 }
 0x597   : > { %v1869_v58 = vmul.f32 1.442695, %v8000_v47  ;;  %v1930_v52 = vadd.f32 %v4114_v9, %v1929_v46  ;;  %v1976_v42 = vpack.c.bf16 %v4126_v25, %v4124_v43  ;;  %v4130_v28 = vpop.eup %4129  ;;  %4149 = vpow2.f32 %v1861_v10  ;;  %v8006_v9 = vld [vmem:[#allocation12_spill] sm:$0xff] }
 0x598   : > { %v1873_v17 = vmul.f32 1.442695, %v8002_v39  ;;  %2006 = vmatpush1.bf16.msra.mxu1 %v8003_v21  ;;  %v8004_v40 = vsub.f32 %v7959_v63, %v5722_v6  ;;  %v8005_v35 = vsub.f32 %v7960_v51, %v5722_v6  ;;  %v4132_v27 = vpop.eup %4131  ;;  %v1910_v62 = vadd.f32 %v5981_v16, %v1909_v49 }
 0x599   : > { %2007 = vmatprep.subr.bf16.mxu1 %v1970_v12  ;;  %4151 = vpow2.f32 %v1865_v48  ;;  %v1931_v23 = vadd.f32 %v4116_v60, %v1930_v52  ;;  %v1978_v45 = vpack.c.bf16 %v4130_v28, %v4128_v11  ;;  %v4134_v26 = vpop.eup %4133  ;;  %v8007_v12 = vsub.f32 %v8006_v9, %v5722_v6 }
 0x59a   : > { %v1877_v4 = vmul.f32 1.442695, %v8004_v40  ;;  %v1881_v53 = vmul.f32 1.442695, %v8005_v35  ;;  %4153 = vpow2.f32 %v1869_v58  ;;  %v8008_v63 = vpack.c.bf16 %v5860_v29, %v5853_v0  ;;  %v4136_v61 = vpop.eup %4135 }
 0x59b   : > { %v1885_v10 = vmul.f32 1.442695, %v8007_v12  ;;  %v1911_v51 = vadd.f32 %v5988_v18, %v1910_v62  ;;  %4155 = vpow2.f32 %v1873_v17  ;;  %v1932_v56 = vadd.f32 %v4118_v57, %v1931_v23  ;;  %v4138_v48 = vpop.eup %4137 }
 0x59c   : > { %2008 = vmatpush1.bf16.msra.mxu1 %v8008_v63  ;;  %v1980_v38 = vpack.c.bf16 %v4134_v26, %v4132_v27  ;;  %4157 = vpow2.f32 %v1877_v4  ;;  %v4140_v60 = vpop.eup %4139  ;;  %v1982_v6 = vpack.c.bf16 %v4138_v48, %v4136_v61  ;;  %v8009_v29 = vpack.c.bf16 %v5875_v1, %v5868_v44 }
 0x59d   : > { %2009 = vmatprep.subr.bf16.mxu1 %v1972_v32  ;;  %v1912_v46 = vadd.f32 %v5996_v13, %v1911_v51  ;;  %4159 = vpow2.f32 %v1881_v53  ;;  %v1933_v47 = vadd.f32 %v4120_v55, %v1932_v56  ;;  %v4142_v58 = vpop.eup %4141  ;;  %v8010_v40 = vpack.c.bf16 %v5889_v36, %v5883_v20 }
 0x59e   : > { %4161 = vpow2.f32 %v1885_v10  ;;  %v4144_v0 = vpop.eup %4143  ;;  %v1984_v32 = vpack.c.bf16 %v4142_v58, %v4140_v60  ;;  %v8012_v51 = vpack.c.bf16 %v5914_v59, %v5908_v7  ;;  %v8016_v7 = vpack.c.bf16 %v5953_v37, %v5944_v5 }
 0x59f   : > { %v1913_v14 = vadd.f32 %v6003_v2, %v1912_v46  ;;  %v1934_v57 = vadd.f32 %v4122_v33, %v1933_v47  ;;  %v4146_v39 = vpop.eup %4145  ;;  %v8019_v5 = vpack.c.bf16 %v6003_v2, %v5996_v13  ;;  %v8023_v13 = vld [vmem:[#allocation13_spill] sm:$0xff] }
 0x5a0   : > { %2010 = vmatpush1.bf16.msra.mxu1 %v8009_v29  ;;  %v4148_v17 = vpop.eup %4147  ;;  %v1986_v52 = vpack.c.bf16 %v4146_v39, %v4144_v0  ;;  %v8024_v29 = vmov 0  }
 0x5a1   : > { %2011 = vmatprep.subr.bf16.mxu1 %v1974_v34  ;;  %v1914_v21 = vadd.f32 %v6011_v50, %v1913_v14  ;;  %v1935_v49 = vadd.f32 %v4124_v43, %v1934_v57  ;;  %v4150_v55 = vpop.eup %4149  ;;  %v8011_v43 = vpack.c.bf16 %v5902_v30, %v5895_v54  ;;  %v8013_v54 = vld [vmem:[#allocation18_spill] sm:$0xff] }
 0x5a2   : > { %v1988_v35 = vpack.c.bf16 %v4150_v55, %v4148_v17  ;;  %v8014_v30 = vpack.c.bf16 %v5925_v8, %v8013_v54  ;;  %v8017_v8 = vpack.c.bf16 %v5973_v31, %v5964_v19  ;;  %v8020_v19 = vpack.c.bf16 %v6019_v24, %v6011_v50 }
 0x5a3   : > { %v4152_v4 = vpop.eup %4151  ;;  %v1915_v1 = vadd.f32 %v6019_v24, %v1914_v21  ;;  %v1936_v44 = vadd.f32 %v4126_v25, %v1935_v49  ;;  %v2058_v24 = vpop.trf.xlu0 }
 0x5a4   : > { %2012 = vmatpush1.bf16.msra.mxu1 %v8010_v40  ;;  %v4154_v33 = vpop.eup %4153 }
 0x5a5   : > { %2013 = vmatprep.subr.bf16.mxu1 %v1976_v42  ;;  %v4156_v34 = vpop.eup %4155  ;;  %v1916_v53 = vadd.f32 %v6024_v15, %v1915_v1  ;;  %v1937_v62 = vadd.f32 %v4128_v11, %v1936_v44  ;;  %v1990_v23 = vpack.c.bf16 %v4154_v33, %v4152_v4 }
 0x5a6   : > { %v4158_v9 = vpop.eup %4157 }
 0x5a7   : > { %v4160_v12 = vpop.eup %4159  ;;  %v6130_v36 = vadd.f32 %v6032_v41, %v1916_v53  ;;  %v1938_v20 = vadd.f32 %v4130_v28, %v1937_v62  ;;  %v1992_v25 = vpack.c.bf16 %v4158_v9, %v4156_v34  ;;  %v8015_v28 = vpack.c.bf16 %v5936_v3, %v5930_v22  ;;  %v2059_v50 = vpop.trf.xlu0 }
 0x5a8   : > { %2014 = vmatpush1.bf16.msra.mxu1 %v8011_v43  ;;  %v4162_v42 = vpop.eup %4161  ;;  %v8018_v22 = vpack.c.bf16 %v5988_v18, %v5981_v16  ;;  %v8021_v16 = vpack.c.bf16 %v6032_v41, %v6024_v15  ;;  %v8022_v18 = vld [vmem:[#allocation14_spill] sm:$0xff] }
 0x5a9   : > { %2015 = vmatprep.subr.bf16.mxu1 %v1978_v45  ;;  %v1939_v10 = vadd.f32 %v4132_v27, %v1938_v20  ;;  %v1994_v63 = vpack.c.bf16 %v4162_v42, %v4160_v12 }
 0x5ab   : > { %v1940_v11 = vadd.f32 %v4134_v26, %v1939_v10  ;;  %v2060_v15 = vpop.trf.xlu0 }
 0x5ac   : > { %2016 = vmatpush1.bf16.msra.mxu1 %v8012_v51 }
 0x5ad   : > { %2017 = vmatprep.subr.bf16.mxu1 %v1980_v38  ;;  %v1941_v56 = vadd.f32 %v4136_v61, %v1940_v11 }
 0x5af   : > { %v1942_v46 = vadd.f32 %v4138_v48, %v1941_v56  ;;  %v2061_v41 = vpop.trf.xlu0 }
 0x5b0   : > { %2018 = vmatpush1.bf16.msra.mxu1 %v8014_v30 }
 0x5b1   : > { %2019 = vmatprep.subr.bf16.mxu1 %v1982_v6  ;;  %v1943_v47 = vadd.f32 %v4140_v60, %v1942_v46  ;;  %v1330_v6 = vld [vmem:[#allocation3 + $0x20] sm:$0xf0] }
 0x5b2   : > { %v1997_v2 = vrot.slane %v1330_v6, 4 }
 0x5b3   : > { %v1944_v27 = vadd.f32 %v4142_v58, %v1943_v47  ;;  %v2131_v58 = vsel %vm709_vm1, %v8023_v13, 0 }
 0x5b4   : > { %2020 = vmatpush1.bf16.msra.mxu1 %v8015_v28 }
 0x5b5   : > { %2021 = vmatprep.subr.bf16.mxu1 %v1984_v32  ;;  %v1945_v45 = vadd.f32 %v4144_v0, %v1944_v27  ;;  %v2062_v0 = vpop.trf.xlu0 }
 0x5b7   : > { %v1946_v59 = vadd.f32 %v4146_v39, %v1945_v45  ;;  %v2074_v39 = vpop.trf.xlu1 }
 0x5b8   : > { %2022 = vmatpush1.bf16.msra.mxu1 %v8016_v7 }
 0x5b9   : > { %2023 = vmatprep.subr.bf16.mxu1 %v1986_v52  ;;  %v1947_v26 = vadd.f32 %v4148_v17, %v1946_v59  ;;  %v2063_v14 = vpop.trf.xlu0 }
 0x5bb   : > { %v1948_v61 = vadd.f32 %v4150_v55, %v1947_v26  ;;  %v2075_v17 = vpop.trf.xlu1 }
 0x5bc   : > { %2024 = vmatpush1.bf16.msra.mxu1 %v8017_v8 }
 0x5bd   : > { %2025 = vmatprep.subr.bf16.mxu1 %v1988_v35  ;;  %v1949_v38 = vadd.f32 %v4152_v4, %v1948_v61  ;;  %v2064_v57 = vpop.trf.xlu0  ;;  %v2751_v4 = vld [vmem:[#allocation3 + $0x38] sm:$0xf0]  ;;  %v1918_v35 = vrot.slane %v6130_v36, 4 }
 0x5be   : > { %v3418_v44 = vrot.slane %v2751_v4, 4 }
 0x5bf   : > { %v1950_v3 = vadd.f32 %v4154_v33, %v1949_v38  ;;  %v2076_v21 = vpop.trf.xlu1 }
 0x5c0   : > { %2026 = vmatpush1.bf16.msra.mxu1 %v8018_v22 }
 0x5c1   : > { %2027 = vmatprep.subr.bf16.mxu1 %v1990_v23  ;;  %v1951_v48 = vadd.f32 %v4156_v34, %v1950_v3  ;;  %v2065_v32 = vpop.trf.xlu0  ;;  %v1919_v34 = vadd.f32 %v1918_v35, %v6130_v36 }
 0x5c3   : > { %v1952_v37 = vadd.f32 %v4158_v9, %v1951_v48  ;;  %v2077_v49 = vpop.trf.xlu1  ;;  %v1920_v62 = vrot.slane %v1919_v34, 2 }
 0x5c4   : > { %2028 = vmatpush1.bf16.msra.mxu1 %v8019_v5 }
 0x5c5   : > { %2029 = vmatprep.subr.bf16.mxu1 %v1992_v25  ;;  %v1953_v60 = vadd.f32 %v4160_v12, %v1952_v37  ;;  %v1921_v9 = vadd.f32 %v1920_v62, %v1919_v34 }
 0x5c7   : > { %v6156_v31 = vadd.f32 %v4162_v42, %v1953_v60  ;;  %v2078_v52 = vpop.trf.xlu1  ;;  %v1922_v12 = vrot.slane %v1921_v9, 1 }
 0x5c8   : > { %2030 = vmatpush1.bf16.msra.mxu1 %v8020_v19 }
 0x5c9   : > { %2031 = vmatprep.subr.bf16.mxu1 %v1994_v63  ;;  %v1955_v33 = vrot.slane %v6156_v31, 4  ;;  %v1923_v25 = vadd.f32 %v1922_v12, %v1921_v9 }
 0x5cb   : > { %v2079_v55 = vpop.trf.xlu1  ;;  %v1956_v53 = vadd.f32 %v1955_v33, %v6156_v31  ;;  %4163 = vrcp.f32 %v1923_v25 }
 0x5cc   : > { %2032 = vmatpush1.bf16.msra.mxu1 %v8021_v16 }
 0x5cd   : > { %3766 = vmatprep.subr.msk.bf16.mxu1 %vm709_vm1, %v8022_v18  ;;  %v1957_v23 = vrot.slane %v1956_v53, 2 }
 0x5cf   : > { %2034 = vmatmul.mubr.bf16.vlgmr.msra.gmra.mrb[72].mxu1 %v1997_v2  ;;  %v2080_v40 = vpop.trf.xlu1  ;;  %v1958_v43 = vadd.f32 %v1957_v23, %v1956_v53 }
 0x5d0   : > { %2137 = vmatpush1.bf16.msra.mxu1 %v2131_v58  ;;  %2168 = vmatprep.mubr.bf16.mxu1 %v8024_v29 }
 0x5d1   : > { %v1959_v20 = vrot.slane %v1958_v43, 1 }
 0x5d3   : > { %v2081_v1 = vpop.trf.xlu1  ;;  %v1960_v42 = vadd.f32 %v1959_v20, %v1958_v43 }
 0x5d5   : > { %4165 = vrcp.f32 %v1960_v42  ;;  %v4164_v10 = vpop.eup %4163 }
 0x5d7   : > { %3767 = vmatmul.mubr.msk.bf16.vlgmr.msra.gmra.mrb[76].mxu1 %vm660_vm2, %v2058_v24 }
 0x5d8   : > { %2178 = vmatprep.mubr.bf16.mxu1 %v8024_v29 }
 0x5df   : > { %3768 = vmatmul.mubr.msk.bf16.gmra.mrb[80].mxu1 %vm660_vm2, %v2059_v50  ;;  %v4166_v51 = vpop.eup %4165 }
 0x5e0   : > { %2188 = vmatprep.mubr.bf16.mxu1 %v8024_v29 }
 0x5e7   : > { %3769 = vmatmul.mubr.msk.bf16.gmra.mrb[84].mxu1 %vm660_vm2, %v2060_v15 }
 0x5e8   : > { %2198 = vmatprep.mubr.bf16.mxu1 %v8024_v29 }
 0x5ef   : > { %3770 = vmatmul.mubr.msk.bf16.gmra.mrb[88].mxu1 %vm660_vm2, %v2061_v41 }
 0x5f0   : > { %2208 = vmatprep.mubr.bf16.mxu1 %v8024_v29 }
 0x5f7   : > { %3771 = vmatmul.mubr.msk.bf16.gmra.mrb[92].mxu1 %vm660_vm2, %v2062_v0 }
 0x5f8   : > { %2218 = vmatprep.mubr.bf16.mxu1 %v8024_v29 }
 0x5ff   : > { %3772 = vmatmul.mubr.msk.bf16.gmra.mrb[96].mxu1 %vm660_vm2, %v2063_v14 }
 0x600   : > { %2228 = vmatprep.mubr.bf16.mxu1 %v8024_v29 }
 0x607   : > { %3773 = vmatmul.mubr.msk.bf16.gmra.mrb[100].mxu1 %vm660_vm2, %v2064_v57 }
 0x608   : > { %2238 = vmatprep.mubr.bf16.mxu1 %v8024_v29 }
 0x60f   : > { %3774 = vmatmul.mubr.msk.bf16.gmra.mrb[104].mxu1 %vm660_vm2, %v2065_v32 }
 0x610   : > { %2248 = vmatprep.mubr.bf16.mxu1 %v8024_v29 }
 0x617   : > { %3775 = vmatmul.mubr.msk.bf16.gmra.mrb[108].mxu1 %vm660_vm2, %v2074_v39 }
 0x618   : > { %2258 = vmatprep.mubr.bf16.mxu1 %v8024_v29 }
 0x61f   : > { %3776 = vmatmul.mubr.msk.bf16.gmra.mrb[112].mxu1 %vm660_vm2, %v2075_v17 }
 0x620   : > { %2268 = vmatprep.mubr.bf16.mxu1 %v8024_v29 }
 0x627   : > { %3777 = vmatmul.mubr.msk.bf16.gmra.mrb[116].mxu1 %vm660_vm2, %v2076_v21 }
 0x628   : > { %2278 = vmatprep.mubr.bf16.mxu1 %v8024_v29 }
 0x62f   : > { %3778 = vmatmul.mubr.msk.bf16.gmra.mrb[120].mxu1 %vm660_vm2, %v2077_v49 }
 0x630   : > { %2288 = vmatprep.mubr.bf16.mxu1 %v8024_v29 }
 0x637   : > { %3779 = vmatmul.mubr.msk.bf16.gmra.mrb[124].mxu1 %vm660_vm2, %v2078_v52 }
 0x638   : > { %2298 = vmatprep.mubr.bf16.mxu1 %v8024_v29 }
 0x63f   : > { %3780 = vmatmul.mubr.msk.bf16.gmra.mrb[128].mxu1 %vm660_vm2, %v2079_v55 }
 0x640   : > { %2308 = vmatprep.mubr.bf16.mxu1 %v8024_v29 }
 0x647   : > { %3781 = vmatmul.mubr.msk.bf16.gmra.mrb[132].mxu1 %vm660_vm2, %v2080_v40 }
 0x648   : > { %2318 = vmatprep.mubr.bf16.mxu1 %v8024_v29 }
 0x64f   : > { %3782 = vmatmul.mubr.msk.bf16.gmra.mrb[136].mxu1 %vm660_vm2, %v2081_v1 }
 0x650   : > { %3453 = vmatprep.mubr.bf16.mxu1 %v3418_v44 }
 0x6a2   : > { %v2035_v63 = vpop.f32.mrb[72].mxu1 }
 0x6a3   : > { %v6201_v11 = vmul.f32 %v4164_v10, %v2035_v63  ;;  %v2037_v56 = vpop.f32.mrb[73].mxu1 }
 0x6a4   : > { %v6203_v54 = vmul.f32 %v4166_v51, %v2037_v56  ;;  %v2039_v36 = vpop.f32.mrb[74].mxu1 }
 0x6a5   : > { %8025 = vst [vmem:[#allocation19_spill] sm:$0xff] %v6201_v11  ;;  %v2040_v47 = vpop.f32.mrb[75].mxu1 }
 0x6a6   : > { %8026 = vst [vmem:[#allocation20_spill] sm:$0xff] %v6203_v54 }
 0x6aa   : > { %v6209_v45 = vpop.f32.mrb[76].mxu1 }
 0x6ab   : > { %v6211_v7 = vpop.f32.mrb[77].mxu1 }
 0x6ac   : > { %v6213_v59 = vpop.f32.mrb[78].mxu1 }
 0x6ad   : > { %v6215_v26 = vpop.f32.mrb[79].mxu1 }
 0x6b2   : > { %v6217_v8 = vpop.f32.mrb[80].mxu1 }
 0x6b3   : > { %v2329_v61 = vmax.f32 %v6209_v45, %v6217_v8  ;;  %v6221_v38 = vpop.f32.mrb[81].mxu1 }
 0x6b4   : > { %v2366_v22 = vmax.f32 %v6211_v7, %v6221_v38  ;;  %v6225_v3 = vpop.f32.mrb[82].mxu1 }
 0x6b5   : > { %v2330_v48 = vmax.f32 %v6213_v59, %v6225_v3  ;;  %v6229_v5 = vpop.f32.mrb[83].mxu1 }
 0x6b6   : > { %v2367_v37 = vmax.f32 %v6215_v26, %v6229_v5 }
 0x6ba   : > { %v6233_v60 = vpop.f32.mrb[84].mxu1 }
 0x6bb   : > { %v2331_v19 = vmax.f32 %v2329_v61, %v6233_v60  ;;  %v6236_v31 = vpop.f32.mrb[85].mxu1 }
 0x6bc   : > { %v2368_v6 = vmax.f32 %v2366_v22, %v6236_v31  ;;  %v6239_v16 = vpop.f32.mrb[86].mxu1 }
 0x6bd   : > { %v2332_v2 = vmax.f32 %v2330_v48, %v6239_v16  ;;  %v6242_v58 = vpop.f32.mrb[87].mxu1 }
 0x6be   : > { %v2369_v24 = vmax.f32 %v2367_v37, %v6242_v58 }
 0x6c2   : > { %v6245_v50 = vpop.f32.mrb[88].mxu1 }
 0x6c3   : > { %v2333_v15 = vmax.f32 %v2331_v19, %v6245_v50  ;;  %v6248_v41 = vpop.f32.mrb[89].mxu1 }
 0x6c4   : > { %v2370_v0 = vmax.f32 %v2368_v6, %v6248_v41  ;;  %v6251_v14 = vpop.f32.mrb[90].mxu1 }
 0x6c5   : > { %v2334_v57 = vmax.f32 %v2332_v2, %v6251_v14  ;;  %v6254_v32 = vpop.f32.mrb[91].mxu1 }
 0x6c6   : > { %v2371_v39 = vmax.f32 %v2369_v24, %v6254_v32 }
 0x6ca   : > { %v6257_v17 = vpop.f32.mrb[92].mxu1 }
 0x6cb   : > { %v2335_v21 = vmax.f32 %v2333_v15, %v6257_v17  ;;  %v6260_v49 = vpop.f32.mrb[93].mxu1 }
 0x6cc   : > { %v2372_v52 = vmax.f32 %v2370_v0, %v6260_v49  ;;  %v6263_v55 = vpop.f32.mrb[94].mxu1 }
 0x6cd   : > { %v2336_v40 = vmax.f32 %v2334_v57, %v6263_v55  ;;  %v6266_v4 = vpop.f32.mrb[95].mxu1 }
 0x6ce   : > { %v2373_v1 = vmax.f32 %v2371_v39, %v6266_v4 }
 0x6d2   : > { %v6269_v44 = vpop.f32.mrb[96].mxu1 }
 0x6d3   : > { %v2337_v35 = vmax.f32 %v2335_v21, %v6269_v44  ;;  %v6272_v33 = vpop.f32.mrb[97].mxu1 }
 0x6d4   : > { %v2374_v34 = vmax.f32 %v2372_v52, %v6272_v33  ;;  %v6275_v53 = vpop.f32.mrb[98].mxu1 }
 0x6d5   : > { %v2338_v62 = vmax.f32 %v2336_v40, %v6275_v53  ;;  %v6278_v23 = vpop.f32.mrb[99].mxu1 }
 0x6d6   : > { %8029 = vst [vmem:[#allocation21_spill] sm:$0xff] %v6278_v23  ;;  %v2375_v9 = vmax.f32 %v2373_v1, %v6278_v23 }
 0x6da   : > { %v6281_v43 = vpop.f32.mrb[100].mxu1 }
 0x6db   : > { %v2339_v12 = vmax.f32 %v2337_v35, %v6281_v43  ;;  %v6284_v20 = vpop.f32.mrb[101].mxu1 }
 0x6dc   : > { %8030 = vst [vmem:[#allocation22_spill] sm:$0xff] %v6284_v20  ;;  %v2376_v25 = vmax.f32 %v2374_v34, %v6284_v20  ;;  %v6287_v42 = vpop.f32.mrb[102].mxu1 }
 0x6dd   : > { %v2340_v10 = vmax.f32 %v2338_v62, %v6287_v42  ;;  %v6290_v63 = vpop.f32.mrb[103].mxu1 }
 0x6de   : > { %8031 = vst [vmem:[#allocation23_spill] sm:$0xff] %v6290_v63  ;;  %v2377_v51 = vmax.f32 %v2375_v9, %v6290_v63 }
 0x6e2   : > { %v6293_v56 = vpop.f32.mrb[104].mxu1 }
 0x6e3   : > { %v2341_v36 = vmax.f32 %v2339_v12, %v6293_v56  ;;  %v6296_v47 = vpop.f32.mrb[105].mxu1 }
 0x6e4   : > { %8032 = vst [vmem:[#allocation24_spill] sm:$0xff] %v6296_v47  ;;  %v2378_v61 = vmax.f32 %v2376_v25, %v6296_v47  ;;  %v6299_v22 = vpop.f32.mrb[106].mxu1 }
 0x6e5   : > { %v2342_v48 = vmax.f32 %v2340_v10, %v6299_v22  ;;  %v6302_v37 = vpop.f32.mrb[107].mxu1 }
 0x6e6   : > { %8033 = vst [vmem:[#allocation25_spill] sm:$0xff] %v6302_v37  ;;  %v2379_v19 = vmax.f32 %v2377_v51, %v6302_v37 }
 0x6ea   : > { %v6305_v6 = vpop.f32.mrb[108].mxu1 }
 0x6eb   : > { %v2343_v2 = vmax.f32 %v2341_v36, %v6305_v6  ;;  %v6308_v24 = vpop.f32.mrb[109].mxu1 }
 0x6ec   : > { %8034 = vst [vmem:[#allocation26_spill] sm:$0xff] %v6308_v24  ;;  %v2380_v15 = vmax.f32 %v2378_v61, %v6308_v24  ;;  %v6311_v0 = vpop.f32.mrb[110].mxu1 }
 0x6ed   : > { %v2344_v57 = vmax.f32 %v2342_v48, %v6311_v0  ;;  %v6314_v39 = vpop.f32.mrb[111].mxu1 }
 0x6ee   : > { %8035 = vst [vmem:[#allocation27_spill] sm:$0xff] %v6314_v39  ;;  %v2381_v21 = vmax.f32 %v2379_v19, %v6314_v39 }
 0x6f2   : > { %v6317_v52 = vpop.f32.mrb[112].mxu1 }
 0x6f3   : > { %v2345_v40 = vmax.f32 %v2343_v2, %v6317_v52  ;;  %v6320_v1 = vpop.f32.mrb[113].mxu1 }
 0x6f4   : > { %8036 = vst [vmem:[#allocation28_spill] sm:$0xff] %v6320_v1  ;;  %v2382_v35 = vmax.f32 %v2380_v15, %v6320_v1  ;;  %v6323_v34 = vpop.f32.mrb[114].mxu1 }
 0x6f5   : > { %v2346_v62 = vmax.f32 %v2344_v57, %v6323_v34  ;;  %v6326_v9 = vpop.f32.mrb[115].mxu1 }
 0x6f6   : > { %8037 = vst [vmem:[#allocation29_spill] sm:$0xff] %v6326_v9  ;;  %v2383_v12 = vmax.f32 %v2381_v21, %v6326_v9 }
 0x6fa   : > { %v6329_v25 = vpop.f32.mrb[116].mxu1 }
 0x6fb   : > { %v2347_v10 = vmax.f32 %v2345_v40, %v6329_v25  ;;  %v6332_v51 = vpop.f32.mrb[117].mxu1 }
 0x6fc   : > { %8038 = vst [vmem:[#allocation31_spill] sm:$0xff] %v6332_v51  ;;  %v2384_v36 = vmax.f32 %v2382_v35, %v6332_v51  ;;  %v6335_v61 = vpop.f32.mrb[118].mxu1 }
 0x6fd   : > { %v2348_v48 = vmax.f32 %v2346_v62, %v6335_v61  ;;  %v6338_v19 = vpop.f32.mrb[119].mxu1 }
 0x6fe   : > { %8039 = vst [vmem:[#allocation33_spill] sm:$0xff] %v6338_v19  ;;  %v2385_v2 = vmax.f32 %v2383_v12, %v6338_v19 }
 0x702   : > { %v6341_v15 = vpop.f32.mrb[120].mxu1 }
 0x703   : > { %v2349_v57 = vmax.f32 %v2347_v10, %v6341_v15  ;;  %v6344_v21 = vpop.f32.mrb[121].mxu1 }
 0x704   : > { %8040 = vst [vmem:[#allocation34_spill] sm:$0xff] %v6344_v21  ;;  %v2386_v40 = vmax.f32 %v2384_v36, %v6344_v21  ;;  %v6347_v46 = vpop.f32.mrb[122].mxu1 }
 0x705   : > { %v2350_v35 = vmax.f32 %v2348_v48, %v6347_v46  ;;  %v6350_v27 = vpop.f32.mrb[123].mxu1 }
 0x706   : > { %8041 = vst [vmem:[#allocation32_spill] sm:$0xff] %v6350_v27  ;;  %v2387_v62 = vmax.f32 %v2385_v2, %v6350_v27 }
 0x70a   : > { %v6353_v30 = vpop.f32.mrb[124].mxu1 }
 0x70b   : > { %v2351_v12 = vmax.f32 %v2349_v57, %v6353_v30  ;;  %v6356_v11 = vpop.f32.mrb[125].mxu1 }
 0x70c   : > { %8042 = vst [vmem:[#allocation15_spill] sm:$0xff] %v6356_v11  ;;  %v2388_v10 = vmax.f32 %v2386_v40, %v6356_v11  ;;  %v6359_v28 = vpop.f32.mrb[126].mxu1 }
 0x70d   : > { %v2352_v36 = vmax.f32 %v2350_v35, %v6359_v28  ;;  %v6362_v54 = vpop.f32.mrb[127].mxu1 }
 0x70e   : > { %8043 = vst [vmem:[#allocation11_spill] sm:$0xff] %v6362_v54  ;;  %v2389_v48 = vmax.f32 %v2387_v62, %v6362_v54 }
 0x712   : > { %v6365_v29 = vpop.f32.mrb[128].mxu1 }
 0x713   : > { %v2353_v2 = vmax.f32 %v2351_v12, %v6365_v29  ;;  %v6368_v18 = vpop.f32.mrb[129].mxu1 }
 0x714   : > { %8044 = vst [vmem:[#allocation30_spill] sm:$0xff] %v6368_v18  ;;  %v2390_v57 = vmax.f32 %v2388_v10, %v6368_v18  ;;  %v6371_v13 = vpop.f32.mrb[130].mxu1 }
 0x715   : > { %v2354_v40 = vmax.f32 %v2352_v36, %v6371_v13  ;;  %v6374_v11 = vpop.f32.mrb[131].mxu1 }
 0x716   : > { %8045 = vst [vmem:[#allocation35_spill] sm:$0xff] %v6374_v11  ;;  %v2391_v35 = vmax.f32 %v2389_v48, %v6374_v11 }
 0x71a   : > { %v6377_v27 = vpop.f32.mrb[132].mxu1 }
 0x71b   : > { %v2355_v62 = vmax.f32 %v2353_v2, %v6377_v27  ;;  %v6380_v54 = vpop.f32.mrb[133].mxu1 }
 0x71c   : > { %8046 = vst [vmem:[#allocation12_spill] sm:$0xff] %v6380_v54  ;;  %v2392_v12 = vmax.f32 %v2390_v57, %v6380_v54  ;;  %v6383_v21 = vpop.f32.mrb[134].mxu1 }
 0x71d   : > { %v2356_v10 = vmax.f32 %v2354_v40, %v6383_v21  ;;  %v6386_v18 = vpop.f32.mrb[135].mxu1 }
 0x71e   : > { %8047 = vst [vmem:[#allocation18_spill] sm:$0xff] %v6386_v18  ;;  %v2393_v36 = vmax.f32 %v2391_v35, %v6386_v18 }
 0x722   : > { %v6389_v19 = vpop.f32.mrb[136].mxu1 }
 0x723   : > { %v2357_v48 = vmax.f32 %v2355_v62, %v6389_v19  ;;  %v6392_v11 = vpop.f32.mrb[137].mxu1 }
 0x724   : > { %8048 = vst [vmem:[#allocation36_spill] sm:$0xff] %v6392_v11  ;;  %v2394_v2 = vmax.f32 %v2392_v12, %v6392_v11  ;;  %v6395_v51 = vpop.f32.mrb[138].mxu1 }
 0x725   : > { %v2358_v57 = vmax.f32 %v2356_v10, %v6395_v51  ;;  %v6398_v54 = vpop.f32.mrb[139].mxu1 }
 0x726   : > { %8049 = vst [vmem:[#allocation37_spill] sm:$0xff] %v6398_v54  ;;  %v2395_v40 = vmax.f32 %v2393_v36, %v6398_v54 }
 0x727   : > { %v2359_v9 = vmax.f32 %v2357_v48, %v2358_v57 }
 0x728   : > { %v2396_v1 = vmax.f32 %v2394_v2, %v2395_v40 }
 0x729   : > { %v2360_v39 = vrot.slane %v2359_v9, 4 }
 0x72a   : > { %v2397_v35 = vrot.slane %v2396_v1, 4 }
 0x72b   : > { %v2361_v18 = vmax.f32 %v2359_v9, %v2360_v39 }
 0x72c   : > { %v2398_v24 = vmax.f32 %v2396_v1, %v2397_v35 }
 0x72d   : > { %v2362_v37 = vrot.slane %v2361_v18, 2 }
 0x72e   : > { %v2399_v62 = vrot.slane %v2398_v24, 2 }
 0x72f   : > { %v2363_v47 = vmax.f32 %v2361_v18, %v2362_v37  ;;  %v8069_v37 = vld [vmem:[#allocation36_spill] sm:$0xff] }
 0x730   : > { %v2400_v63 = vmax.f32 %v2398_v24, %v2399_v62 }
 0x731   : > { %v2364_v20 = vrot.slane %v2363_v47, 1 }
 0x732   : > { %v2401_v12 = vrot.slane %v2400_v63, 1 }
 0x733   : > { %v6401_v11 = vmax.f32 %v2363_v47, %v2364_v20 }
 0x734   : > { %v6403_v23 = vmax.f32 %v2400_v63, %v2401_v12 }
 0x735   : > { %v2403_v10 = vsub.f32 %v6209_v45, %v6401_v11  ;;  %v2405_v36 = vsub.f32 %v6213_v59, %v6401_v11  ;;  %v2407_v39 = vsub.f32 %v6217_v8, %v6401_v11  ;;  %v2409_v1 = vsub.f32 %v6225_v3, %v6401_v11 }
 0x736   : > { %v2411_v18 = vsub.f32 %v6233_v60, %v6401_v11  ;;  %v2413_v20 = vsub.f32 %v6239_v16, %v6401_v11  ;;  %v2415_v63 = vsub.f32 %v6245_v50, %v6401_v11  ;;  %v2417_v45 = vsub.f32 %v6251_v14, %v6401_v11 }
 0x737   : > { %v2419_v59 = vsub.f32 %v6257_v17, %v6401_v11  ;;  %v2421_v8 = vsub.f32 %v6263_v55, %v6401_v11  ;;  %v2423_v3 = vsub.f32 %v6269_v44, %v6401_v11  ;;  %v2425_v60 = vsub.f32 %v6275_v53, %v6401_v11 }
 0x738   : > { %v2427_v16 = vsub.f32 %v6281_v43, %v6401_v11  ;;  %v2429_v50 = vsub.f32 %v6287_v42, %v6401_v11  ;;  %v2431_v14 = vsub.f32 %v6293_v56, %v6401_v11  ;;  %v2433_v17 = vsub.f32 %v6299_v22, %v6401_v11 }
 0x739   : > { %v2435_v55 = vsub.f32 %v6305_v6, %v6401_v11  ;;  %v2437_v44 = vsub.f32 %v6311_v0, %v6401_v11  ;;  %v2439_v53 = vsub.f32 %v6317_v52, %v6401_v11  ;;  %v2441_v43 = vsub.f32 %v6323_v34, %v6401_v11 }
 0x73a   : > { %v2443_v42 = vsub.f32 %v6329_v25, %v6401_v11  ;;  %v2445_v56 = vsub.f32 %v6335_v61, %v6401_v11  ;;  %v2447_v47 = vsub.f32 %v6341_v15, %v6401_v11  ;;  %v2449_v22 = vsub.f32 %v6347_v46, %v6401_v11 }
 0x73b   : > { %v2467_v25 = vmul.f32 1.442695, %v2403_v10  ;;  %v2471_v61 = vmul.f32 1.442695, %v2405_v36  ;;  %v2475_v15 = vmul.f32 1.442695, %v2407_v39 }
 0x73c   : > { %v2479_v2 = vmul.f32 1.442695, %v2409_v1  ;;  %v2483_v40 = vmul.f32 1.442695, %v2411_v18  ;;  %v2487_v35 = vmul.f32 1.442695, %v2413_v20 }
 0x73d   : > { %4167 = vpow2.f32 %v2467_v25  ;;  %v2491_v62 = vmul.f32 1.442695, %v2415_v63  ;;  %v2495_v12 = vmul.f32 1.442695, %v2417_v45  ;;  %v2499_v46 = vmul.f32 1.442695, %v2419_v59 }
 0x73e   : > { %4169 = vpow2.f32 %v2471_v61  ;;  %v2503_v9 = vmul.f32 1.442695, %v2421_v8  ;;  %v2507_v10 = vmul.f32 1.442695, %v2423_v3  ;;  %v2511_v36 = vmul.f32 1.442695, %v2425_v60 }
 0x73f   : > { %4171 = vpow2.f32 %v2475_v15  ;;  %v2515_v39 = vmul.f32 1.442695, %v2427_v16  ;;  %v2519_v48 = vmul.f32 1.442695, %v2429_v50  ;;  %v2523_v1 = vmul.f32 1.442695, %v2431_v14 }
 0x740   : > { %4173 = vpow2.f32 %v2479_v2  ;;  %v2527_v34 = vmul.f32 1.442695, %v2433_v17  ;;  %v2531_v57 = vmul.f32 1.442695, %v2435_v55  ;;  %v2535_v25 = vmul.f32 1.442695, %v2437_v44 }
 0x741   : > { %4175 = vpow2.f32 %v2483_v40  ;;  %v2539_v18 = vmul.f32 1.442695, %v2439_v53  ;;  %v2543_v20 = vmul.f32 1.442695, %v2441_v43  ;;  %v2547_v61 = vmul.f32 1.442695, %v2443_v42 }
 0x742   : > { %4177 = vpow2.f32 %v2487_v35  ;;  %v6473_v63 = vmul.f32 1.442695, %v2445_v56  ;;  %v6475_v45 = vmul.f32 1.442695, %v2447_v47  ;;  %v6477_v59 = vmul.f32 1.442695, %v2449_v22 }
 0x743   : > { %4179 = vpow2.f32 %v2491_v62  ;;  %v8050_v42 = vld [vmem:[#allocation21_spill] sm:$0xff]  ;;  %v8052_v15 = vld [vmem:[#allocation23_spill] sm:$0xff]  ;;  %v8053_v35 = vld [vmem:[#allocation24_spill] sm:$0xff] }
 0x744   : > { %4181 = vpow2.f32 %v2495_v12  ;;  %v8054_v12 = vld [vmem:[#allocation25_spill] sm:$0xff]  ;;  %v8056_v43 = vld [vmem:[#allocation27_spill] sm:$0xff]  ;;  %v8057_v53 = vld [vmem:[#allocation28_spill] sm:$0xff] }
 0x745   : > { %4183 = vpow2.f32 %v2499_v46  ;;  %v8051_v46 = vld [vmem:[#allocation22_spill] sm:$0xff]  ;;  %v8058_v62 = vld [vmem:[#allocation29_spill] sm:$0xff]  ;;  %v8059_v17 = vld [vmem:[#allocation31_spill] sm:$0xff] }
 0x746   : > { %4185 = vpow2.f32 %v2503_v9  ;;  %v8060_v14 = vld [vmem:[#allocation33_spill] sm:$0xff]  ;;  %v8061_v2 = vld [vmem:[#allocation34_spill] sm:$0xff]  ;;  %v8062_v60 = vld [vmem:[#allocation32_spill] sm:$0xff] }
 0x747   : > { %v6487_v50 = vpop.eup %4167  ;;  %4187 = vpow2.f32 %v2507_v10  ;;  %v8063_v10 = vld [vmem:[#allocation15_spill] sm:$0xff] }
 0x748   : > { %v6495_v44 = vpop.eup %4169  ;;  %4189 = vpow2.f32 %v2511_v36  ;;  %v8055_v36 = vld [vmem:[#allocation26_spill] sm:$0xff]  ;;  %v8064_v8 = vld [vmem:[#allocation11_spill] sm:$0xff] }
 0x749   : > { %v6503_v47 = vpop.eup %4171  ;;  %4191 = vpow2.f32 %v2515_v39  ;;  %v2595_v22 = vadd.f32 %v6495_v44, %v6487_v50  ;;  %v8068_v39 = vld [vmem:[#allocation18_spill] sm:$0xff] }
 0x74a   : > { %v6511_v40 = vpop.eup %4173  ;;  %4193 = vpow2.f32 %v2519_v48  ;;  %v8066_v48 = vld [vmem:[#allocation35_spill] sm:$0xff] }
 0x74b   : > { %v6519_v56 = vpop.eup %4175  ;;  %4195 = vpow2.f32 %v2523_v1  ;;  %v2596_v9 = vadd.f32 %v6503_v47, %v2595_v22 }
 0x74c   : > { %v6526_v55 = vpop.eup %4177  ;;  %4197 = vpow2.f32 %v2527_v34 }
 0x74d   : > { %v6534_v16 = vpop.eup %4179  ;;  %4199 = vpow2.f32 %v2531_v57  ;;  %v2597_v22 = vadd.f32 %v6511_v40, %v2596_v9 }
 0x74e   : > { %v6541_v3 = vpop.eup %4181  ;;  %4201 = vpow2.f32 %v2535_v25 }
 0x74f   : > { %v6549_v0 = vpop.eup %4183  ;;  %4203 = vpow2.f32 %v2539_v18  ;;  %v2598_v9 = vadd.f32 %v6519_v56, %v2597_v22  ;;  %v8070_v22 = vsub.f32 %v6353_v30, %v6401_v11 }
 0x750   : > { %v6556_v6 = vpop.eup %4185  ;;  %4205 = vpow2.f32 %v2543_v20  ;;  %v8071_v20 = vsub.f32 %v6359_v28, %v6401_v11 }
 0x751   : > { %v6564_v52 = vpop.eup %4187  ;;  %4207 = vpow2.f32 %v2547_v61  ;;  %v2563_v34 = vmul.f32 1.442695, %v8070_v22  ;;  %v2599_v25 = vadd.f32 %v6526_v55, %v2598_v9  ;;  %v8072_v61 = vsub.f32 %v6365_v29, %v6401_v11 }
 0x752   : > { %v6570_v24 = vpop.eup %4189  ;;  %4209 = vpow2.f32 %v6473_v63  ;;  %v2567_v57 = vmul.f32 1.442695, %v8071_v20  ;;  %v8073_v63 = vsub.f32 %v6371_v13, %v6401_v11  ;;  %v8077_v13 = vsub.f32 %v6389_v19, %v6401_v11 }
 0x753   : > { %v6576_v1 = vpop.eup %4191  ;;  %4211 = vpow2.f32 %v6475_v45  ;;  %v2571_v18 = vmul.f32 1.442695, %v8072_v61  ;;  %v2600_v30 = vadd.f32 %v6534_v16, %v2599_v25  ;;  %v8074_v45 = vsub.f32 %v6377_v27, %v6401_v11 }
 0x754   : > { %v6583_v22 = vpop.eup %4193  ;;  %4213 = vpow2.f32 %v6477_v59  ;;  %v2575_v9 = vmul.f32 1.442695, %v8073_v63  ;;  %v8075_v25 = vsub.f32 %v6383_v21, %v6401_v11 }
 0x755   : > { %v6589_v28 = vpop.eup %4195  ;;  %4215 = vpow2.f32 %v2563_v34  ;;  %v2579_v20 = vmul.f32 1.442695, %v8074_v45  ;;  %v2601_v29 = vadd.f32 %v6541_v3, %v2600_v30  ;;  %v2587_v34 = vmul.f32 1.442695, %v8077_v13 }
 0x756   : > { %v6595_v61 = vpop.eup %4197  ;;  %4217 = vpow2.f32 %v2567_v57  ;;  %v2583_v59 = vmul.f32 1.442695, %v8075_v25  ;;  %v8078_v30 = vsub.f32 %v6395_v51, %v6401_v11  ;;  %v8081_v11 = vsub.f32 %v6221_v38, %v6403_v23 }
 0x757   : > { %v6600_v54 = vpop.eup %4199  ;;  %4219 = vpow2.f32 %v2571_v18  ;;  %v2602_v63 = vadd.f32 %v6549_v0, %v2601_v29  ;;  %v8079_v18 = vsub.f32 %v6211_v7, %v6403_v23  ;;  %v8080_v29 = vsub.f32 %v6215_v26, %v6403_v23 }
 0x758   : > { %8076 = vst [vmem:[#allocation21_spill] sm:$0xff] %v6600_v54  ;;  %v6606_v27 = vpop.eup %4201  ;;  %4221 = vpow2.f32 %v2575_v9  ;;  %v2591_v57 = vmul.f32 1.442695, %v8078_v30  ;;  %v2477_v51 = vmul.f32 1.442695, %v8081_v11  ;;  %v8082_v7 = vsub.f32 %v6229_v5, %v6403_v23 }
 0x759   : > { %v6611_v45 = vpop.eup %4203  ;;  %4223 = vpow2.f32 %v2579_v20  ;;  %v2603_v21 = vadd.f32 %v6556_v6, %v2602_v63  ;;  %v2469_v25 = vmul.f32 1.442695, %v8079_v18  ;;  %v2473_v9 = vmul.f32 1.442695, %v8080_v29 }
 0x75a   : > { %v6617_v19 = vpop.eup %4205  ;;  %4225 = vpow2.f32 %v2583_v59  ;;  %v2481_v63 = vmul.f32 1.442695, %v8082_v7  ;;  %v8083_v59 = vsub.f32 %v6236_v31, %v6403_v23  ;;  %v8084_v26 = vsub.f32 %v6242_v58, %v6403_v23 }
 0x75b   : > { %v6625_v13 = vpop.eup %4207  ;;  %4227 = vpow2.f32 %v2587_v34  ;;  %v2604_v20 = vadd.f32 %v6564_v52, %v2603_v21  ;;  %v8085_v34 = vsub.f32 %v6248_v41, %v6403_v23  ;;  %v8086_v21 = vsub.f32 %v6254_v32, %v6403_v23 }
 0x75c   : > { %v2485_v30 = vmul.f32 1.442695, %v8083_v59  ;;  %v6634_v18 = vpop.eup %4209  ;;  %4229 = vpow2.f32 %v2591_v57  ;;  %v2489_v38 = vmul.f32 1.442695, %v8084_v26  ;;  %v8087_v57 = vsub.f32 %v6260_v49, %v6403_v23 }
 0x75d   : > { %v2493_v29 = vmul.f32 1.442695, %v8085_v34  ;;  %v2497_v5 = vmul.f32 1.442695, %v8086_v21  ;;  %v6645_v11 = vpop.eup %4211  ;;  %v2605_v31 = vadd.f32 %v6570_v24, %v2604_v20  ;;  %4231 = vpow2.f32 %v2469_v25 }
 0x75e   : > { %v2501_v7 = vmul.f32 1.442695, %v8087_v57  ;;  %v8088_v58 = vsub.f32 %v6266_v4, %v6403_v23  ;;  %v6654_v26 = vpop.eup %4213  ;;  %4233 = vpow2.f32 %v2473_v9 }
 0x75f   : > { %v6662_v20 = vpop.eup %4215  ;;  %v2606_v49 = vadd.f32 %v6576_v1, %v2605_v31  ;;  %4235 = vpow2.f32 %v2477_v51 }
 0x760   : > { %v2505_v59 = vmul.f32 1.442695, %v8088_v58  ;;  %v6669_v34 = vpop.eup %4217  ;;  %4237 = vpow2.f32 %v2481_v63  ;;  %v8089_v63 = vsub.f32 %v6272_v33, %v6403_v23  ;;  %v8090_v58 = vsub.f32 %v8050_v42, %v6403_v23 }
 0x761   : > { %v6677_v31 = vpop.eup %4219  ;;  %v2607_v51 = vadd.f32 %v6583_v22, %v2606_v49  ;;  %4239 = vpow2.f32 %v2485_v30 }
 0x762   : > { %v6684_v4 = vpop.eup %4221  ;;  %4241 = vpow2.f32 %v2489_v38  ;;  %v2509_v9 = vmul.f32 1.442695, %v8089_v63  ;;  %v2513_v57 = vmul.f32 1.442695, %v8090_v58 }
 0x763   : > { %v6692_v49 = vpop.eup %4223  ;;  %v2608_v30 = vadd.f32 %v6589_v28, %v2607_v51  ;;  %4243 = vpow2.f32 %v2493_v29  ;;  %v8091_v29 = vsub.f32 %v8051_v46, %v6403_v23  ;;  %v8096_v46 = vsub.f32 %v8056_v43, %v6403_v23 }
 0x764   : > { %v6700_v25 = vpop.eup %4225  ;;  %4245 = vpow2.f32 %v2497_v5  ;;  %v8092_v5 = vsub.f32 %v8052_v15, %v6403_v23  ;;  %v8095_v15 = vsub.f32 %v8055_v36, %v6403_v23  ;;  %v8099_v43 = vsub.f32 %v8059_v17, %v6403_v23 }
 0x765   : > { %v6705_v21 = vpop.eup %4227  ;;  %v2609_v32 = vadd.f32 %v6595_v61, %v2608_v30  ;;  %4247 = vpow2.f32 %v2501_v7  ;;  %v2517_v33 = vmul.f32 1.442695, %v8091_v29  ;;  %v8093_v7 = vsub.f32 %v8053_v35, %v6403_v23 }
 0x766   : > { %v6713_v63 = vpop.eup %4229  ;;  %4249 = vpow2.f32 %v2505_v59  ;;  %v2521_v42 = vmul.f32 1.442695, %v8092_v5  ;;  %v8094_v59 = vsub.f32 %v8054_v12, %v6403_v23  ;;  %v2533_v5 = vmul.f32 1.442695, %v8095_v15 }
 0x767   : > { %v4232_v58 = vpop.eup %4231  ;;  %v2610_v38 = vadd.f32 %v6600_v54, %v2609_v32  ;;  %4251 = vpow2.f32 %v2509_v9  ;;  %v2525_v30 = vmul.f32 1.442695, %v8093_v7  ;;  %v8097_v12 = vsub.f32 %v8057_v53, %v6403_v23 }
 0x768   : > { %v4234_v29 = vpop.eup %4233  ;;  %4253 = vpow2.f32 %v2513_v57  ;;  %v2529_v51 = vmul.f32 1.442695, %v8094_v59  ;;  %v2537_v57 = vmul.f32 1.442695, %v8096_v46  ;;  %v2549_v46 = vmul.f32 1.442695, %v8099_v43 }
 0x769   : > { %v4236_v41 = vpop.eup %4235  ;;  %v2611_v32 = vadd.f32 %v6606_v27, %v2610_v38  ;;  %4255 = vpow2.f32 %v2517_v33  ;;  %v2632_v9 = vadd.f32 %v4234_v29, %v4232_v58  ;;  %v2672_v35 = vpack.c.bf16 %v4234_v29, %v4232_v58 }
 0x76a   : > { %v4238_v7 = vpop.eup %4237  ;;  %4257 = vpow2.f32 %v2521_v42  ;;  %v2541_v59 = vmul.f32 1.442695, %v8097_v12  ;;  %v8098_v42 = vsub.f32 %v8058_v62, %v6403_v23  ;;  %v8100_v53 = vpack.c.bf16 %v6495_v44, %v6487_v50 }
 0x76b   : > { %v4240_v54 = vpop.eup %4239  ;;  %v2612_v36 = vadd.f32 %v6611_v45, %v2611_v32  ;;  %4259 = vpow2.f32 %v2525_v30  ;;  %v2633_v15 = vadd.f32 %v4236_v41, %v2632_v9  ;;  %2703 = vmatprep.subr.bf16.mxu0 %v2672_v35  ;;  %v2674_v38 = vpack.c.bf16 %v4238_v7, %v4236_v41 }
 0x76c   : > { %v4242_v33 = vpop.eup %4241  ;;  %4261 = vpow2.f32 %v2529_v51  ;;  %v2545_v58 = vmul.f32 1.442695, %v8098_v42  ;;  %2704 = vmatpush1.bf16.msra.mxu0 %v8100_v53  ;;  %v8101_v62 = vsub.f32 %v8060_v14, %v6403_v23  ;;  %v8102_v17 = vsub.f32 %v8061_v2, %v6403_v23  ;;  %v8107_v53 = vld [vmem:[#allocation30_spill] sm:$0xff] }
 0x76d   : > { %v4244_v29 = vpop.eup %4243  ;;  %v2613_v30 = vadd.f32 %v6617_v19, %v2612_v36  ;;  %4263 = vpow2.f32 %v2533_v5  ;;  %v2634_v32 = vadd.f32 %v4238_v7, %v2633_v15  ;;  %2705 = vmatprep.subr.bf16.mxu0 %v2674_v38  ;;  %v2676_v41 = vpack.c.bf16 %v4242_v33, %v4240_v54 }
 0x76e   : > { %v4246_v51 = vpop.eup %4245  ;;  %4265 = vpow2.f32 %v2537_v57  ;;  %v2553_v9 = vmul.f32 1.442695, %v8101_v62  ;;  %v2557_v35 = vmul.f32 1.442695, %v8102_v17  ;;  %v8103_v7 = vsub.f32 %v8062_v60, %v6403_v23 }
 0x76f   : > { %v4248_v12 = vpop.eup %4247  ;;  %v2614_v50 = vadd.f32 %v6625_v13, %v2613_v30  ;;  %4267 = vpow2.f32 %v2541_v59  ;;  %v2635_v44 = vadd.f32 %v4240_v54, %v2634_v32  ;;  %v2678_v36 = vpack.c.bf16 %v4246_v51, %v4244_v29 }
 0x770   : > { %v4250_v5 = vpop.eup %4249  ;;  %4269 = vpow2.f32 %v2545_v58  ;;  %v2561_v57 = vmul.f32 1.442695, %v8103_v7  ;;  %v8104_v14 = vsub.f32 %v8063_v10, %v6403_v23  ;;  %v8105_v2 = vpack.c.bf16 %v6511_v40, %v6503_v47 }
 0x771   : > { %v4252_v38 = vpop.eup %4251  ;;  %v2615_v42 = vadd.f32 %v6634_v18, %v2614_v50  ;;  %4271 = vpow2.f32 %v2549_v46  ;;  %v2636_v54 = vadd.f32 %v4242_v33, %v2635_v44  ;;  %v2680_v59 = vpack.c.bf16 %v4250_v5, %v4248_v12 }
 0x772   : > { %v2565_v15 = vmul.f32 1.442695, %v8104_v14  ;;  %2706 = vmatpush1.bf16.msra.mxu0 %v8105_v2  ;;  %v4254_v58 = vpop.eup %4253  ;;  %4273 = vpow2.f32 %v2553_v9  ;;  %v8106_v60 = vsub.f32 %v8064_v8, %v6403_v23  ;;  %v8108_v10 = vsub.f32 %v8107_v53, %v6403_v23  ;;  %v8110_v9 = vld [vmem:[#allocation12_spill] sm:$0xff] }
 0x773   : > { %2707 = vmatprep.subr.bf16.mxu0 %v2676_v41  ;;  %v4256_v32 = vpop.eup %4255  ;;  %v2616_v47 = vadd.f32 %v6645_v11, %v2615_v42  ;;  %4275 = vpow2.f32 %v2557_v35  ;;  %v2637_v40 = vadd.f32 %v4244_v29, %v2636_v54  ;;  %v2682_v62 = vpack.c.bf16 %v4254_v58, %v4252_v38 }
 0x774   : > { %v2569_v43 = vmul.f32 1.442695, %v8106_v60  ;;  %v2573_v30 = vmul.f32 1.442695, %v8108_v10  ;;  %v4258_v46 = vpop.eup %4257  ;;  %4277 = vpow2.f32 %v2561_v57  ;;  %v8109_v33 = vsub.f32 %v8066_v48, %v6403_v23 }
 0x775   : > { %v8111_v8 = vsub.f32 %v8110_v9, %v6403_v23  ;;  %v8112_v50 = vpack.c.bf16 %v6526_v55, %v6519_v56  ;;  %v4260_v44 = vpop.eup %4259  ;;  %v2617_v7 = vadd.f32 %v6654_v26, %v2616_v47  ;;  %4279 = vpow2.f32 %v2565_v15 }
 0x776   : > { %v2577_v41 = vmul.f32 1.442695, %v8109_v33  ;;  %v2638_v29 = vadd.f32 %v4246_v51, %v2637_v40  ;;  %v2684_v35 = vpack.c.bf16 %v4258_v46, %v4256_v32  ;;  %v4262_v57 = vpop.eup %4261  ;;  %4281 = vpow2.f32 %v2569_v43  ;;  %v8115_v51 = vld [vmem:[#allocation37_spill] sm:$0xff] }
 0x777   : > { %v2581_v17 = vmul.f32 1.442695, %v8111_v8  ;;  %2708 = vmatpush1.bf16.msra.mxu0 %v8112_v50  ;;  %v8113_v48 = vsub.f32 %v8068_v39, %v6403_v23  ;;  %v8114_v2 = vsub.f32 %v8069_v37, %v6403_v23  ;;  %v4264_v54 = vpop.eup %4263  ;;  %v2618_v55 = vadd.f32 %v6662_v20, %v2617_v7 }
 0x778   : > { %2709 = vmatprep.subr.bf16.mxu0 %v2678_v36  ;;  %4283 = vpow2.f32 %v2573_v30  ;;  %v2639_v56 = vadd.f32 %v4248_v12, %v2638_v29  ;;  %v2686_v60 = vpack.c.bf16 %v4262_v57, %v4260_v44  ;;  %v4266_v15 = vpop.eup %4265  ;;  %v8116_v36 = vsub.f32 %v8115_v51, %v6403_v23 }
 0x779   : > { %v2585_v14 = vmul.f32 1.442695, %v8113_v48  ;;  %v2589_v42 = vmul.f32 1.442695, %v8114_v2  ;;  %4285 = vpow2.f32 %v2577_v41  ;;  %v8117_v39 = vpack.c.bf16 %v6541_v3, %v6534_v16  ;;  %v4268_v53 = vpop.eup %4267 }
 0x77a   : > { %v2593_v43 = vmul.f32 1.442695, %v8116_v36  ;;  %v2619_v37 = vadd.f32 %v6669_v34, %v2618_v55  ;;  %4287 = vpow2.f32 %v2581_v17  ;;  %v2640_v10 = vadd.f32 %v4250_v5, %v2639_v56  ;;  %v4270_v30 = vpop.eup %4269 }
 0x77b   : > { %2710 = vmatpush1.bf16.msra.mxu0 %v8117_v39  ;;  %v2688_v47 = vpack.c.bf16 %v4266_v15, %v4264_v54  ;;  %4289 = vpow2.f32 %v2585_v14  ;;  %v4272_v12 = vpop.eup %4271  ;;  %v2690_v23 = vpack.c.bf16 %v4270_v30, %v4268_v53  ;;  %v8118_v3 = vpack.c.bf16 %v6556_v6, %v6549_v0 }
 0x77c   : > { %2711 = vmatprep.subr.bf16.mxu0 %v2680_v59  ;;  %v2620_v40 = vadd.f32 %v6677_v31, %v2619_v37  ;;  %4291 = vpow2.f32 %v2589_v42  ;;  %v2641_v33 = vadd.f32 %v4252_v38, %v2640_v10  ;;  %v4274_v41 = vpop.eup %4273  ;;  %v8119_v48 = vpack.c.bf16 %v6570_v24, %v6564_v52 }
 0x77d   : > { %4293 = vpow2.f32 %v2593_v43  ;;  %v4276_v16 = vpop.eup %4275  ;;  %v2692_v59 = vpack.c.bf16 %v4274_v41, %v4272_v12  ;;  %v8121_v37 = vpack.c.bf16 %v6595_v61, %v6589_v28  ;;  %v8125_v28 = vpack.c.bf16 %v6634_v18, %v6625_v13 }
 0x77e   : > { %v2621_v9 = vadd.f32 %v6684_v4, %v2620_v40  ;;  %v2642_v5 = vadd.f32 %v4254_v58, %v2641_v33  ;;  %v4278_v8 = vpop.eup %4277  ;;  %v8128_v13 = vpack.c.bf16 %v6684_v4, %v6677_v31  ;;  %v2048_v4 = vld [vmem:[#allocation3 + $0x30] sm:$0xf] }
 0x77f   : > { %2712 = vmatpush1.bf16.msra.mxu0 %v8118_v3  ;;  %v4280_v17 = vpop.eup %4279  ;;  %v2694_v29 = vpack.c.bf16 %v4278_v8, %v4276_v16  ;;  %v8132_v3 = vpack.c.bf16 %v6713_v63, %v6705_v21 }
 0x780   : > { %2713 = vmatprep.subr.bf16.mxu0 %v2682_v62  ;;  %v2622_v50 = vadd.f32 %v6692_v49, %v2621_v9  ;;  %v2643_v7 = vadd.f32 %v4256_v32, %v2642_v5  ;;  %v4282_v38 = vpop.eup %4281  ;;  %v8120_v32 = vpack.c.bf16 %v6583_v22, %v6576_v1  ;;  %v8122_v1 = vld [vmem:[#allocation21_spill] sm:$0xff] }
 0x781   : > { %v2696_v2 = vpack.c.bf16 %v4282_v38, %v4280_v17  ;;  %v8123_v22 = vpack.c.bf16 %v6606_v27, %v8122_v1  ;;  %v8126_v27 = vpack.c.bf16 %v6654_v26, %v6645_v11  ;;  %v8129_v11 = vpack.c.bf16 %v6700_v25, %v6692_v49 }
 0x782   : > { %v4284_v14 = vpop.eup %4283  ;;  %v2623_v6 = vadd.f32 %v6700_v25, %v2622_v50  ;;  %v2644_v0 = vadd.f32 %v4258_v46, %v2643_v7  ;;  %v2766_v25 = vpop.trf.xlu0 }
 0x783   : > { %2714 = vmatpush1.bf16.msra.mxu0 %v8119_v48  ;;  %v4286_v58 = vpop.eup %4285 }
 0x784   : > { %2715 = vmatprep.subr.bf16.mxu0 %v2684_v35  ;;  %v4288_v62 = vpop.eup %4287  ;;  %v2624_v42 = vadd.f32 %v6705_v21, %v2623_v6  ;;  %v2645_v55 = vadd.f32 %v4260_v44, %v2644_v0  ;;  %v2698_v56 = vpack.c.bf16 %v4286_v58, %v4284_v14 }
 0x785   : > { %v4290_v51 = vpop.eup %4289 }
 0x786   : > { %v4292_v36 = vpop.eup %4291  ;;  %v6811_v24 = vadd.f32 %v6713_v63, %v2624_v42  ;;  %v2646_v52 = vadd.f32 %v4262_v57, %v2645_v55  ;;  %v2700_v46 = vpack.c.bf16 %v4290_v51, %v4288_v62  ;;  %v8124_v57 = vpack.c.bf16 %v6617_v19, %v6611_v45  ;;  %v2767_v49 = vpop.trf.xlu0 }
 0x787   : > { %2716 = vmatpush1.bf16.msra.mxu0 %v8120_v32  ;;  %v4294_v35 = vpop.eup %4293  ;;  %v8127_v45 = vpack.c.bf16 %v6669_v34, %v6662_v20  ;;  %v8131_v20 = vld [vmem:[#allocation14_spill] sm:$0xff] }
 0x788   : > { %2717 = vmatprep.subr.bf16.mxu0 %v2686_v60  ;;  %v2647_v43 = vadd.f32 %v4264_v54, %v2646_v52  ;;  %v2702_v39 = vpack.c.bf16 %v4294_v35, %v4292_v36  ;;  %v2793_v34 = vrot.slane %v8131_v20, 4  ;;  %v2626_v0 = vrot.slane %v6811_v24, 4 }
 0x78a   : > { %v2648_v44 = vadd.f32 %v4266_v15, %v2647_v43  ;;  %v2768_v21 = vpop.trf.xlu0 }
 0x78b   : > { %2718 = vmatpush1.bf16.msra.mxu0 %v8121_v37 }
 0x78c   : > { %2719 = vmatprep.subr.bf16.mxu0 %v2688_v47  ;;  %v2649_v10 = vadd.f32 %v4268_v53, %v2648_v44 }
 0x78e   : > { %v2650_v40 = vadd.f32 %v4270_v30, %v2649_v10  ;;  %v2769_v63 = vpop.trf.xlu0 }
 0x78f   : > { %2720 = vmatpush1.bf16.msra.mxu0 %v8123_v22 }
 0x790   : > { %2721 = vmatprep.subr.bf16.mxu0 %v2690_v23  ;;  %v2651_v33 = vadd.f32 %v4272_v12, %v2650_v40  ;;  %v8130_v23 = vld [vmem:[#allocation13_spill] sm:$0xff] }
 0x792   : > { %v2652_v54 = vadd.f32 %v4274_v41, %v2651_v33  ;;  %v2792_v41 = vrot.slane %v8130_v23, 4  ;;  %v2770_v9 = vpop.trf.xlu0 }
 0x793   : > { %2722 = vmatpush1.bf16.msra.mxu0 %v8124_v57 }
 0x794   : > { %2723 = vmatprep.subr.bf16.mxu0 %v2692_v59  ;;  %v2653_v60 = vadd.f32 %v4276_v16, %v2652_v54  ;;  %v2843_v31 = vsel %vm709_vm1, %v2792_v41, 0  ;;  %v8133_v16 = vmov 0  }
 0x796   : > { %v2654_v61 = vadd.f32 %v4278_v8, %v2653_v60  ;;  %v2771_v5 = vpop.trf.xlu0 }
 0x797   : > { %2724 = vmatpush1.bf16.msra.mxu0 %v8125_v28 }
 0x798   : > { %2725 = vmatprep.subr.bf16.mxu0 %v2694_v29  ;;  %v2655_v15 = vadd.f32 %v4280_v17, %v2654_v61  ;;  %v2782_v17 = vpop.trf.xlu1 }
 0x79a   : > { %v2656_v53 = vadd.f32 %v4282_v38, %v2655_v15  ;;  %v2772_v59 = vpop.trf.xlu0 }
 0x79b   : > { %2726 = vmatpush1.bf16.msra.mxu0 %v8126_v27 }
 0x79c   : > { %2727 = vmatprep.subr.bf16.mxu0 %v2696_v2  ;;  %v2657_v47 = vadd.f32 %v4284_v14, %v2656_v53  ;;  %v2783_v50 = vpop.trf.xlu1 }
 0x79e   : > { %v2658_v19 = vadd.f32 %v4286_v58, %v2657_v47  ;;  %v2773_v8 = vpop.trf.xlu0  ;;  %v2627_v58 = vadd.f32 %v2626_v0, %v6811_v24 }
 0x79f   : > { %2728 = vmatpush1.bf16.msra.mxu0 %v8127_v45 }
 0x7a0   : > { %2729 = vmatprep.subr.bf16.mxu0 %v2698_v56  ;;  %v2659_v30 = vadd.f32 %v4288_v62, %v2658_v19  ;;  %v2784_v7 = vpop.trf.xlu1  ;;  %v2628_v42 = vrot.slane %v2627_v58, 2 }
 0x7a2   : > { %v2660_v18 = vadd.f32 %v4290_v51, %v2659_v30  ;;  %v2629_v56 = vadd.f32 %v2628_v42, %v2627_v58 }
 0x7a3   : > { %2730 = vmatpush1.bf16.msra.mxu0 %v8128_v13 }
 0x7a4   : > { %2731 = vmatprep.subr.bf16.mxu0 %v2700_v46  ;;  %v2661_v12 = vadd.f32 %v4292_v36, %v2660_v18  ;;  %v2785_v29 = vpop.trf.xlu1  ;;  %v2630_v32 = vrot.slane %v2629_v56, 1 }
 0x7a6   : > { %v2662_v26 = vadd.f32 %v4294_v35, %v2661_v12  ;;  %v2631_v52 = vadd.f32 %v2630_v32, %v2629_v56 }
 0x7a7   : > { %2732 = vmatpush1.bf16.msra.mxu0 %v8129_v11 }
 0x7a8   : > { %2733 = vmatprep.subr.bf16.mxu0 %v2702_v39  ;;  %v2786_v38 = vpop.trf.xlu1  ;;  %v2663_v2 = vrot.slane %v2662_v26, 4  ;;  %4295 = vrcp.f32 %v2631_v52 }
 0x7aa   : > { %v2664_v62 = vadd.f32 %v2663_v2, %v2662_v26 }
 0x7ab   : > { %2734 = vmatpush1.bf16.msra.mxu0 %v8132_v3 }
 0x7ac   : > { %3783 = vmatprep.subr.msk.bf16.mxu0 %vm709_vm1, %v2793_v34  ;;  %v2787_v48 = vpop.trf.xlu1  ;;  %v2665_v55 = vrot.slane %v2664_v62, 2 }
 0x7ae   : > { %2736 = vmatmul.mubr.bf16.vlgmr.msra.gmra.mrb[84].mxu0 %v2048_v4  ;;  %v2666_v51 = vadd.f32 %v2665_v55, %v2664_v62 }
 0x7af   : > { %2849 = vmatpush1.bf16.msra.mxu0 %v2843_v31  ;;  %2880 = vmatprep.mubr.bf16.mxu0 %v8133_v16 }
 0x7b0   : > { %v2788_v14 = vpop.trf.xlu1  ;;  %v2667_v36 = vrot.slane %v2666_v51, 1 }
 0x7b2   : > { %v2668_v46 = vadd.f32 %v2667_v36, %v2666_v51  ;;  %v4296_v35 = vpop.eup %4295 }
 0x7b4   : > { %v2789_v6 = vpop.trf.xlu1  ;;  %4297 = vrcp.f32 %v2668_v46 }
 0x7b6   : > { %3784 = vmatmul.mubr.msk.bf16.vlgmr.msra.gmra.mrb[88].mxu0 %vm660_vm2, %v2766_v25 }
 0x7b7   : > { %2890 = vmatprep.mubr.bf16.mxu0 %v8133_v16 }
 0x7be   : > { %3785 = vmatmul.mubr.msk.bf16.gmra.mrb[92].mxu0 %vm660_vm2, %v2767_v49  ;;  %v4298_v39 = vpop.eup %4297 }
 0x7bf   : > { %2900 = vmatprep.mubr.bf16.mxu0 %v8133_v16 }
 0x7c6   : > { %3786 = vmatmul.mubr.msk.bf16.gmra.mrb[96].mxu0 %vm660_vm2, %v2768_v21 }
 0x7c7   : > { %2910 = vmatprep.mubr.bf16.mxu0 %v8133_v16 }
 0x7ce   : > { %3787 = vmatmul.mubr.msk.bf16.gmra.mrb[100].mxu0 %vm660_vm2, %v2769_v63 }
 0x7cf   : > { %2920 = vmatprep.mubr.bf16.mxu0 %v8133_v16 }
 0x7d6   : > { %3788 = vmatmul.mubr.msk.bf16.gmra.mrb[104].mxu0 %vm660_vm2, %v2770_v9 }
 0x7d7   : > { %2930 = vmatprep.mubr.bf16.mxu0 %v8133_v16 }
 0x7de   : > { %3789 = vmatmul.mubr.msk.bf16.gmra.mrb[108].mxu0 %vm660_vm2, %v2771_v5 }
 0x7df   : > { %2940 = vmatprep.mubr.bf16.mxu0 %v8133_v16 }
 0x7e6   : > { %3790 = vmatmul.mubr.msk.bf16.gmra.mrb[112].mxu0 %vm660_vm2, %v2772_v59 }
 0x7e7   : > { %2950 = vmatprep.mubr.bf16.mxu0 %v8133_v16 }
 0x7ee   : > { %3791 = vmatmul.mubr.msk.bf16.gmra.mrb[116].mxu0 %vm660_vm2, %v2773_v8 }
 0x7ef   : > { %2960 = vmatprep.mubr.bf16.mxu0 %v8133_v16 }
 0x7f6   : > { %3792 = vmatmul.mubr.msk.bf16.gmra.mrb[120].mxu0 %vm660_vm2, %v2782_v17 }
 0x7f7   : > { %2970 = vmatprep.mubr.bf16.mxu0 %v8133_v16 }
 0x7fe   : > { %3793 = vmatmul.mubr.msk.bf16.gmra.mrb[124].mxu0 %vm660_vm2, %v2783_v50 }
 0x7ff   : > { %2980 = vmatprep.mubr.bf16.mxu0 %v8133_v16 }
 0x806   : > { %3794 = vmatmul.mubr.msk.bf16.gmra.mrb[128].mxu0 %vm660_vm2, %v2784_v7 }
 0x807   : > { %2990 = vmatprep.mubr.bf16.mxu0 %v8133_v16 }
 0x80e   : > { %3795 = vmatmul.mubr.msk.bf16.gmra.mrb[132].mxu0 %vm660_vm2, %v2785_v29 }
 0x80f   : > { %3000 = vmatprep.mubr.bf16.mxu0 %v8133_v16 }
 0x816   : > { %3796 = vmatmul.mubr.msk.bf16.gmra.mrb[136].mxu0 %vm660_vm2, %v2786_v38 }
 0x817   : > { %3010 = vmatprep.mubr.bf16.mxu0 %v8133_v16 }
 0x81e   : > { %3797 = vmatmul.mubr.msk.bf16.gmra.mrb[140].mxu0 %vm660_vm2, %v2787_v48 }
 0x81f   : > { %3020 = vmatprep.mubr.bf16.mxu0 %v8133_v16 }
 0x826   : > { %3798 = vmatmul.mubr.msk.bf16.gmra.mrb[144].mxu0 %vm660_vm2, %v2788_v14 }
 0x827   : > { %3030 = vmatprep.mubr.bf16.mxu0 %v8133_v16 }
 0x82e   : > { %3799 = vmatmul.mubr.msk.bf16.gmra.mrb[148].mxu0 %vm660_vm2, %v2789_v6 }
 0x881   : > { %v2737_v43 = vpop.f32.mrb[84].mxu0 }
 0x882   : > { %v6878_v37 = vmul.f32 %v4296_v35, %v2737_v43  ;;  %v2739_v44 = vpop.f32.mrb[85].mxu0 }
 0x883   : > { %v6880_v10 = vmul.f32 %v4298_v39, %v2739_v44  ;;  %v2741_v24 = vpop.f32.mrb[86].mxu0 }
 0x884   : > { %8134 = vst [vmem:[#allocation22_spill] sm:$0xff] %v6878_v37  ;;  %v2742_v1 = vpop.f32.mrb[87].mxu0 }
 0x885   : > { %8135 = vst [vmem:[#allocation23_spill] sm:$0xff] %v6880_v10 }
 0x889   : > { %v6882_v22 = vpop.f32.mrb[88].mxu0 }
 0x88a   : > { %v6884_v40 = vpop.f32.mrb[89].mxu0 }
 0x88b   : > { %v6886_v33 = vpop.f32.mrb[90].mxu0 }
 0x88c   : > { %v6888_v57 = vpop.f32.mrb[91].mxu0 }
 0x891   : > { %v6890_v54 = vpop.f32.mrb[92].mxu0 }
 0x892   : > { %v3041_v60 = vmax.f32 %v6882_v22, %v6890_v54  ;;  %v6894_v28 = vpop.f32.mrb[93].mxu0 }
 0x893   : > { %v3078_v61 = vmax.f32 %v6884_v40, %v6894_v28  ;;  %v6898_v15 = vpop.f32.mrb[94].mxu0 }
 0x894   : > { %v3042_v27 = vmax.f32 %v6886_v33, %v6898_v15  ;;  %v6902_v53 = vpop.f32.mrb[95].mxu0 }
 0x895   : > { %v3079_v47 = vmax.f32 %v6888_v57, %v6902_v53 }
 0x899   : > { %v6906_v45 = vpop.f32.mrb[96].mxu0 }
 0x89a   : > { %v3043_v19 = vmax.f32 %v3041_v60, %v6906_v45  ;;  %v6909_v30 = vpop.f32.mrb[97].mxu0 }
 0x89b   : > { %v3080_v13 = vmax.f32 %v3078_v61, %v6909_v30  ;;  %v6912_v18 = vpop.f32.mrb[98].mxu0 }
 0x89c   : > { %v3044_v12 = vmax.f32 %v3042_v27, %v6912_v18  ;;  %v6915_v11 = vpop.f32.mrb[99].mxu0 }
 0x89d   : > { %v3081_v26 = vmax.f32 %v3079_v47, %v6915_v11 }
 0x8a1   : > { %v6918_v23 = vpop.f32.mrb[100].mxu0 }
 0x8a2   : > { %v3045_v41 = vmax.f32 %v3043_v19, %v6918_v23  ;;  %v6921_v20 = vpop.f32.mrb[101].mxu0 }
 0x8a3   : > { %v3082_v34 = vmax.f32 %v3080_v13, %v6921_v20  ;;  %v6924_v3 = vpop.f32.mrb[102].mxu0 }
 0x8a4   : > { %v3046_v4 = vmax.f32 %v3044_v12, %v6924_v3  ;;  %v6927_v31 = vpop.f32.mrb[103].mxu0 }
 0x8a5   : > { %v3083_v25 = vmax.f32 %v3081_v26, %v6927_v31 }
 0x8a9   : > { %v6930_v49 = vpop.f32.mrb[104].mxu0 }
 0x8aa   : > { %v3047_v21 = vmax.f32 %v3045_v41, %v6930_v49  ;;  %v6933_v63 = vpop.f32.mrb[105].mxu0 }
 0x8ab   : > { %v3084_v9 = vmax.f32 %v3082_v34, %v6933_v63  ;;  %v6936_v5 = vpop.f32.mrb[106].mxu0 }
 0x8ac   : > { %v3048_v59 = vmax.f32 %v3046_v4, %v6936_v5  ;;  %v6939_v8 = vpop.f32.mrb[107].mxu0 }
 0x8ad   : > { %v3085_v17 = vmax.f32 %v3083_v25, %v6939_v8 }
 0x8b1   : > { %v6942_v50 = vpop.f32.mrb[108].mxu0 }
 0x8b2   : > { %v3049_v7 = vmax.f32 %v3047_v21, %v6942_v50  ;;  %v6945_v29 = vpop.f32.mrb[109].mxu0 }
 0x8b3   : > { %v3086_v38 = vmax.f32 %v3084_v9, %v6945_v29  ;;  %v6948_v48 = vpop.f32.mrb[110].mxu0 }
 0x8b4   : > { %v3050_v14 = vmax.f32 %v3048_v59, %v6948_v48  ;;  %v6951_v6 = vpop.f32.mrb[111].mxu0 }
 0x8b5   : > { %8136 = vst [vmem:[#allocation24_spill] sm:$0xff] %v6951_v6  ;;  %v3087_v0 = vmax.f32 %v3085_v17, %v6951_v6 }
 0x8b9   : > { %v6954_v2 = vpop.f32.mrb[112].mxu0 }
 0x8ba   : > { %v3051_v58 = vmax.f32 %v3049_v7, %v6954_v2  ;;  %v6957_v62 = vpop.f32.mrb[113].mxu0 }
 0x8bb   : > { %8137 = vst [vmem:[#allocation25_spill] sm:$0xff] %v6957_v62  ;;  %v3088_v42 = vmax.f32 %v3086_v38, %v6957_v62  ;;  %v6960_v55 = vpop.f32.mrb[114].mxu0 }
 0x8bc   : > { %v3052_v56 = vmax.f32 %v3050_v14, %v6960_v55  ;;  %v6963_v51 = vpop.f32.mrb[115].mxu0 }
 0x8bd   : > { %8138 = vst [vmem:[#allocation26_spill] sm:$0xff] %v6963_v51  ;;  %v3089_v32 = vmax.f32 %v3087_v0, %v6963_v51 }
 0x8c1   : > { %v6966_v36 = vpop.f32.mrb[116].mxu0 }
 0x8c2   : > { %v3053_v52 = vmax.f32 %v3051_v58, %v6966_v36  ;;  %v6969_v46 = vpop.f32.mrb[117].mxu0 }
 0x8c3   : > { %8139 = vst [vmem:[#allocation27_spill] sm:$0xff] %v6969_v46  ;;  %v3090_v35 = vmax.f32 %v3088_v42, %v6969_v46  ;;  %v6972_v43 = vpop.f32.mrb[118].mxu0 }
 0x8c4   : > { %v3054_v39 = vmax.f32 %v3052_v56, %v6972_v43  ;;  %v6975_v44 = vpop.f32.mrb[119].mxu0 }
 0x8c5   : > { %8140 = vst [vmem:[#allocation28_spill] sm:$0xff] %v6975_v44  ;;  %v3091_v24 = vmax.f32 %v3089_v32, %v6975_v44 }
 0x8c9   : > { %v6978_v1 = vpop.f32.mrb[120].mxu0 }
 0x8ca   : > { %v3055_v60 = vmax.f32 %v3053_v52, %v6978_v1  ;;  %v6981_v61 = vpop.f32.mrb[121].mxu0 }
 0x8cb   : > { %8141 = vst [vmem:[#allocation29_spill] sm:$0xff] %v6981_v61  ;;  %v3092_v27 = vmax.f32 %v3090_v35, %v6981_v61  ;;  %v6984_v47 = vpop.f32.mrb[122].mxu0 }
 0x8cc   : > { %v3056_v19 = vmax.f32 %v3054_v39, %v6984_v47  ;;  %v6987_v13 = vpop.f32.mrb[123].mxu0 }
 0x8cd   : > { %8142 = vst [vmem:[#allocation31_spill] sm:$0xff] %v6987_v13  ;;  %v3093_v12 = vmax.f32 %v3091_v24, %v6987_v13 }
 0x8d1   : > { %v6990_v26 = vpop.f32.mrb[124].mxu0 }
 0x8d2   : > { %v3057_v41 = vmax.f32 %v3055_v60, %v6990_v26  ;;  %v6993_v34 = vpop.f32.mrb[125].mxu0 }
 0x8d3   : > { %8143 = vst [vmem:[#allocation33_spill] sm:$0xff] %v6993_v34  ;;  %v3094_v4 = vmax.f32 %v3092_v27, %v6993_v34  ;;  %v6996_v25 = vpop.f32.mrb[126].mxu0 }
 0x8d4   : > { %v3058_v21 = vmax.f32 %v3056_v19, %v6996_v25  ;;  %v6999_v9 = vpop.f32.mrb[127].mxu0 }
 0x8d5   : > { %8144 = vst [vmem:[#allocation34_spill] sm:$0xff] %v6999_v9  ;;  %v3095_v59 = vmax.f32 %v3093_v12, %v6999_v9 }
 0x8d9   : > { %v7002_v17 = vpop.f32.mrb[128].mxu0 }
 0x8da   : > { %v3059_v7 = vmax.f32 %v3057_v41, %v7002_v17  ;;  %v7005_v38 = vpop.f32.mrb[129].mxu0 }
 0x8db   : > { %8145 = vst [vmem:[#allocation32_spill] sm:$0xff] %v7005_v38  ;;  %v3096_v14 = vmax.f32 %v3094_v4, %v7005_v38  ;;  %v7008_v0 = vpop.f32.mrb[130].mxu0 }
 0x8dc   : > { %v3060_v58 = vmax.f32 %v3058_v21, %v7008_v0  ;;  %v7011_v42 = vpop.f32.mrb[131].mxu0 }
 0x8dd   : > { %8146 = vst [vmem:[#allocation15_spill] sm:$0xff] %v7011_v42  ;;  %v3097_v56 = vmax.f32 %v3095_v59, %v7011_v42 }
 0x8e1   : > { %v7014_v32 = vpop.f32.mrb[132].mxu0 }
 0x8e2   : > { %v3061_v52 = vmax.f32 %v3059_v7, %v7014_v32  ;;  %v7017_v35 = vpop.f32.mrb[133].mxu0 }
 0x8e3   : > { %8147 = vst [vmem:[#allocation11_spill] sm:$0xff] %v7017_v35  ;;  %v3098_v39 = vmax.f32 %v3096_v14, %v7017_v35  ;;  %v7020_v24 = vpop.f32.mrb[134].mxu0 }
 0x8e4   : > { %v3062_v60 = vmax.f32 %v3060_v58, %v7020_v24  ;;  %v7023_v27 = vpop.f32.mrb[135].mxu0 }
 0x8e5   : > { %8148 = vst [vmem:[#allocation35_spill] sm:$0xff] %v7023_v27  ;;  %v3099_v19 = vmax.f32 %v3097_v56, %v7023_v27 }
 0x8e9   : > { %v7026_v12 = vpop.f32.mrb[136].mxu0 }
 0x8ea   : > { %v3063_v41 = vmax.f32 %v3061_v52, %v7026_v12  ;;  %v7029_v4 = vpop.f32.mrb[137].mxu0 }
 0x8eb   : > { %8149 = vst [vmem:[#allocation18_spill] sm:$0xff] %v7029_v4  ;;  %v3100_v21 = vmax.f32 %v3098_v39, %v7029_v4  ;;  %v7032_v59 = vpop.f32.mrb[138].mxu0 }
 0x8ec   : > { %v3064_v7 = vmax.f32 %v3062_v60, %v7032_v59  ;;  %v7035_v14 = vpop.f32.mrb[139].mxu0 }
 0x8ed   : > { %8150 = vst [vmem:[#allocation36_spill] sm:$0xff] %v7035_v14  ;;  %v3101_v58 = vmax.f32 %v3099_v19, %v7035_v14 }
 0x8f1   : > { %v7038_v10 = vpop.f32.mrb[140].mxu0 }
 0x8f2   : > { %v3065_v56 = vmax.f32 %v3063_v41, %v7038_v10  ;;  %v7041_v37 = vpop.f32.mrb[141].mxu0 }
 0x8f3   : > { %8151 = vst [vmem:[#allocation30_spill] sm:$0xff] %v7041_v37  ;;  %v3102_v52 = vmax.f32 %v3100_v21, %v7041_v37  ;;  %v7044_v16 = vpop.f32.mrb[142].mxu0 }
 0x8f4   : > { %v3066_v39 = vmax.f32 %v3064_v7, %v7044_v16  ;;  %v7047_v4 = vpop.f32.mrb[143].mxu0 }
 0x8f5   : > { %8152 = vst [vmem:[#allocation12_spill] sm:$0xff] %v7047_v4  ;;  %v3103_v60 = vmax.f32 %v3101_v58, %v7047_v4 }
 0x8f9   : > { %v7050_v27 = vpop.f32.mrb[144].mxu0 }
 0x8fa   : > { %v3067_v19 = vmax.f32 %v3065_v56, %v7050_v27  ;;  %v7053_v14 = vpop.f32.mrb[145].mxu0 }
 0x8fb   : > { %8153 = vst [vmem:[#allocation37_spill] sm:$0xff] %v7053_v14  ;;  %v3104_v41 = vmax.f32 %v3102_v52, %v7053_v14  ;;  %v7056_v35 = vpop.f32.mrb[146].mxu0 }
 0x8fc   : > { %v3068_v21 = vmax.f32 %v3066_v39, %v7056_v35  ;;  %v7059_v37 = vpop.f32.mrb[147].mxu0 }
 0x8fd   : > { %8154 = vst [vmem:[#allocation21_spill] sm:$0xff] %v7059_v37  ;;  %v3105_v7 = vmax.f32 %v3103_v60, %v7059_v37 }
 0x901   : > { %v7062_v42 = vpop.f32.mrb[148].mxu0 }
 0x902   : > { %v3069_v58 = vmax.f32 %v3067_v19, %v7062_v42  ;;  %v7065_v4 = vpop.f32.mrb[149].mxu0 }
 0x903   : > { %8155 = vst [vmem:[#allocation13_spill] sm:$0xff] %v7065_v4  ;;  %v3106_v56 = vmax.f32 %v3104_v41, %v7065_v4  ;;  %v7068_v38 = vpop.f32.mrb[150].mxu0 }
 0x904   : > { %v3070_v52 = vmax.f32 %v3068_v21, %v7068_v38  ;;  %v7071_v14 = vpop.f32.mrb[151].mxu0 }
 0x905   : > { %8156 = vst [vmem:[#allocation14_spill] sm:$0xff] %v7071_v14  ;;  %v3107_v39 = vmax.f32 %v3105_v7, %v7071_v14 }
 0x906   : > { %v3071_v9 = vmax.f32 %v3069_v58, %v3070_v52 }
 0x907   : > { %v3108_v34 = vmax.f32 %v3106_v56, %v3107_v39 }
 0x908   : > { %v3072_v13 = vrot.slane %v3071_v9, 4 }
 0x909   : > { %v3109_v60 = vrot.slane %v3108_v34, 4 }
 0x90a   : > { %v3073_v37 = vmax.f32 %v3071_v9, %v3072_v13 }
 0x90b   : > { %v3110_v61 = vmax.f32 %v3108_v34, %v3109_v60 }
 0x90c   : > { %v3074_v44 = vrot.slane %v3073_v37, 2 }
 0x90d   : > { %v3111_v19 = vrot.slane %v3110_v61, 2 }
 0x90e   : > { %v3075_v46 = vmax.f32 %v3073_v37, %v3074_v44  ;;  %v8176_v44 = vld [vmem:[#allocation13_spill] sm:$0xff] }
 0x90f   : > { %v3112_v51 = vmax.f32 %v3110_v61, %v3111_v19 }
 0x910   : > { %v3076_v62 = vrot.slane %v3075_v46, 1 }
 0x911   : > { %v3113_v41 = vrot.slane %v3112_v51, 1 }
 0x912   : > { %v7074_v4 = vmax.f32 %v3075_v46, %v3076_v62 }
 0x913   : > { %v7076_v6 = vmax.f32 %v3112_v51, %v3113_v41 }
 0x914   : > { %v3115_v21 = vsub.f32 %v6882_v22, %v7074_v4  ;;  %v3117_v7 = vsub.f32 %v6886_v33, %v7074_v4  ;;  %v3119_v13 = vsub.f32 %v6890_v54, %v7074_v4  ;;  %v3121_v34 = vsub.f32 %v6898_v15, %v7074_v4 }
 0x915   : > { %v3123_v37 = vsub.f32 %v6906_v45, %v7074_v4  ;;  %v3125_v62 = vsub.f32 %v6912_v18, %v7074_v4  ;;  %v3127_v51 = vsub.f32 %v6918_v23, %v7074_v4  ;;  %v3129_v22 = vsub.f32 %v6924_v3, %v7074_v4 }
 0x916   : > { %v3131_v33 = vsub.f32 %v6930_v49, %v7074_v4  ;;  %v3133_v54 = vsub.f32 %v6936_v5, %v7074_v4  ;;  %v3135_v15 = vsub.f32 %v6942_v50, %v7074_v4  ;;  %v3137_v45 = vsub.f32 %v6948_v48, %v7074_v4 }
 0x917   : > { %v3139_v18 = vsub.f32 %v6954_v2, %v7074_v4  ;;  %v3141_v23 = vsub.f32 %v6960_v55, %v7074_v4  ;;  %v3143_v3 = vsub.f32 %v6966_v36, %v7074_v4  ;;  %v3145_v49 = vsub.f32 %v6972_v43, %v7074_v4 }
 0x918   : > { %v3147_v5 = vsub.f32 %v6978_v1, %v7074_v4  ;;  %v3149_v50 = vsub.f32 %v6984_v47, %v7074_v4  ;;  %v3151_v48 = vsub.f32 %v6990_v26, %v7074_v4  ;;  %v3153_v2 = vsub.f32 %v6996_v25, %v7074_v4 }
 0x919   : > { %v3155_v55 = vsub.f32 %v7002_v17, %v7074_v4  ;;  %v3157_v36 = vsub.f32 %v7008_v0, %v7074_v4  ;;  %v3159_v46 = vsub.f32 %v7014_v32, %v7074_v4  ;;  %v3161_v43 = vsub.f32 %v7020_v24, %v7074_v4 }
 0x91a   : > { %v3179_v0 = vmul.f32 1.442695, %v3115_v21  ;;  %v3183_v32 = vmul.f32 1.442695, %v3117_v7  ;;  %v3187_v24 = vmul.f32 1.442695, %v3119_v13 }
 0x91b   : > { %v3191_v56 = vmul.f32 1.442695, %v3121_v34  ;;  %v3195_v39 = vmul.f32 1.442695, %v3123_v37  ;;  %v3199_v60 = vmul.f32 1.442695, %v3125_v62 }
 0x91c   : > { %4299 = vpow2.f32 %v3179_v0  ;;  %v3203_v19 = vmul.f32 1.442695, %v3127_v51  ;;  %v3207_v41 = vmul.f32 1.442695, %v3129_v22  ;;  %v3211_v9 = vmul.f32 1.442695, %v3131_v33 }
 0x91d   : > { %4301 = vpow2.f32 %v3183_v32  ;;  %v3215_v17 = vmul.f32 1.442695, %v3133_v54  ;;  %v3219_v21 = vmul.f32 1.442695, %v3135_v15  ;;  %v3223_v7 = vmul.f32 1.442695, %v3137_v45 }
 0x91e   : > { %4303 = vpow2.f32 %v3187_v24  ;;  %v3227_v13 = vmul.f32 1.442695, %v3139_v18  ;;  %v3231_v58 = vmul.f32 1.442695, %v3141_v23  ;;  %v3235_v34 = vmul.f32 1.442695, %v3143_v3 }
 0x91f   : > { %4305 = vpow2.f32 %v3191_v56  ;;  %v3239_v25 = vmul.f32 1.442695, %v3145_v49  ;;  %v3243_v52 = vmul.f32 1.442695, %v3147_v5  ;;  %v3247_v0 = vmul.f32 1.442695, %v3149_v50 }
 0x920   : > { %4307 = vpow2.f32 %v3195_v39  ;;  %v3251_v37 = vmul.f32 1.442695, %v3151_v48  ;;  %v3255_v62 = vmul.f32 1.442695, %v3153_v2  ;;  %v3259_v32 = vmul.f32 1.442695, %v3155_v55 }
 0x921   : > { %4309 = vpow2.f32 %v3199_v60  ;;  %v7146_v51 = vmul.f32 1.442695, %v3157_v36  ;;  %v7148_v22 = vmul.f32 1.442695, %v3159_v46  ;;  %v7150_v33 = vmul.f32 1.442695, %v3161_v43 }
 0x922   : > { %4311 = vpow2.f32 %v3203_v19  ;;  %v8157_v55 = vld [vmem:[#allocation24_spill] sm:$0xff]  ;;  %v8159_v24 = vld [vmem:[#allocation26_spill] sm:$0xff]  ;;  %v8160_v60 = vld [vmem:[#allocation27_spill] sm:$0xff] }
 0x923   : > { %4313 = vpow2.f32 %v3207_v41  ;;  %v8161_v41 = vld [vmem:[#allocation28_spill] sm:$0xff]  ;;  %v8163_v2 = vld [vmem:[#allocation31_spill] sm:$0xff]  ;;  %v8164_v48 = vld [vmem:[#allocation33_spill] sm:$0xff] }
 0x924   : > { %4315 = vpow2.f32 %v3211_v9  ;;  %v8158_v9 = vld [vmem:[#allocation25_spill] sm:$0xff]  ;;  %v8165_v19 = vld [vmem:[#allocation34_spill] sm:$0xff]  ;;  %v8166_v49 = vld [vmem:[#allocation32_spill] sm:$0xff] }
 0x925   : > { %4317 = vpow2.f32 %v3215_v17  ;;  %v8167_v3 = vld [vmem:[#allocation15_spill] sm:$0xff]  ;;  %v8171_v54 = vld [vmem:[#allocation36_spill] sm:$0xff] }
 0x926   : > { %v7160_v23 = vpop.eup %4299  ;;  %4319 = vpow2.f32 %v3219_v21  ;;  %v8168_v56 = vld [vmem:[#allocation11_spill] sm:$0xff]  ;;  %v8170_v21 = vld [vmem:[#allocation18_spill] sm:$0xff] }
 0x927   : > { %v7168_v50 = vpop.eup %4301  ;;  %4321 = vpow2.f32 %v3223_v7  ;;  %v8162_v7 = vld [vmem:[#allocation29_spill] sm:$0xff]  ;;  %v8169_v45 = vld [vmem:[#allocation35_spill] sm:$0xff] }
 0x928   : > { %v7176_v46 = vpop.eup %4303  ;;  %4323 = vpow2.f32 %v3227_v13  ;;  %v3307_v43 = vadd.f32 %v7168_v50, %v7160_v23  ;;  %v8175_v13 = vld [vmem:[#allocation21_spill] sm:$0xff] }
 0x929   : > { %v7184_v39 = vpop.eup %4305  ;;  %4325 = vpow2.f32 %v3231_v58  ;;  %v8173_v58 = vld [vmem:[#allocation12_spill] sm:$0xff] }
 0x92a   : > { %v7192_v36 = vpop.eup %4307  ;;  %4327 = vpow2.f32 %v3235_v34  ;;  %v3308_v17 = vadd.f32 %v7176_v46, %v3307_v43 }
 0x92b   : > { %v7199_v5 = vpop.eup %4309  ;;  %4329 = vpow2.f32 %v3239_v25 }
 0x92c   : > { %v7207_v18 = vpop.eup %4311  ;;  %4331 = vpow2.f32 %v3243_v52  ;;  %v3309_v43 = vadd.f32 %v7184_v39, %v3308_v17 }
 0x92d   : > { %v7214_v15 = vpop.eup %4313  ;;  %4333 = vpow2.f32 %v3247_v0 }
 0x92e   : > { %v7222_v47 = vpop.eup %4315  ;;  %4335 = vpow2.f32 %v3251_v37  ;;  %v3310_v17 = vadd.f32 %v7192_v36, %v3309_v43  ;;  %v8177_v43 = vsub.f32 %v7026_v12, %v7074_v4 }
 0x92f   : > { %v7229_v1 = vpop.eup %4317  ;;  %4337 = vpow2.f32 %v3255_v62  ;;  %v8178_v62 = vsub.f32 %v7032_v59, %v7074_v4 }
 0x930   : > { %v7237_v26 = vpop.eup %4319  ;;  %4339 = vpow2.f32 %v3259_v32  ;;  %v3275_v25 = vmul.f32 1.442695, %v8177_v43  ;;  %v3311_v0 = vadd.f32 %v7199_v5, %v3310_v17  ;;  %v8179_v32 = vsub.f32 %v7038_v10, %v7074_v4 }
 0x931   : > { %v7243_v61 = vpop.eup %4321  ;;  %4341 = vpow2.f32 %v7146_v51  ;;  %v3279_v52 = vmul.f32 1.442695, %v8178_v62  ;;  %v8180_v51 = vsub.f32 %v7044_v16, %v7074_v4  ;;  %v8184_v16 = vsub.f32 %v7062_v42, %v7074_v4 }
 0x932   : > { %v7249_v34 = vpop.eup %4323  ;;  %4343 = vpow2.f32 %v7148_v22  ;;  %v3283_v37 = vmul.f32 1.442695, %v8179_v32  ;;  %v3312_v12 = vadd.f32 %v7207_v18, %v3311_v0  ;;  %v8181_v22 = vsub.f32 %v7050_v27, %v7074_v4 }
 0x933   : > { %v7256_v43 = vpop.eup %4325  ;;  %4345 = vpow2.f32 %v7150_v33  ;;  %v3287_v17 = vmul.f32 1.442695, %v8180_v51  ;;  %v8182_v0 = vsub.f32 %v7056_v35, %v7074_v4 }
 0x934   : > { %v7262_v59 = vpop.eup %4327  ;;  %4347 = vpow2.f32 %v3275_v25  ;;  %v3291_v62 = vmul.f32 1.442695, %v8181_v22  ;;  %v3313_v10 = vadd.f32 %v7214_v15, %v3312_v12  ;;  %v3299_v25 = vmul.f32 1.442695, %v8184_v16 }
 0x935   : > { %v7268_v32 = vpop.eup %4329  ;;  %4349 = vpow2.f32 %v3279_v52  ;;  %v3295_v33 = vmul.f32 1.442695, %v8182_v0  ;;  %v8185_v12 = vsub.f32 %v7068_v38, %v7074_v4  ;;  %v8188_v38 = vsub.f32 %v6894_v28, %v7076_v6 }
 0x936   : > { %v7273_v14 = vpop.eup %4331  ;;  %4351 = vpow2.f32 %v3283_v37  ;;  %v3314_v51 = vadd.f32 %v7222_v47, %v3313_v10  ;;  %v8186_v37 = vsub.f32 %v6884_v40, %v7076_v6  ;;  %v8187_v10 = vsub.f32 %v6888_v57, %v7076_v6 }
 0x937   : > { %8183 = vst [vmem:[#allocation24_spill] sm:$0xff] %v7273_v14  ;;  %v7279_v27 = vpop.eup %4333  ;;  %4353 = vpow2.f32 %v3287_v17  ;;  %v3303_v52 = vmul.f32 1.442695, %v8185_v12  ;;  %v3189_v4 = vmul.f32 1.442695, %v8188_v38  ;;  %v8189_v40 = vsub.f32 %v6902_v53, %v7076_v6 }
 0x938   : > { %v7284_v22 = vpop.eup %4335  ;;  %4355 = vpow2.f32 %v3291_v62  ;;  %v3315_v35 = vadd.f32 %v7229_v1, %v3314_v51  ;;  %v3181_v0 = vmul.f32 1.442695, %v8186_v37  ;;  %v3185_v17 = vmul.f32 1.442695, %v8187_v10 }
 0x939   : > { %v7290_v42 = vpop.eup %4337  ;;  %4357 = vpow2.f32 %v3295_v33  ;;  %v3193_v51 = vmul.f32 1.442695, %v8189_v40  ;;  %v8190_v33 = vsub.f32 %v6909_v30, %v7076_v6  ;;  %v8191_v57 = vsub.f32 %v6915_v11, %v7076_v6 }
 0x93a   : > { %v7298_v16 = vpop.eup %4339  ;;  %4359 = vpow2.f32 %v3299_v25  ;;  %v3316_v62 = vadd.f32 %v7237_v26, %v3315_v35  ;;  %v8192_v25 = vsub.f32 %v6921_v20, %v7076_v6  ;;  %v8193_v35 = vsub.f32 %v6927_v31, %v7076_v6 }
 0x93b   : > { %v3197_v12 = vmul.f32 1.442695, %v8190_v33  ;;  %v7307_v37 = vpop.eup %4341  ;;  %4361 = vpow2.f32 %v3303_v52  ;;  %v3201_v28 = vmul.f32 1.442695, %v8191_v57  ;;  %v8194_v52 = vsub.f32 %v6933_v63, %v7076_v6 }
 0x93c   : > { %v3205_v10 = vmul.f32 1.442695, %v8192_v25  ;;  %v3209_v53 = vmul.f32 1.442695, %v8193_v35  ;;  %v7318_v38 = vpop.eup %4343  ;;  %v3317_v30 = vadd.f32 %v7243_v61, %v3316_v62  ;;  %4363 = vpow2.f32 %v3181_v0 }
 0x93d   : > { %v3213_v40 = vmul.f32 1.442695, %v8194_v52  ;;  %v8195_v11 = vsub.f32 %v6939_v8, %v7076_v6  ;;  %v7327_v57 = vpop.eup %4345  ;;  %4365 = vpow2.f32 %v3185_v17 }
 0x93e   : > { %v7335_v62 = vpop.eup %4347  ;;  %v3318_v63 = vadd.f32 %v7249_v34, %v3317_v30  ;;  %4367 = vpow2.f32 %v3189_v4 }
 0x93f   : > { %v3217_v33 = vmul.f32 1.442695, %v8195_v11  ;;  %v7342_v25 = vpop.eup %4349  ;;  %4369 = vpow2.f32 %v3193_v51  ;;  %v8196_v51 = vsub.f32 %v6945_v29, %v7076_v6  ;;  %v8197_v11 = vsub.f32 %v8157_v55, %v7076_v6 }
 0x940   : > { %v7350_v30 = vpop.eup %4351  ;;  %v3319_v4 = vadd.f32 %v7256_v43, %v3318_v63  ;;  %4371 = vpow2.f32 %v3197_v12 }
 0x941   : > { %v7357_v8 = vpop.eup %4353  ;;  %4373 = vpow2.f32 %v3201_v28  ;;  %v3221_v17 = vmul.f32 1.442695, %v8196_v51  ;;  %v3225_v52 = vmul.f32 1.442695, %v8197_v11 }
 0x942   : > { %v7365_v63 = vpop.eup %4355  ;;  %v3320_v12 = vadd.f32 %v7262_v59, %v3319_v4  ;;  %4375 = vpow2.f32 %v3205_v10  ;;  %v8198_v10 = vsub.f32 %v8158_v9, %v7076_v6  ;;  %v8203_v9 = vsub.f32 %v8163_v2, %v7076_v6 }
 0x943   : > { %v7373_v0 = vpop.eup %4357  ;;  %4377 = vpow2.f32 %v3209_v53  ;;  %v8199_v53 = vsub.f32 %v8159_v24, %v7076_v6  ;;  %v8202_v24 = vsub.f32 %v8162_v7, %v7076_v6  ;;  %v8206_v2 = vsub.f32 %v8166_v49, %v7076_v6 }
 0x944   : > { %v7378_v35 = vpop.eup %4359  ;;  %v3321_v31 = vadd.f32 %v7268_v32, %v3320_v12  ;;  %4379 = vpow2.f32 %v3213_v40  ;;  %v3229_v29 = vmul.f32 1.442695, %v8198_v10  ;;  %v8200_v40 = vsub.f32 %v8160_v60, %v7076_v6 }
 0x945   : > { %v7386_v51 = vpop.eup %4361  ;;  %4381 = vpow2.f32 %v3217_v33  ;;  %v3233_v55 = vmul.f32 1.442695, %v8199_v53  ;;  %v8201_v33 = vsub.f32 %v8161_v41, %v7076_v6  ;;  %v3245_v53 = vmul.f32 1.442695, %v8202_v24 }
 0x946   : > { %v4364_v11 = vpop.eup %4363  ;;  %v3322_v28 = vadd.f32 %v7273_v14, %v3321_v31  ;;  %4383 = vpow2.f32 %v3221_v17  ;;  %v3237_v12 = vmul.f32 1.442695, %v8200_v40  ;;  %v8204_v41 = vsub.f32 %v8164_v48, %v7076_v6 }
 0x947   : > { %v4366_v10 = vpop.eup %4365  ;;  %4385 = vpow2.f32 %v3225_v52  ;;  %v3241_v4 = vmul.f32 1.442695, %v8201_v33  ;;  %v3249_v52 = vmul.f32 1.442695, %v8203_v9  ;;  %v3261_v9 = vmul.f32 1.442695, %v8206_v2 }
 0x948   : > { %v4368_v20 = vpop.eup %4367  ;;  %v3323_v31 = vadd.f32 %v7279_v27, %v3322_v28  ;;  %4387 = vpow2.f32 %v3229_v29  ;;  %v3344_v17 = vadd.f32 %v4366_v10, %v4364_v11  ;;  %v3384_v60 = vpack.c.bf16 %v4366_v10, %v4364_v11 }
 0x949   : > { %v4370_v40 = vpop.eup %4369  ;;  %4389 = vpow2.f32 %v3233_v55  ;;  %v3253_v33 = vmul.f32 1.442695, %v8204_v41  ;;  %v8205_v55 = vsub.f32 %v8165_v19, %v7076_v6  ;;  %v8207_v48 = vpack.c.bf16 %v7168_v50, %v7160_v23 }
 0x94a   : > { %v4372_v14 = vpop.eup %4371  ;;  %v3324_v7 = vadd.f32 %v7284_v22, %v3323_v31  ;;  %4391 = vpow2.f32 %v3237_v12  ;;  %v3345_v24 = vadd.f32 %v4368_v20, %v3344_v17  ;;  %3421 = vmatprep.subr.bf16.mxu1 %v3384_v60  ;;  %v3386_v28 = vpack.c.bf16 %v4370_v40, %v4368_v20 }
 0x94b   : > { %v4374_v29 = vpop.eup %4373  ;;  %4393 = vpow2.f32 %v3241_v4  ;;  %v3257_v11 = vmul.f32 1.442695, %v8205_v55  ;;  %3422 = vmatpush1.bf16.msra.mxu1 %v8207_v48  ;;  %v8208_v19 = vsub.f32 %v8167_v3, %v7076_v6  ;;  %v8209_v49 = vsub.f32 %v8168_v56, %v7076_v6  ;;  %v8214_v48 = vld [vmem:[#allocation30_spill] sm:$0xff] }
 0x94c   : > { %v4376_v10 = vpop.eup %4375  ;;  %v3325_v12 = vadd.f32 %v7290_v42, %v3324_v7  ;;  %4395 = vpow2.f32 %v3245_v53  ;;  %v3346_v31 = vadd.f32 %v4370_v40, %v3345_v24  ;;  %3423 = vmatprep.subr.bf16.mxu1 %v3386_v28  ;;  %v3388_v20 = vpack.c.bf16 %v4374_v29, %v4372_v14 }
 0x94d   : > { %v4378_v4 = vpop.eup %4377  ;;  %4397 = vpow2.f32 %v3249_v52  ;;  %v3265_v17 = vmul.f32 1.442695, %v8208_v19  ;;  %v3269_v60 = vmul.f32 1.442695, %v8209_v49  ;;  %v8210_v40 = vsub.f32 %v8169_v45, %v7076_v6 }
 0x94e   : > { %v4380_v41 = vpop.eup %4379  ;;  %v3326_v23 = vadd.f32 %v7298_v16, %v3325_v12  ;;  %4399 = vpow2.f32 %v3253_v33  ;;  %v3347_v50 = vadd.f32 %v4372_v14, %v3346_v31  ;;  %v3390_v7 = vpack.c.bf16 %v4378_v4, %v4376_v10 }
 0x94f   : > { %v4382_v53 = vpop.eup %4381  ;;  %4401 = vpow2.f32 %v3257_v11  ;;  %v3273_v52 = vmul.f32 1.442695, %v8210_v40  ;;  %v8211_v3 = vsub.f32 %v8170_v21, %v7076_v6  ;;  %v8212_v56 = vpack.c.bf16 %v7184_v39, %v7176_v46 }
 0x950   : > { %v4384_v28 = vpop.eup %4383  ;;  %v3327_v55 = vadd.f32 %v7307_v37, %v3326_v23  ;;  %4403 = vpow2.f32 %v3261_v9  ;;  %v3348_v14 = vadd.f32 %v4374_v29, %v3347_v50  ;;  %v3392_v33 = vpack.c.bf16 %v4382_v53, %v4380_v41 }
 0x951   : > { %v3277_v24 = vmul.f32 1.442695, %v8211_v3  ;;  %3424 = vmatpush1.bf16.msra.mxu1 %v8212_v56  ;;  %v4386_v11 = vpop.eup %4385  ;;  %4405 = vpow2.f32 %v3265_v17  ;;  %v8213_v45 = vsub.f32 %v8171_v54, %v7076_v6  ;;  %v8215_v21 = vsub.f32 %v8214_v48, %v7076_v6  ;;  %v8217_v17 = vld [vmem:[#allocation37_spill] sm:$0xff] }
 0x952   : > { %3425 = vmatprep.subr.bf16.mxu1 %v3388_v20  ;;  %v4388_v31 = vpop.eup %4387  ;;  %v3328_v46 = vadd.f32 %v7318_v38, %v3327_v55  ;;  %4407 = vpow2.f32 %v3269_v60  ;;  %v3349_v39 = vadd.f32 %v4376_v10, %v3348_v14  ;;  %v3394_v19 = vpack.c.bf16 %v4386_v11, %v4384_v28 }
 0x953   : > { %v3281_v2 = vmul.f32 1.442695, %v8213_v45  ;;  %v3285_v12 = vmul.f32 1.442695, %v8215_v21  ;;  %v4390_v9 = vpop.eup %4389  ;;  %4409 = vpow2.f32 %v3273_v52  ;;  %v8216_v29 = vsub.f32 %v8173_v58, %v7076_v6 }
 0x954   : > { %v8218_v54 = vsub.f32 %v8217_v17, %v7076_v6  ;;  %v8219_v23 = vpack.c.bf16 %v7199_v5, %v7192_v36  ;;  %v4392_v50 = vpop.eup %4391  ;;  %v3329_v40 = vadd.f32 %v7327_v57, %v3328_v46  ;;  %4411 = vpow2.f32 %v3277_v24 }
 0x955   : > { %v3289_v20 = vmul.f32 1.442695, %v8216_v29  ;;  %v3350_v10 = vadd.f32 %v4378_v4, %v3349_v39  ;;  %v3396_v60 = vpack.c.bf16 %v4390_v9, %v4388_v31  ;;  %v4394_v52 = vpop.eup %4393  ;;  %4413 = vpow2.f32 %v3281_v2  ;;  %v8222_v4 = vld [vmem:[#allocation14_spill] sm:$0xff] }
 0x956   : > { %v3293_v49 = vmul.f32 1.442695, %v8218_v54  ;;  %3426 = vmatpush1.bf16.msra.mxu1 %v8219_v23  ;;  %v8220_v58 = vsub.f32 %v8175_v13, %v7076_v6  ;;  %v8221_v56 = vsub.f32 %v8176_v44, %v7076_v6  ;;  %v4396_v14 = vpop.eup %4395  ;;  %v3330_v5 = vadd.f32 %v7335_v62, %v3329_v40 }
 0x957   : > { %3427 = vmatprep.subr.bf16.mxu1 %v3390_v7  ;;  %4415 = vpow2.f32 %v3285_v12  ;;  %v3351_v36 = vadd.f32 %v4380_v41, %v3350_v10  ;;  %v3398_v45 = vpack.c.bf16 %v4394_v52, %v4392_v50  ;;  %v4398_v24 = vpop.eup %4397  ;;  %v8223_v7 = vsub.f32 %v8222_v4, %v7076_v6 }
 0x958   : > { %v3297_v3 = vmul.f32 1.442695, %v8220_v58  ;;  %v3301_v55 = vmul.f32 1.442695, %v8221_v56  ;;  %4417 = vpow2.f32 %v3289_v20  ;;  %v8224_v13 = vpack.c.bf16 %v7214_v15, %v7207_v18  ;;  %v4400_v48 = vpop.eup %4399 }
 0x959   : > { %v3305_v2 = vmul.f32 1.442695, %v8223_v7  ;;  %v3331_v44 = vadd.f32 %v7342_v25, %v3330_v5  ;;  %4419 = vpow2.f32 %v3293_v49  ;;  %v3352_v21 = vadd.f32 %v4382_v53, %v3351_v36  ;;  %v4402_v12 = vpop.eup %4401 }
 0x95a   : > { %3428 = vmatpush1.bf16.msra.mxu1 %v8224_v13  ;;  %v3400_v46 = vpack.c.bf16 %v4398_v24, %v4396_v14  ;;  %4421 = vpow2.f32 %v3297_v3  ;;  %v4404_v41 = vpop.eup %4403  ;;  %v3402_v6 = vpack.c.bf16 %v4402_v12, %v4400_v48  ;;  %v8225_v15 = vpack.c.bf16 %v7229_v1, %v7222_v47 }
 0x95b   : > { %3429 = vmatprep.subr.bf16.mxu1 %v3392_v33  ;;  %v3332_v39 = vadd.f32 %v7350_v30, %v3331_v44  ;;  %4423 = vpow2.f32 %v3301_v55  ;;  %v3353_v29 = vadd.f32 %v4384_v28, %v3352_v21  ;;  %v4406_v20 = vpop.eup %4405  ;;  %v8226_v58 = vpack.c.bf16 %v7243_v61, %v7237_v26 }
 0x95c   : > { %4425 = vpow2.f32 %v3305_v2  ;;  %v4408_v18 = vpop.eup %4407  ;;  %v3404_v33 = vpack.c.bf16 %v4406_v20, %v4404_v41  ;;  %v8228_v44 = vpack.c.bf16 %v7268_v32, %v7262_v59  ;;  %v8232_v59 = vpack.c.bf16 %v7307_v37, %v7298_v16 }
 0x95d   : > { %v3333_v17 = vadd.f32 %v7357_v8, %v3332_v39  ;;  %v3354_v53 = vadd.f32 %v4386_v11, %v3353_v29  ;;  %v4410_v54 = vpop.eup %4409  ;;  %v8229_v39 = vld [vmem:[#allocation24_spill] sm:$0xff]  ;;  %v8235_v16 = vpack.c.bf16 %v7357_v8, %v7350_v30  ;;  %v8241_v30 = vld [vmem:[#allocation19_spill] sm:$0xff] }
 0x95e   : > { %3430 = vmatpush1.bf16.msra.mxu1 %v8225_v15  ;;  %v4412_v49 = vpop.eup %4411  ;;  %v3406_v10 = vpack.c.bf16 %v4410_v54, %v4408_v18 }
 0x95f   : > { %3431 = vmatprep.subr.bf16.mxu1 %v3394_v19  ;;  %v3334_v23 = vadd.f32 %v7365_v63, %v3333_v17  ;;  %v3355_v40 = vadd.f32 %v4388_v31, %v3354_v53  ;;  %v4414_v28 = vpop.eup %4413  ;;  %v8227_v31 = vpack.c.bf16 %v7256_v43, %v7249_v34  ;;  %v8230_v34 = vpack.c.bf16 %v7279_v27, %v8229_v39  ;;  %v3469_v39 = vld [vmem:[%s4717_s29 + $0x8] sm:$0xff] }
 0x960   : > { %v3408_v56 = vpack.c.bf16 %v4414_v28, %v4412_v49  ;;  %v8233_v27 = vpack.c.bf16 %v7327_v57, %v7318_v38  ;;  %v8236_v38 = vpack.c.bf16 %v7373_v0, %v7365_v63  ;;  %v8244_v53 = vmov 0  }
 0x961   : > { %v4416_v3 = vpop.eup %4415  ;;  %v3335_v1 = vadd.f32 %v7373_v0, %v3334_v23  ;;  %v3356_v47 = vadd.f32 %v4390_v9, %v3355_v40  ;;  %v3496_v0 = vld [vmem:[%s7613_s4] sm:$0xff]  ;;  %v4569_v63 = vmov 2  }
 0x962   : > { %3432 = vmatpush1.bf16.msra.mxu1 %v8226_v58  ;;  %v4418_v11 = vpop.eup %4417  ;;  %3889 = vset.pattern.permute.xlu0 %v4569_v63 }
 0x963   : > { %3433 = vmatprep.subr.bf16.mxu1 %v3396_v60  ;;  %v4420_v19 = vpop.eup %4419  ;;  %v3336_v55 = vadd.f32 %v7378_v35, %v3335_v1  ;;  %v3357_v5 = vadd.f32 %v4392_v50, %v3356_v47  ;;  %v3410_v36 = vpack.c.bf16 %v4418_v11, %v4416_v3  ;;  %3890 = vset.pattern.permute.xlu1 %v4569_v63 }
 0x964   : > { %v4422_v4 = vpop.eup %4421  ;;  %3502 = vperm.xlu0 %3889, %v3496_v0  }
 0x965   : > { %v4424_v7 = vpop.eup %4423  ;;  %v3337_v61 = vadd.f32 %v7386_v51, %v3336_v55  ;;  %v3358_v26 = vadd.f32 %v4394_v52, %v3357_v5  ;;  %v3412_v2 = vpack.c.bf16 %v4422_v4, %v4420_v19  ;;  %v8231_v52 = vpack.c.bf16 %v7290_v42, %v7284_v22 }
 0x966   : > { %3434 = vmatpush1.bf16.msra.mxu1 %v8227_v31  ;;  %v4426_v9 = vpop.eup %4425  ;;  %v8234_v22 = vpack.c.bf16 %v7342_v25, %v7335_v62  ;;  %v8237_v62 = vpack.c.bf16 %v7386_v51, %v7378_v35  ;;  %v8238_v25 = vld [vmem:[#allocation20_spill] sm:$0xff]  ;;  %v3497_v35 = vld [vmem:[%s7613_s4 + $0x8] sm:$0xff] }
 0x967   : > { %3435 = vmatprep.subr.bf16.mxu1 %v3398_v45  ;;  %v3359_v60 = vadd.f32 %v4396_v14, %v3358_v26  ;;  %v3414_v13 = vpack.c.bf16 %v4426_v9, %v4424_v7  ;;  %3507 = vperm.xlu1 %3890, %v3497_v35   ;;  %v3499_v51 = vld [vmem:[%s7613_s4 + $0x18] sm:$0xff] }
 0x968   : > { %3517 = vperm.xlu0 %3889, %v3499_v51  }
 0x969   : > { %v3360_v50 = vadd.f32 %v4398_v24, %v3359_v60 }
 0x96a   : > { %3436 = vmatpush1.bf16.msra.mxu1 %v8228_v44  ;;  %v3898_v44 = vld [vmem:[#allocation5 + $0x8] sm:$0xff]  }
 0x96b   : > { %3437 = vmatprep.subr.bf16.mxu1 %v3400_v46  ;;  %v3361_v21 = vadd.f32 %v4400_v48, %v3360_v50  ;;  %v3468_v50 = vld [vmem:[%s4717_s29] sm:$0xff] }
 0x96d   : > { %v3362_v43 = vadd.f32 %v4402_v12, %v3361_v21 }
 0x96e   : > { %3438 = vmatpush1.bf16.msra.mxu1 %v8230_v34  ;;  %v3472_v34 = vunpack.c.l.bf16 %v3468_v50 }
 0x96f   : > { %3439 = vmatprep.subr.bf16.mxu1 %v3402_v6  ;;  %v3363_v29 = vadd.f32 %v4404_v41, %v3362_v43  ;;  %v2750_v6 = vld [vmem:[#allocation3 + $0x30] sm:$0xf0] }
 0x970   : > { %v3417_v8 = vrot.slane %v2750_v6, 4 }
 0x971   : > { %v3364_v14 = vadd.f32 %v4406_v20, %v3363_v29  ;;  %v8239_v20 = vld [vmem:[#allocation17_spill] sm:$0xff]  ;;  %v3473_v29 = vunpack.c.h.bf16 %v3468_v50 }
 0x972   : > { %3440 = vmatpush1.bf16.msra.mxu1 %v8231_v52  ;;  %v8240_v15 = vpack.c.bf16 %v8238_v25, %v8239_v20 }
 0x973   : > { %3441 = vmatprep.subr.bf16.mxu1 %v3404_v33  ;;  %v3365_v45 = vadd.f32 %v4408_v18, %v3364_v14  ;;  %v8242_v18 = vld [vmem:[#allocation16_spill] sm:$0xff]  ;;  %v3498_v33 = vld [vmem:[%s7613_s4 + $0x10] sm:$0xff] }
 0x974   : > { %v8243_v17 = vpack.c.bf16 %v8241_v30, %v8242_v18  ;;  %3512 = vperm.xlu1 %3890, %v3498_v33  }
 0x975   : > { %v3366_v32 = vadd.f32 %v4410_v54, %v3365_v45  ;;  %v3338_v54 = vrot.slane %v3337_v61, 4 }
 0x976   : > { %3442 = vmatpush1.bf16.msra.mxu1 %v8232_v59  ;;  %v3474_v59 = vunpack.c.l.bf16 %v3469_v39 }
 0x977   : > { %3443 = vmatprep.subr.bf16.mxu1 %v3406_v10  ;;  %v3367_v24 = vadd.f32 %v4412_v49, %v3366_v32  ;;  %v3339_v23 = vadd.f32 %v3338_v54, %v3337_v61  ;;  %v8245_v61 = vld [vmem:[#allocation22_spill] sm:$0xff] }
 0x979   : > { %v3368_v48 = vadd.f32 %v4414_v28, %v3367_v24  ;;  %v3340_v10 = vrot.slane %v3339_v23, 2 }
 0x97a   : > { %3444 = vmatpush1.bf16.msra.mxu1 %v8233_v27  ;;  %v3475_v27 = vunpack.c.h.bf16 %v3469_v39 }
 0x97b   : > { %3445 = vmatprep.subr.bf16.mxu1 %v3408_v56  ;;  %v3369_v46 = vadd.f32 %v4416_v3, %v3368_v48  ;;  %v3341_v58 = vadd.f32 %v3340_v10, %v3339_v23 }
 0x97d   : > { %v3370_v42 = vadd.f32 %v4418_v11, %v3369_v46  ;;  %v3342_v1 = vrot.slane %v3341_v58, 1 }
 0x97e   : > { %3446 = vmatpush1.bf16.msra.mxu1 %v8234_v22 }
 0x97f   : > { %3447 = vmatprep.subr.bf16.mxu1 %v3410_v36  ;;  %v3371_v12 = vadd.f32 %v4420_v19, %v3370_v42  ;;  %v3343_v56 = vadd.f32 %v3342_v1, %v3341_v58 }
 0x981   : > { %v3372_v37 = vadd.f32 %v4422_v4, %v3371_v12  ;;  %4427 = vrcp.f32 %v3343_v56 }
 0x982   : > { %3448 = vmatpush1.bf16.msra.mxu1 %v8235_v16  ;;  %v3470_v16 = vld [vmem:[%s4717_s29 + $0x10] sm:$0xff] }
 0x983   : > { %3449 = vmatprep.subr.bf16.mxu1 %v3412_v2  ;;  %v3373_v41 = vadd.f32 %v4424_v7, %v3372_v37  ;;  %v3476_v6 = vunpack.c.l.bf16 %v3470_v16  ;;  %v3477_v25 = vunpack.c.h.bf16 %v3470_v16 }
 0x985   : > { %v3374_v57 = vadd.f32 %v4426_v9, %v3373_v41  ;;  %v8246_v9 = vld [vmem:[#allocation23_spill] sm:$0xff] }
 0x986   : > { %3450 = vmatpush1.bf16.msra.mxu1 %v8236_v38  ;;  %v3471_v38 = vld [vmem:[%s4717_s29 + $0x18] sm:$0xff]  ;;  %s3621_s29 = sshll.u32 %s7541_s15, 4  ;;  %s7556_s29 = int_to_ptr.vmem [resolvable:$true] %s3621_s29 }
 0x987   : > { %3451 = vmatprep.subr.bf16.mxu1 %v3414_v13  ;;  %v3375_v49 = vrot.slane %v3374_v57, 4  ;;  %v3897_v13 = vld [vmem:[#allocation5] sm:$0xff]   ;;  %s4459_s27 = scalar_lea.vmem %s7556_s29, 1024  ;;  %p4466_p1 = scmp.lt.s32.totalorder %s7556_s29, %s4464_s12 }
 0x988   : > { %p4460_p8 = scmp.ne.s32.totalorder %s7556_s29, %s4459_s27  ;;  %p4467_p3 = scmp.lt.s32.totalorder %s4465_s11, %s4459_s27 }
 0x989   : > { %v3376_v40 = vadd.f32 %v3375_v49, %v3374_v57 }
 0x98a   : > { %3452 = vmatpush1.bf16.msra.mxu1 %v8237_v62  ;;  %p4461_p11 = pnand %p4460_p8, %p8247_p10  ;;  %p4468_p5 = por %p4467_p3, %p4466_p1 }
 0x98b   : > { %3536 = vmatprep.subr.bf16.mxu1 %v8240_v15  ;;  %v3377_v28 = vrot.slane %v3376_v40, 2  ;;  %v4428_v19 = vpop.eup %4427  ;;  %v3478_v15 = vunpack.c.l.bf16 %v3471_v38 }
 0x98c   : > { %p4462_p13 = pneg %p4461_p11 }
 0x98d   : > { %3454 = vmatmul.mubr.bf16.vlgmr.msra.gmra.mrb[140].mxu1 %v3417_v8  ;;  %v3378_v3 = vadd.f32 %v3377_v28, %v3376_v40 }
 0x98e   : > { %3537 = vmatpush1.bf16.msra.mxu1 %v8243_v17  ;;  %3568 = vmatprep.mubr.bf16.mxu1 %v8244_v53  ;;  %p4469_p6 = pnand %p4468_p5, %p4462_p13 }
 0x98f   : > { %v3379_v47 = vrot.slane %v3378_v3, 1 }
 0x991   : > { %v3380_v11 = vadd.f32 %v3379_v47, %v3378_v3 }
 0x993   : > { %4429 = vrcp.f32 %v3380_v11 }
 0x99d   : > { %v4430_v5 = vpop.eup %4429 }
 0x9e3   : > { %v3503_v21 = vpop.permute.xlu0 %3502 }
 0x9e6   : > { %v3508_v52 = vpop.permute.xlu1 %3507 }
 0x9e7   : > { %v3518_v18 = vpop.permute.xlu0 %3517 }
 0x9f3   : > { %v3513_v57 = vpop.permute.xlu1 %3512 }
 0xa60   : > { %v3455_v55 = vpop.f32.mrb[140].mxu1 }
 0xa61   : > { %v3462_v36 = vmul.f32 %v4428_v19, %v3455_v55  ;;  %v3457_v4 = vpop.f32.mrb[141].mxu1 }
 0xa62   : > { %v3463_v31 = vmul.f32 %v4430_v5, %v3457_v4  ;;  %v3459_v7 = vpop.f32.mrb[142].mxu1 }
 0xa63   : > { %v3490_v26 = vpack.c.bf16 %v3462_v36, %v8245_v61  ;;  %v3460_v2 = vpop.f32.mrb[143].mxu1 }
 0xa64   : > { %v3491_v60 = vpack.c.bf16 %v3463_v31, %v8246_v9 }
 0xa66   : > { %3538 = vmatprep.subr.bf16.mxu1 %v3491_v60 }
 0xa67   : > { %3539 = vmatpush1.bf16.msra.mxu1 %v3490_v26 }
 0xa6a   : > { %3802 = vmatmul.mubr.msk.bf16.vlgmr.msra.gmra.mrb[144].mxu1 %vm435_vm0, %v3897_v13 }
 0xa6b   : > { %3578 = vmatprep.mubr.bf16.mxu1 %v8244_v53  ;;  %v3479_v53 = vunpack.c.h.bf16 %v3471_v38 }
 0xa72   : > { %3803 = vmatmul.mubr.msk.bf16.gmra.mrb[148].mxu1 %vm435_vm0, %v3898_v44 }
 0xb3d   : > { %v3570_v43 = vpop.f32.mrb[144].mxu1 }
 0xb3e   : > { %v3572_v14 = vpop.f32.mrb[145].mxu1  ;;  %v3571_v45 = vadd.f32 %v3570_v43, %v3503_v21 }
 0xb3f   : > { %v3574_v32 = vpop.f32.mrb[146].mxu1  ;;  %v3573_v24 = vadd.f32 %v3572_v14, %v3503_v21 }
 0xb40   : > { %v3589_v48 = vadd.f32 %v3571_v45, %v3472_v34  ;;  %v3575_v46 = vadd.f32 %v3574_v32, %v3508_v52  ;;  %v3576_v22 = vpop.f32.mrb[147].mxu1 }
 0xb41   : > { %v3590_v42 = vadd.f32 %v3573_v24, %v3473_v29  ;;  %v3577_v12 = vadd.f32 %v3576_v22, %v3508_v52 }
 0xb42   : > { %3597 = vst [vmem:[%s7541_s15] sm:$0xff] %v3589_v48  ;;  %v3591_v37 = vadd.f32 %v3575_v46, %v3474_v59 }
 0xb43   : > { %3598 = vst [vmem:[%s7541_s15 + $0x8] sm:$0xff] %v3590_v42  ;;  %v3592_v41 = vadd.f32 %v3577_v12, %v3475_v27 }
 0xb44   : > { %3599 = vst [vmem:[%s7541_s15 + $0x10] sm:$0xff] %v3591_v37 }
 0xb45   : > { %3600 = vst [vmem:[%s7541_s15 + $0x18] sm:$0xff] %v3592_v41  ;;  %v3580_v62 = vpop.f32.mrb[148].mxu1 }
 0xb46   : > { %v3582_v20 = vpop.f32.mrb[149].mxu1  ;;  %v3581_v8 = vadd.f32 %v3580_v62, %v3513_v57 }
 0xb47   : > { %v3584_v30 = vpop.f32.mrb[150].mxu1  ;;  %v3583_v17 = vadd.f32 %v3582_v20, %v3513_v57 }
 0xb48   : > { %v3585_v0 = vadd.f32 %v3584_v30, %v3518_v18  ;;  %v3593_v35 = vadd.f32 %v3581_v8, %v3476_v6  ;;  %v3586_v63 = vpop.f32.mrb[151].mxu1 }
 0xb49   : > { %v3594_v51 = vadd.f32 %v3583_v17, %v3477_v25  ;;  %v3587_v33 = vadd.f32 %v3586_v63, %v3518_v18 }
 0xb4a   : > { %v3595_v54 = vadd.f32 %v3585_v0, %v3478_v15  ;;  %3601 = vst [vmem:[%s7541_s15 + $0x20] sm:$0xff] %v3593_v35 }
 0xb4b   : > { %3602 = vst [vmem:[%s7541_s15 + $0x28] sm:$0xff] %v3594_v51  ;;  %v3596_v49 = vadd.f32 %v3587_v33, %v3479_v53 }
 0xb4c   : > { %3603 = vst [vmem:[%s7541_s15 + $0x30] sm:$0xff] %v3595_v54 }
 0xb4d   : > { %3604 = vst [vmem:[%s7541_s15 + $0x38] sm:$0xff] %v3596_v49 }
 0xb4e   : > { %4472 = shalt.err (!%p4469_p6)
}
 0xb4f   : > { %s4473_s10 = scalar_lea.hbm %s7554_s25, 1024  ;;  %s4477_s13 = scalar_lea.hbm %s7614_s5, 2048 }
 0xb50   : > { %p4474_p7 = scmp.ne.s32.totalorder %s7554_s25, %s4473_s10  ;;  %p4478_p0 = scmp.lt.u32.totalorder %s7554_s25, %s7614_s5 }
 0xb51   : > { %p4479_p2 = scmp.lt.u32.totalorder %s4477_s13, %s4473_s10  ;;  %p4481_p8 = scmp.lt.u32.totalorder %s4473_s10, %s7554_s25 }
 0xb52   : > { %p4475_p9 = pnand %p4474_p7, %p8247_p10 }
 0xb53   : > { %p4480_p4 = por %p4479_p2, %p4478_p0 }
 0xb54   : > { %p4476_p12 = pneg %p4475_p9 }
 0xb55   : > { %p4482_p11 = por %p4481_p8, %p4480_p4 }
 0xb57   : > { %p4483_p13 = pnand %p4482_p11, %p4476_p12 }
 0xb59   : > { %4486 = shalt.err (!%p4483_p13)
}
 0xb5a   : > { %s4571_s16 = smov 256   ;;  %s4572_s17 = smov 16  }
 0xb5b   : > { %3815 = dma.vmem_to_hbm [thread:$0]  (%p8247_p10), %s7556_s29, 1024, %s7554_s25, %s7563_s21, %s4571_s16, %s4571_s16, %s4572_s17  }
 0xb5c PF: > { %p3827_p1 = scmp.ge.s32.totalorder %s4561_s23, 2  ;;  %s3636_s24 = sand.u32 1, %s4541_s18  }
 0xb5d   : > { %p8248_p3 = scmp.ne.s32.totalorder %s7802_s30, 0  ;;  %s3637_s27 = scalar_lea.sflag [#allocation7], %s3636_s24 }
 0xb5f   : > { %p3822_p5 = pnand %p3827_p1, %p8248_p3 }
 0xb61   : > { %4516 = dma.done.wait (!%p3822_p5), %s3637_s27, 1024  }
 0xb62   : > { %4518 = vsyncadd (!%p3822_p5), %s3637_s27, 4294966272  ;;  %s19_s23 = sadd.s32 1, %s4561_s23   ;;  %s8249_s18 = smov %s4545_s19 }
 0xb63   : > { %p16_p6 = scmp.ge.s32.totalorder %s19_s23, 4   ;;  %s8250_s19 = smov %s4549_s20 }
 0xb64   : > { %s8251_s20 = smov %s4656_s6  ;;  %s8252_s21 = smov %s4557_s22 }
 0xb65   : > { %s8253_s22 = smov %s8255_s26  ;;  %18 = sbr.rel (!%p16_p6) target bundleno = 5 (0x5), region = 86 }
 0xb6c   :  { %3642 = vsyncpa [#allocation6], 1 }
 0xb6d   :  { %3644 = vsyncpa [#allocation6 + $0x1], 1 }
 0xb6e   :  { %3645 = vsyncpa [#allocation7], 1 }
 0xb6f   :  { %3647 = vsyncpa [#allocation7 + $0x1], 1 }

</bundles_post_ra>
